<compile_context>
chip_gen: v6e
topology: v6e:2x2x1
jax: 0.10.0
libtpu: 0.0.40
codegen_flags: <defaults>
</compile_context>

<pallas_src>
import functools
import jax
import jax.numpy as jnp
from jax.experimental import pallas as pl
from jax.experimental.pallas import tpu as pltpu

_SQRT_HALF = 0.7071067811865476


def _erf_f32(x):
    # XLA/Eigen float erf rational approximation (mul/add/div only, so it always
    # lowers inside a Pallas TPU kernel). |err| < 1e-6 vs exact erf, matching
    # torch's nn.GELU() (exact, erf-based).
    a = (-2.72614225801306e-10, 2.77068142495902e-08, -2.10102402082508e-06,
         -5.69250639462346e-05, -7.34990630326855e-04, -2.95459980854025e-03,
         -1.60960333262415e-02)
    b = (-1.45660718464996e-05, -2.13374055278905e-04, -1.68282697438203e-03,
         -7.37332916720468e-03, -1.42647390514189e-02)
    x = jnp.clip(x, -4.0, 4.0)
    t = x * x
    p = a[0]
    for c in a[1:]:
        p = p * t + c
    q = b[0]
    for c in b[1:]:
        q = q * t + c
    return x * p / q


def _gelu_exact(x):
    return 0.5 * x * (1.0 + _erf_f32(x * _SQRT_HALF))


def _pick_tile(total, target, mult=8):
    """Largest divisor of `total` that is <= target and a multiple of `mult`
    (falls back to `total` -> single block)."""
    if total <= target:
        return total
    for t in range(min(total, target), 0, -1):
        if total % t == 0 and t % mult == 0:
            return t
    return total


# ----------------------------- Encoder kernel --------------------------------
# One grid step = Gb point groups. Pointwise convs are flattened to
# (Gb*N, Cin) @ (Cin, Cout) matmuls; the two max-pools and the global-feature
# concat work on the (Gb, N, C) view. BN(eval) is pre-folded into w1/w3.
def _encoder_kernel(pg_ref, w1, b1, w2, b2, w3, b3, w4, b4, out_ref):
    Gb, N, _ = pg_ref.shape
    pg = pg_ref[...].reshape(Gb * N, 3)
    h = jnp.maximum(
        jnp.dot(pg, w1[...], preferred_element_type=jnp.float32) + b1[...], 0.0)
    feat = jnp.dot(h, w2[...], preferred_element_type=jnp.float32) + b2[...]   # (Gb*N, 256)
    fglob = jnp.max(feat.reshape(Gb, N, -1), axis=1, keepdims=True)            # (Gb, 1, 256)
    fglob_b = jnp.broadcast_to(
        fglob, (Gb, N, fglob.shape[-1])).reshape(Gb * N, -1)
    feat = jnp.concatenate([fglob_b, feat], axis=-1)                           # (Gb*N, 512)
    h2 = jnp.maximum(
        jnp.dot(feat, w3[...], preferred_element_type=jnp.float32) + b3[...], 0.0)
    h2 = jnp.dot(h2, w4[...], preferred_element_type=jnp.float32) + b4[...]    # (Gb*N, Ce)
    out_ref[...] = jnp.max(h2.reshape(Gb, N, -1), axis=1)                      # (Gb, Ce)


def encoder_forward(point_groups, p, group_tile=32):
    BG, N, _ = point_groups.shape
    Ce = p["w4"].shape[1]
    Gb = _pick_tile(BG, group_tile)
    weights = [p["w1"], p["b1"], p["w2"], p["b2"], p["w3"], p["b3"],
               p["w4"], p["b4"]]

    def full_spec(a):
        nd = a.ndim
        return pl.BlockSpec(a.shape, lambda i, nd=nd: (0,) * nd)

    return pl.pallas_call(
        _encoder_kernel,
        out_shape=jax.ShapeDtypeStruct((BG, Ce), jnp.float32),
        grid=(BG // Gb,),
        in_specs=[pl.BlockSpec((Gb, N, 3), lambda i: (i, 0, 0))]
                 + [full_spec(a) for a in weights],
        out_specs=pl.BlockSpec((Gb, Ce), lambda i: (i, 0)),
        compiler_params=pltpu.CompilerParams(dimension_semantics=("parallel",)),
    )(point_groups, *weights)


# ---------------------------- pos_embed kernel --------------------------------
# Single grid step over all B*G centers (per-step work is tiny, so one launch).
def _pos_embed_kernel(c_ref, w1, b1, w2, b2, out_ref):
    h = _gelu_exact(
        jnp.dot(c_ref[...], w1[...], preferred_element_type=jnp.float32) + b1[...])
    out_ref[...] = jnp.dot(h, w2[...], preferred_element_type=jnp.float32) + b2[...]


def pos_embed_forward(center_flat, p):
    M, _ = center_flat.shape
    C = p["pe2_w"].shape[1]
    weights = [p["pe1_w"], p["pe1_b"], p["pe2_w"], p["pe2_b"]]

    def full_spec(a):
        nd = a.ndim
        return pl.BlockSpec(a.shape, lambda i, nd=nd: (0,) * nd)

    return pl.pallas_call(
        _pos_embed_kernel,
        out_shape=jax.ShapeDtypeStruct((M, C), jnp.float32),
        grid=(1,),
        in_specs=[pl.BlockSpec((M, 3), lambda i: (0, 0))]
                 + [full_spec(a) for a in weights],
        out_specs=pl.BlockSpec((M, C), lambda i: (0, 0)),
    )(center_flat, *weights)


# --------------------------- Transformer kernel --------------------------------
# grid = (B // Bt, depth): the whole batch tile lives in one block, so per-depth
# weights are streamed once per depth (not once per batch element). The carry
# across depth is held in a (Bt, L, C) VMEM scratch; per-batch-row math unrolls
# as small static Python loops. Final LayerNorm applied at the last depth.
def _transformer_kernel(x_ref, pos_ref, g1, be1, wqkv, wproj, bproj,
                        g2, be2, wfc1, bfc1, wfc2, bfc2, gf, bf,
                        out_ref, acc_ref, *, num_heads, head_dim, eps=1e-5):
    d = pl.program_id(1)

    @pl.when(d == 0)
    def _():
        acc_ref[...] = x_ref[...]

    def layer_norm(v, g, b):
        mu = jnp.mean(v, axis=-1, keepdims=True)
        var = jnp.mean((v - mu) * (v - mu), axis=-1, keepdims=True)
        return (v - mu) * jax.lax.rsqrt(var + eps) * g + b

    # Hoist the per-depth weight reads out of the batch loop.
    wqkv_m, wproj_m = wqkv[0], wproj[0]          # (C, 3C), (C, C)
    wfc1_m, wfc2_m = wfc1[0], wfc2[0]            # (C, 4C), (4C, C)
    g1v, be1v, g2v, be2v = g1[0], be1[0], g2[0], be2[0]
    bprojv, bfc1v, bfc2v = bproj[0], bfc1[0], bfc2[0]

    Bt = acc_ref.shape[0]
    C = acc_ref.shape[-1]
    scale = head_dim ** -0.5
    dot_qkT = (((1,), (1,)), ((), ()))           # contract last dims (q @ k^T)

    for b in range(Bt):
        x = acc_ref[b] + pos_ref[b]                                  # (L, C)

        # --- Attention ---
        xn = layer_norm(x, g1v, be1v)
        qkv = jnp.dot(xn, wqkv_m, preferred_element_type=jnp.float32)  # (L, 3C)
        q, k, v = qkv[:, :C], qkv[:, C:2 * C], qkv[:, 2 * C:]
        heads = []
        for h in range(num_heads):
            sl = slice(h * head_dim, (h + 1) * head_dim)
            s = jax.lax.dot_general(q[:, sl], k[:, sl], dot_qkT,
                                    preferred_element_type=jnp.float32) * scale
            s = jnp.exp(s - jnp.max(s, axis=-1, keepdims=True))
            s = s / jnp.sum(s, axis=-1, keepdims=True)
            heads.append(jnp.dot(s, v[:, sl],
                                 preferred_element_type=jnp.float32))  # (L, hd)
        o = jnp.concatenate(heads, axis=-1)                            # (L, C)
        x = x + jnp.dot(o, wproj_m, preferred_element_type=jnp.float32) + bprojv

        # --- MLP ---
        xn2 = layer_norm(x, g2v, be2v)
        hmid = _gelu_exact(
            jnp.dot(xn2, wfc1_m, preferred_element_type=jnp.float32) + bfc1v)
        x = x + jnp.dot(hmid, wfc2_m, preferred_element_type=jnp.float32) + bfc2v

        acc_ref[b] = x

    @pl.when(d == pl.num_programs(1) - 1)
    def _():
        out_ref[...] = layer_norm(acc_ref[...], gf[...], bf[...])


def transformer_forward(x, pos, bp, gf, bf, num_heads, batch_tile=None):
    B, L, C = x.shape
    depth = bp["wqkv"].shape[0]
    head_dim = C // num_heads
    Bt = B if batch_tile is None else batch_tile   # set < B on v7x for 2 TCs
    assert B % Bt == 0

    per_depth = [bp["g1"], bp["be1"], bp["wqkv"], bp["wproj"], bp["bproj"],
                 bp["g2"], bp["be2"], bp["wfc1"], bp["bfc1"], bp["wfc2"],
                 bp["bfc2"]]

    def depth_spec(a):
        nd = a.ndim
        return pl.BlockSpec((1,) + a.shape[1:],
                            lambda b, d, nd=nd: (d,) + (0,) * (nd - 1))

    def full_spec(a):
        nd = a.ndim
        return pl.BlockSpec(a.shape, lambda b, d, nd=nd: (0,) * nd)

    kernel = functools.partial(_transformer_kernel,
                               num_heads=num_heads, head_dim=head_dim)
    return pl.pallas_call(
        kernel,
        out_shape=jax.ShapeDtypeStruct((B, L, C), jnp.float32),
        grid=(B // Bt, depth),
        in_specs=[pl.BlockSpec((Bt, L, C), lambda b, d: (b, 0, 0)),
                  pl.BlockSpec((Bt, L, C), lambda b, d: (b, 0, 0))]
                 + [depth_spec(a) for a in per_depth]
                 + [full_spec(gf), full_spec(bf)],
        out_specs=pl.BlockSpec((Bt, L, C), lambda b, d: (b, 0, 0)),
        scratch_shapes=[pltpu.VMEM((Bt, L, C), jnp.float32)],
        compiler_params=pltpu.CompilerParams(
            dimension_semantics=("parallel", "arbitrary")),
    )(x, pos, *per_depth, gf, bf)


# ------------------------------ parameters ------------------------------------
# All weights stored pre-transposed as (Cin, Cout); eval-mode BN (running stats
# mean=0, var=1) folded into w1/w3 (W' = s*W, b' = s*b + t with s=1/sqrt(1+eps)).
def init_params(key, trans_dim=128, encoder_dims=128, depth=2, num_heads=4,
                mlp_ratio=4):
    C, Ce = trans_dim, encoder_dims
    ks = jax.random.split(key, 16)
    std = 0.02

    def tn(k, shape):  # stand-in for trunc_normal_(std=0.02); deterministic
        return (std * jax.random.normal(k, shape)).astype(jnp.float32)

    bn_scale = (1.0 / jnp.sqrt(jnp.float32(1.0 + 1e-5))).astype(jnp.float32)
    zeros = lambda s: jnp.zeros(s, jnp.float32)
    ones = lambda s: jnp.ones(s, jnp.float32)

    return dict(
        enc=dict(
            w1=tn(ks[0], (3, 128)) * bn_scale, b1=zeros((1, 128)),
            w2=tn(ks[1], (128, 256)), b2=zeros((1, 256)),
            w3=tn(ks[2], (512, 512)) * bn_scale, b3=zeros((1, 512)),
            w4=tn(ks[3], (512, Ce)), b4=zeros((1, Ce)),
        ),
        pos=dict(
            pe1_w=tn(ks[4], (3, 128)), pe1_b=zeros((1, 128)),
            pe2_w=tn(ks[5], (128, C)), pe2_b=zeros((1, C)),
        ),
        img_token=zeros((1, 1, C)),
        text_token=zeros((1, 1, C)),
        img_pos=jax.random.normal(ks[6], (1, 1, C)).astype(jnp.float32),
        text_pos=jax.random.normal(ks[7], (1, 1, C)).astype(jnp.float32),
        blocks=dict(
            g1=ones((depth, 1, C)), be1=zeros((depth, 1, C)),
            wqkv=tn(ks[8], (depth, C, 3 * C)),             # qkv_bias=False
            wproj=tn(ks[9], (depth, C, C)), bproj=zeros((depth, 1, C)),
            wfc1=tn(ks[10], (depth, C, mlp_ratio * C)),
            bfc1=zeros((depth, 1, mlp_ratio * C)),
            wfc2=tn(ks[11], (depth, mlp_ratio * C, C)),
            bfc2=zeros((depth, 1, C)),
            g2=ones((depth, 1, C)), be2=zeros((depth, 1, C)),
        ),
        norm_g=ones((1, C)),
        norm_b=zeros((1, C)),
        num_heads=num_heads,
    )


# ------------------------- DisTransformer.forward ------------------------------
def dis_transformer_forward(neighborhood, center, params):
    B, G, N, _ = neighborhood.shape
    C = params["norm_g"].shape[-1]
    tokens = encoder_forward(neighborhood.reshape(B * G, N, 3), params["enc"])
    tokens = tokens.reshape(B, G, C)
    pos = pos_embed_forward(center.reshape(B * G, 3), params["pos"]).reshape(B, G, C)
    img_tok = jnp.broadcast_to(params["img_token"], (B, 1, C))
    txt_tok = jnp.broadcast_to(params["text_token"], (B, 1, C))
    img_pos = jnp.broadcast_to(params["img_pos"], (B, 1, C))
    txt_pos = jnp.broadcast_to(params["text_pos"], (B, 1, C))
    x = jnp.concatenate([img_tok, txt_tok, tokens], axis=1)
    pos_full = jnp.concatenate([img_pos, txt_pos, pos], axis=1)
    x = transformer_forward(x, pos_full, params["blocks"], params["norm_g"],
                            params["norm_b"], params["num_heads"])
    return x[:, 0], x[:, 1]


# ------------------------------ pure-JAX reference -----------------------------
def _ref_layer_norm(v, g, b, eps=1e-5):
    mu = jnp.mean(v, axis=-1, keepdims=True)
    var = jnp.mean((v - mu) ** 2, axis=-1, keepdims=True)
    return (v - mu) / jnp.sqrt(var + eps) * g + b


def reference_forward(neighborhood, center, params):
    B, G, N, _ = neighborhood.shape
    e = params["enc"]
    pg = neighborhood.reshape(B * G, N, 3)
    h = jnp.maximum(pg @ e["w1"] + e["b1"], 0.0)
    feat = h @ e["w2"] + e["b2"]
    fglob = jnp.max(feat, axis=1, keepdims=True)
    feat = jnp.concatenate([jnp.broadcast_to(fglob, feat.shape), feat], axis=-1)
    h2 = jnp.maximum(feat @ e["w3"] + e["b3"], 0.0)
    h2 = h2 @ e["w4"] + e["b4"]
    tokens = jnp.max(h2, axis=1).reshape(B, G, -1)

    pp = params["pos"]
    c = center.reshape(B, -1, 3)
    pos = _gelu_exact(c @ pp["pe1_w"] + pp["pe1_b"]) @ pp["pe2_w"] + pp["pe2_b"]

    C = tokens.shape[-1]
    x = jnp.concatenate([jnp.broadcast_to(params["img_token"], (B, 1, C)),
                         jnp.broadcast_to(params["text_token"], (B, 1, C)),
                         tokens], axis=1)
    pos = jnp.concatenate([jnp.broadcast_to(params["img_pos"], (B, 1, C)),
                           jnp.broadcast_to(params["text_pos"], (B, 1, C)),
                           pos], axis=1)

    bp = params["blocks"]
    H = params["num_heads"]
    hd = C // H
    for d in range(bp["wqkv"].shape[0]):
        xi = x + pos
        xn = _ref_layer_norm(xi, bp["g1"][d], bp["be1"][d])
        qkv = xn @ bp["wqkv"][d]
        q, k, v = qkv[..., :C], qkv[..., C:2 * C], qkv[..., 2 * C:]
        q = q.reshape(B, -1, H, hd).transpose(0, 2, 1, 3)
        k = k.reshape(B, -1, H, hd).transpose(0, 2, 1, 3)
        v = v.reshape(B, -1, H, hd).transpose(0, 2, 1, 3)
        s = jax.nn.softmax(jnp.einsum("bhld,bhmd->bhlm", q, k) * hd ** -0.5, -1)
        o = jnp.einsum("bhlm,bhmd->bhld", s, v).transpose(0, 2, 1, 3)
        o = o.reshape(B, -1, C) @ bp["wproj"][d] + bp["bproj"][d]
        xi = xi + o
        xn2 = _ref_layer_norm(xi, bp["g2"][d], bp["be2"][d])
        m = _gelu_exact(xn2 @ bp["wfc1"][d] + bp["bfc1"][d])
        x = xi + m @ bp["wfc2"][d] + bp["bfc2"][d]
    x = _ref_layer_norm(x, params["norm_g"], params["norm_b"])
    return x[:, 0], x[:, 1]


if __name__ == "__main__":
    key = jax.random.PRNGKey(0)
    kp, kn, kc = jax.random.split(key, 3)
    B, G, N = 2, 8, 32           # batch, groups (seq), points per group
    TRANS_DIM, DEPTH, HEADS = 128, 2, 4

    params = init_params(kp, trans_dim=TRANS_DIM, encoder_dims=TRANS_DIM,
                         depth=DEPTH, num_heads=HEADS)
    neighborhood = jax.random.normal(kn, (B, G, N, 3), jnp.float32)
    center = jax.random.normal(kc, (B, G, 3), jnp.float32)

    img_feat, text_feat = dis_transformer_forward(neighborhood, center, params)
    jax.block_until_ready((img_feat, text_feat))

    ref_img, ref_text = reference_forward(neighborhood, center, params)
    assert img_feat.shape == (B, TRANS_DIM) and text_feat.shape == (B, TRANS_DIM)
    assert jnp.allclose(img_feat, ref_img, atol=1e-2, rtol=1e-2)
    assert jnp.allclose(text_feat, ref_text, atol=1e-2, rtol=1e-2)
    print("KERNEL_OK")
</pallas_src>

<mosaic_0001>
module attributes {stable_mosaic.version = 11 : i64} {
  func.func @_encoder_kernel(%arg0: i32, %arg1: memref<16x32x3xf32, #tpu.memory_space<vmem>>, %arg2: memref<3x128xf32, #tpu.memory_space<vmem>>, %arg3: memref<1x128xf32, #tpu.memory_space<vmem>>, %arg4: memref<128x256xf32, #tpu.memory_space<vmem>>, %arg5: memref<1x256xf32, #tpu.memory_space<vmem>>, %arg6: memref<512x512xf32, #tpu.memory_space<vmem>>, %arg7: memref<1x512xf32, #tpu.memory_space<vmem>>, %arg8: memref<512x128xf32, #tpu.memory_space<vmem>>, %arg9: memref<1x128xf32, #tpu.memory_space<vmem>>, %arg10: memref<16x128xf32, #tpu.memory_space<vmem>>) attributes {dimension_semantics = [#tpu.dimension_semantics<parallel>], iteration_bounds = array<i64: 1>, scalar_prefetch = 0 : i64, scratch_operands = 0 : i64, tpu.core_type = #tpu.core_type<tc>, window_params = [{transform_indices = @transform_0, window_bounds = array<i64: 16, 32, 3>}, {pipeline_mode = #tpu.pipeline_mode<synchronous>, transform_indices = @transform_1, window_bounds = array<i64: 3, 128>}, {pipeline_mode = #tpu.pipeline_mode<synchronous>, transform_indices = @transform_2, window_bounds = array<i64: 1, 128>}, {pipeline_mode = #tpu.pipeline_mode<synchronous>, transform_indices = @transform_3, window_bounds = array<i64: 128, 256>}, {pipeline_mode = #tpu.pipeline_mode<synchronous>, transform_indices = @transform_4, window_bounds = array<i64: 1, 256>}, {pipeline_mode = #tpu.pipeline_mode<synchronous>, transform_indices = @transform_5, window_bounds = array<i64: 512, 512>}, {pipeline_mode = #tpu.pipeline_mode<synchronous>, transform_indices = @transform_6, window_bounds = array<i64: 1, 512>}, {pipeline_mode = #tpu.pipeline_mode<synchronous>, transform_indices = @transform_7, window_bounds = array<i64: 512, 128>}, {pipeline_mode = #tpu.pipeline_mode<synchronous>, transform_indices = @transform_8, window_bounds = array<i64: 1, 128>}, {transform_indices = @transform_9, window_bounds = array<i64: 16, 128>}]} {
    %c0 = arith.constant 0 : index
    %c0_0 = arith.constant 0 : index
    %c0_1 = arith.constant 0 : index
    %0 = vector.load %arg1[%c0, %c0_0, %c0_1] : memref<16x32x3xf32, #tpu.memory_space<vmem>>, vector<16x32x3xf32>
    %1 = vector.shape_cast %0 : vector<16x32x3xf32> to vector<512x3xf32>
    %c0_2 = arith.constant 0 : index
    %c0_3 = arith.constant 0 : index
    %2 = vector.load %arg2[%c0_2, %c0_3] : memref<3x128xf32, #tpu.memory_space<vmem>>, vector<3x128xf32>
    %cst = arith.constant dense<0.000000e+00> : vector<512x128xf32>
    %3 = tpu.matmul %1, %2, %cst {dimension_numbers = #tpu.dot_dimension_numbers<[1], [0], [0], [1], [0, 0, 1, 1], [], []>} : vector<512x3xf32>, vector<3x128xf32>, vector<512x128xf32> -> vector<512x128xf32>
    %c0_4 = arith.constant 0 : index
    %c0_5 = arith.constant 0 : index
    %4 = vector.load %arg3[%c0_4, %c0_5] : memref<1x128xf32, #tpu.memory_space<vmem>>, vector<1x128xf32>
    %5 = vector.broadcast %4 : vector<1x128xf32> to vector<512x128xf32>
    %6 = arith.addf %3, %5 : vector<512x128xf32>
    %cst_6 = arith.constant 0.000000e+00 : f32
    %7 = vector.broadcast %cst_6 : f32 to vector<512x128xf32>
    %8 = arith.maximumf %6, %7 : vector<512x128xf32>
    %c0_7 = arith.constant 0 : index
    %c0_8 = arith.constant 0 : index
    %9 = vector.load %arg4[%c0_7, %c0_8] : memref<128x256xf32, #tpu.memory_space<vmem>>, vector<128x256xf32>
    %cst_9 = arith.constant dense<0.000000e+00> : vector<512x256xf32>
    %10 = tpu.matmul %8, %9, %cst_9 {dimension_numbers = #tpu.dot_dimension_numbers<[1], [0], [0], [1], [0, 0, 1, 1], [], []>} : vector<512x128xf32>, vector<128x256xf32>, vector<512x256xf32> -> vector<512x256xf32>
    %c0_10 = arith.constant 0 : index
    %c0_11 = arith.constant 0 : index
    %11 = vector.load %arg5[%c0_10, %c0_11] : memref<1x256xf32, #tpu.memory_space<vmem>>, vector<1x256xf32>
    %12 = vector.broadcast %11 : vector<1x256xf32> to vector<512x256xf32>
    %13 = arith.addf %10, %12 : vector<512x256xf32>
    %14 = vector.shape_cast %13 : vector<512x256xf32> to vector<16x32x256xf32>
    %cst_12 = arith.constant dense<0xFF800000> : vector<16x256xf32>
    %15 = vector.multi_reduction <maximumf>, %14, %cst_12 [1] : vector<16x32x256xf32> to vector<16x256xf32>
    %16 = vector.shape_cast %15 : vector<16x256xf32> to vector<16x1x256xf32>
    %17 = vector.shape_cast %16 : vector<16x1x256xf32> to vector<16x1x256xf32>
    %18 = vector.broadcast %17 : vector<16x1x256xf32> to vector<16x32x256xf32>
    %19 = vector.shape_cast %18 : vector<16x32x256xf32> to vector<512x256xf32>
    %20 = tpu.concatenate %19, %13 in 1 : vector<512x256xf32>, vector<512x256xf32> -> vector<512x512xf32>
    %c0_13 = arith.constant 0 : index
    %c0_14 = arith.constant 0 : index
    %21 = vector.load %arg6[%c0_13, %c0_14] : memref<512x512xf32, #tpu.memory_space<vmem>>, vector<512x512xf32>
    %cst_15 = arith.constant dense<0.000000e+00> : vector<512x512xf32>
    %22 = tpu.matmul %20, %21, %cst_15 {dimension_numbers = #tpu.dot_dimension_numbers<[1], [0], [0], [1], [0, 0, 1, 1], [], []>} : vector<512x512xf32>, vector<512x512xf32>, vector<512x512xf32> -> vector<512x512xf32>
    %c0_16 = arith.constant 0 : index
    %c0_17 = arith.constant 0 : index
    %23 = vector.load %arg7[%c0_16, %c0_17] : memref<1x512xf32, #tpu.memory_space<vmem>>, vector<1x512xf32>
    %24 = vector.broadcast %23 : vector<1x512xf32> to vector<512x512xf32>
    %25 = arith.addf %22, %24 : vector<512x512xf32>
    %cst_18 = arith.constant 0.000000e+00 : f32
    %26 = vector.broadcast %cst_18 : f32 to vector<512x512xf32>
    %27 = arith.maximumf %25, %26 : vector<512x512xf32>
    %c0_19 = arith.constant 0 : index
    %c0_20 = arith.constant 0 : index
    %28 = vector.load %arg8[%c0_19, %c0_20] : memref<512x128xf32, #tpu.memory_space<vmem>>, vector<512x128xf32>
    %cst_21 = arith.constant dense<0.000000e+00> : vector<512x128xf32>
    %29 = tpu.matmul %27, %28, %cst_21 {dimension_numbers = #tpu.dot_dimension_numbers<[1], [0], [0], [1], [0, 0, 1, 1], [], []>} : vector<512x512xf32>, vector<512x128xf32>, vector<512x128xf32> -> vector<512x128xf32>
    %c0_22 = arith.constant 0 : index
    %c0_23 = arith.constant 0 : index
    %30 = vector.load %arg9[%c0_22, %c0_23] : memref<1x128xf32, #tpu.memory_space<vmem>>, vector<1x128xf32>
    %31 = vector.broadcast %30 : vector<1x128xf32> to vector<512x128xf32>
    %32 = arith.addf %29, %31 : vector<512x128xf32>
    %33 = vector.shape_cast %32 : vector<512x128xf32> to vector<16x32x128xf32>
    %cst_24 = arith.constant dense<0xFF800000> : vector<16x128xf32>
    %34 = vector.multi_reduction <maximumf>, %33, %cst_24 [1] : vector<16x32x128xf32> to vector<16x128xf32>
    %c0_25 = arith.constant 0 : index
    %c0_26 = arith.constant 0 : index
    %35 = vector.load %arg10[%c0_25, %c0_26] : memref<16x128xf32, #tpu.memory_space<vmem>>, vector<16x128xf32>
    tpu.vector_store %arg10[%c0_25, %c0_26], %34 {strides = array<i32>} : memref<16x128xf32, #tpu.memory_space<vmem>>, vector<16x128xf32>,
    return
  }
  func.func @transform_0(%arg0: i32) -> (i32, i32, i32) {
    %c0_i32 = arith.constant 0 : i32
    %c0_i32_0 = arith.constant 0 : i32
    %c0_i32_1 = arith.constant 0 : i32
    return %arg0, %c0_i32, %c0_i32_0 : i32, i32, i32
  }
  func.func @transform_1(%arg0: i32) -> (i32, i32) {
    %c0_i32 = arith.constant 0 : i32
    %c0_i32_0 = arith.constant 0 : i32
    %c0_i32_1 = arith.constant 0 : i32
    return %c0_i32, %c0_i32_0 : i32, i32
  }
  func.func @transform_2(%arg0: i32) -> (i32, i32) {
    %c0_i32 = arith.constant 0 : i32
    %c0_i32_0 = arith.constant 0 : i32
    %c0_i32_1 = arith.constant 0 : i32
    return %c0_i32, %c0_i32_0 : i32, i32
  }
  func.func @transform_3(%arg0: i32) -> (i32, i32) {
    %c0_i32 = arith.constant 0 : i32
    %c0_i32_0 = arith.constant 0 : i32
    %c0_i32_1 = arith.constant 0 : i32
    return %c0_i32, %c0_i32_0 : i32, i32
  }
  func.func @transform_4(%arg0: i32) -> (i32, i32) {
    %c0_i32 = arith.constant 0 : i32
    %c0_i32_0 = arith.constant 0 : i32
    %c0_i32_1 = arith.constant 0 : i32
    return %c0_i32, %c0_i32_0 : i32, i32
  }
  func.func @transform_5(%arg0: i32) -> (i32, i32) {
    %c0_i32 = arith.constant 0 : i32
    %c0_i32_0 = arith.constant 0 : i32
    %c0_i32_1 = arith.constant 0 : i32
    return %c0_i32, %c0_i32_0 : i32, i32
  }
  func.func @transform_6(%arg0: i32) -> (i32, i32) {
    %c0_i32 = arith.constant 0 : i32
    %c0_i32_0 = arith.constant 0 : i32
    %c0_i32_1 = arith.constant 0 : i32
    return %c0_i32, %c0_i32_0 : i32, i32
  }
  func.func @transform_7(%arg0: i32) -> (i32, i32) {
    %c0_i32 = arith.constant 0 : i32
    %c0_i32_0 = arith.constant 0 : i32
    %c0_i32_1 = arith.constant 0 : i32
    return %c0_i32, %c0_i32_0 : i32, i32
  }
  func.func @transform_8(%arg0: i32) -> (i32, i32) {
    %c0_i32 = arith.constant 0 : i32
    %c0_i32_0 = arith.constant 0 : i32
    %c0_i32_1 = arith.constant 0 : i32
    return %c0_i32, %c0_i32_0 : i32, i32
  }
  func.func @transform_9(%arg0: i32) -> (i32, i32) {
    %c0_i32 = arith.constant 0 : i32
    %c0_i32_0 = arith.constant 0 : i32
    return %arg0, %c0_i32 : i32, i32
  }
}

</mosaic_0001>

<bundles_post_ra>
// kernel: tpu_custom_call.1
= control target key start
LH: loop header
LB: loop body
LE: loop exit
PB: predicated region body
PF: predicated region fallthrough
CT: control target
= control target key end

     0   :  { %14 = vsyncpa [#allocation3], 0  ;;  %s8940_s0 = inlined_call_operand.vmem [shape: f32[16,32,3], index: 0, kind: input, shape index: {}]   ;;  %s8941_s1 = inlined_call_operand.vmem [shape: f32[3,128], index: 1, kind: input, shape index: {}]   ;;  %s8942_s2 = inlined_call_operand.vmem [shape: f32[1,128], index: 2, kind: input, shape index: {}]   ;;  %s8943_s3 = inlined_call_operand.hbm [shape: f32[128,256], index: 3, kind: input, shape index: {}]   ;;  %s8944_s4 = inlined_call_operand.vmem [shape: f32[1,256], index: 4, kind: input, shape index: {}]   ;;  %s8945_s5 = inlined_call_operand.hbm [shape: f32[512,512], index: 5, kind: input, shape index: {}]   ;;  %s8946_s6 = inlined_call_operand.vmem [shape: f32[1,512], index: 6, kind: input, shape index: {}]   ;;  %s8947_s7 = inlined_call_operand.vmem [shape: f32[512,128], index: 7, kind: input, shape index: {}]   ;;  %s8948_s8 = inlined_call_operand.vmem [shape: f32[1,128], index: 8, kind: input, shape index: {}]   ;;  %s8949_s9 = inlined_call_operand.hbm [shape: f32[16,128], index: 9, kind: output, shape index: {}]  }
   0x1   :  { %15 = vsyncpa [#allocation6], 0 }
   0x2   :  { %16 = vsyncpa [#allocation4], 0  ;;  %s5275_s30 = smov [#allocation2]  }
   0x3   :  { %s28_s10 = sshll.u32 %s5275_s30, 4  ;;  %s29_s10 = int_to_ptr.vmem [resolvable:$true] %s28_s10 }
   0x4   :  { %s5217_s11 = scalar_lea.vmem %s29_s10, 4096  ;;  %p5222_p1 = scmp.lt.s32.totalorder %s29_s10, %s29_s10 }
   0x5   :  { %p5218_p0 = scmp.ne.s32.totalorder %s29_s10, %s5217_s11  ;;  %p5223_p2 = scmp.lt.s32.totalorder %s5217_s11, %s5217_s11 }
   0x7   :  { %p5224_p3 = por %p5223_p2, %p5222_p1 }
   0x9   :  { %p5225_p4 = pnand %p5224_p3, %p5218_p0 }
   0xb   :  { %5228 = shalt.err (!%p5225_p4)
}
   0xc   :  { %s5276_s12 = smov 256   ;;  %s5277_s13 = smov 16  }
   0xd   :  { %34 = dma.hbm_to_vmem [thread:$0]  %s8943_s3, 4096, %s29_s10, [#allocation3], %s5276_s12, %s5276_s12, %s5277_s13  }
   0xe   :  { %s5278_s16 = smov [#allocation5]  }
   0xf   :  { %s42_s17 = sshll.u32 %s5278_s16, 4  ;;  %s43_s17 = int_to_ptr.vmem [resolvable:$true] %s42_s17 }
  0x10   :  { %s5237_s18 = scalar_lea.vmem %s43_s17, 32768  ;;  %p5242_p6 = scmp.lt.s32.totalorder %s43_s17, %s43_s17 }
  0x11   :  { %p5238_p5 = scmp.ne.s32.totalorder %s43_s17, %s5237_s18  ;;  %p5243_p7 = scmp.lt.s32.totalorder %s5237_s18, %s5237_s18 }
  0x13   :  { %p5244_p8 = por %p5243_p7, %p5242_p6 }
  0x15   :  { %p5245_p9 = pnand %p5244_p8, %p5238_p5 }
  0x17   :  { %5248 = shalt.err (!%p5245_p9)
}
  0x18   :  { %s5279_s19 = smov 512   ;;  %s5280_s20 = smov 32  }
  0x19   :  { %48 = dma.hbm_to_vmem [thread:$0]  %s8945_s5, 32768, %s43_s17, [#allocation6], %s5279_s19, %s5279_s19, %s5280_s20  }
  0x1a   :  { %5269 = dma.done.wait [#allocation3], 4096  }
  0x1b   :  { %5270 = vsyncadd [#allocation3], 4294963200 }
  0x1c   :  { %5271 = dma.done.wait [#allocation6], 32768  }
  0x1d   :  { %5272 = vsyncadd [#allocation6], 4294934528  ;;  %vm326_vm0 = vcmask 1042432   ;;  %vm133_vm1 = vcmask 23552   ;;  %v125_v0 = vld [vmem:[%s8941_s1] sm:$0x7] }
  0x1e   :  { %v61_v1 = vld [vmem:[%s8940_s0] sm:$0xff]  ;;  %v62_v2 = vld [vmem:[%s8940_s0 + $0x8] sm:$0xff]  ;;  %5066 = vmatprep.subr.msk.mxu0 %vm326_vm0, %v125_v0  ;;  %v63_v3 = vld [vmem:[%s8940_s0 + $0x10] sm:$0xff]  ;;  %vm4891_vm2 = vcmask 1041409   ;;  %vm4893_vm3 = vcmask 1042434   ;;  %vm4895_vm4 = vcmask 1043459  }
  0x1f   :  { %5068 = vmatprep.mubr.msk.f32.mxu0 %vm133_vm1, %v61_v1  ;;  %5067 = vmatpush3.msk.msra.mxu0 %vm326_vm0, %v125_v0  ;;  %v64_v4 = vld [vmem:[%s8940_s0 + $0x18] sm:$0xff]  ;;  %v65_v5 = vld [vmem:[%s8940_s0 + $0x20] sm:$0xff]  ;;  %v66_v6 = vld [vmem:[%s8940_s0 + $0x28] sm:$0xff]  ;;  %vm4897_vm5 = vcmask 1044484   ;;  %vm4899_vm6 = vcmask 1045509   ;;  %vm4901_vm7 = vcmask 1046534  }
  0x20   :  { %5069 = vmatmul.mubr.msk.f32.vlgmr.msra.gmra.mxu0 %vm133_vm1, %v62_v2  ;;  %v67_v7 = vld [vmem:[%s8940_s0 + $0x30] sm:$0xff]  ;;  %v810_v8 = vld [vmem:[#allocation2 + $0xf8] sm:$0xff]  ;;  %v808_v10 = vld [vmem:[#allocation2 + $0xe8] sm:$0xff]  ;;  %vm4903_vm8 = vcmask 1047559  }
  0x21   :  { %5071 = vmatprep.mubr.msk.f32.mxu0 %vm133_vm1, %v63_v3  ;;  %823 = vmatprep.subr.mxu0 %v810_v8  ;;  %v809_v9 = vld [vmem:[#allocation2 + $0xf0] sm:$0xff]  ;;  %v807_v11 = vld [vmem:[#allocation2 + $0xe0] sm:$0xff]  ;;  %v68_v12 = vld [vmem:[%s8940_s0 + $0x38] sm:$0xff] }
  0x22   :  { %5164 = vmatprep.subr.mxu1 %v810_v8  ;;  %824 = vmatpush1.msra.mxu0 %v809_v9  ;;  %v806_v13 = vld [vmem:[#allocation2 + $0xd8] sm:$0xff]  ;;  %v69_v14 = vld [vmem:[%s8940_s0 + $0x40] sm:$0xff]  ;;  %v805_v15 = vld [vmem:[#allocation2 + $0xd0] sm:$0xff]  ;;  %v8952_v8 = vmov 0.0  }
  0x23   :  { %5180 = vmatpush1.msra.mxu1 %v809_v9  ;;  %825 = vmatprep.subr.mxu0 %v808_v10  ;;  %v804_v16 = vld [vmem:[#allocation2 + $0xc8] sm:$0xff]  ;;  %v803_v17 = vld [vmem:[#allocation2 + $0xc0] sm:$0xff]  ;;  %v802_v19 = vld [vmem:[#allocation2 + $0xb8] sm:$0xff] }
  0x24   :  { %5072 = vmatmul.mubr.msk.f32.gmra.mxu0 %vm133_vm1, %v64_v4  ;;  %5165 = vmatprep.subr.mxu1 %v808_v10  ;;  %v70_v18 = vld [vmem:[%s8940_s0 + $0x48] sm:$0xff]  ;;  %v71_v20 = vld [vmem:[%s8940_s0 + $0x50] sm:$0xff]  ;;  %v799_v23 = vld [vmem:[#allocation2 + $0xa0] sm:$0xff] }
  0x25   :  { %5074 = vmatprep.mubr.msk.f32.mxu0 %vm133_vm1, %v65_v5  ;;  %826 = vmatpush1.msra.mxu0 %v807_v11  ;;  %v801_v21 = vld [vmem:[#allocation2 + $0xb0] sm:$0xff]  ;;  %v800_v22 = vld [vmem:[#allocation2 + $0xa8] sm:$0xff]  ;;  %v72_v24 = vld [vmem:[%s8940_s0 + $0x58] sm:$0xff] }
  0x26   :  { %5181 = vmatpush1.msra.mxu1 %v807_v11  ;;  %827 = vmatprep.subr.mxu0 %v806_v13  ;;  %v798_v25 = vld [vmem:[#allocation2 + $0x98] sm:$0xff]  ;;  %v73_v26 = vld [vmem:[%s8940_s0 + $0x60] sm:$0xff]  ;;  %v797_v27 = vld [vmem:[#allocation2 + $0x90] sm:$0xff] }
  0x27   :  { %828 = vmatpush1.msra.mxu0 %v805_v15  ;;  %5166 = vmatprep.subr.mxu1 %v806_v13  ;;  %v796_v28 = vld [vmem:[#allocation2 + $0x88] sm:$0xff]  ;;  %v795_v29 = vld [vmem:[#allocation2 + $0x80] sm:$0xff]  ;;  %v794_v31 = vld [vmem:[#allocation2 + $0x78] sm:$0xff] }
  0x28   :  { %5075 = vmatmul.mubr.msk.f32.gmra.mxu0 %vm133_vm1, %v66_v6  ;;  %829 = vmatprep.subr.mxu0 %v804_v16  ;;  %v74_v30 = vld [vmem:[%s8940_s0 + $0x68] sm:$0xff]  ;;  %v75_v32 = vld [vmem:[%s8940_s0 + $0x70] sm:$0xff]  ;;  %v791_v35 = vld [vmem:[#allocation2 + $0x60] sm:$0xff] }
  0x29   :  { %5077 = vmatprep.mubr.msk.f32.mxu0 %vm133_vm1, %v67_v7  ;;  %830 = vmatpush1.msra.mxu0 %v803_v17  ;;  %v793_v33 = vld [vmem:[#allocation2 + $0x70] sm:$0xff]  ;;  %v792_v34 = vld [vmem:[#allocation2 + $0x68] sm:$0xff]  ;;  %v76_v36 = vld [vmem:[%s8940_s0 + $0x78] sm:$0xff] }
  0x2a   :  { %5182 = vmatpush1.msra.mxu1 %v805_v15  ;;  %831 = vmatprep.subr.mxu0 %v802_v19  ;;  %v790_v37 = vld [vmem:[#allocation2 + $0x58] sm:$0xff]  ;;  %v77_v38 = vld [vmem:[%s8940_s0 + $0x80] sm:$0xff]  ;;  %v789_v39 = vld [vmem:[#allocation2 + $0x50] sm:$0xff] }
  0x2b   :  { %832 = vmatpush1.msra.mxu0 %v801_v21  ;;  %5167 = vmatprep.subr.mxu1 %v804_v16  ;;  %v788_v40 = vld [vmem:[#allocation2 + $0x48] sm:$0xff]  ;;  %v787_v41 = vld [vmem:[#allocation2 + $0x40] sm:$0xff]  ;;  %v786_v43 = vld [vmem:[#allocation2 + $0x38] sm:$0xff] }
  0x2c   :  { %5078 = vmatmul.mubr.msk.f32.gmra.mxu0 %vm133_vm1, %v68_v12  ;;  %833 = vmatprep.subr.mxu0 %v800_v22  ;;  %v78_v42 = vld [vmem:[%s8940_s0 + $0x88] sm:$0xff]  ;;  %v79_v44 = vld [vmem:[%s8940_s0 + $0x90] sm:$0xff]  ;;  %v783_v47 = vld [vmem:[#allocation2 + $0x20] sm:$0xff] }
  0x2d   :  { %5080 = vmatprep.mubr.msk.f32.mxu0 %vm133_vm1, %v69_v14  ;;  %834 = vmatpush1.msra.mxu0 %v799_v23  ;;  %v785_v45 = vld [vmem:[#allocation2 + $0x30] sm:$0xff]  ;;  %v784_v46 = vld [vmem:[#allocation2 + $0x28] sm:$0xff]  ;;  %v80_v48 = vld [vmem:[%s8940_s0 + $0x98] sm:$0xff] }
  0x2e   :  { %5183 = vmatpush1.msra.mxu1 %v803_v17  ;;  %835 = vmatprep.subr.mxu0 %v798_v25  ;;  %v782_v49 = vld [vmem:[#allocation2 + $0x18] sm:$0xff]  ;;  %v81_v50 = vld [vmem:[%s8940_s0 + $0xa0] sm:$0xff]  ;;  %v781_v51 = vld [vmem:[#allocation2 + $0x10] sm:$0xff] }
  0x2f   :  { %836 = vmatpush1.msra.mxu0 %v797_v27  ;;  %5168 = vmatprep.subr.mxu1 %v802_v19  ;;  %v780_v52 = vld [vmem:[#allocation2 + $0x8] sm:$0xff]  ;;  %v779_v53 = vld [vmem:[#allocation2] sm:$0xff]  ;;  %v83_v55 = vld [vmem:[%s8940_s0 + $0xb0] sm:$0xff] }
  0x30   :  { %5081 = vmatmul.mubr.msk.f32.gmra.mxu0 %vm133_vm1, %v70_v18  ;;  %837 = vmatprep.subr.mxu0 %v796_v28  ;;  %v82_v54 = vld [vmem:[%s8940_s0 + $0xa8] sm:$0xff]  ;;  %v84_v56 = vld [vmem:[%s8940_s0 + $0xb8] sm:$0xff]  ;;  %v85_v57 = vld [vmem:[%s8940_s0 + $0xc0] sm:$0xff] }
  0x31   :  { %5083 = vmatprep.mubr.msk.f32.mxu0 %vm133_vm1, %v71_v20  ;;  %838 = vmatpush1.msra.mxu0 %v795_v29  ;;  %v86_v58 = vld [vmem:[%s8940_s0 + $0xc8] sm:$0xff]  ;;  %v87_v59 = vld [vmem:[%s8940_s0 + $0xd0] sm:$0xff]  ;;  %v88_v60 = vld [vmem:[%s8940_s0 + $0xd8] sm:$0xff] }
  0x32   :  { %5184 = vmatpush1.msra.mxu1 %v801_v21  ;;  %839 = vmatprep.subr.mxu0 %v794_v31  ;;  %v89_v61 = vld [vmem:[%s8940_s0 + $0xe0] sm:$0xff]  ;;  %v90_v62 = vld [vmem:[%s8940_s0 + $0xe8] sm:$0xff]  ;;  %v91_v63 = vld [vmem:[%s8940_s0 + $0xf0] sm:$0xff] }
  0x33   :  { %840 = vmatpush1.msra.mxu0 %v793_v33  ;;  %5169 = vmatprep.subr.mxu1 %v800_v22  ;;  %v92_v0 = vld [vmem:[%s8940_s0 + $0xf8] sm:$0xff]  ;;  %v93_v1 = vld [vmem:[%s8940_s0 + $0x100] sm:$0xff]  ;;  %v94_v2 = vld [vmem:[%s8940_s0 + $0x108] sm:$0xff] }
  0x34   :  { %5084 = vmatmul.mubr.msk.f32.gmra.mxu0 %vm133_vm1, %v72_v24  ;;  %841 = vmatprep.subr.mxu0 %v792_v34  ;;  %v95_v3 = vld [vmem:[%s8940_s0 + $0x110] sm:$0xff]  ;;  %v96_v4 = vld [vmem:[%s8940_s0 + $0x118] sm:$0xff]  ;;  %v97_v5 = vld [vmem:[%s8940_s0 + $0x120] sm:$0xff] }
  0x35   :  { %5086 = vmatprep.mubr.msk.f32.mxu0 %vm133_vm1, %v73_v26  ;;  %842 = vmatpush1.msra.mxu0 %v791_v35  ;;  %v98_v6 = vld [vmem:[%s8940_s0 + $0x128] sm:$0xff]  ;;  %v99_v7 = vld [vmem:[%s8940_s0 + $0x130] sm:$0xff]  ;;  %v100_v9 = vld [vmem:[%s8940_s0 + $0x138] sm:$0xff] }
  0x36   :  { %5185 = vmatpush1.msra.mxu1 %v799_v23  ;;  %843 = vmatprep.subr.mxu0 %v790_v37  ;;  %v101_v10 = vld [vmem:[%s8940_s0 + $0x140] sm:$0xff]  ;;  %v102_v11 = vld [vmem:[%s8940_s0 + $0x148] sm:$0xff]  ;;  %v103_v12 = vld [vmem:[%s8940_s0 + $0x150] sm:$0xff] }
  0x37   :  { %844 = vmatpush1.msra.mxu0 %v789_v39  ;;  %5170 = vmatprep.subr.mxu1 %v798_v25  ;;  %v104_v13 = vld [vmem:[%s8940_s0 + $0x158] sm:$0xff]  ;;  %v105_v14 = vld [vmem:[%s8940_s0 + $0x160] sm:$0xff]  ;;  %v106_v15 = vld [vmem:[%s8940_s0 + $0x168] sm:$0xff] }
  0x38   :  { %5087 = vmatmul.mubr.msk.f32.gmra.mxu0 %vm133_vm1, %v74_v30  ;;  %845 = vmatprep.subr.mxu0 %v788_v40  ;;  %v107_v16 = vld [vmem:[%s8940_s0 + $0x170] sm:$0xff]  ;;  %v108_v17 = vld [vmem:[%s8940_s0 + $0x178] sm:$0xff]  ;;  %v109_v18 = vld [vmem:[%s8940_s0 + $0x180] sm:$0xff] }
  0x39   :  { %5089 = vmatprep.mubr.msk.f32.mxu0 %vm133_vm1, %v75_v32  ;;  %846 = vmatpush1.msra.mxu0 %v787_v41  ;;  %v110_v19 = vld [vmem:[%s8940_s0 + $0x188] sm:$0xff]  ;;  %v111_v20 = vld [vmem:[%s8940_s0 + $0x190] sm:$0xff]  ;;  %v112_v21 = vld [vmem:[%s8940_s0 + $0x198] sm:$0xff] }
  0x3a   :  { %5186 = vmatpush1.msra.mxu1 %v797_v27  ;;  %847 = vmatprep.subr.mxu0 %v786_v43  ;;  %v113_v22 = vld [vmem:[%s8940_s0 + $0x1a0] sm:$0xff]  ;;  %v114_v23 = vld [vmem:[%s8940_s0 + $0x1a8] sm:$0xff]  ;;  %v115_v24 = vld [vmem:[%s8940_s0 + $0x1b0] sm:$0xff] }
  0x3b   :  { %848 = vmatpush1.msra.mxu0 %v785_v45  ;;  %5171 = vmatprep.subr.mxu1 %v796_v28  ;;  %v116_v25 = vld [vmem:[%s8940_s0 + $0x1b8] sm:$0xff]  ;;  %v117_v26 = vld [vmem:[%s8940_s0 + $0x1c0] sm:$0xff]  ;;  %v118_v27 = vld [vmem:[%s8940_s0 + $0x1c8] sm:$0xff] }
  0x3c   :  { %5090 = vmatmul.mubr.msk.f32.gmra.mxu0 %vm133_vm1, %v76_v36  ;;  %849 = vmatprep.subr.mxu0 %v784_v46  ;;  %v119_v28 = vld [vmem:[%s8940_s0 + $0x1d0] sm:$0xff]  ;;  %v121_v30 = vld [vmem:[%s8940_s0 + $0x1e0] sm:$0xff]  ;;  %v122_v32 = vld [vmem:[%s8940_s0 + $0x1e8] sm:$0xff] }
  0x3d   :  { %5092 = vmatprep.mubr.msk.f32.mxu0 %vm133_vm1, %v77_v38  ;;  %850 = vmatpush1.msra.mxu0 %v783_v47  ;;  %v5605_v36 = vld [vmem:[%s8942_s2] ss:$0 sm:$0xff] }
  0x3e   :  { %5187 = vmatpush1.msra.mxu1 %v795_v29  ;;  %851 = vmatprep.subr.mxu0 %v782_v49  ;;  %v120_v29 = vld [vmem:[%s8940_s0 + $0x1d8] sm:$0xff] }
  0x3f   :  { %852 = vmatpush1.msra.mxu0 %v781_v51  ;;  %5172 = vmatprep.subr.mxu1 %v794_v31  ;;  %v1749_v31 = vld [vmem:[#allocation5 + $0x5e8] sm:$0xff] }
  0x40   :  { %5093 = vmatmul.mubr.msk.f32.gmra.mxu0 %vm133_vm1, %v78_v42  ;;  %853 = vmatprep.subr.mxu0 %v780_v52 }
  0x41   :  { %5095 = vmatprep.mubr.msk.f32.mxu0 %vm133_vm1, %v79_v44  ;;  %854 = vmatpush1.msra.mxu0 %v779_v53 }
  0x42   :  { %5188 = vmatpush1.msra.mxu1 %v793_v33  ;;  %1001 = vmatprep.mubr.f32.mxu1 %v8952_v8  ;;  %v123_v33 = vld [vmem:[%s8940_s0 + $0x1f0] sm:$0xff] }
  0x43   :  { %5173 = vmatprep.subr.mxu1 %v792_v34  ;;  %v124_v34 = vld [vmem:[%s8940_s0 + $0x1f8] sm:$0xff] }
  0x44   :  { %5096 = vmatmul.mubr.msk.f32.gmra.mxu0 %vm133_vm1, %v80_v48  ;;  %5189 = vmatpush1.msra.mxu1 %v791_v35 }
  0x45   :  { %5098 = vmatprep.mubr.msk.f32.mxu0 %vm133_vm1, %v81_v50  ;;  %5174 = vmatprep.subr.mxu1 %v790_v37 }
  0x46   :  { %5190 = vmatpush1.msra.mxu1 %v789_v39 }
  0x47   :  { %5175 = vmatprep.subr.mxu1 %v788_v40 }
  0x48   :  { %5099 = vmatmul.mubr.msk.f32.gmra.mxu0 %vm133_vm1, %v82_v54  ;;  %5191 = vmatpush1.msra.mxu1 %v787_v41 }
  0x49   :  { %5101 = vmatprep.mubr.msk.f32.mxu0 %vm133_vm1, %v83_v55  ;;  %5176 = vmatprep.subr.mxu1 %v786_v43 }
  0x4a   :  { %5192 = vmatpush1.msra.mxu1 %v785_v45 }
  0x4b   :  { %5177 = vmatprep.subr.mxu1 %v784_v46 }
  0x4c   :  { %5102 = vmatmul.mubr.msk.f32.gmra.mxu0 %vm133_vm1, %v84_v56  ;;  %5193 = vmatpush1.msra.mxu1 %v783_v47 }
  0x4d   :  { %5104 = vmatprep.mubr.msk.f32.mxu0 %vm133_vm1, %v85_v57  ;;  %5178 = vmatprep.subr.mxu1 %v782_v49 }
  0x4e   :  { %5194 = vmatpush1.msra.mxu1 %v781_v51 }
  0x4f   :  { %5179 = vmatprep.subr.mxu1 %v780_v52 }
  0x50   :  { %5105 = vmatmul.mubr.msk.f32.gmra.mxu0 %vm133_vm1, %v86_v58  ;;  %5195 = vmatpush1.msra.mxu1 %v779_v53 }
  0x51   :  { %5107 = vmatprep.mubr.msk.f32.mxu0 %vm133_vm1, %v87_v59  ;;  %2287 = vmatprep.subr.mxu1 %v1749_v31 }
  0x54   :  { %5108 = vmatmul.mubr.msk.f32.gmra.mxu0 %vm133_vm1, %v88_v60  ;;  %v1621_v60 = vld [vmem:[#allocation5 + $0x1e8] sm:$0xff] }
  0x55   :  { %5110 = vmatprep.mubr.msk.f32.mxu0 %vm133_vm1, %v89_v61  ;;  %1838 = vmatprep.subr.mxu0 %v1621_v60  ;;  %v1732_v60 = vld [vmem:[#allocation5 + $0x560] sm:$0xff] }
  0x58   :  { %5111 = vmatmul.mubr.msk.f32.gmra.mxu0 %vm133_vm1, %v90_v62 }
  0x59   :  { %5113 = vmatprep.mubr.msk.f32.mxu0 %vm133_vm1, %v91_v63 }
  0x5c   :  { %5114 = vmatmul.mubr.msk.f32.gmra.mxu0 %vm133_vm1, %v92_v0  ;;  %v1620_v0 = vld [vmem:[#allocation5 + $0x1e0] sm:$0xff] }
  0x5d   :  { %5116 = vmatprep.mubr.msk.f32.mxu0 %vm133_vm1, %v93_v1  ;;  %v1617_v1 = vld [vmem:[#allocation5 + $0x1c8] sm:$0xff] }
  0x60   :  { %5117 = vmatmul.mubr.msk.f32.gmra.mxu0 %vm133_vm1, %v94_v2 }
  0x61   :  { %5119 = vmatprep.mubr.msk.f32.mxu0 %vm133_vm1, %v95_v3  ;;  %v1616_v3 = vld [vmem:[#allocation5 + $0x1c0] sm:$0xff] }
  0x64   :  { %5120 = vmatmul.mubr.msk.f32.gmra.mxu0 %vm133_vm1, %v96_v4 }
  0x65   :  { %5122 = vmatprep.mubr.msk.f32.mxu0 %vm133_vm1, %v97_v5 }
  0x68   :  { %5123 = vmatmul.mubr.msk.f32.gmra.mxu0 %vm133_vm1, %v98_v6 }
  0x69   :  { %5125 = vmatprep.mubr.msk.f32.mxu0 %vm133_vm1, %v99_v7  ;;  %v1613_v7 = vld [vmem:[#allocation5 + $0x1a8] sm:$0xff] }
  0x6c   :  { %5126 = vmatmul.mubr.msk.f32.gmra.mxu0 %vm133_vm1, %v100_v9  ;;  %v1612_v9 = vld [vmem:[#allocation5 + $0x1a0] sm:$0xff] }
  0x6d   :  { %5128 = vmatprep.mubr.msk.f32.mxu0 %vm133_vm1, %v101_v10 }
  0x70   :  { %5129 = vmatmul.mubr.msk.f32.gmra.mxu0 %vm133_vm1, %v102_v11  ;;  %v1609_v11 = vld [vmem:[#allocation5 + $0x188] sm:$0xff] }
  0x71   :  { %5131 = vmatprep.mubr.msk.f32.mxu0 %vm133_vm1, %v103_v12 }
  0x74   :  { %5132 = vmatmul.mubr.msk.f32.gmra.mxu0 %vm133_vm1, %v104_v13 }
  0x75   :  { %5134 = vmatprep.mubr.msk.f32.mxu0 %vm133_vm1, %v105_v14 }
  0x78   :  { %5135 = vmatmul.mubr.msk.f32.gmra.mxu0 %vm133_vm1, %v106_v15  ;;  %v1608_v15 = vld [vmem:[#allocation5 + $0x180] sm:$0xff] }
  0x79   :  { %5137 = vmatprep.mubr.msk.f32.mxu0 %vm133_vm1, %v107_v16  ;;  %v1605_v16 = vld [vmem:[#allocation5 + $0x168] sm:$0xff] }
  0x7c   :  { %5138 = vmatmul.mubr.msk.f32.gmra.mxu0 %vm133_vm1, %v108_v17  ;;  %v1604_v17 = vld [vmem:[#allocation5 + $0x160] sm:$0xff] }
  0x7d   :  { %5140 = vmatprep.mubr.msk.f32.mxu0 %vm133_vm1, %v109_v18 }
  0x80   :  { %5141 = vmatmul.mubr.msk.f32.gmra.mxu0 %vm133_vm1, %v110_v19  ;;  %v1601_v19 = vld [vmem:[#allocation5 + $0x148] sm:$0xff] }
  0x81   :  { %5143 = vmatprep.mubr.msk.f32.mxu0 %vm133_vm1, %v111_v20 }
  0x84   :  { %5144 = vmatmul.mubr.msk.f32.gmra.mxu0 %vm133_vm1, %v112_v21 }
  0x85   :  { %5146 = vmatprep.mubr.msk.f32.mxu0 %vm133_vm1, %v113_v22 }
  0x88   :  { %5147 = vmatmul.mubr.msk.f32.gmra.mxu0 %vm133_vm1, %v114_v23 }
  0x89   :  { %5149 = vmatprep.mubr.msk.f32.mxu0 %vm133_vm1, %v115_v24 }
  0x8c   :  { %5150 = vmatmul.mubr.msk.f32.gmra.mxu0 %vm133_vm1, %v116_v25  ;;  %v1748_v25 = vld [vmem:[#allocation5 + $0x5e0] sm:$0xff] }
  0x8d   :  { %5152 = vmatprep.mubr.msk.f32.mxu0 %vm133_vm1, %v117_v26  ;;  %v1600_v26 = vld [vmem:[#allocation5 + $0x140] sm:$0xff] }
  0x90   :  { %5153 = vmatmul.mubr.msk.f32.gmra.mxu0 %vm133_vm1, %v118_v27  ;;  %v1597_v27 = vld [vmem:[#allocation5 + $0x128] sm:$0xff] }
  0x91   :  { %5155 = vmatprep.mubr.msk.f32.mxu0 %vm133_vm1, %v119_v28 }
  0x94   :  { %5156 = vmatmul.mubr.msk.f32.gmra.mxu0 %vm133_vm1, %v120_v29  ;;  %v1745_v29 = vld [vmem:[#allocation5 + $0x5c8] sm:$0xff] }
  0x95   :  { %5158 = vmatprep.mubr.msk.f32.mxu0 %vm133_vm1, %v121_v30 }
  0x98   :  { %5159 = vmatmul.mubr.msk.f32.gmra.mxu0 %vm133_vm1, %v122_v32  ;;  %v1744_v32 = vld [vmem:[#allocation5 + $0x5c0] sm:$0xff] }
  0x99   :  { %5161 = vmatprep.mubr.msk.f32.mxu0 %vm133_vm1, %v123_v33 }
  0x9c   :  { %5162 = vmatmul.mubr.msk.f32.gmra.mxu0 %vm133_vm1, %v124_v34  ;;  %v1741_v34 = vld [vmem:[#allocation5 + $0x5a8] sm:$0xff] }
  0x9d   :  { %887 = vmatprep.mubr.f32.mxu0 %v8952_v8 }
  0xe0   :  { %v5070_v35 = vpop.f32.mrf.mxu0 }
  0xe1   :  { %v402_v40 = vadd.f32 %v5070_v35, %v5605_v36  ;;  %v1596_v35 = vld [vmem:[#allocation5 + $0x120] sm:$0xff] }
  0xe2   :  { %v396_v37 = vpop.f32.mrf.mxu0 }
  0xe3   :  { %v397_v38 = vadd.f32 %v5605_v36, %v396_v37  ;;  %v716_v44 = vmax.f32 %v402_v40, 0.0  ;;  %v1593_v40 = vld [vmem:[#allocation5 + $0x108] sm:$0xff] }
  0xe4   :  { %v5073_v39 = vpop.f32.mrf.mxu0 }
  0xe5   :  { %v715_v41 = vmax.f32 %v397_v38, 0.0  ;;  %v412_v48 = vadd.f32 %v5073_v39, %v5605_v36  ;;  %v1740_v39 = vld [vmem:[#allocation5 + $0x5a0] sm:$0xff] }
  0xe6   :  { %v406_v42 = vpop.f32.mrf.mxu0 }
  0xe7   :  { %888 = vmatmul.mubr.f32.vlgmr.msra.gmra.mxu0 %v715_v41  ;;  %v407_v45 = vadd.f32 %v5605_v36, %v406_v42  ;;  %v718_v52 = vmax.f32 %v412_v48, 0.0 }
  0xe8   :  { %v5076_v43 = vpop.f32.mrf.mxu0  ;;  %893 = vmatprep.mubr.f32.mxu0 %v8952_v8  ;;  %1839 = vmatpush1.msra.mxu0 %v1620_v0 }
  0xe9   :  { %v717_v49 = vmax.f32 %v407_v45, 0.0  ;;  %v422_v56 = vadd.f32 %v5076_v43, %v5605_v36  ;;  %1840 = vmatprep.subr.mxu0 %v1617_v1  ;;  %v1729_v1 = vld [vmem:[#allocation5 + $0x548] sm:$0xff] }
  0xea   :  { %v416_v46 = vpop.f32.mrf.mxu0  ;;  %1841 = vmatpush1.msra.mxu0 %v1616_v3  ;;  %v1584_v3 = vld [vmem:[#allocation5 + $0xc0] sm:$0xff] }
  0xeb   :  { %894 = vmatmul.mubr.f32.gmra.mxu0 %v716_v44  ;;  %v417_v53 = vadd.f32 %v5605_v36, %v416_v46  ;;  %v720_v61 = vmax.f32 %v422_v56, 0.0  ;;  %1842 = vmatprep.subr.mxu0 %v1613_v7  ;;  %v1737_v46 = vld [vmem:[#allocation5 + $0x588] sm:$0xff]  ;;  %v1588_v56 = vld [vmem:[#allocation5 + $0xe0] sm:$0xff] }
  0xec   :  { %v5079_v47 = vpop.f32.mrf.mxu0  ;;  %899 = vmatprep.mubr.f32.mxu0 %v8952_v8  ;;  %1843 = vmatpush1.msra.mxu0 %v1612_v9  ;;  %v1728_v7 = vld [vmem:[#allocation5 + $0x540] sm:$0xff]  ;;  %v1581_v9 = vld [vmem:[#allocation5 + $0xa8] sm:$0xff] }
  0xed   :  { %v719_v57 = vmax.f32 %v417_v53, 0.0  ;;  %v432_v4 = vadd.f32 %v5079_v47, %v5605_v36  ;;  %1844 = vmatprep.subr.mxu0 %v1609_v11  ;;  %v1592_v47 = vld [vmem:[#allocation5 + $0x100] sm:$0xff] }
  0xee   :  { %v426_v50 = vpop.f32.mrf.mxu0  ;;  %1845 = vmatpush1.msra.mxu0 %v1608_v15  ;;  %v1580_v15 = vld [vmem:[#allocation5 + $0xa0] sm:$0xff] }
  0xef   :  { %900 = vmatmul.mubr.f32.gmra.mxu0 %v717_v49  ;;  %v427_v62 = vadd.f32 %v5605_v36, %v426_v50  ;;  %v722_v12 = vmax.f32 %v432_v4, 0.0  ;;  %1846 = vmatprep.subr.mxu0 %v1605_v16  ;;  %v1736_v50 = vld [vmem:[#allocation5 + $0x580] sm:$0xff] }
  0xf0   :  { %v5082_v51 = vpop.f32.mrf.mxu0  ;;  %905 = vmatprep.mubr.f32.mxu0 %v8952_v8  ;;  %1847 = vmatpush1.msra.mxu0 %v1604_v17 }
  0xf1   :  { %v721_v5 = vmax.f32 %v427_v62, 0.0  ;;  %v442_v20 = vadd.f32 %v5082_v51, %v5605_v36  ;;  %1848 = vmatprep.subr.mxu0 %v1601_v19  ;;  %v1589_v51 = vld [vmem:[#allocation5 + $0xe8] sm:$0xff] }
  0xf2   :  { %v436_v54 = vpop.f32.mrf.mxu0  ;;  %1849 = vmatpush1.msra.mxu0 %v1600_v26  ;;  %v1577_v19 = vld [vmem:[#allocation5 + $0x88] sm:$0xff] }
  0xf3   :  { %906 = vmatmul.mubr.f32.gmra.mxu0 %v718_v52  ;;  %v437_v13 = vadd.f32 %v5605_v36, %v436_v54  ;;  %v724_v30 = vmax.f32 %v442_v20, 0.0  ;;  %1850 = vmatprep.subr.mxu0 %v1597_v27  ;;  %v1720_v27 = vld [vmem:[#allocation5 + $0x500] sm:$0xff] }
  0xf4   :  { %v5615_v55 = vpop.f32.mrf.mxu0  ;;  %911 = vmatprep.mubr.f32.mxu0 %v8952_v8  ;;  %1851 = vmatpush1.msra.mxu0 %v1596_v35  ;;  %v1716_v35 = vld [vmem:[#allocation5 + $0x4e0] sm:$0xff] }
  0xf5   :  { %v723_v21 = vmax.f32 %v437_v13, 0.0  ;;  %v452_v42 = vadd.f32 %v5615_v55, %v5605_v36  ;;  %1852 = vmatprep.subr.mxu0 %v1593_v40  ;;  %v1733_v55 = vld [vmem:[#allocation5 + $0x568] sm:$0xff] }
  0xf6   :  { %v446_v58 = vpop.f32.mrf.mxu0  ;;  %1853 = vmatpush1.msra.mxu0 %v1592_v47  ;;  %v1725_v13 = vld [vmem:[#allocation5 + $0x528] sm:$0xff] }
  0xf7   :  { %912 = vmatmul.mubr.f32.gmra.mxu0 %v719_v57  ;;  %v447_v31 = vadd.f32 %v5605_v36, %v446_v58  ;;  %v726_v53 = vmax.f32 %v452_v42, 0.0  ;;  %1854 = vmatprep.subr.mxu0 %v1589_v51  ;;  %v1713_v40 = vld [vmem:[#allocation5 + $0x4c8] sm:$0xff] }
  0xf8   :  { %v5619_v59 = vpop.f32.mrf.mxu0  ;;  %917 = vmatprep.mubr.f32.mxu0 %v8952_v8  ;;  %1855 = vmatpush1.msra.mxu0 %v1588_v56  ;;  %v1704_v56 = vld [vmem:[#allocation5 + $0x480] sm:$0xff] }
  0xf9   :  { %v725_v43 = vmax.f32 %v447_v31, 0.0  ;;  %v1717_v31 = vld [vmem:[#allocation5 + $0x4e8] sm:$0xff] }
  0xfa   :  { %v5623_v63 = vpop.f32.mrf.mxu0 }
  0xfb   :  { %918 = vmatmul.mubr.f32.gmra.mxu0 %v720_v61  ;;  %v457_v54 = vadd.f32 %v5605_v36, %v5623_v63  ;;  %v1585_v61 = vld [vmem:[#allocation5 + $0xc8] sm:$0xff]  ;;  %v462_v63 = vadd.f32 %v5619_v59, %v5605_v36 }
  0xfc   :  { %v5625_v2 = vpop.f32.mrf.mxu0  ;;  %923 = vmatprep.mubr.f32.mxu0 %v8952_v8  ;;  %1856 = vmatprep.subr.mxu0 %v1585_v61  ;;  %v1701_v61 = vld [vmem:[#allocation5 + $0x468] sm:$0xff] }
  0xfd   :  { %v727_v0 = vmax.f32 %v457_v54, 0.0  ;;  %v728_v59 = vmax.f32 %v462_v63, 0.0  ;;  %1857 = vmatpush1.msra.mxu0 %v1584_v3  ;;  %v1697_v3 = vld [vmem:[#allocation5 + $0x448] sm:$0xff] }
  0xfe   :  { %v5629_v6 = vpop.f32.mrf.mxu0  ;;  %1858 = vmatprep.subr.mxu0 %v1581_v9  ;;  %v1696_v9 = vld [vmem:[#allocation5 + $0x440] sm:$0xff] }
  0xff   :  { %924 = vmatmul.mubr.f32.gmra.mxu0 %v721_v5 }
 0x100   :  { %v5631_v10 = vpop.f32.mrf.mxu0  ;;  %929 = vmatprep.mubr.f32.mxu0 %v8952_v8  ;;  %1859 = vmatpush1.msra.mxu0 %v1580_v15  ;;  %v1689_v15 = vld [vmem:[#allocation5 + $0x408] sm:$0xff] }
 0x101   :  { %1860 = vmatprep.subr.mxu0 %v1577_v19  ;;  %v1688_v19 = vld [vmem:[#allocation5 + $0x400] sm:$0xff] }
 0x102   :  { %v5635_v14 = vpop.f32.mrf.mxu0 }
 0x103   :  { %930 = vmatmul.mubr.f32.gmra.mxu0 %v722_v12  ;;  %v467_v12 = vadd.f32 %v5605_v36, %v5629_v6  ;;  %v472_v6 = vadd.f32 %v5625_v2, %v5605_v36 }
 0x104   :  { %v5097_v18 = vpop.f32.mrf.mxu0  ;;  %935 = vmatprep.mubr.f32.mxu0 %v8952_v8 }
 0x105   :  { %v492_v22 = vadd.f32 %v5097_v18, %v5605_v36  ;;  %v1724_v18 = vld [vmem:[#allocation5 + $0x520] sm:$0xff]  ;;  %v730_v2 = vmax.f32 %v472_v6, 0.0 }
 0x106   :  { %v5640_v23 = vpop.f32.mrf.mxu0 }
 0x107   :  { %v734_v24 = vmax.f32 %v492_v22, 0.0  ;;  %936 = vmatmul.mubr.f32.gmra.mxu0 %v723_v21  ;;  %v729_v21 = vmax.f32 %v467_v12, 0.0  ;;  %v1721_v22 = vld [vmem:[#allocation5 + $0x508] sm:$0xff]  ;;  %v487_v47 = vadd.f32 %v5605_v36, %v5640_v23 }
 0x108   :  { %v5100_v28 = vpop.f32.mrf.mxu0  ;;  %941 = vmatprep.mubr.f32.mxu0 %v8952_v8  ;;  %v1705_v23 = vld [vmem:[#allocation5 + $0x488] sm:$0xff] }
 0x109   :  { %1002 = vmatmul.mubr.f32.vlgmr.msra.gmra.mxu1 %v734_v24  ;;  %v502_v37 = vadd.f32 %v5100_v28, %v5605_v36  ;;  %v1576_v24 = vld [vmem:[#allocation5 + $0x80] sm:$0xff]  ;;  %v1573_v28 = vld [vmem:[#allocation5 + $0x68] sm:$0xff] }
 0x10a   :  { %v496_v33 = vpop.f32.mrf.mxu0  ;;  %1007 = vmatprep.mubr.f32.mxu1 %v8952_v8  ;;  %2288 = vmatpush1.msra.mxu1 %v1748_v25  ;;  %v1693_v12 = vld [vmem:[#allocation5 + $0x428] sm:$0xff] }
 0x10b   :  { %v497_v38 = vadd.f32 %v5605_v36, %v496_v33  ;;  %942 = vmatmul.mubr.f32.gmra.mxu0 %v724_v30  ;;  %2289 = vmatprep.subr.mxu1 %v1745_v29  ;;  %v736_v48 = vmax.f32 %v502_v37, 0.0  ;;  %v477_v30 = vadd.f32 %v5605_v36, %v5635_v14  ;;  %v1569_v37 = vld [vmem:[#allocation5 + $0x48] sm:$0xff]  ;;  %v482_v14 = vadd.f32 %v5631_v10, %v5605_v36 }
 0x10c   :  { %947 = vmatprep.mubr.f32.mxu0 %v8952_v8  ;;  %v5103_v41 = vpop.f32.mrf.mxu0  ;;  %2290 = vmatpush1.msra.mxu1 %v1744_v32  ;;  %v1572_v32 = vld [vmem:[#allocation5 + $0x60] sm:$0xff] }
 0x10d   :  { %v735_v44 = vmax.f32 %v497_v38, 0.0  ;;  %2291 = vmatprep.subr.mxu1 %v1741_v34  ;;  %v512_v57 = vadd.f32 %v5103_v41, %v5605_v36  ;;  %1861 = vmatpush1.msra.mxu0 %v1576_v24  ;;  %v1568_v41 = vld [vmem:[#allocation5 + $0x40] sm:$0xff]  ;;  %v732_v10 = vmax.f32 %v482_v14, 0.0  ;;  %v1809_v24 = vld [vmem:[#allocation5 + $0x7c8] sm:$0xff] }
 0x10e   :  { %v506_v45 = vpop.f32.mrf.mxu0  ;;  %2292 = vmatpush1.msra.mxu1 %v1740_v39  ;;  %1862 = vmatprep.subr.mxu0 %v1573_v28  ;;  %v731_v39 = vmax.f32 %v477_v30, 0.0  ;;  %v1808_v28 = vld [vmem:[#allocation5 + $0x7c0] sm:$0xff]  ;;  %v1805_v30 = vld [vmem:[#allocation5 + $0x7a8] sm:$0xff] }
 0x10f   :  { %948 = vmatmul.mubr.f32.gmra.mxu0 %v725_v43  ;;  %1008 = vmatmul.mubr.f32.gmra.mxu1 %v735_v44  ;;  %v507_v49 = vadd.f32 %v5605_v36, %v506_v45  ;;  %v738_v4 = vmax.f32 %v512_v57, 0.0  ;;  %v1712_v44 = vld [vmem:[#allocation5 + $0x4c0] sm:$0xff]  ;;  %v1565_v45 = vld [vmem:[#allocation5 + $0x28] sm:$0xff] }
 0x110   :  { %953 = vmatprep.mubr.f32.mxu0 %v8952_v8  ;;  %1013 = vmatprep.mubr.f32.mxu1 %v8952_v8  ;;  %v5106_v52 = vpop.f32.mrf.mxu0  ;;  %v1560_v57 = vld [vmem:[#allocation5] sm:$0xff] }
 0x111   :  { %2293 = vmatprep.subr.mxu1 %v1737_v46  ;;  %v737_v58 = vmax.f32 %v507_v49, 0.0  ;;  %v522_v16 = vadd.f32 %v5106_v52, %v5605_v36  ;;  %1863 = vmatpush1.msra.mxu0 %v1572_v32  ;;  %v1564_v49 = vld [vmem:[#allocation5 + $0x20] sm:$0xff]  ;;  %v1801_v32 = vld [vmem:[#allocation5 + $0x788] sm:$0xff] }
 0x112   :  { %2294 = vmatpush1.msra.mxu1 %v1736_v50  ;;  %v516_v62 = vpop.f32.mrf.mxu0  ;;  %1864 = vmatprep.subr.mxu0 %v1569_v37  ;;  %v1708_v52 = vld [vmem:[#allocation5 + $0x4a0] sm:$0xff] }
 0x113   :  { %954 = vmatmul.mubr.f32.gmra.mxu0 %v726_v53  ;;  %1014 = vmatmul.mubr.f32.gmra.mxu1 %v736_v48  ;;  %v517_v5 = vadd.f32 %v5605_v36, %v516_v62  ;;  %v740_v25 = vmax.f32 %v522_v16, 0.0  ;;  %v1709_v48 = vld [vmem:[#allocation5 + $0x4a8] sm:$0xff]  ;;  %v1800_v37 = vld [vmem:[#allocation5 + $0x780] sm:$0xff] }
 0x114   :  { %959 = vmatprep.mubr.f32.mxu0 %v8952_v8  ;;  %1019 = vmatprep.mubr.f32.mxu1 %v8952_v8  ;;  %v5109_v11 = vpop.f32.mrf.mxu0  ;;  %v1561_v53 = vld [vmem:[#allocation5 + $0x8] sm:$0xff] }
 0x115   :  { %2295 = vmatprep.subr.mxu1 %v1733_v55  ;;  %v739_v17 = vmax.f32 %v517_v5, 0.0  ;;  %v532_v33 = vadd.f32 %v5109_v11, %v5605_v36  ;;  %1865 = vmatpush1.msra.mxu0 %v1568_v41  ;;  %v733_v55 = vmax.f32 %v487_v47, 0.0  ;;  %v1685_v62 = vld [vmem:[#allocation5 + $0x3e8] sm:$0xff]  ;;  %v1680_v11 = vld [vmem:[#allocation5 + $0x3c0] sm:$0xff] }
 0x116   :  { %2296 = vmatpush1.msra.mxu1 %v1732_v60  ;;  %v526_v20 = vpop.f32.mrf.mxu0  ;;  %1866 = vmatprep.subr.mxu0 %v1565_v45  ;;  %v1677_v16 = vld [vmem:[#allocation5 + $0x3a8] sm:$0xff]  ;;  %v1792_v45 = vld [vmem:[#allocation5 + $0x740] sm:$0xff] }
 0x117   :  { %960 = vmatmul.mubr.f32.gmra.mxu0 %v727_v0  ;;  %1020 = vmatmul.mubr.f32.gmra.mxu1 %v737_v58  ;;  %v527_v26 = vadd.f32 %v5605_v36, %v526_v20  ;;  %v742_v42 = vmax.f32 %v532_v33, 0.0  ;;  %v1684_v0 = vld [vmem:[#allocation5 + $0x3e0] sm:$0xff]  ;;  %v1669_v33 = vld [vmem:[#allocation5 + $0x368] sm:$0xff] }
 0x118   :  { %965 = vmatprep.mubr.f32.mxu0 %v8952_v8  ;;  %1025 = vmatprep.mubr.f32.mxu1 %v8952_v8  ;;  %v5112_v29 = vpop.f32.mrf.mxu0  ;;  %v1676_v20 = vld [vmem:[#allocation5 + $0x3a0] sm:$0xff]  ;;  %v1793_v41 = vld [vmem:[#allocation5 + $0x748] sm:$0xff] }
 0x119   :  { %2297 = vmatprep.subr.mxu1 %v1729_v1  ;;  %v741_v34 = vmax.f32 %v527_v26, 0.0  ;;  %v542_v50 = vadd.f32 %v5112_v29, %v5605_v36  ;;  %1867 = vmatpush1.msra.mxu0 %v1564_v49  ;;  %v1700_v1 = vld [vmem:[#allocation5 + $0x460] sm:$0xff]  ;;  %v1789_v47 = vld [vmem:[#allocation5 + $0x728] sm:$0xff] }
 0x11a   :  { %2298 = vmatpush1.msra.mxu1 %v1728_v7  ;;  %v536_v38 = vpop.f32.mrf.mxu0  ;;  %1868 = vmatprep.subr.mxu0 %v1561_v53  ;;  %v1672_v29 = vld [vmem:[#allocation5 + $0x380] sm:$0xff]  ;;  %v1785_v49 = vld [vmem:[#allocation5 + $0x708] sm:$0xff] }
 0x11b   :  { %966 = vmatmul.mubr.f32.gmra.mxu0 %v728_v59  ;;  %1026 = vmatmul.mubr.f32.gmra.mxu1 %v738_v4  ;;  %v537_v43 = vadd.f32 %v5605_v36, %v536_v38  ;;  %v744_v58 = vmax.f32 %v542_v50, 0.0  ;;  %v1681_v4 = vld [vmem:[#allocation5 + $0x3c8] sm:$0xff]  ;;  %v1668_v38 = vld [vmem:[#allocation5 + $0x360] sm:$0xff] }
 0x11c   :  { %971 = vmatprep.mubr.f32.mxu0 %v8952_v8  ;;  %1031 = vmatprep.mubr.f32.mxu1 %v8952_v8  ;;  %v5115_v46 = vpop.f32.mrf.mxu0  ;;  %v1661_v50 = vld [vmem:[#allocation5 + $0x328] sm:$0xff]  ;;  %v1784_v53 = vld [vmem:[#allocation5 + $0x700] sm:$0xff] }
 0x11d   :  { %2299 = vmatprep.subr.mxu1 %v1725_v13  ;;  %v743_v51 = vmax.f32 %v537_v43, 0.0  ;;  %1869 = vmatpush1.msra.mxu0 %v1560_v57  ;;  %v552_v5 = vadd.f32 %v5115_v46, %v5605_v36  ;;  %v1692_v13 = vld [vmem:[#allocation5 + $0x420] sm:$0xff]  ;;  %v1777_v57 = vld [vmem:[#allocation5 + $0x6c8] sm:$0xff] }
 0x11e   :  { %2300 = vmatpush1.msra.mxu1 %v1724_v18  ;;  %v546_v54 = vpop.f32.mrf.mxu0  ;;  %1870 = vmatprep.subr.mxu0 %v1685_v62  ;;  %v1664_v46 = vld [vmem:[#allocation5 + $0x340] sm:$0xff] }
 0x11f   :  { %972 = vmatmul.mubr.f32.gmra.mxu0 %v729_v21  ;;  %1032 = vmatmul.mubr.f32.gmra.mxu1 %v739_v17  ;;  %v547_v60 = vadd.f32 %v5605_v36, %v546_v54  ;;  %v746_v17 = vmax.f32 %v552_v5, 0.0  ;;  %v1813_v21 = vld [vmem:[#allocation5 + $0x7e8] sm:$0xff]  ;;  %v1660_v54 = vld [vmem:[#allocation5 + $0x320] sm:$0xff] }
 0x120   :  { %977 = vmatprep.mubr.f32.mxu0 %v8952_v8  ;;  %1037 = vmatprep.mubr.f32.mxu1 %v8952_v8  ;;  %v5118_v63 = vpop.f32.mrf.mxu0  ;;  %v1776_v62 = vld [vmem:[#allocation5 + $0x6c0] sm:$0xff]  ;;  %v1653_v5 = vld [vmem:[#allocation5 + $0x2e8] sm:$0xff] }
 0x121   :  { %2301 = vmatprep.subr.mxu1 %v1721_v22  ;;  %v745_v7 = vmax.f32 %v547_v60, 0.0  ;;  %1871 = vmatpush2.msra.mxu0 %v1684_v0  ;;  %v1812_v22 = vld [vmem:[#allocation5 + $0x7e0] sm:$0xff]  ;;  %v562_v26 = vadd.f32 %v5118_v63, %v5605_v36 }
 0x122   :  { %2302 = vmatpush1.msra.mxu1 %v1720_v27  ;;  %v556_v59 = vpop.f32.mrf.mxu0  ;;  %1872 = vmatprep.subr.mxu0 %v1681_v4  ;;  %v1656_v63 = vld [vmem:[#allocation5 + $0x300] sm:$0xff]  ;;  %v1769_v4 = vld [vmem:[#allocation5 + $0x688] sm:$0xff] }
 0x123   :  { %978 = vmatmul.mubr.f32.gmra.mxu0 %v730_v2  ;;  %1038 = vmatmul.mubr.f32.gmra.mxu1 %v740_v25  ;;  %v557_v18 = vadd.f32 %v5605_v36, %v556_v59  ;;  %v1673_v25 = vld [vmem:[#allocation5 + $0x388] sm:$0xff]  ;;  %v1652_v59 = vld [vmem:[#allocation5 + $0x2e0] sm:$0xff] }
 0x124   :  { %983 = vmatprep.mubr.f32.mxu0 %v8952_v8  ;;  %1043 = vmatprep.mubr.f32.mxu1 %v8952_v8  ;;  %v5121_v6 = vpop.f32.mrf.mxu0 }
 0x125   :  { %2303 = vmatprep.subr.mxu1 %v1717_v31  ;;  %1873 = vmatpush2.msra.mxu0 %v1680_v11  ;;  %v747_v27 = vmax.f32 %v557_v18, 0.0  ;;  %v1804_v31 = vld [vmem:[#allocation5 + $0x7a0] sm:$0xff]  ;;  %v572_v43 = vadd.f32 %v5121_v6, %v5605_v36 }
 0x126   :  { %2304 = vmatpush1.msra.mxu1 %v1716_v35  ;;  %1874 = vmatprep.subr.mxu0 %v1677_v16  ;;  %v566_v2 = vpop.f32.mrf.mxu0  ;;  %v1768_v11 = vld [vmem:[#allocation5 + $0x680] sm:$0xff]  ;;  %v1649_v16 = vld [vmem:[#allocation5 + $0x2c8] sm:$0xff] }
 0x127   :  { %984 = vmatmul.mubr.f32.gmra.mxu0 %v731_v39  ;;  %1044 = vmatmul.mubr.f32.gmra.mxu1 %v741_v34  ;;  %v748_v34 = vmax.f32 %v562_v26, 0.0  ;;  %v567_v35 = vadd.f32 %v5605_v36, %v566_v2  ;;  %v1797_v39 = vld [vmem:[#allocation5 + $0x768] sm:$0xff]  ;;  %v1760_v6 = vld [vmem:[#allocation5 + $0x640] sm:$0xff] }
 0x128   :  { %989 = vmatprep.mubr.f32.mxu0 %v8952_v8  ;;  %1049 = vmatprep.mubr.f32.mxu1 %v8952_v8  ;;  %v5124_v14 = vpop.f32.mrf.mxu0  ;;  %v1757_v26 = vld [vmem:[#allocation5 + $0x628] sm:$0xff]  ;;  %v1756_v2 = vld [vmem:[#allocation5 + $0x620] sm:$0xff] }
 0x129   :  { %2305 = vmatprep.subr.mxu1 %v1713_v40  ;;  %1875 = vmatpush2.msra.mxu0 %v1676_v20  ;;  %v1796_v40 = vld [vmem:[#allocation5 + $0x760] sm:$0xff]  ;;  %v582_v60 = vadd.f32 %v5124_v14, %v5605_v36  ;;  %v1751_v14 = vld [vmem:[#allocation5 + $0x5f8] sm:$0xff] }
 0x12a   :  { %2306 = vmatpush1.msra.mxu1 %v1712_v44  ;;  %1876 = vmatprep.subr.mxu0 %v1673_v25  ;;  %v749_v44 = vmax.f32 %v567_v35, 0.0  ;;  %v1648_v20 = vld [vmem:[#allocation5 + $0x2c0] sm:$0xff]  ;;  %v1641_v25 = vld [vmem:[#allocation5 + $0x288] sm:$0xff] }
 0x12b   :  { %990 = vmatmul.mubr.f32.gmra.mxu0 %v732_v10  ;;  %1050 = vmatmul.mubr.f32.gmra.mxu1 %v742_v42  ;;  %v1665_v42 = vld [vmem:[#allocation5 + $0x348] sm:$0xff]  ;;  %v576_v10 = vpop.f32.mrf.mxu0 }
 0x12c   :  { %995 = vmatprep.mubr.f32.mxu0 %v8952_v8  ;;  %1055 = vmatprep.mubr.f32.mxu1 %v8952_v8 }
 0x12d   :  { %2307 = vmatprep.subr.mxu1 %v1709_v48  ;;  %1877 = vmatpush2.msra.mxu0 %v1672_v29  ;;  %v1788_v48 = vld [vmem:[#allocation5 + $0x720] sm:$0xff] }
 0x12e   :  { %2308 = vmatpush1.msra.mxu1 %v1708_v52  ;;  %1878 = vmatprep.subr.mxu0 %v1669_v33  ;;  %v577_v52 = vadd.f32 %v5605_v36, %v576_v10  ;;  %v1640_v29 = vld [vmem:[#allocation5 + $0x280] sm:$0xff] }
 0x12f   :  { %996 = vmatmul.mubr.f32.gmra.mxu0 %v733_v55  ;;  %1056 = vmatmul.mubr.f32.gmra.mxu1 %v743_v51  ;;  %v750_v51 = vmax.f32 %v572_v43, 0.0  ;;  %v5127_v55 = vpop.f32.mrf.mxu0  ;;  %v1636_v33 = vld [vmem:[#allocation5 + $0x260] sm:$0xff] }
 0x130   :  { %1061 = vmatprep.mubr.f32.mxu1 %v8952_v8  ;;  %2309 = vmatprep.subr.mxu1 %v1705_v23  ;;  %v1781_v23 = vld [vmem:[#allocation5 + $0x6e8] sm:$0xff]  ;;  %v592_v18 = vadd.f32 %v5127_v55, %v5605_v36  ;;  %v1624_v10 = vld [vmem:[#allocation5 + $0x200] sm:$0xff] }
 0x131   :  { %2310 = vmatpush1.msra.mxu1 %v1704_v56  ;;  %1879 = vmatpush2.msra.mxu0 %v1668_v38  ;;  %v1780_v56 = vld [vmem:[#allocation5 + $0x6e0] sm:$0xff]  ;;  %v586_v0 = vpop.f32.mrf.mxu0  ;;  %v1633_v38 = vld [vmem:[#allocation5 + $0x248] sm:$0xff] }
 0x132   :  { %2311 = vmatprep.subr.mxu1 %v1701_v61  ;;  %1880 = vmatprep.subr.mxu0 %v1665_v42  ;;  %v751_v61 = vmax.f32 %v577_v52, 0.0  ;;  %v1628_v42 = vld [vmem:[#allocation5 + $0x220] sm:$0xff] }
 0x133   :  { %1062 = vmatmul.mubr.f32.gmra.mxu1 %v744_v58  ;;  %1881 = vmatpush2.msra.mxu0 %v1664_v46  ;;  %v1657_v58 = vld [vmem:[#allocation5 + $0x308] sm:$0xff] }
 0x134   :  { %1067 = vmatprep.mubr.f32.mxu1 %v8952_v8  ;;  %2312 = vmatpush1.msra.mxu1 %v1700_v1  ;;  %v1773_v1 = vld [vmem:[#allocation5 + $0x6a8] sm:$0xff] }
 0x135   :  { %2313 = vmatprep.subr.mxu1 %v1697_v3  ;;  %1882 = vmatprep.subr.mxu0 %v1661_v50  ;;  %v1772_v3 = vld [vmem:[#allocation5 + $0x6a0] sm:$0xff] }
 0x136   :  { %2314 = vmatpush1.msra.mxu1 %v1696_v9  ;;  %1883 = vmatpush2.msra.mxu0 %v1660_v54  ;;  %v587_v9 = vadd.f32 %v5605_v36, %v586_v0 }
 0x137   :  { %1068 = vmatmul.mubr.f32.gmra.mxu1 %v745_v7  ;;  %2315 = vmatprep.subr.mxu1 %v1693_v12  ;;  %v752_v7 = vmax.f32 %v582_v60, 0.0  ;;  %v5130_v12 = vpop.f32.mrf.mxu0 }
 0x138   :  { %1073 = vmatprep.mubr.f32.mxu1 %v8952_v8  ;;  %2316 = vmatpush1.msra.mxu1 %v1692_v13  ;;  %v1765_v13 = vld [vmem:[#allocation5 + $0x668] sm:$0xff]  ;;  %v602_v35 = vadd.f32 %v5130_v12, %v5605_v36 }
 0x139   :  { %2317 = vmatprep.subr.mxu1 %v1689_v15  ;;  %1884 = vmatprep.subr.mxu0 %v1657_v58  ;;  %v1764_v15 = vld [vmem:[#allocation5 + $0x660] sm:$0xff] }
 0x13a   :  { %2318 = vmatpush1.msra.mxu1 %v1688_v19  ;;  %1885 = vmatpush2.msra.mxu0 %v1656_v63  ;;  %v753_v19 = vmax.f32 %v587_v9, 0.0  ;;  %v756_v43 = vmax.f32 %v602_v35, 0.0 }
 0x13b   :  { %1074 = vmatmul.mubr.f32.gmra.mxu1 %v746_v17  ;;  %2319 = vmatprep.subr.mxu1 %v1813_v21  ;;  %v1761_v17 = vld [vmem:[#allocation5 + $0x648] sm:$0xff]  ;;  %v596_v21 = vpop.f32.mrf.mxu0 }
 0x13c   :  { %1079 = vmatprep.mubr.f32.mxu1 %v8952_v8  ;;  %2320 = vmatpush2.msra.mxu1 %v1812_v22  ;;  %v1645_v22 = vld [vmem:[#allocation5 + $0x2a8] sm:$0xff] }
 0x13d   :  { %2321 = vmatprep.subr.mxu1 %v1809_v24  ;;  %1886 = vmatprep.subr.mxu0 %v1653_v5  ;;  %v1644_v24 = vld [vmem:[#allocation5 + $0x2a0] sm:$0xff] }
 0x13e   :  { %2322 = vmatpush2.msra.mxu1 %v1808_v28  ;;  %1887 = vmatpush2.msra.mxu0 %v1652_v59  ;;  %v597_v28 = vadd.f32 %v5605_v36, %v596_v21 }
 0x13f   :  { %1080 = vmatmul.mubr.f32.gmra.mxu1 %v747_v27  ;;  %2323 = vmatprep.subr.mxu1 %v1805_v30  ;;  %v754_v27 = vmax.f32 %v592_v18, 0.0  ;;  %v5133_v30 = vpop.f32.mrf.mxu0  ;;  %v5735_v18 = vld [vmem:[%s8942_s2] ss:$0 sm:$0xff] }
 0x140   :  { %1085 = vmatprep.mubr.f32.mxu1 %v8952_v8  ;;  %2324 = vmatpush2.msra.mxu1 %v1804_v31  ;;  %v1637_v31 = vld [vmem:[#allocation5 + $0x268] sm:$0xff] }
 0x141   :  { %2325 = vmatprep.subr.mxu1 %v1801_v32  ;;  %1888 = vmatprep.subr.mxu0 %v1649_v16  ;;  %v1753_v32 = vld [vmem:[#allocation5 + $0x608] sm:$0xff] }
 0x142   :  { %2326 = vmatpush2.msra.mxu1 %v1800_v37  ;;  %1889 = vmatpush2.msra.mxu0 %v1648_v20  ;;  %v755_v37 = vmax.f32 %v597_v28, 0.0 }
 0x143   :  { %1086 = vmatmul.mubr.f32.gmra.mxu1 %v748_v34  ;;  %2327 = vmatprep.subr.mxu1 %v1797_v39  ;;  %v1752_v34 = vld [vmem:[#allocation5 + $0x600] sm:$0xff]  ;;  %v606_v39 = vpop.f32.mrf.mxu0 }
 0x144   :  { %1091 = vmatprep.mubr.f32.mxu1 %v8952_v8  ;;  %2328 = vmatpush2.msra.mxu1 %v1796_v40  ;;  %v1632_v40 = vld [vmem:[#allocation5 + $0x240] sm:$0xff] }
 0x145   :  { %2329 = vmatprep.subr.mxu1 %v1793_v41  ;;  %1890 = vmatprep.subr.mxu0 %v1645_v22  ;;  %v1629_v41 = vld [vmem:[#allocation5 + $0x228] sm:$0xff]  ;;  %v5136_v46 = vpop.f32.mrf.mxu0 }
 0x146   :  { %2330 = vmatpush2.msra.mxu1 %v1792_v45  ;;  %1891 = vmatpush2.msra.mxu0 %v1644_v24  ;;  %v1625_v45 = vld [vmem:[#allocation5 + $0x208] sm:$0xff]  ;;  %v622_v54 = vadd.f32 %v5136_v46, %v5605_v36  ;;  %v811_v46 = vld [vmem:[%s8944_s4] sm:$0x3] }
 0x147   :  { %1092 = vmatmul.mubr.f32.gmra.mxu1 %v749_v44  ;;  %2331 = vmatprep.subr.mxu1 %v1789_v47  ;;  %v607_v44 = vadd.f32 %v5605_v36, %v606_v39  ;;  %v1623_v47 = vld [vmem:[#allocation5 + $0x1f8] sm:$0xff]  ;;  %v616_v50 = vpop.f32.mrf.mxu0 }
 0x148   :  { %1097 = vmatprep.mubr.f32.mxu1 %v8952_v8  ;;  %2332 = vmatpush2.msra.mxu1 %v1788_v48  ;;  %v612_v48 = vadd.f32 %v5133_v30, %v5605_v36  ;;  %v617_v52 = vadd.f32 %v5605_v36, %v616_v50 }
 0x149   :  { %2333 = vmatprep.subr.mxu1 %v1785_v49  ;;  %1892 = vmatprep.subr.mxu0 %v1641_v25  ;;  %v757_v49 = vmax.f32 %v607_v44, 0.0 }
 0x14a   :  { %2334 = vmatpush2.msra.mxu1 %v1784_v53  ;;  %1893 = vmatpush2.msra.mxu0 %v1640_v29  ;;  %v5139_v53 = vpop.f32.mrf.mxu0  ;;  %v759_v55 = vmax.f32 %v617_v52, 0.0 }
 0x14b   :  { %1098 = vmatmul.mubr.f32.gmra.mxu1 %v750_v51  ;;  %2335 = vmatprep.subr.mxu1 %v1781_v23  ;;  %v758_v51 = vmax.f32 %v612_v48, 0.0  ;;  %v632_v60 = vadd.f32 %v5139_v53, %v5605_v36 }
 0x14c   :  { %1103 = vmatprep.mubr.f32.mxu1 %v8952_v8  ;;  %2336 = vmatpush2.msra.mxu1 %v1780_v56  ;;  %v626_v23 = vpop.f32.mrf.mxu0  ;;  %v760_v56 = vmax.f32 %v622_v54, 0.0 }
 0x14d   :  { %2337 = vmatprep.subr.mxu1 %v1777_v57  ;;  %1894 = vmatprep.subr.mxu0 %v1637_v31  ;;  %v627_v57 = vadd.f32 %v5605_v36, %v626_v23  ;;  %v762_v0 = vmax.f32 %v632_v60, 0.0 }
 0x14e   :  { %2338 = vmatpush2.msra.mxu1 %v1776_v62  ;;  %1895 = vmatpush2.msra.mxu0 %v1636_v33  ;;  %v5142_v58 = vpop.f32.mrf.mxu0 }
 0x14f   :  { %1104 = vmatmul.mubr.f32.gmra.mxu1 %v751_v61  ;;  %2339 = vmatprep.subr.mxu1 %v1773_v1  ;;  %v761_v61 = vmax.f32 %v627_v57, 0.0 }
 0x150   :  { %1109 = vmatprep.mubr.f32.mxu1 %v8952_v8  ;;  %2340 = vmatpush2.msra.mxu1 %v1772_v3  ;;  %v636_v62 = vpop.f32.mrf.mxu0 }
 0x151   :  { %2341 = vmatprep.subr.mxu1 %v1769_v4  ;;  %1896 = vmatprep.subr.mxu0 %v1633_v38  ;;  %v637_v1 = vadd.f32 %v5605_v36, %v636_v62  ;;  %v642_v4 = vadd.f32 %v5142_v58, %v5605_v36 }
 0x152   :  { %2342 = vmatpush2.msra.mxu1 %v1768_v11  ;;  %1897 = vmatpush2.msra.mxu0 %v1632_v40  ;;  %v5145_v63 = vpop.f32.mrf.mxu0 }
 0x153   :  { %1110 = vmatmul.mubr.f32.gmra.mxu1 %v752_v7  ;;  %2343 = vmatprep.subr.mxu1 %v1765_v13  ;;  %v763_v5 = vmax.f32 %v637_v1, 0.0  ;;  %v764_v9 = vmax.f32 %v642_v4, 0.0  ;;  %v652_v13 = vadd.f32 %v5145_v63, %v5605_v36 }
 0x154   :  { %1115 = vmatprep.mubr.f32.mxu1 %v8952_v8  ;;  %2344 = vmatpush2.msra.mxu1 %v1764_v15  ;;  %v646_v3 = vpop.f32.mrf.mxu0 }
 0x155   :  { %2345 = vmatprep.subr.mxu1 %v1761_v17  ;;  %1898 = vmatprep.subr.mxu0 %v1629_v41  ;;  %v647_v11 = vadd.f32 %v5605_v36, %v646_v3  ;;  %v766_v17 = vmax.f32 %v652_v13, 0.0 }
 0x156   :  { %2346 = vmatpush2.msra.mxu1 %v1760_v6  ;;  %1899 = vmatpush2.msra.mxu0 %v1628_v42  ;;  %v5148_v7 = vpop.f32.mrf.mxu0 }
 0x157   :  { %1116 = vmatmul.mubr.f32.gmra.mxu1 %v753_v19  ;;  %2347 = vmatprep.subr.mxu1 %v1757_v26  ;;  %v765_v15 = vmax.f32 %v647_v11, 0.0  ;;  %v662_v6 = vadd.f32 %v5735_v18, %v5148_v7 }
 0x158   :  { %1121 = vmatprep.mubr.f32.mxu1 %v8952_v8  ;;  %2348 = vmatpush2.msra.mxu1 %v1756_v2  ;;  %v656_v59 = vpop.f32.mrf.mxu0 }
 0x159   :  { %2349 = vmatprep.subr.mxu1 %v1753_v32  ;;  %1900 = vmatprep.subr.mxu0 %v1625_v45  ;;  %v657_v19 = vadd.f32 %v5735_v18, %v656_v59  ;;  %v768_v22 = vmax.f32 %v662_v6, 0.0 }
 0x15a   :  { %2350 = vmatpush2.msra.mxu1 %v1752_v34  ;;  %1901 = vmatpush2.msra.mxu0 %v1624_v10  ;;  %v5151_v12 = vpop.f32.mrf.mxu0  ;;  %v813_v34 = vlaneseq }
 0x15b   :  { %1122 = vmatmul.mubr.f32.gmra.mxu1 %v754_v27  ;;  %3185 = vmatprep.subr.mxu1 %v1751_v14  ;;  %v767_v36 = vmax.f32 %v657_v19, 0.0  ;;  %v672_v27 = vadd.f32 %v5735_v18, %v5151_v12 }
 0x15c   :  { %1127 = vmatprep.mubr.f32.mxu1 %v8952_v8  ;;  %2736 = vmatprep.subr.mxu0 %v1623_v47  ;;  %v666_v16 = vpop.f32.mrf.mxu0  ;;  %v5752_v14 = vshrl.u32 %v813_v34, 7 }
 0x15d   :  { %v667_v24 = vadd.f32 %v5735_v18, %v666_v16  ;;  %v770_v29 = vmax.f32 %v672_v27, 0.0 }
 0x15e   :  { %v5154_v20 = vpop.f32.mrf.mxu0  ;;  %9098 = vst [vmem:[#allocation11_spill] sm:$0xff] %v5752_v14  ;;  %v8950_v47 = vsub.s32 1, %v5752_v14 }
 0x15f   :  { %1128 = vmatmul.mubr.f32.gmra.mxu1 %v755_v37  ;;  %v769_v26 = vmax.f32 %v667_v24, 0.0  ;;  %v682_v31 = vadd.f32 %v5735_v18, %v5154_v20 }
 0x160   :  { %1133 = vmatprep.mubr.f32.mxu1 %v8952_v8  ;;  %v676_v21 = vpop.f32.mrf.mxu0  ;;  %v5770_v53 = vrot.slane %v811_v46, %v8950_v47 }
 0x161   :  { %v677_v2 = vadd.f32 %v5735_v18, %v676_v21  ;;  %v772_v35 = vmax.f32 %v682_v31, 0.0  ;;  %v1746_v31 = vld [vmem:[#allocation5 + $0x5d0] sm:$0xff] }
 0x162   :  { %v5157_v25 = vpop.f32.mrf.mxu0 }
 0x163   :  { %1134 = vmatmul.mubr.f32.gmra.mxu1 %v756_v43  ;;  %v771_v32 = vmax.f32 %v677_v2, 0.0  ;;  %v692_v39 = vadd.f32 %v5735_v18, %v5157_v25  ;;  %v8951_v43 = vsub.s32 0, %v5752_v14  ;;  %v1750_v25 = vld [vmem:[#allocation5 + $0x5f0] sm:$0xff] }
 0x164   :  { %1139 = vmatprep.mubr.f32.mxu1 %v8952_v8  ;;  %v686_v28 = vpop.f32.mrf.mxu0 }
 0x165   :  { %v687_v37 = vadd.f32 %v5735_v18, %v686_v28  ;;  %v774_v44 = vmax.f32 %v692_v39, 0.0 }
 0x166   :  { %v5160_v30 = vpop.f32.mrf.mxu0 }
 0x167   :  { %1140 = vmatmul.mubr.f32.gmra.mxu1 %v757_v49  ;;  %v773_v40 = vmax.f32 %v687_v37, 0.0  ;;  %v5764_v49 = vrot.slane %v811_v46, %v8951_v43  ;;  %v702_v50 = vadd.f32 %v5735_v18, %v5160_v30 }
 0x168   :  { %1145 = vmatprep.mubr.f32.mxu1 %v8952_v8  ;;  %v696_v33 = vpop.f32.mrf.mxu0 }
 0x169   :  { %v697_v45 = vadd.f32 %v5735_v18, %v696_v33  ;;  %v776_v58 = vmax.f32 %v702_v50, 0.0 }
 0x16a   :  { %v5163_v38 = vpop.f32.mrf.mxu0 }
 0x16b   :  { %1146 = vmatmul.mubr.f32.gmra.mxu1 %v758_v51  ;;  %v775_v51 = vmax.f32 %v697_v45, 0.0  ;;  %v712_v7 = vadd.f32 %v5735_v18, %v5163_v38  ;;  %v1739_v45 = vld [vmem:[#allocation5 + $0x598] sm:$0xff] }
 0x16c   :  { %1151 = vmatprep.mubr.f32.mxu1 %v8952_v8  ;;  %v706_v41 = vpop.f32.mrf.mxu0 }
 0x16d   :  { %v707_v60 = vadd.f32 %v5735_v18, %v706_v41  ;;  %v778_v19 = vmax.f32 %v712_v7, 0.0  ;;  %v1618_v7 = vld [vmem:[#allocation5 + $0x1d0] sm:$0xff] }
 0x16f   :  { %1152 = vmatmul.mubr.f32.gmra.mxu1 %v759_v55 }
 0x170   :  { %1157 = vmatprep.mubr.f32.mxu1 %v8952_v8 }
 0x173   :  { %1158 = vmatmul.mubr.f32.gmra.mxu1 %v760_v56 }
 0x174   :  { %1163 = vmatprep.mubr.f32.mxu1 %v8952_v8 }
 0x177   :  { %1164 = vmatmul.mubr.f32.gmra.mxu1 %v761_v61 }
 0x178   :  { %1169 = vmatprep.mubr.f32.mxu1 %v8952_v8 }
 0x17b   :  { %1170 = vmatmul.mubr.f32.gmra.mxu1 %v762_v0 }
 0x17c   :  { %1175 = vmatprep.mubr.f32.mxu1 %v8952_v8 }
 0x17f   :  { %1176 = vmatmul.mubr.f32.gmra.mxu1 %v763_v5 }
 0x180   :  { %1181 = vmatprep.mubr.f32.mxu1 %v8952_v8 }
 0x183   :  { %1182 = vmatmul.mubr.f32.gmra.mxu1 %v764_v9  ;;  %v777_v9 = vmax.f32 %v707_v60, 0.0  ;;  %v1622_v60 = vld [vmem:[#allocation5 + $0x1f0] sm:$0xff] }
 0x184   :  { %1187 = vmatprep.mubr.f32.mxu1 %v8952_v8 }
 0x187   :  { %1188 = vmatmul.mubr.f32.gmra.mxu1 %v765_v15 }
 0x188   :  { %1193 = vmatprep.mubr.f32.mxu1 %v8952_v8 }
 0x18b   :  { %1194 = vmatmul.mubr.f32.gmra.mxu1 %v766_v17 }
 0x18c   :  { %1199 = vmatprep.mubr.f32.mxu1 %v8952_v8 }
 0x18f   :  { %1200 = vmatmul.mubr.f32.gmra.mxu1 %v767_v36 }
 0x190   :  { %1205 = vmatprep.mubr.f32.mxu1 %v8952_v8 }
 0x193   :  { %1206 = vmatmul.mubr.f32.gmra.mxu1 %v768_v22 }
 0x194   :  { %1211 = vmatprep.mubr.f32.mxu1 %v8952_v8 }
 0x197   :  { %1212 = vmatmul.mubr.f32.gmra.mxu1 %v769_v26 }
 0x198   :  { %1217 = vmatprep.mubr.f32.mxu1 %v8952_v8 }
 0x19b   :  { %1218 = vmatmul.mubr.f32.gmra.mxu1 %v770_v29  ;;  %v1747_v29 = vld [vmem:[#allocation5 + $0x5d8] sm:$0xff] }
 0x19c   :  { %1223 = vmatprep.mubr.f32.mxu1 %v8952_v8 }
 0x19f   :  { %1224 = vmatmul.mubr.f32.gmra.mxu1 %v771_v32 }
 0x1a0   :  { %1229 = vmatprep.mubr.f32.mxu1 %v8952_v8 }
 0x1a3   :  { %1230 = vmatmul.mubr.f32.gmra.mxu1 %v772_v35  ;;  %v1743_v35 = vld [vmem:[#allocation5 + $0x5b8] sm:$0xff] }
 0x1a4   :  { %1235 = vmatprep.mubr.f32.mxu1 %v8952_v8 }
 0x1a7   :  { %v889_v42 = vpop.f32.mrf.mxu0  ;;  %1236 = vmatmul.mubr.f32.gmra.mxu1 %v773_v40  ;;  %v1742_v40 = vld [vmem:[#allocation5 + $0x5b0] sm:$0xff] }
 0x1a8   :  { %1241 = vmatprep.mubr.f32.mxu1 %v8952_v8  ;;  %v5776_v23 = vadd.f32 %v889_v42, %v5764_v49 }
 0x1a9   :  { %v891_v10 = vpop.f32.mrf.mxu0 }
 0x1aa   :  { %v5787_v62 = vadd.f32 %v891_v10, %v5770_v53 }
 0x1ab   :  { %v895_v48 = vpop.f32.mrf.mxu0  ;;  %1242 = vmatmul.mubr.f32.gmra.mxu1 %v774_v44 }
 0x1ac   :  { %1247 = vmatprep.mubr.f32.mxu1 %v8952_v8  ;;  %v5773_v54 = vadd.f32 %v895_v48, %v5764_v49  ;;  %v1738_v48 = vld [vmem:[#allocation5 + $0x590] sm:$0xff] }
 0x1ad   :  { %v897_v52 = vpop.f32.mrf.mxu0 }
 0x1ae   :  { %v5779_v56 = vadd.f32 %v897_v52, %v5770_v53  ;;  %v1272_v63 = vmax.f32 %v5776_v23, %v5773_v54 }
 0x1af   :  { %v901_v55 = vpop.f32.mrf.mxu0  ;;  %1248 = vmatmul.mubr.f32.gmra.mxu1 %v775_v51 }
 0x1b0   :  { %v5782_v57 = vadd.f32 %v901_v55, %v5764_v49  ;;  %1253 = vmatprep.mubr.f32.mxu1 %v8952_v8  ;;  %v1281_v3 = vmax.f32 %v5787_v62, %v5779_v56 }
 0x1b1   :  { %v903_v61 = vpop.f32.mrf.mxu0 }
 0x1b2   :  { %v5792_v0 = vadd.f32 %v903_v61, %v5770_v53  ;;  %v1273_v4 = vmax.f32 %v1272_v63, %v5782_v57 }
 0x1b3   :  { %v907_v1 = vpop.f32.mrf.mxu0  ;;  %1254 = vmatmul.mubr.f32.gmra.mxu1 %v776_v58 }
 0x1b4   :  { %v5798_v5 = vadd.f32 %v907_v1, %v5764_v49  ;;  %1259 = vmatprep.mubr.f32.mxu1 %v8952_v8  ;;  %v1282_v59 = vmax.f32 %v1281_v3, %v5792_v0  ;;  %v1619_v3 = vld [vmem:[#allocation5 + $0x1d8] sm:$0xff] }
 0x1b5   :  { %v909_v11 = vpop.f32.mrf.mxu0 }
 0x1b6   :  { %9099 = vst [vmem:[#allocation12_spill] sm:$0xff] %v5798_v5  ;;  %v1274_v12 = vmax.f32 %v1273_v4, %v5798_v5  ;;  %v5805_v13 = vadd.f32 %v909_v11, %v5770_v53 }
 0x1b7   :  { %v913_v15 = vpop.f32.mrf.mxu0  ;;  %1260 = vmatmul.mubr.f32.gmra.mxu1 %v777_v9  ;;  %v1735_v9 = vld [vmem:[#allocation5 + $0x578] sm:$0xff] }
 0x1b8   :  { %v1275_v16 = vrot.slane %v1274_v12, 4  ;;  %v1283_v17 = vmax.f32 %v1282_v59, %v5805_v13  ;;  %1265 = vmatprep.mubr.f32.mxu1 %v8952_v8  ;;  %v5818_v33 = vadd.f32 %v913_v15, %v5764_v49 }
 0x1b9   :  { %v915_v20 = vpop.f32.mrf.mxu0 }
 0x1ba   :  { %v1276_v6 = vmax.f32 %v1274_v12, %v1275_v16  ;;  %v1284_v18 = vrot.slane %v1283_v17, 4  ;;  %9102 = vst [vmem:[#allocation15_spill] sm:$0xff] %v5818_v33  ;;  %v5825_v38 = vadd.f32 %v915_v20, %v5770_v53  ;;  %v1734_v20 = vld [vmem:[#allocation5 + $0x570] sm:$0xff] }
 0x1bb   :  { %v919_v36 = vpop.f32.mrf.mxu0  ;;  %1266 = vmatmul.mubr.f32.gmra.mxu1 %v778_v19  ;;  %v1615_v19 = vld [vmem:[#allocation5 + $0x1b8] sm:$0xff] }
 0x1bc   :  { %v1277_v21 = vrot.slane %v1276_v6, 2  ;;  %v1285_v22 = vmax.f32 %v1283_v17, %v1284_v18  ;;  %2351 = vmatprep.mubr.f32.mxu1 %v5787_v62  ;;  %v5811_v28 = vadd.f32 %v919_v36, %v5764_v49  ;;  %9104 = vst [vmem:[#allocation17_spill] sm:$0xff] %v5825_v38  ;;  %v1614_v36 = vld [vmem:[#allocation5 + $0x1b0] sm:$0xff] }
 0x1bd   :  { %v921_v24 = vpop.f32.mrf.mxu0 }
 0x1be   :  { %v1278_v26 = vmax.f32 %v1276_v6, %v1277_v21  ;;  %v1286_v27 = vrot.slane %v1285_v22, 2  ;;  %9100 = vst [vmem:[#allocation13_spill] sm:$0xff] %v5811_v28  ;;  %v5814_v2 = vadd.f32 %v921_v24, %v5770_v53  ;;  %v1290_v42 = vmax.f32 %v5818_v33, %v5811_v28  ;;  %v1731_v21 = vld [vmem:[#allocation5 + $0x558] sm:$0xff] }
 0x1bf   :  { %v925_v30 = vpop.f32.mrf.mxu0  ;;  %2352 = vmatmul.mubr.f32.vlgmr.msra.gmra.mxu1 %v5776_v23 }
 0x1c0   :  { %9101 = vst [vmem:[#allocation14_spill] sm:$0xff] %v5814_v2  ;;  %v1287_v32 = vmax.f32 %v1285_v22, %v1286_v27  ;;  %v5821_v34 = vadd.f32 %v925_v30, %v5764_v49  ;;  %2357 = vmatprep.mubr.f32.mxu1 %v5779_v56  ;;  %3186 = vmatpush1.msra.mxu1 %v1750_v25  ;;  %v1279_v37 = vrot.slane %v1278_v26, 1  ;;  %v1611_v30 = vld [vmem:[#allocation5 + $0x198] sm:$0xff] }
 0x1c1   :  { %v927_v39 = vpop.f32.mrf.mxu0  ;;  %3187 = vmatprep.subr.mxu1 %v1747_v29  ;;  %v1299_v46 = vmax.f32 %v5825_v38, %v5814_v2 }
 0x1c2   :  { %9103 = vst [vmem:[#allocation16_spill] sm:$0xff] %v5821_v34  ;;  %v1288_v41 = vrot.slane %v1287_v32, 1  ;;  %v5830_v44 = vadd.f32 %v927_v39, %v5770_v53  ;;  %3188 = vmatpush1.msra.mxu1 %v1746_v31  ;;  %v1291_v51 = vmax.f32 %v1290_v42, %v5821_v34  ;;  %v5842_v55 = vmax.f32 %v1278_v26, %v1279_v37  ;;  %v1730_v31 = vld [vmem:[#allocation5 + $0x550] sm:$0xff] }
 0x1c3   :  { %v931_v10 = vpop.f32.mrf.mxu0  ;;  %2358 = vmatmul.mubr.f32.gmra.mxu1 %v5773_v54  ;;  %3189 = vmatprep.subr.mxu1 %v1743_v35  ;;  %v1610_v39 = vld [vmem:[#allocation5 + $0x190] sm:$0xff] }
 0x1c4   :  { %9105 = vst [vmem:[#allocation18_spill] sm:$0xff] %v5830_v44  ;;  %v5835_v50 = vmax.f32 %v1287_v32, %v1288_v41  ;;  %v5839_v52 = vadd.f32 %v931_v10, %v5764_v49  ;;  %2363 = vmatprep.mubr.f32.mxu1 %v5792_v0  ;;  %3190 = vmatpush1.msra.mxu1 %v1742_v40  ;;  %v1727_v40 = vld [vmem:[#allocation5 + $0x538] sm:$0xff] }
 0x1c5   :  { %v933_v58 = vpop.f32.mrf.mxu0  ;;  %3191 = vmatprep.subr.mxu1 %v1739_v45  ;;  %v1300_v61 = vmax.f32 %v1299_v46, %v5830_v44 }
 0x1c6   :  { %9106 = vst [vmem:[#allocation19_spill] sm:$0xff] %v5839_v52  ;;  %v1292_v63 = vmax.f32 %v1291_v51, %v5839_v52  ;;  %v5847_v1 = vadd.f32 %v933_v58, %v5770_v53  ;;  %1902 = vmatprep.mubr.f32.mxu0 %v5835_v50  ;;  %3192 = vmatpush1.msra.mxu1 %v1738_v48 }
 0x1c7   :  { %v937_v4 = vpop.f32.mrf.mxu0  ;;  %1903 = vmatmul.mubr.f32.vlgmr.msra.gmra.mxu0 %v5842_v55  ;;  %2364 = vmatmul.mubr.f32.gmra.mxu1 %v5782_v57 }
 0x1c8   :  { %9107 = vst [vmem:[#allocation20_spill] sm:$0xff] %v5847_v1  ;;  %v1293_v11 = vrot.slane %v1292_v63, 4  ;;  %v1301_v59 = vmax.f32 %v1300_v61, %v5847_v1  ;;  %2737 = vmatpush1.msra.mxu0 %v1622_v60  ;;  %1908 = vmatprep.mubr.f32.mxu0 %v5835_v50  ;;  %v5867_v32 = vadd.f32 %v937_v4, %v5764_v49 }
 0x1c9   :  { %2369 = vmatprep.mubr.f32.mxu1 %v5805_v13  ;;  %v939_v12 = vpop.f32.mrf.mxu0  ;;  %v5855_v15 = vpop.f32.mrf.mxu1  ;;  %2738 = vmatprep.subr.mxu0 %v1619_v3  ;;  %v1726_v3 = vld [vmem:[#allocation5 + $0x530] sm:$0xff] }
 0x1ca   :  { %v1294_v16 = vmax.f32 %v1292_v63, %v1293_v11  ;;  %v1302_v17 = vrot.slane %v1301_v59, 4  ;;  %2739 = vmatpush1.msra.mxu0 %v1618_v7  ;;  %3193 = vmatprep.subr.mxu1 %v1735_v9  ;;  %9109 = vst [vmem:[#allocation22_spill] sm:$0xff] %v5867_v32  ;;  %v5884_v58 = vadd.f32 %v939_v12, %v5770_v53  ;;  %v1607_v63 = vld [vmem:[#allocation5 + $0x178] sm:$0xff] }
 0x1cb   :  { %v943_v6 = vpop.f32.mrf.mxu0  ;;  %1909 = vmatmul.mubr.f32.gmra.mxu0 %v5842_v55  ;;  %2370 = vmatmul.mubr.f32.gmra.mxu1 %v5798_v5  ;;  %v5859_v18 = vpop.f32.mrf.mxu1  ;;  %v1814_v5 = vld [vmem:[#allocation5 + $0x7f0] sm:$0xff] }
 0x1cc   :  { %v1295_v22 = vrot.slane %v1294_v16, 2  ;;  %v1303_v24 = vmax.f32 %v1301_v59, %v1302_v17  ;;  %1914 = vmatprep.mubr.f32.mxu0 %v5835_v50  ;;  %2375 = vmatprep.mubr.f32.mxu1 %v5825_v38  ;;  %v5864_v29 = vadd.f32 %v943_v6, %v5764_v49  ;;  %9112 = vst [vmem:[#allocation25_spill] sm:$0xff] %v5884_v58  ;;  %v1691_v38 = vld [vmem:[#allocation5 + $0x418] sm:$0xff] }
 0x1cd   :  { %v945_v25 = vpop.f32.mrf.mxu0  ;;  %2740 = vmatprep.subr.mxu0 %v1615_v19  ;;  %3194 = vmatpush1.msra.mxu1 %v1734_v20 }
 0x1ce   :  { %v1296_v26 = vmax.f32 %v1294_v16, %v1295_v22  ;;  %v1304_v27 = vrot.slane %v1303_v24, 2  ;;  %9108 = vst [vmem:[#allocation21_spill] sm:$0xff] %v5864_v29  ;;  %2741 = vmatpush1.msra.mxu0 %v1614_v36  ;;  %3195 = vmatprep.subr.mxu1 %v1731_v21  ;;  %v5874_v42 = vadd.f32 %v945_v25, %v5770_v53  ;;  %v1606_v21 = vld [vmem:[#allocation5 + $0x170] sm:$0xff]  ;;  %v1723_v22 = vld [vmem:[#allocation5 + $0x518] sm:$0xff] }
 0x1cf   :  { %v949_v35 = vpop.f32.mrf.mxu0  ;;  %v5869_v37 = vpop.f32.mrf.mxu1  ;;  %1915 = vmatmul.mubr.f32.gmra.mxu0 %v5842_v55  ;;  %2376 = vmatmul.mubr.f32.gmra.mxu1 %v5818_v33  ;;  %v1308_v60 = vmax.f32 %v5867_v32, %v5864_v29 }
 0x1d0   :  { %v1305_v41 = vmax.f32 %v1303_v24, %v1304_v27  ;;  %9110 = vst [vmem:[#allocation23_spill] sm:$0xff] %v5874_v42  ;;  %v5877_v45 = vadd.f32 %v949_v35, %v5764_v49  ;;  %1920 = vmatprep.mubr.f32.mxu0 %v5835_v50  ;;  %2381 = vmatprep.mubr.f32.mxu1 %v5814_v2  ;;  %v1297_v46 = vrot.slane %v1296_v26, 1  ;;  %v1722_v27 = vld [vmem:[#allocation5 + $0x510] sm:$0xff] }
 0x1d1   :  { %v951_v10 = vpop.f32.mrf.mxu0  ;;  %v5881_v48 = vpop.f32.mrf.mxu1  ;;  %2742 = vmatprep.subr.mxu0 %v1611_v30  ;;  %3196 = vmatpush1.msra.mxu1 %v1730_v31  ;;  %v1317_v11 = vmax.f32 %v5884_v58, %v5874_v42 }
 0x1d2   :  { %9111 = vst [vmem:[#allocation24_spill] sm:$0xff] %v5877_v45  ;;  %v1306_v51 = vrot.slane %v1305_v41, 1  ;;  %v5889_v61 = vadd.f32 %v951_v10, %v5770_v53  ;;  %2743 = vmatpush1.msra.mxu0 %v1610_v39  ;;  %3197 = vmatprep.subr.mxu1 %v1727_v40  ;;  %v1309_v59 = vmax.f32 %v1308_v60, %v5877_v45  ;;  %v1719_v10 = vld [vmem:[#allocation5 + $0x4f8] sm:$0xff] }
 0x1d3   :  { %v955_v4 = vpop.f32.mrf.mxu0  ;;  %v5891_v7 = vpop.f32.mrf.mxu1  ;;  %1921 = vmatmul.mubr.f32.gmra.mxu0 %v5842_v55  ;;  %2382 = vmatmul.mubr.f32.gmra.mxu1 %v5811_v28  ;;  %v5904_v16 = vmax.f32 %v1296_v26, %v1297_v46  ;;  %v1603_v26 = vld [vmem:[#allocation5 + $0x158] sm:$0xff]  ;;  %v1602_v46 = vld [vmem:[#allocation5 + $0x150] sm:$0xff] }
 0x1d4   :  { %9113 = vst [vmem:[#allocation26_spill] sm:$0xff] %v5889_v61  ;;  %v5895_v9 = vmax.f32 %v1305_v41, %v1306_v51  ;;  %v5901_v12 = vadd.f32 %v955_v4, %v5764_v49  ;;  %2387 = vmatprep.mubr.f32.mxu1 %v5830_v44  ;;  %2744 = vmatprep.subr.mxu0 %v1607_v63  ;;  %v1599_v63 = vld [vmem:[#allocation5 + $0x138] sm:$0xff] }
 0x1d5   :  { %9116 = vst [vmem:[#allocation29_spill] sm:$0xff] %v5904_v16  ;;  %v957_v17 = vpop.f32.mrf.mxu0  ;;  %v5906_v19 = vpop.f32.mrf.mxu1  ;;  %3198 = vmatpush1.msra.mxu1 %v1726_v3  ;;  %v1318_v20 = vmax.f32 %v1317_v11, %v5889_v61  ;;  %2745 = vmatpush1.msra.mxu0 %v1606_v21  ;;  %v1718_v3 = vld [vmem:[#allocation5 + $0x4f0] sm:$0xff] }
 0x1d6   :  { %9114 = vst [vmem:[#allocation27_spill] sm:$0xff] %v5895_v9  ;;  %9115 = vst [vmem:[#allocation28_spill] sm:$0xff] %v5901_v12  ;;  %v1310_v6 = vmax.f32 %v1309_v59, %v5901_v12  ;;  %v5911_v36 = vadd.f32 %v957_v17, %v5770_v53  ;;  %1926 = vmatprep.mubr.f32.mxu0 %v5895_v9  ;;  %3199 = vmatprep.subr.mxu1 %v1723_v22  ;;  %v1598_v22 = vld [vmem:[#allocation5 + $0x130] sm:$0xff] }
 0x1d7   :  { %v961_v24 = vpop.f32.mrf.mxu0  ;;  %v5914_v25 = vpop.f32.mrf.mxu1  ;;  %1927 = vmatmul.mubr.f32.gmra.mxu0 %v5904_v16  ;;  %2388 = vmatmul.mubr.f32.gmra.mxu1 %v5821_v34 }
 0x1d8   :  { %9117 = vst [vmem:[#allocation30_spill] sm:$0xff] %v5911_v36  ;;  %v1311_v30 = vrot.slane %v1310_v6, 4  ;;  %v1319_v31 = vmax.f32 %v1318_v20, %v5911_v36  ;;  %1932 = vmatprep.mubr.f32.mxu0 %v5895_v9  ;;  %2393 = vmatprep.mubr.f32.mxu1 %v5847_v1 }
 0x1d9   :  { %v963_v35 = vpop.f32.mrf.mxu0  ;;  %v5921_v39 = vpop.f32.mrf.mxu1  ;;  %2746 = vmatprep.subr.mxu0 %v1603_v26  ;;  %3200 = vmatpush1.msra.mxu1 %v1722_v27  ;;  %v1715_v26 = vld [vmem:[#allocation5 + $0x4d8] sm:$0xff]  ;;  %v5935_v27 = vadd.f32 %v961_v24, %v5764_v49 }
 0x1da   :  { %v1312_v40 = vmax.f32 %v1310_v6, %v1311_v30  ;;  %v1320_v41 = vrot.slane %v1319_v31, 4  ;;  %2747 = vmatpush1.msra.mxu0 %v1602_v46  ;;  %3201 = vmatprep.subr.mxu1 %v1719_v10  ;;  %v5952_v47 = vadd.f32 %v963_v35, %v5770_v53 }
 0x1db   :  { %v967_v51 = vpop.f32.mrf.mxu0  ;;  %v5923_v60 = vpop.f32.mrf.mxu1  ;;  %1933 = vmatmul.mubr.f32.gmra.mxu0 %v5904_v16  ;;  %2394 = vmatmul.mubr.f32.gmra.mxu1 %v5839_v52  ;;  %9119 = vst [vmem:[#allocation32_spill] sm:$0xff] %v5935_v27  ;;  %v1587_v52 = vld [vmem:[#allocation5 + $0xd8] sm:$0xff] }
 0x1dc   :  { %v1313_v4 = vrot.slane %v1312_v40, 2  ;;  %v1321_v11 = vmax.f32 %v1319_v31, %v1320_v41  ;;  %1938 = vmatprep.mubr.f32.mxu0 %v5895_v9  ;;  %2399 = vmatprep.mubr.f32.mxu1 %v5884_v58  ;;  %v5932_v21 = vadd.f32 %v967_v51, %v5764_v49  ;;  %v1595_v41 = vld [vmem:[#allocation5 + $0x118] sm:$0xff]  ;;  %9122 = vst [vmem:[#allocation35_spill] sm:$0xff] %v5952_v47 }
 0x1dd   :  { %v969_v59 = vpop.f32.mrf.mxu0  ;;  %v5929_v17 = vpop.f32.mrf.mxu1  ;;  %2748 = vmatprep.subr.mxu0 %v1599_v63  ;;  %3202 = vmatpush1.msra.mxu1 %v1718_v3 }
 0x1de   :  { %v1314_v20 = vmax.f32 %v1312_v40, %v1313_v4  ;;  %v1322_v6 = vrot.slane %v1321_v11, 2  ;;  %9118 = vst [vmem:[#allocation31_spill] sm:$0xff] %v5932_v21  ;;  %v1714_v40 = vld [vmem:[#allocation5 + $0x4d0] sm:$0xff]  ;;  %v5942_v10 = vadd.f32 %v969_v59, %v5770_v53  ;;  %2749 = vmatpush1.msra.mxu0 %v1598_v22  ;;  %3203 = vmatprep.subr.mxu1 %v1715_v26 }
 0x1df   :  { %v973_v30 = vpop.f32.mrf.mxu0  ;;  %v5937_v31 = vpop.f32.mrf.mxu1  ;;  %1939 = vmatmul.mubr.f32.gmra.mxu0 %v5904_v16  ;;  %2400 = vmatmul.mubr.f32.gmra.mxu1 %v5867_v32 }
 0x1e0   :  { %v1323_v46 = vmax.f32 %v1321_v11, %v1322_v6  ;;  %9120 = vst [vmem:[#allocation33_spill] sm:$0xff] %v5942_v10  ;;  %v5945_v51 = vadd.f32 %v973_v30, %v5764_v49  ;;  %1944 = vmatprep.mubr.f32.mxu0 %v5895_v9  ;;  %2405 = vmatprep.mubr.f32.mxu1 %v5874_v42  ;;  %v1315_v24 = vrot.slane %v1314_v20, 1  ;;  %v1594_v6 = vld [vmem:[#allocation5 + $0x110] sm:$0xff]  ;;  %v1711_v30 = vld [vmem:[#allocation5 + $0x4b8] sm:$0xff] }
 0x1e1   :  { %v975_v63 = vpop.f32.mrf.mxu0  ;;  %v5949_v3 = vpop.f32.mrf.mxu1  ;;  %v1326_v11 = vmax.f32 %v5935_v27, %v5932_v21  ;;  %2750 = vmatprep.subr.mxu0 %v1595_v41  ;;  %3204 = vmatpush1.msra.mxu1 %v1714_v40  ;;  %v1335_v35 = vmax.f32 %v5952_v47, %v5942_v10 }
 0x1e2   :  { %9121 = vst [vmem:[#allocation34_spill] sm:$0xff] %v5945_v51  ;;  %v1324_v4 = vrot.slane %v1323_v46, 1  ;;  %v5957_v59 = vadd.f32 %v975_v63, %v5770_v53  ;;  %v5972_v41 = vmax.f32 %v1314_v20, %v1315_v24  ;;  %2751 = vmatpush1.msra.mxu0 %v1594_v6  ;;  %3205 = vmatprep.subr.mxu1 %v1711_v30  ;;  %v1590_v20 = vld [vmem:[#allocation5 + $0xf0] sm:$0xff]  ;;  %v1707_v24 = vld [vmem:[#allocation5 + $0x498] sm:$0xff] }
 0x1e3   :  { %v979_v43 = vpop.f32.mrf.mxu0  ;;  %v5959_v8 = vpop.f32.mrf.mxu1  ;;  %1945 = vmatmul.mubr.f32.gmra.mxu0 %v5904_v16  ;;  %2406 = vmatmul.mubr.f32.gmra.mxu1 %v5864_v29  ;;  %v1327_v26 = vmax.f32 %v1326_v11, %v5945_v51  ;;  %v1710_v11 = vld [vmem:[#allocation5 + $0x4b0] sm:$0xff] }
 0x1e4   :  { %9123 = vst [vmem:[#allocation36_spill] sm:$0xff] %v5957_v59  ;;  %v5963_v22 = vmax.f32 %v1323_v46, %v1324_v4  ;;  %v5969_v63 = vadd.f32 %v979_v43, %v5764_v49  ;;  %2411 = vmatprep.mubr.f32.mxu1 %v5889_v61  ;;  %9126 = vst [vmem:[#allocation39_spill] sm:$0xff] %v5972_v41  ;;  %v1336_v46 = vmax.f32 %v1335_v35, %v5957_v59  ;;  %v1591_v43 = vld [vmem:[#allocation5 + $0xf8] sm:$0xff] }
 0x1e5   :  { %v981_v40 = vpop.f32.mrf.mxu0  ;;  %v5974_v42 = vpop.f32.mrf.mxu1  ;;  %2752 = vmatprep.subr.mxu0 %v1591_v43  ;;  %3206 = vmatpush1.msra.mxu1 %v1710_v11  ;;  %v6006_v11 = vadd.f32 %v5881_v48, %v5770_v53  ;;  %v6018_v48 = vadd.f32 %v5891_v7, %v5764_v49 }
 0x1e6   :  { %9124 = vst [vmem:[#allocation37_spill] sm:$0xff] %v5963_v22  ;;  %9125 = vst [vmem:[#allocation38_spill] sm:$0xff] %v5969_v63  ;;  %v1328_v4 = vmax.f32 %v1327_v26, %v5969_v63  ;;  %v5979_v29 = vadd.f32 %v981_v40, %v5770_v53  ;;  %1950 = vmatprep.mubr.f32.mxu0 %v5963_v22  ;;  %2753 = vmatpush1.msra.mxu0 %v1590_v20 }
 0x1e7   :  { %v985_v32 = vpop.f32.mrf.mxu0  ;;  %v5982_v61 = vpop.f32.mrf.mxu1  ;;  %1951 = vmatmul.mubr.f32.gmra.mxu0 %v5972_v41  ;;  %2412 = vmatmul.mubr.f32.gmra.mxu1 %v5877_v45  ;;  %v1706_v45 = vld [vmem:[#allocation5 + $0x490] sm:$0xff]  ;;  %9130 = vst [vmem:[#allocation43_spill] sm:$0xff] %v6006_v11  ;;  %9133 = vst [vmem:[#allocation46_spill] sm:$0xff] %v6018_v48 }
 0x1e8   :  { %9127 = vst [vmem:[#allocation40_spill] sm:$0xff] %v5979_v29  ;;  %v1329_v6 = vrot.slane %v1328_v4, 4  ;;  %v1337_v30 = vmax.f32 %v1336_v46, %v5979_v29  ;;  %1956 = vmatprep.mubr.f32.mxu0 %v5963_v22  ;;  %2417 = vmatprep.mubr.f32.mxu1 %v5911_v36  ;;  %v1586_v46 = vld [vmem:[#allocation5 + $0xd0] sm:$0xff]  ;;  %v1703_v36 = vld [vmem:[#allocation5 + $0x478] sm:$0xff] }
 0x1e9   :  { %v987_v35 = vpop.f32.mrf.mxu0  ;;  %v5989_v26 = vpop.f32.mrf.mxu1  ;;  %3207 = vmatprep.subr.mxu1 %v1707_v24  ;;  %2754 = vmatprep.subr.mxu0 %v1587_v52  ;;  %v6022_v52 = vadd.f32 %v5906_v19, %v5770_v53  ;;  %v6040_v19 = vadd.f32 %v5855_v15, %v5764_v49  ;;  %v1579_v15 = vld [vmem:[#allocation5 + $0x98] sm:$0xff] }
 0x1ea   :  { %v1330_v40 = vmax.f32 %v1328_v4, %v1329_v6  ;;  %v1338_v58 = vrot.slane %v1337_v30, 4  ;;  %v6002_v4 = vadd.f32 %v5869_v37, %v5764_v49  ;;  %3208 = vmatpush1.msra.mxu1 %v1706_v45  ;;  %v6011_v6 = vadd.f32 %v985_v32, %v5764_v49  ;;  %2755 = vmatpush1.msra.mxu0 %v1586_v46  ;;  %v1583_v37 = vld [vmem:[#allocation5 + $0xb8] sm:$0xff] }
 0x1eb   :  { %v991_v1 = vpop.f32.mrf.mxu0  ;;  %v5991_v34 = vpop.f32.mrf.mxu1  ;;  %1957 = vmatmul.mubr.f32.gmra.mxu0 %v5972_v41  ;;  %2418 = vmatmul.mubr.f32.gmra.mxu1 %v5901_v12  ;;  %9134 = vst [vmem:[#allocation47_spill] sm:$0xff] %v6022_v52  ;;  %v6025_v45 = vadd.f32 %v987_v35, %v5770_v53  ;;  %9137 = vst [vmem:[#allocation50_spill] sm:$0xff] %v6040_v19  ;;  %v6044_v35 = vadd.f32 %v5859_v18, %v5770_v53  ;;  %v1698_v18 = vld [vmem:[#allocation5 + $0x450] sm:$0xff] }
 0x1ec   :  { %v1331_v16 = vrot.slane %v1330_v40, 2  ;;  %v1339_v44 = vmax.f32 %v1337_v30, %v1338_v58  ;;  %v5996_v43 = vadd.f32 %v991_v1, %v5764_v49  ;;  %1962 = vmatprep.mubr.f32.mxu0 %v5963_v22  ;;  %2423 = vmatprep.mubr.f32.mxu1 %v5952_v47  ;;  %9129 = vst [vmem:[#allocation42_spill] sm:$0xff] %v6002_v4  ;;  %9131 = vst [vmem:[#allocation44_spill] sm:$0xff] %v6011_v6  ;;  %v1702_v47 = vld [vmem:[#allocation5 + $0x470] sm:$0xff] }
 0x1ed   :  { %v993_v20 = vpop.f32.mrf.mxu0  ;;  %v6008_v24 = vpop.f32.mrf.mxu1  ;;  %3209 = vmatprep.subr.mxu1 %v1703_v36  ;;  %9135 = vst [vmem:[#allocation48_spill] sm:$0xff] %v6025_v45  ;;  %v1582_v36 = vld [vmem:[#allocation5 + $0xb0] sm:$0xff]  ;;  %9138 = vst [vmem:[#allocation51_spill] sm:$0xff] %v6044_v35  ;;  %2756 = vmatprep.subr.mxu0 %v1583_v37  ;;  %v1362_v9 = vmax.f32 %v6002_v4, %v6018_v48  ;;  %v1371_v37 = vmax.f32 %v6006_v11, %v6022_v52 }
 0x1ee   :  { %9128 = vst [vmem:[#allocation41_spill] sm:$0xff] %v5996_v43  ;;  %v1332_v58 = vmax.f32 %v1330_v40, %v1331_v16  ;;  %v1340_v1 = vrot.slane %v1339_v44, 2  ;;  %v6014_v30 = vadd.f32 %v993_v20, %v5770_v53  ;;  %v1699_v40 = vld [vmem:[#allocation5 + $0x458] sm:$0xff]  ;;  %v1344_v7 = vmax.f32 %v6011_v6, %v5996_v43  ;;  %3210 = vmatpush1.msra.mxu1 %v1702_v47 }
 0x1ef   :  { %v997_v32 = vpop.f32.mrf.mxu0  ;;  %v6027_v16 = vpop.f32.mrf.mxu1  ;;  %1963 = vmatmul.mubr.f32.gmra.mxu0 %v5972_v41  ;;  %2424 = vmatmul.mubr.f32.gmra.mxu1 %v5935_v27  ;;  %v6060_v47 = vadd.f32 %v5914_v25, %v5764_v49 }
 0x1f0   :  { %9132 = vst [vmem:[#allocation45_spill] sm:$0xff] %v6014_v30  ;;  %v1341_v46 = vmax.f32 %v1339_v44, %v1340_v1  ;;  %v6034_v20 = vadd.f32 %v997_v32, %v5764_v49  ;;  %1968 = vmatprep.mubr.f32.mxu0 %v5963_v22  ;;  %2429 = vmatprep.mubr.f32.mxu1 %v5942_v10  ;;  %v1333_v27 = vrot.slane %v1332_v58, 1 }
 0x1f1   :  { %v999_v44 = vpop.f32.mrf.mxu0  ;;  %v6046_v1 = vpop.f32.mrf.mxu1  ;;  %v1353_v12 = vmax.f32 %v6025_v45, %v6014_v30  ;;  %2757 = vmatpush1.msra.mxu0 %v1582_v36  ;;  %3211 = vmatprep.subr.mxu1 %v1699_v40  ;;  %9140 = vst [vmem:[#allocation53_spill] sm:$0xff] %v6060_v47  ;;  %v1578_v36 = vld [vmem:[#allocation5 + $0x90] sm:$0xff]  ;;  %v6068_v40 = vadd.f32 %v5921_v39, %v5770_v53 }
 0x1f2   :  { %9136 = vst [vmem:[#allocation49_spill] sm:$0xff] %v6034_v20  ;;  %v1342_v32 = vrot.slane %v1341_v46, 1  ;;  %v1345_v10 = vmax.f32 %v1344_v7, %v6034_v20  ;;  %v6052_v22 = vadd.f32 %v999_v44, %v5770_v53  ;;  %v6075_v25 = vmax.f32 %v1332_v58, %v1333_v27  ;;  %2758 = vmatprep.subr.mxu0 %v1579_v15  ;;  %v1574_v58 = vld [vmem:[#allocation5 + $0x70] sm:$0xff] }
 0x1f3   :  { %v6062_v28 = vpop.f32.mrf.mxu1  ;;  %1969 = vmatmul.mubr.f32.gmra.mxu0 %v5972_v41  ;;  %2430 = vmatmul.mubr.f32.gmra.mxu1 %v5932_v21  ;;  %9141 = vst [vmem:[#allocation54_spill] sm:$0xff] %v6068_v40  ;;  %v6081_v21 = vadd.f32 %v5929_v17, %v5770_v53  ;;  %v1694_v15 = vld [vmem:[#allocation5 + $0x430] sm:$0xff]  ;;  %v1372_v17 = vmax.f32 %v1371_v37, %v6068_v40  ;;  %v1571_v37 = vld [vmem:[#allocation5 + $0x58] sm:$0xff] }
 0x1f4   :  { %9139 = vst [vmem:[#allocation52_spill] sm:$0xff] %v6052_v22  ;;  %v6070_v7 = vmax.f32 %v1341_v46, %v1342_v32  ;;  %v1346_v44 = vmax.f32 %v1345_v10, %v6040_v19  ;;  %v1354_v2 = vmax.f32 %v1353_v12, %v6052_v22  ;;  %2435 = vmatprep.mubr.f32.mxu1 %v5957_v59  ;;  %9143 = vst [vmem:[#allocation56_spill] sm:$0xff] %v6075_v25  ;;  %v1575_v10 = vld [vmem:[#allocation5 + $0x78] sm:$0xff] }
 0x1f5   :  { %v6077_v33 = vpop.f32.mrf.mxu1  ;;  %3212 = vmatpush1.msra.mxu1 %v1698_v18  ;;  %9144 = vst [vmem:[#allocation57_spill] sm:$0xff] %v6081_v21  ;;  %2759 = vmatpush1.msra.mxu0 %v1578_v36  ;;  %v1695_v12 = vld [vmem:[#allocation5 + $0x438] sm:$0xff]  ;;  %v1363_v32 = vmax.f32 %v1362_v9, %v6060_v47 }
 0x1f6   :  { %9142 = vst [vmem:[#allocation55_spill] sm:$0xff] %v6070_v7  ;;  %v1347_v39 = vrot.slane %v1346_v44, 4  ;;  %v1355_v46 = vmax.f32 %v1354_v2, %v6044_v35  ;;  %1974 = vmatprep.mubr.f32.mxu0 %v6070_v7  ;;  %v6093_v2 = vadd.f32 %v5923_v60, %v5764_v49  ;;  %2760 = vmatprep.subr.mxu0 %v1575_v10 }
 0x1f7   :  { %v6086_v27 = vpop.f32.mrf.mxu1  ;;  %1975 = vmatmul.mubr.f32.gmra.mxu0 %v6075_v25  ;;  %2436 = vmatmul.mubr.f32.gmra.mxu1 %v5945_v51  ;;  %v1373_v51 = vmax.f32 %v1372_v17, %v6081_v21  ;;  %v1567_v17 = vld [vmem:[#allocation5 + $0x38] sm:$0xff] }
 0x1f8   :  { %9145 = vst [vmem:[#allocation58_spill] sm:$0xff] %v6093_v2  ;;  %v1348_v18 = vmax.f32 %v1346_v44, %v1347_v39  ;;  %v1356_v36 = vrot.slane %v1355_v46, 4  ;;  %1980 = vmatprep.mubr.f32.mxu0 %v6070_v7  ;;  %2441 = vmatprep.mubr.f32.mxu1 %v5979_v29  ;;  %v1570_v44 = vld [vmem:[#allocation5 + $0x50] sm:$0xff]  ;;  %v1364_v29 = vmax.f32 %v1363_v32, %v6093_v2 }
 0x1f9   :  { %v6097_v9 = vpop.f32.mrf.mxu1  ;;  %3213 = vmatprep.subr.mxu1 %v1695_v12  ;;  %2761 = vmatpush1.msra.mxu0 %v1574_v58  ;;  %v1690_v39 = vld [vmem:[#allocation5 + $0x410] sm:$0xff]  ;;  %v1374_v58 = vrot.slane %v1373_v51, 4 }
 0x1fa   :  { %v1349_v59 = vrot.slane %v1348_v18, 2  ;;  %v1357_v41 = vmax.f32 %v1355_v46, %v1356_v36  ;;  %3214 = vmatpush1.msra.mxu1 %v1694_v15  ;;  %2762 = vmatprep.subr.mxu0 %v1571_v37  ;;  %v1815_v36 = vld [vmem:[#allocation5 + $0x7f8] sm:$0xff]  ;;  %v1566_v32 = vld [vmem:[#allocation5 + $0x30] sm:$0xff]  ;;  %v6129_v37 = vadd.f32 %v5959_v8, %v5764_v49 }
 0x1fb   :  { %v6100_v60 = vpop.f32.mrf.mxu1  ;;  %1981 = vmatmul.mubr.f32.gmra.mxu0 %v6075_v25  ;;  %2442 = vmatmul.mubr.f32.gmra.mxu1 %v5969_v63  ;;  %v1562_v8 = vld [vmem:[#allocation5 + $0x10] sm:$0xff] }
 0x1fc   :  { %v1358_v10 = vrot.slane %v1357_v41, 2  ;;  %1986 = vmatprep.mubr.f32.mxu0 %v6070_v7  ;;  %2447 = vmatprep.mubr.f32.mxu1 %v6025_v45  ;;  %v1350_v46 = vmax.f32 %v1348_v18, %v1349_v59  ;;  %v1365_v45 = vrot.slane %v1364_v29, 4  ;;  %v6115_v59 = vadd.f32 %v5949_v3, %v5770_v53  ;;  %9149 = vst [vmem:[#allocation62_spill] sm:$0xff] %v6129_v37 }
 0x1fd   :  { %v6107_v12 = vpop.f32.mrf.mxu1  ;;  %3215 = vmatprep.subr.mxu1 %v1691_v38  ;;  %2763 = vmatpush1.msra.mxu0 %v1570_v44  ;;  %v6119_v38 = vadd.f32 %v5974_v42, %v5770_v53  ;;  %v6125_v18 = vadd.f32 %v5937_v31, %v5764_v49  ;;  %v1375_v42 = vmax.f32 %v1373_v51, %v1374_v58  ;;  %v1810_v31 = vld [vmem:[#allocation5 + $0x7d0] sm:$0xff] }
 0x1fe   :  { %v1359_v15 = vmax.f32 %v1357_v41, %v1358_v10  ;;  %3216 = vmatpush1.msra.mxu1 %v1690_v39  ;;  %9146 = vst [vmem:[#allocation59_spill] sm:$0xff] %v6115_v59  ;;  %v1351_v44 = vrot.slane %v1350_v46, 1  ;;  %2764 = vmatprep.subr.mxu0 %v1567_v17  ;;  %v1563_v10 = vld [vmem:[#allocation5 + $0x18] sm:$0xff]  ;;  %v6143_v51 = vadd.f32 %v5989_v26, %v5770_v53 }
 0x1ff   :  { %v6109_v63 = vpop.f32.mrf.mxu1  ;;  %1987 = vmatmul.mubr.f32.gmra.mxu0 %v6075_v25  ;;  %2448 = vmatmul.mubr.f32.gmra.mxu1 %v6011_v6  ;;  %9147 = vst [vmem:[#allocation60_spill] sm:$0xff] %v6119_v38  ;;  %9148 = vst [vmem:[#allocation61_spill] sm:$0xff] %v6125_v18  ;;  %v1389_v17 = vmax.f32 %v6115_v59, %v6119_v38  ;;  %v6151_v58 = vadd.f32 %v5982_v61, %v5764_v49  ;;  %v1686_v61 = vld [vmem:[#allocation5 + $0x3f0] sm:$0xff] }
 0x200   :  { %v1360_v41 = vrot.slane %v1359_v15, 1  ;;  %1992 = vmatprep.mubr.f32.mxu0 %v6070_v7  ;;  %2453 = vmatprep.mubr.f32.mxu1 %v6014_v30  ;;  %v1811_v30 = vld [vmem:[#allocation5 + $0x7d8] sm:$0xff]  ;;  %v1366_v7 = vmax.f32 %v1364_v29, %v1365_v45  ;;  %9151 = vst [vmem:[#allocation64_spill] sm:$0xff] %v6143_v51  ;;  %v1376_v45 = vrot.slane %v1375_v42, 2  ;;  %v6159_v26 = vadd.f32 %v6008_v24, %v5770_v53 }
 0x201   :  { %v6131_v3 = vpop.f32.mrf.mxu1  ;;  %3217 = vmatprep.subr.mxu1 %v1815_v36  ;;  %2765 = vmatpush1.msra.mxu0 %v1566_v32  ;;  %9152 = vst [vmem:[#allocation65_spill] sm:$0xff] %v6151_v58  ;;  %v1687_v36 = vld [vmem:[#allocation5 + $0x3f8] sm:$0xff] }
 0x202   :  { %v6133_v39 = vmax.f32 %v1359_v15, %v1360_v41  ;;  %3218 = vmatpush2.msra.mxu1 %v1814_v5  ;;  %v1380_v5 = vmax.f32 %v6125_v18, %v6129_v37  ;;  %v6153_v15 = vmax.f32 %v1350_v46, %v1351_v44  ;;  %2766 = vmatprep.subr.mxu0 %v1563_v10  ;;  %v1807_v32 = vld [vmem:[#allocation5 + $0x7b8] sm:$0xff]  ;;  %v1806_v46 = vld [vmem:[#allocation5 + $0x7b0] sm:$0xff]  ;;  %v1367_v44 = vrot.slane %v1366_v7, 2 }
 0x203   :  { %v6135_v6 = vpop.f32.mrf.mxu1  ;;  %1993 = vmatmul.mubr.f32.gmra.mxu0 %v6075_v25  ;;  %2454 = vmatmul.mubr.f32.gmra.mxu1 %v5996_v43  ;;  %9154 = vst [vmem:[#allocation67_spill] sm:$0xff] %v6159_v26  ;;  %v6171_v10 = vadd.f32 %v5991_v34, %v5764_v49  ;;  %v1802_v34 = vld [vmem:[#allocation5 + $0x790] sm:$0xff] }
 0x204   :  { %9150 = vst [vmem:[#allocation63_spill] sm:$0xff] %v6133_v39  ;;  %1998 = vmatprep.mubr.f32.mxu0 %v6133_v39  ;;  %2459 = vmatprep.mubr.f32.mxu1 %v6052_v22  ;;  %9153 = vst [vmem:[#allocation66_spill] sm:$0xff] %v6153_v15  ;;  %v1381_v24 = vmax.f32 %v1380_v5, %v6151_v58  ;;  %v1683_v22 = vld [vmem:[#allocation5 + $0x3d8] sm:$0xff]  ;;  %v1682_v5 = vld [vmem:[#allocation5 + $0x3d0] sm:$0xff] }
 0x205   :  { %v6155_v29 = vpop.f32.mrf.mxu1  ;;  %3219 = vmatprep.subr.mxu1 %v1811_v30  ;;  %2767 = vmatpush1.msra.mxu0 %v1562_v8  ;;  %v1390_v30 = vmax.f32 %v1389_v17, %v6143_v51  ;;  %9155 = vst [vmem:[#allocation68_spill] sm:$0xff] %v6171_v10  ;;  %v1803_v17 = vld [vmem:[#allocation5 + $0x798] sm:$0xff] }
 0x206   :  { %3220 = vmatpush2.msra.mxu1 %v1810_v31  ;;  %2768 = vmatprep.subr.mxu0 %v1687_v36  ;;  %v1377_v31 = vmax.f32 %v1375_v42, %v1376_v45  ;;  %v1382_v42 = vmax.f32 %v1381_v24, %v6171_v10  ;;  %v6191_v24 = vadd.f32 %v6046_v1, %v5770_v53 }
 0x207   :  { %v6161_v41 = vpop.f32.mrf.mxu1  ;;  %1999 = vmatmul.mubr.f32.gmra.mxu0 %v6153_v15  ;;  %2460 = vmatmul.mubr.f32.gmra.mxu1 %v6034_v20  ;;  %v1391_v20 = vmax.f32 %v1390_v30, %v6159_v26 }
 0x208   :  { %2004 = vmatprep.mubr.f32.mxu0 %v6133_v39  ;;  %2465 = vmatprep.mubr.f32.mxu1 %v6044_v35  ;;  %v1368_v35 = vmax.f32 %v1366_v7, %v1367_v44  ;;  %v1378_v36 = vrot.slane %v1377_v31, 1  ;;  %v1678_v7 = vld [vmem:[#allocation5 + $0x3b0] sm:$0xff]  ;;  %9156 = vst [vmem:[#allocation69_spill] sm:$0xff] %v6191_v24 }
 0x209   :  { %v6173_v8 = vpop.f32.mrf.mxu1  ;;  %3221 = vmatprep.subr.mxu1 %v1807_v32  ;;  %2769 = vmatpush2.msra.mxu0 %v1686_v61  ;;  %v1392_v32 = vrot.slane %v1391_v20, 4  ;;  %v1679_v61 = vld [vmem:[#allocation5 + $0x3b8] sm:$0xff]  ;;  %v1798_v44 = vld [vmem:[#allocation5 + $0x770] sm:$0xff] }
 0x20a   :  { %3222 = vmatpush2.msra.mxu1 %v1806_v46  ;;  %2770 = vmatprep.subr.mxu0 %v1683_v22  ;;  %v1799_v46 = vld [vmem:[#allocation5 + $0x778] sm:$0xff]  ;;  %v6195_v22 = vadd.f32 %v6077_v33, %v5770_v53  ;;  %v6209_v1 = vmax.f32 %v1377_v31, %v1378_v36 }
 0x20b   :  { %v6176_v43 = vpop.f32.mrf.mxu1  ;;  %2005 = vmatmul.mubr.f32.gmra.mxu0 %v6153_v15  ;;  %2466 = vmatmul.mubr.f32.gmra.mxu1 %v6040_v19  ;;  %v1393_v33 = vmax.f32 %v1391_v20, %v1392_v32  ;;  %v1675_v19 = vld [vmem:[#allocation5 + $0x398] sm:$0xff]  ;;  %v6221_v20 = vadd.f32 %v6097_v9, %v5770_v53  ;;  %v6229_v32 = vadd.f32 %v6086_v27, %v5764_v49  ;;  %v1670_v27 = vld [vmem:[#allocation5 + $0x370] sm:$0xff] }
 0x20c   :  { %2010 = vmatprep.mubr.f32.mxu0 %v6133_v39  ;;  %2471 = vmatprep.mubr.f32.mxu1 %v6006_v11  ;;  %v1369_v11 = vrot.slane %v1368_v35, 1  ;;  %9157 = vst [vmem:[#allocation70_spill] sm:$0xff] %v6195_v22  ;;  %9160 = vst [vmem:[#allocation73_spill] sm:$0xff] %v6209_v1  ;;  %v6235_v9 = vadd.f32 %v6107_v12, %v5770_v53 }
 0x20d   :  { %v6183_v45 = vpop.f32.mrf.mxu1  ;;  %3223 = vmatprep.subr.mxu1 %v1803_v17  ;;  %2771 = vmatpush2.msra.mxu0 %v1682_v5  ;;  %v1383_v17 = vrot.slane %v1382_v42, 4  ;;  %v6201_v5 = vadd.f32 %v6027_v16, %v5764_v49  ;;  %v1674_v16 = vld [vmem:[#allocation5 + $0x390] sm:$0xff]  ;;  %9162 = vst [vmem:[#allocation75_spill] sm:$0xff] %v6221_v20  ;;  %9163 = vst [vmem:[#allocation76_spill] sm:$0xff] %v6229_v32 }
 0x20e   :  { %3224 = vmatpush2.msra.mxu1 %v1802_v34  ;;  %v6205_v34 = vadd.f32 %v6062_v28, %v5764_v49  ;;  %2772 = vmatprep.subr.mxu0 %v1679_v61  ;;  %v1794_v28 = vld [vmem:[#allocation5 + $0x750] sm:$0xff]  ;;  %v6215_v25 = vmax.f32 %v1368_v35, %v1369_v11  ;;  %v1407_v61 = vmax.f32 %v6191_v24, %v6195_v22  ;;  %v1394_v35 = vrot.slane %v1393_v33, 2 }
 0x20f   :  { %v6185_v30 = vpop.f32.mrf.mxu1  ;;  %2011 = vmatmul.mubr.f32.gmra.mxu0 %v6153_v15  ;;  %2472 = vmatmul.mubr.f32.gmra.mxu1 %v6002_v4  ;;  %9158 = vst [vmem:[#allocation71_spill] sm:$0xff] %v6201_v5  ;;  %v1384_v31 = vmax.f32 %v1382_v42, %v1383_v17  ;;  %9164 = vst [vmem:[#allocation77_spill] sm:$0xff] %v6235_v9  ;;  %v1791_v42 = vld [vmem:[#allocation5 + $0x738] sm:$0xff]  ;;  %v6247_v17 = vadd.f32 %v6100_v60, %v5764_v49  ;;  %v1786_v60 = vld [vmem:[#allocation5 + $0x710] sm:$0xff] }
 0x210   :  { %2016 = vmatprep.mubr.f32.mxu0 %v6133_v39  ;;  %2477 = vmatprep.mubr.f32.mxu1 %v6022_v52  ;;  %9159 = vst [vmem:[#allocation72_spill] sm:$0xff] %v6205_v34  ;;  %v1795_v52 = vld [vmem:[#allocation5 + $0x758] sm:$0xff]  ;;  %9161 = vst [vmem:[#allocation74_spill] sm:$0xff] %v6215_v25  ;;  %v1398_v36 = vmax.f32 %v6201_v5, %v6205_v34 }
 0x211   :  { %v6207_v4 = vpop.f32.mrf.mxu1  ;;  %3225 = vmatprep.subr.mxu1 %v1799_v46  ;;  %2773 = vmatpush2.msra.mxu0 %v1678_v7  ;;  %v1671_v46 = vld [vmem:[#allocation5 + $0x378] sm:$0xff]  ;;  %9165 = vst [vmem:[#allocation78_spill] sm:$0xff] %v6247_v17 }
 0x212   :  { %3226 = vmatpush2.msra.mxu1 %v1798_v44  ;;  %2774 = vmatprep.subr.mxu0 %v1675_v19  ;;  %v1790_v44 = vld [vmem:[#allocation5 + $0x730] sm:$0xff]  ;;  %v1408_v19 = vmax.f32 %v1407_v61, %v6221_v20  ;;  %v1399_v12 = vmax.f32 %v1398_v36, %v6229_v32  ;;  %v1667_v61 = vld [vmem:[#allocation5 + $0x358] sm:$0xff] }
 0x213   :  { %v6211_v39 = vpop.f32.mrf.mxu1  ;;  %2017 = vmatmul.mubr.f32.gmra.mxu0 %v6153_v15  ;;  %2478 = vmatmul.mubr.f32.gmra.mxu1 %v6018_v48  ;;  %v1666_v36 = vld [vmem:[#allocation5 + $0x350] sm:$0xff] }
 0x214   :  { %2022 = vmatprep.mubr.f32.mxu0 %v6209_v1  ;;  %2483 = vmatprep.mubr.f32.mxu1 %v6068_v40  ;;  %v1787_v40 = vld [vmem:[#allocation5 + $0x718] sm:$0xff] }
 0x215   :  { %v6231_v11 = vpop.f32.mrf.mxu1  ;;  %3227 = vmatprep.subr.mxu1 %v1795_v52  ;;  %2775 = vmatpush2.msra.mxu0 %v1674_v16  ;;  %v1385_v52 = vrot.slane %v1384_v31, 2 }
 0x216   :  { %3228 = vmatpush2.msra.mxu1 %v1794_v28  ;;  %2776 = vmatprep.subr.mxu0 %v1671_v46  ;;  %v1395_v28 = vmax.f32 %v1393_v33, %v1394_v35  ;;  %v1400_v33 = vmax.f32 %v1399_v12, %v6247_v17  ;;  %v6275_v12 = vadd.f32 %v6131_v3, %v5770_v53  ;;  %v1659_v3 = vld [vmem:[#allocation5 + $0x318] sm:$0xff] }
 0x217   :  { %v6237_v7 = vpop.f32.mrf.mxu1  ;;  %2023 = vmatmul.mubr.f32.gmra.mxu0 %v6215_v25  ;;  %2484 = vmatmul.mubr.f32.gmra.mxu1 %v6060_v47  ;;  %v1409_v47 = vmax.f32 %v1408_v19, %v6235_v9  ;;  %v1386_v46 = vmax.f32 %v1384_v31, %v1385_v52  ;;  %v1783_v19 = vld [vmem:[#allocation5 + $0x6f8] sm:$0xff]  ;;  %v1782_v52 = vld [vmem:[#allocation5 + $0x6f0] sm:$0xff] }
 0x218   :  { %2028 = vmatprep.mubr.f32.mxu0 %v6209_v1  ;;  %2489 = vmatprep.mubr.f32.mxu1 %v6081_v21  ;;  %9168 = vst [vmem:[#allocation81_spill] sm:$0xff] %v6275_v12  ;;  %v1779_v21 = vld [vmem:[#allocation5 + $0x6d8] sm:$0xff] }
 0x219   :  { %v6249_v16 = vpop.f32.mrf.mxu1  ;;  %3229 = vmatprep.subr.mxu1 %v1791_v42  ;;  %2777 = vmatpush2.msra.mxu0 %v1670_v27  ;;  %v1396_v42 = vrot.slane %v1395_v28, 1  ;;  %v1410_v27 = vrot.slane %v1409_v47, 4 }
 0x21a   :  { %3230 = vmatpush2.msra.mxu1 %v1790_v44  ;;  %2778 = vmatprep.subr.mxu0 %v1667_v61  ;;  %v1663_v44 = vld [vmem:[#allocation5 + $0x338] sm:$0xff]  ;;  %v1401_v61 = vrot.slane %v1400_v33, 4 }
 0x21b   :  { %v6252_v48 = vpop.f32.mrf.mxu1  ;;  %2029 = vmatmul.mubr.f32.gmra.mxu0 %v6215_v25  ;;  %2490 = vmatmul.mubr.f32.gmra.mxu1 %v6093_v2  ;;  %v6263_v2 = vadd.f32 %v6109_v63, %v5764_v49  ;;  %v6279_v63 = vadd.f32 %v6155_v29, %v5770_v53 }
 0x21c   :  { %2034 = vmatprep.mubr.f32.mxu0 %v6209_v1  ;;  %2495 = vmatprep.mubr.f32.mxu1 %v6115_v59  ;;  %v6267_v59 = vadd.f32 %v6135_v6, %v5764_v49  ;;  %v1387_v6 = vrot.slane %v1386_v46, 1 }
 0x21d   :  { %v6259_v35 = vpop.f32.mrf.mxu1  ;;  %3231 = vmatprep.subr.mxu1 %v1787_v40  ;;  %2779 = vmatpush2.msra.mxu0 %v1666_v36  ;;  %9166 = vst [vmem:[#allocation79_spill] sm:$0xff] %v6263_v2  ;;  %v1662_v40 = vld [vmem:[#allocation5 + $0x330] sm:$0xff]  ;;  %9169 = vst [vmem:[#allocation82_spill] sm:$0xff] %v6279_v63 }
 0x21e   :  { %3232 = vmatpush2.msra.mxu1 %v1786_v60  ;;  %9167 = vst [vmem:[#allocation80_spill] sm:$0xff] %v6267_v59  ;;  %2780 = vmatprep.subr.mxu0 %v1663_v44  ;;  %v6285_v60 = vmax.f32 %v1395_v28, %v1396_v42  ;;  %v1416_v29 = vmax.f32 %v6263_v2, %v6267_v59 }
 0x21f   :  { %v6269_v31 = vpop.f32.mrf.mxu1  ;;  %2035 = vmatmul.mubr.f32.gmra.mxu0 %v6215_v25  ;;  %2496 = vmatmul.mubr.f32.gmra.mxu1 %v6125_v18  ;;  %v1411_v18 = vmax.f32 %v1409_v47, %v1410_v27  ;;  %v1425_v28 = vmax.f32 %v6275_v12, %v6279_v63  ;;  %v6297_v47 = vadd.f32 %v6161_v41, %v5764_v49 }
 0x220   :  { %2040 = vmatprep.mubr.f32.mxu0 %v6209_v1  ;;  %2501 = vmatprep.mubr.f32.mxu1 %v6119_v38  ;;  %9170 = vst [vmem:[#allocation83_spill] sm:$0xff] %v6285_v60  ;;  %v1658_v38 = vld [vmem:[#allocation5 + $0x310] sm:$0xff]  ;;  %v6301_v42 = vadd.f32 %v6173_v8, %v5770_v53  ;;  %v6305_v27 = vmax.f32 %v1386_v46, %v1387_v6  ;;  %v1775_v8 = vld [vmem:[#allocation5 + $0x6b8] sm:$0xff] }
 0x221   :  { %v6283_v36 = vpop.f32.mrf.mxu1  ;;  %3233 = vmatprep.subr.mxu1 %v1783_v19  ;;  %2781 = vmatpush2.msra.mxu0 %v1662_v40  ;;  %v1778_v1 = vld [vmem:[#allocation5 + $0x6d0] sm:$0xff]  ;;  %9171 = vst [vmem:[#allocation84_spill] sm:$0xff] %v6297_v47  ;;  %v1402_v44 = vmax.f32 %v1400_v33, %v1401_v61  ;;  %v1412_v40 = vrot.slane %v1411_v18, 2  ;;  %v6311_v41 = vadd.f32 %v6183_v45, %v5770_v53 }
 0x222   :  { %3234 = vmatpush2.msra.mxu1 %v1782_v52  ;;  %9172 = vst [vmem:[#allocation85_spill] sm:$0xff] %v6301_v42  ;;  %9173 = vst [vmem:[#allocation86_spill] sm:$0xff] %v6305_v27  ;;  %2782 = vmatprep.subr.mxu0 %v1659_v3  ;;  %v1655_v52 = vld [vmem:[#allocation5 + $0x2f8] sm:$0xff]  ;;  %v1654_v46 = vld [vmem:[#allocation5 + $0x2f0] sm:$0xff]  ;;  %v1417_v6 = vmax.f32 %v1416_v29, %v6297_v47  ;;  %v6321_v45 = vadd.f32 %v6176_v43, %v5764_v49 }
 0x223   :  { %v6289_v15 = vpop.f32.mrf.mxu1  ;;  %2041 = vmatmul.mubr.f32.gmra.mxu0 %v6215_v25  ;;  %2502 = vmatmul.mubr.f32.gmra.mxu1 %v6129_v37  ;;  %9174 = vst [vmem:[#allocation87_spill] sm:$0xff] %v6311_v41  ;;  %v1774_v33 = vld [vmem:[#allocation5 + $0x6b0] sm:$0xff]  ;;  %v1413_v61 = vmax.f32 %v1411_v18, %v1412_v40  ;;  %v1651_v29 = vld [vmem:[#allocation5 + $0x2d8] sm:$0xff] }
 0x224   :  { %2046 = vmatprep.mubr.f32.mxu0 %v6285_v60  ;;  %2507 = vmatprep.mubr.f32.mxu1 %v6143_v51  ;;  %9175 = vst [vmem:[#allocation88_spill] sm:$0xff] %v6321_v45  ;;  %v1650_v43 = vld [vmem:[#allocation5 + $0x2d0] sm:$0xff]  ;;  %v1418_v51 = vmax.f32 %v1417_v6, %v6321_v45 }
 0x225   :  { %v6307_v19 = vpop.f32.mrf.mxu1  ;;  %3235 = vmatprep.subr.mxu1 %v1779_v21  ;;  %2783 = vmatpush2.msra.mxu0 %v1658_v38  ;;  %v1426_v21 = vmax.f32 %v1425_v28, %v6301_v42  ;;  %v1403_v38 = vrot.slane %v1402_v44, 2  ;;  %v1771_v28 = vld [vmem:[#allocation5 + $0x698] sm:$0xff]  ;;  %v1646_v6 = vld [vmem:[#allocation5 + $0x2b0] sm:$0xff] }
 0x226   :  { %3236 = vmatpush2.msra.mxu1 %v1778_v1  ;;  %2784 = vmatprep.subr.mxu0 %v1655_v52  ;;  %v1414_v52 = vrot.slane %v1413_v61, 1 }
 0x227   :  { %v6313_v37 = vpop.f32.mrf.mxu1  ;;  %2047 = vmatmul.mubr.f32.gmra.mxu0 %v6305_v27  ;;  %2508 = vmatmul.mubr.f32.gmra.mxu1 %v6151_v58  ;;  %v1427_v3 = vmax.f32 %v1426_v21, %v6311_v41  ;;  %v1404_v18 = vmax.f32 %v1402_v44, %v1403_v38  ;;  %v6343_v44 = vadd.f32 %v6207_v4, %v5770_v53 }
 0x228   :  { %2052 = vmatprep.mubr.f32.mxu0 %v6285_v60  ;;  %2513 = vmatprep.mubr.f32.mxu1 %v6159_v26  ;;  %v1770_v26 = vld [vmem:[#allocation5 + $0x690] sm:$0xff]  ;;  %v6347_v38 = vadd.f32 %v6231_v11, %v5770_v53  ;;  %v6361_v4 = vmax.f32 %v1413_v61, %v1414_v52 }
 0x229   :  { %v6325_v1 = vpop.f32.mrf.mxu1  ;;  %3237 = vmatprep.subr.mxu1 %v1775_v8  ;;  %2785 = vmatpush2.msra.mxu0 %v1654_v46  ;;  %v1428_v8 = vrot.slane %v1427_v3, 4  ;;  %v1647_v46 = vld [vmem:[#allocation5 + $0x2b8] sm:$0xff]  ;;  %9176 = vst [vmem:[#allocation89_spill] sm:$0xff] %v6343_v44  ;;  %v1762_v61 = vld [vmem:[#allocation5 + $0x650] sm:$0xff] }
 0x22a   :  { %3238 = vmatpush2.msra.mxu1 %v1774_v33  ;;  %2786 = vmatprep.subr.mxu0 %v1651_v29  ;;  %v1767_v33 = vld [vmem:[#allocation5 + $0x678] sm:$0xff]  ;;  %9177 = vst [vmem:[#allocation90_spill] sm:$0xff] %v6347_v38  ;;  %v6353_v29 = vadd.f32 %v6185_v30, %v5764_v49  ;;  %9180 = vst [vmem:[#allocation93_spill] sm:$0xff] %v6361_v4  ;;  %v1642_v30 = vld [vmem:[#allocation5 + $0x290] sm:$0xff] }
 0x22b   :  { %v6328_v58 = vpop.f32.mrf.mxu1  ;;  %2053 = vmatmul.mubr.f32.gmra.mxu0 %v6305_v27  ;;  %2514 = vmatmul.mubr.f32.gmra.mxu1 %v6171_v10  ;;  %v1766_v10 = vld [vmem:[#allocation5 + $0x670] sm:$0xff]  ;;  %v1429_v11 = vmax.f32 %v1427_v3, %v1428_v8  ;;  %v6387_v8 = vadd.f32 %v6259_v35, %v5770_v53  ;;  %v6399_v35 = vadd.f32 %v6252_v48, %v5764_v49 }
 0x22c   :  { %2058 = vmatprep.mubr.f32.mxu0 %v6285_v60  ;;  %2519 = vmatprep.mubr.f32.mxu1 %v6191_v24  ;;  %v1419_v24 = vrot.slane %v1418_v51, 4  ;;  %9178 = vst [vmem:[#allocation91_spill] sm:$0xff] %v6353_v29  ;;  %v1758_v48 = vld [vmem:[#allocation5 + $0x630] sm:$0xff] }
 0x22d   :  { %v6335_v40 = vpop.f32.mrf.mxu1  ;;  %3239 = vmatprep.subr.mxu1 %v1771_v28  ;;  %2787 = vmatpush2.msra.mxu0 %v1650_v43  ;;  %v6357_v28 = vadd.f32 %v6211_v39, %v5764_v49  ;;  %v1443_v39 = vmax.f32 %v6343_v44, %v6347_v38  ;;  %9184 = vst [vmem:[#allocation97_spill] sm:$0xff] %v6387_v8  ;;  %9185 = vst [vmem:[#allocation98_spill] sm:$0xff] %v6399_v35 }
 0x22e   :  { %3240 = vmatpush2.msra.mxu1 %v1770_v26  ;;  %v1405_v26 = vrot.slane %v1404_v18, 1  ;;  %2788 = vmatprep.subr.mxu0 %v1647_v46  ;;  %v6371_v46 = vadd.f32 %v6249_v16, %v5770_v53  ;;  %v1430_v16 = vrot.slane %v1429_v11, 2 }
 0x22f   :  { %v6337_v21 = vpop.f32.mrf.mxu1  ;;  %2059 = vmatmul.mubr.f32.gmra.mxu0 %v6305_v27  ;;  %2520 = vmatmul.mubr.f32.gmra.mxu1 %v6201_v5  ;;  %9179 = vst [vmem:[#allocation92_spill] sm:$0xff] %v6357_v28  ;;  %v1643_v5 = vld [vmem:[#allocation5 + $0x298] sm:$0xff]  ;;  %v1434_v52 = vmax.f32 %v6353_v29, %v6357_v28 }
 0x230   :  { %2064 = vmatprep.mubr.f32.mxu0 %v6285_v60  ;;  %2525 = vmatprep.mubr.f32.mxu1 %v6195_v22  ;;  %v1420_v60 = vmax.f32 %v1418_v51, %v1419_v24  ;;  %9181 = vst [vmem:[#allocation94_spill] sm:$0xff] %v6371_v46  ;;  %v6375_v3 = vmax.f32 %v1404_v18, %v1405_v26 }
 0x231   :  { %v6359_v43 = vpop.f32.mrf.mxu1  ;;  %3241 = vmatprep.subr.mxu1 %v1767_v33  ;;  %2789 = vmatpush2.msra.mxu0 %v1646_v6  ;;  %v6381_v51 = vadd.f32 %v6237_v7, %v5764_v49  ;;  %v1639_v33 = vld [vmem:[#allocation5 + $0x278] sm:$0xff]  ;;  %v1638_v7 = vld [vmem:[#allocation5 + $0x270] sm:$0xff]  ;;  %v1444_v26 = vmax.f32 %v1443_v39, %v6371_v46 }
 0x232   :  { %3242 = vmatpush2.msra.mxu1 %v1766_v10  ;;  %v1763_v10 = vld [vmem:[#allocation5 + $0x658] sm:$0xff]  ;;  %9182 = vst [vmem:[#allocation95_spill] sm:$0xff] %v6375_v3  ;;  %2790 = vmatprep.subr.mxu0 %v1643_v5  ;;  %v1421_v6 = vrot.slane %v1420_v60, 2  ;;  %v1634_v39 = vld [vmem:[#allocation5 + $0x250] sm:$0xff] }
 0x233   :  { %v6363_v22 = vpop.f32.mrf.mxu1  ;;  %2065 = vmatmul.mubr.f32.gmra.mxu0 %v6305_v27  ;;  %2526 = vmatmul.mubr.f32.gmra.mxu1 %v6205_v34  ;;  %9183 = vst [vmem:[#allocation96_spill] sm:$0xff] %v6381_v51  ;;  %v1435_v5 = vmax.f32 %v1434_v52, %v6381_v51  ;;  %v1759_v52 = vld [vmem:[#allocation5 + $0x638] sm:$0xff] }
 0x234   :  { %2070 = vmatprep.mubr.f32.mxu0 %v6361_v4  ;;  %2531 = vmatprep.mubr.f32.mxu1 %v6221_v20 }
 0x235   :  { %v6383_v24 = vpop.f32.mrf.mxu1  ;;  %3243 = vmatprep.subr.mxu1 %v1763_v10  ;;  %2791 = vmatpush2.msra.mxu0 %v1642_v30  ;;  %v1431_v10 = vmax.f32 %v1429_v11, %v1430_v16  ;;  %v1436_v11 = vmax.f32 %v1435_v5, %v6399_v35  ;;  %v6419_v5 = vadd.f32 %v6283_v36, %v5770_v53 }
 0x236   :  { %3244 = vmatpush2.msra.mxu1 %v1762_v61  ;;  %2792 = vmatprep.subr.mxu0 %v1639_v33  ;;  %v1445_v61 = vmax.f32 %v1444_v26, %v6387_v8  ;;  %v1631_v26 = vld [vmem:[#allocation5 + $0x238] sm:$0xff] }
 0x237   :  { %v6389_v18 = vpop.f32.mrf.mxu1  ;;  %2071 = vmatmul.mubr.f32.gmra.mxu0 %v6375_v3  ;;  %2532 = vmatmul.mubr.f32.gmra.mxu1 %v6229_v32  ;;  %v1635_v32 = vld [vmem:[#allocation5 + $0x258] sm:$0xff]  ;;  %v1432_v33 = vrot.slane %v1431_v10, 1  ;;  %9186 = vst [vmem:[#allocation99_spill] sm:$0xff] %v6419_v5 }
 0x238   :  { %2076 = vmatprep.mubr.f32.mxu0 %v6361_v4  ;;  %2537 = vmatprep.mubr.f32.mxu1 %v6235_v9  ;;  %v1422_v9 = vmax.f32 %v1420_v60, %v1421_v6  ;;  %v1630_v60 = vld [vmem:[#allocation5 + $0x230] sm:$0xff] }
 0x239   :  { %v6401_v30 = vpop.f32.mrf.mxu1  ;;  %2793 = vmatpush2.msra.mxu0 %v1638_v7  ;;  %3245 = vmatprep.subr.mxu1 %v1759_v52  ;;  %v1446_v7 = vrot.slane %v1445_v61, 4  ;;  %v1754_v6 = vld [vmem:[#allocation5 + $0x610] sm:$0xff]  ;;  %v6429_v52 = vadd.f32 %v6269_v31, %v5764_v49  ;;  %v6437_v36 = vmax.f32 %v1431_v10, %v1432_v33 }
 0x23a   :  { %2794 = vmatprep.subr.mxu0 %v1635_v32  ;;  %3246 = vmatpush2.msra.mxu1 %v1758_v48  ;;  %v6423_v32 = vadd.f32 %v6307_v19, %v5770_v53  ;;  %v6433_v48 = vadd.f32 %v6289_v15, %v5764_v49  ;;  %v1626_v10 = vld [vmem:[#allocation5 + $0x210] sm:$0xff] }
 0x23b   :  { %v6404_v20 = vpop.f32.mrf.mxu1  ;;  %2077 = vmatmul.mubr.f32.gmra.mxu0 %v6375_v3  ;;  %2538 = vmatmul.mubr.f32.gmra.mxu1 %v6247_v17  ;;  %v1755_v17 = vld [vmem:[#allocation5 + $0x618] sm:$0xff]  ;;  %9188 = vst [vmem:[#allocation101_spill] sm:$0xff] %v6429_v52  ;;  %9190 = vst [vmem:[#allocation103_spill] sm:$0xff] %v6437_v36  ;;  %v1447_v19 = vmax.f32 %v1445_v61, %v1446_v7  ;;  %v9194_v7 = vmov 0.0  }
 0x23c   :  { %2082 = vmatprep.mubr.f32.mxu0 %v6361_v4  ;;  %2543 = vmatprep.mubr.f32.mxu1 %v6275_v12  ;;  %v1423_v12 = vrot.slane %v1422_v9, 1  ;;  %9187 = vst [vmem:[#allocation100_spill] sm:$0xff] %v6423_v32  ;;  %9189 = vst [vmem:[#allocation102_spill] sm:$0xff] %v6433_v48  ;;  %v1461_v15 = vmax.f32 %v6419_v5, %v6423_v32  ;;  %v1452_v33 = vmax.f32 %v6429_v52, %v6433_v48 }
 0x23d   :  { %v6411_v16 = vpop.f32.mrf.mxu1  ;;  %2795 = vmatpush2.msra.mxu0 %v1634_v39  ;;  %v1437_v39 = vrot.slane %v1436_v11, 4  ;;  %3247 = vmatprep.subr.mxu1 %v1755_v17  ;;  %v6449_v17 = vadd.f32 %v6325_v1, %v5770_v53  ;;  %v1448_v1 = vrot.slane %v1447_v19, 2 }
 0x23e   :  { %2796 = vmatprep.subr.mxu0 %v1631_v26  ;;  %3248 = vmatpush2.msra.mxu1 %v1754_v6  ;;  %v6443_v31 = vmax.f32 %v1422_v9, %v1423_v12  ;;  %v6457_v9 = vadd.f32 %v6313_v37, %v5764_v49  ;;  %v6464_v26 = vadd.f32 %v6335_v40, %v5770_v53 }
 0x23f   :  { %v6413_v34 = vpop.f32.mrf.mxu1  ;;  %2083 = vmatmul.mubr.f32.gmra.mxu0 %v6375_v3  ;;  %2544 = vmatmul.mubr.f32.gmra.mxu1 %v6263_v2  ;;  %9192 = vst [vmem:[#allocation105_spill] sm:$0xff] %v6449_v17  ;;  %v1438_v61 = vmax.f32 %v1436_v11, %v1437_v39  ;;  %v1462_v37 = vmax.f32 %v1461_v15, %v6449_v17 }
 0x240   :  { %2088 = vmatprep.mubr.f32.mxu0 %v6361_v4  ;;  %2549 = vmatprep.mubr.f32.mxu1 %v6279_v63  ;;  %v1627_v4 = vld [vmem:[#allocation5 + $0x218] sm:$0xff]  ;;  %9191 = vst [vmem:[#allocation104_spill] sm:$0xff] %v6443_v31  ;;  %9193 = vst [vmem:[#allocation106_spill] sm:$0xff] %v6457_v9  ;;  %v1453_v11 = vmax.f32 %v1452_v33, %v6457_v9  ;;  %v6476_v40 = vadd.f32 %v6328_v58, %v5764_v49 }
 0x241   :  { %v6435_v2 = vpop.f32.mrf.mxu1  ;;  %2797 = vmatpush2.msra.mxu0 %v1630_v60  ;;  %4346 = vmatprep.subr.mxu1 %v9194_v7  ;;  %9195 = vst [vmem:[#allocation107_spill] sm:$0xff] %v6464_v26  ;;  %v1449_v39 = vmax.f32 %v1447_v19, %v1448_v1  ;;  %v6497_v1 = vadd.f32 %v6359_v43, %v5770_v53 }
 0x242   :  { %2798 = vmatprep.subr.mxu0 %v1627_v4  ;;  %v1439_v4 = vrot.slane %v1438_v61, 2  ;;  %9196 = vst [vmem:[#allocation108_spill] sm:$0xff] %v6476_v40  ;;  %v1454_v58 = vmax.f32 %v1453_v11, %v6476_v40  ;;  %v6507_v11 = vadd.f32 %v6337_v21, %v5764_v49  ;;  %v6525_v21 = vadd.f32 %v6401_v30, %v5770_v53 }
 0x243   :  { %v6439_v63 = vpop.f32.mrf.mxu1  ;;  %2089 = vmatmul.mubr.f32.gmra.mxu0 %v6375_v3  ;;  %2550 = vmatmul.mubr.f32.gmra.mxu1 %v6267_v59  ;;  %9197 = vst [vmem:[#allocation109_spill] sm:$0xff] %v6497_v1  ;;  %v6541_v30 = vadd.f32 %v6411_v16, %v5770_v53 }
 0x244   :  { %2094 = vmatprep.mubr.f32.mxu0 %v6437_v36  ;;  %2555 = vmatprep.mubr.f32.mxu1 %v6301_v42  ;;  %v1440_v15 = vmax.f32 %v1438_v61, %v1439_v4  ;;  %v1455_v4 = vrot.slane %v1454_v58, 4  ;;  %9199 = vst [vmem:[#allocation111_spill] sm:$0xff] %v6507_v11  ;;  %9202 = vst [vmem:[#allocation114_spill] sm:$0xff] %v6525_v21 }
 0x245   :  { %v6459_v12 = vpop.f32.mrf.mxu1  ;;  %2799 = vmatpush2.msra.mxu0 %v1626_v10  ;;  %v1463_v10 = vmax.f32 %v1462_v37, %v6464_v26  ;;  %v6501_v37 = vadd.f32 %v6383_v24, %v5770_v53  ;;  %9205 = vst [vmem:[#allocation117_spill] sm:$0xff] %v6541_v30 }
 0x246   :  { %3961 = vmatprep.subr.mxu0 %v9194_v7  ;;  %v1441_v61 = vrot.slane %v1440_v15, 1 }
 0x247   :  { %v6466_v60 = vpop.f32.mrf.mxu1  ;;  %2095 = vmatmul.mubr.f32.gmra.mxu0 %v6443_v31  ;;  %2556 = vmatmul.mubr.f32.gmra.mxu1 %v6297_v47  ;;  %v1464_v42 = vrot.slane %v1463_v10, 4  ;;  %9198 = vst [vmem:[#allocation110_spill] sm:$0xff] %v6501_v37 }
 0x248   :  { %2100 = vmatprep.mubr.f32.mxu0 %v6437_v36  ;;  %2561 = vmatprep.mubr.f32.mxu1 %v6311_v41  ;;  %v1450_v41 = vrot.slane %v1449_v39, 1 }
 0x249   :  { %v6478_v6 = vpop.f32.mrf.mxu1  ;;  %v1465_v24 = vmax.f32 %v1463_v10, %v1464_v42  ;;  %v1456_v42 = vmax.f32 %v1454_v58, %v1455_v4 }
 0x24b   :  { %v6482_v47 = vpop.f32.mrf.mxu1  ;;  %2101 = vmatmul.mubr.f32.gmra.mxu0 %v6443_v31  ;;  %2562 = vmatmul.mubr.f32.gmra.mxu1 %v6321_v45 }
 0x24c   :  { %2106 = vmatprep.mubr.f32.mxu0 %v6437_v36  ;;  %2567 = vmatprep.mubr.f32.mxu1 %v6343_v44  ;;  %v6515_v44 = vmax.f32 %v1449_v39, %v1450_v41  ;;  %v6535_v39 = vadd.f32 %v6389_v18, %v5764_v49  ;;  %v1457_v18 = vrot.slane %v1456_v42, 2 }
 0x24d   :  { %v6489_v33 = vpop.f32.mrf.mxu1 }
 0x24e   :  { %9201 = vst [vmem:[#allocation113_spill] sm:$0xff] %v6515_v44  ;;  %9204 = vst [vmem:[#allocation116_spill] sm:$0xff] %v6535_v39 }
 0x24f   :  { %v6491_v19 = vpop.f32.mrf.mxu1  ;;  %2107 = vmatmul.mubr.f32.gmra.mxu0 %v6443_v31  ;;  %2568 = vmatmul.mubr.f32.gmra.mxu1 %v6353_v29  ;;  %v6511_v29 = vadd.f32 %v6363_v22, %v5764_v49  ;;  %v6529_v22 = vmax.f32 %v1440_v15, %v1441_v61  ;;  %v6553_v61 = vadd.f32 %v6404_v20, %v5764_v49 }
 0x250   :  { %2112 = vmatprep.mubr.f32.mxu0 %v6437_v36  ;;  %2573 = vmatprep.mubr.f32.mxu1 %v6347_v38  ;;  %v1479_v38 = vmax.f32 %v6497_v1, %v6501_v37 }
 0x251   :  { %9200 = vst [vmem:[#allocation112_spill] sm:$0xff] %v6511_v29  ;;  %v6513_v43 = vpop.f32.mrf.mxu1  ;;  %9203 = vst [vmem:[#allocation115_spill] sm:$0xff] %v6529_v22  ;;  %v1470_v41 = vmax.f32 %v6507_v11, %v6511_v29 }
 0x252   :  { %v1480_v15 = vmax.f32 %v1479_v38, %v6525_v21  ;;  %9206 = vst [vmem:[#allocation118_spill] sm:$0xff] %v6553_v61  ;;  %v1458_v38 = vmax.f32 %v1456_v42, %v1457_v18  ;;  %v6581_v42 = vadd.f32 %v6435_v2, %v5770_v53  ;;  %v6585_v18 = vadd.f32 %v6459_v12, %v5770_v53 }
 0x253   :  { %v6517_v45 = vpop.f32.mrf.mxu1  ;;  %2113 = vmatmul.mubr.f32.gmra.mxu0 %v6443_v31  ;;  %2574 = vmatmul.mubr.f32.gmra.mxu1 %v6357_v28  ;;  %v1466_v28 = vrot.slane %v1465_v24, 2  ;;  %v1471_v58 = vmax.f32 %v1470_v41, %v6535_v39 }
 0x254   :  { %2118 = vmatprep.mubr.f32.mxu0 %v6515_v44  ;;  %2579 = vmatprep.mubr.f32.mxu1 %v6371_v46  ;;  %v1481_v46 = vmax.f32 %v1480_v15, %v6541_v30  ;;  %9209 = vst [vmem:[#allocation121_spill] sm:$0xff] %v6581_v42  ;;  %9210 = vst [vmem:[#allocation122_spill] sm:$0xff] %v6585_v18  ;;  %v1497_v12 = vmax.f32 %v6581_v42, %v6585_v18 }
 0x255   :  { %v6537_v10 = vpop.f32.mrf.mxu1  ;;  %v1467_v4 = vmax.f32 %v1465_v24, %v1466_v28  ;;  %v1472_v41 = vmax.f32 %v1471_v58, %v6553_v61  ;;  %v6569_v28 = vadd.f32 %v6413_v34, %v5764_v49  ;;  %v6573_v24 = vadd.f32 %v6439_v63, %v5764_v49 }
 0x256   :  { %v1459_v34 = vrot.slane %v1458_v38, 1 }
 0x257   :  { %v6543_v31 = vpop.f32.mrf.mxu1  ;;  %2119 = vmatmul.mubr.f32.gmra.mxu0 %v6529_v22  ;;  %2580 = vmatmul.mubr.f32.gmra.mxu1 %v6381_v51  ;;  %v1482_v51 = vrot.slane %v1481_v46, 4  ;;  %9207 = vst [vmem:[#allocation119_spill] sm:$0xff] %v6569_v28  ;;  %9208 = vst [vmem:[#allocation120_spill] sm:$0xff] %v6573_v24  ;;  %v1473_v63 = vrot.slane %v1472_v41, 4 }
 0x258   :  { %2124 = vmatprep.mubr.f32.mxu0 %v6515_v44  ;;  %2585 = vmatprep.mubr.f32.mxu1 %v6387_v8  ;;  %v1468_v8 = vrot.slane %v1467_v4, 1 }
 0x259   :  { %v6555_v16 = vpop.f32.mrf.mxu1 }
 0x25b   :  { %v6558_v36 = vpop.f32.mrf.mxu1  ;;  %2125 = vmatmul.mubr.f32.gmra.mxu0 %v6529_v22  ;;  %2586 = vmatmul.mubr.f32.gmra.mxu1 %v6399_v35  ;;  %v1483_v35 = vmax.f32 %v1481_v46, %v1482_v51  ;;  %v6611_v46 = vmax.f32 %v1458_v38, %v1459_v34  ;;  %v1474_v51 = vmax.f32 %v1472_v41, %v1473_v63 }
 0x25c   :  { %2130 = vmatprep.mubr.f32.mxu0 %v6515_v44  ;;  %2591 = vmatprep.mubr.f32.mxu1 %v6419_v5  ;;  %v6591_v5 = vmax.f32 %v1467_v4, %v1468_v8  ;;  %v6607_v8 = vadd.f32 %v6478_v6, %v5770_v53  ;;  %v6627_v38 = vadd.f32 %v6482_v47, %v5764_v49 }
 0x25d   :  { %v6565_v20 = vpop.f32.mrf.mxu1  ;;  %9214 = vst [vmem:[#allocation126_spill] sm:$0xff] %v6611_v46 }
 0x25e   :  { %9211 = vst [vmem:[#allocation123_spill] sm:$0xff] %v6591_v5  ;;  %9213 = vst [vmem:[#allocation125_spill] sm:$0xff] %v6607_v8 }
 0x25f   :  { %v6575_v15 = vpop.f32.mrf.mxu1  ;;  %2131 = vmatmul.mubr.f32.gmra.mxu0 %v6529_v22  ;;  %2592 = vmatmul.mubr.f32.gmra.mxu1 %v6429_v52  ;;  %v1488_v52 = vmax.f32 %v6569_v28, %v6573_v24  ;;  %9216 = vst [vmem:[#allocation128_spill] sm:$0xff] %v6627_v38 }
 0x260   :  { %2136 = vmatprep.mubr.f32.mxu0 %v6515_v44  ;;  %2597 = vmatprep.mubr.f32.mxu1 %v6423_v32  ;;  %v6603_v32 = vadd.f32 %v6466_v60, %v5764_v49 }
 0x261   :  { %v6589_v58 = vpop.f32.mrf.mxu1 }
 0x262   :  { %9212 = vst [vmem:[#allocation124_spill] sm:$0xff] %v6603_v32  ;;  %v1489_v6 = vmax.f32 %v1488_v52, %v6603_v32 }
 0x263   :  { %v6595_v2 = vpop.f32.mrf.mxu1  ;;  %2137 = vmatmul.mubr.f32.gmra.mxu0 %v6529_v22  ;;  %2598 = vmatmul.mubr.f32.gmra.mxu1 %v6433_v48  ;;  %v1484_v48 = vrot.slane %v1483_v35, 2  ;;  %v6617_v22 = vadd.f32 %v6489_v33, %v5770_v53  ;;  %v1475_v33 = vrot.slane %v1474_v51, 2 }
 0x264   :  { %2142 = vmatprep.mubr.f32.mxu0 %v6591_v5  ;;  %2603 = vmatprep.mubr.f32.mxu1 %v6449_v17  ;;  %v1498_v17 = vmax.f32 %v1497_v12, %v6607_v8  ;;  %v1490_v52 = vmax.f32 %v1489_v6, %v6627_v38 }
 0x265   :  { %v6613_v4 = vpop.f32.mrf.mxu1  ;;  %9215 = vst [vmem:[#allocation127_spill] sm:$0xff] %v6617_v22  ;;  %v1485_v34 = vmax.f32 %v1483_v35, %v1484_v48  ;;  %v1476_v47 = vmax.f32 %v1474_v51, %v1475_v33  ;;  %v6655_v33 = vadd.f32 %v6513_v43, %v5770_v53 }
 0x266   :  { %v1499_v63 = vmax.f32 %v1498_v17, %v6617_v22  ;;  %v1491_v48 = vrot.slane %v1490_v52, 4 }
 0x267   :  { %v6619_v60 = vpop.f32.mrf.mxu1  ;;  %2143 = vmatmul.mubr.f32.gmra.mxu0 %v6611_v46  ;;  %2604 = vmatmul.mubr.f32.gmra.mxu1 %v6457_v9  ;;  %v1477_v17 = vrot.slane %v1476_v47, 1 }
 0x268   :  { %2148 = vmatprep.mubr.f32.mxu0 %v6591_v5  ;;  %2609 = vmatprep.mubr.f32.mxu1 %v6464_v26  ;;  %v1486_v26 = vrot.slane %v1485_v34, 1  ;;  %v1500_v9 = vrot.slane %v1499_v63, 4 }
 0x269   :  { %v6631_v41 = vpop.f32.mrf.mxu1 }
 0x26a   :  { %v1501_v51 = vmax.f32 %v1499_v63, %v1500_v9  ;;  %v1492_v9 = vmax.f32 %v1490_v52, %v1491_v48  ;;  %v6693_v63 = vadd.f32 %v6543_v31, %v5764_v49 }
 0x26b   :  { %v6634_v44 = vpop.f32.mrf.mxu1  ;;  %2149 = vmatmul.mubr.f32.gmra.mxu0 %v6611_v46  ;;  %2610 = vmatmul.mubr.f32.gmra.mxu1 %v6476_v40  ;;  %v6659_v40 = vadd.f32 %v6537_v10, %v5770_v53 }
 0x26c   :  { %2154 = vmatprep.mubr.f32.mxu0 %v6591_v5  ;;  %2615 = vmatprep.mubr.f32.mxu1 %v6497_v1  ;;  %v6651_v1 = vmax.f32 %v1485_v34, %v1486_v26  ;;  %v6675_v26 = vadd.f32 %v6555_v16, %v5770_v53  ;;  %v6687_v34 = vadd.f32 %v6565_v20, %v5770_v53 }
 0x26d   :  { %v6641_v12 = vpop.f32.mrf.mxu1  ;;  %v1515_v10 = vmax.f32 %v6655_v33, %v6659_v40  ;;  %v6704_v20 = vadd.f32 %v6558_v36, %v5764_v49 }
 0x26e   :  { %9217 = vst [vmem:[#allocation129_spill] sm:$0xff] %v6651_v1 }
 0x26f   :  { %v6643_v35 = vpop.f32.mrf.mxu1  ;;  %2155 = vmatmul.mubr.f32.gmra.mxu0 %v6611_v46  ;;  %2616 = vmatmul.mubr.f32.gmra.mxu1 %v6507_v11  ;;  %v6663_v11 = vadd.f32 %v6491_v19, %v5764_v49  ;;  %v6679_v19 = vmax.f32 %v1476_v47, %v1477_v17  ;;  %v1493_v47 = vrot.slane %v1492_v9, 2  ;;  %v1516_v48 = vmax.f32 %v1515_v10, %v6675_v26 }
 0x270   :  { %2160 = vmatprep.mubr.f32.mxu0 %v6591_v5  ;;  %2621 = vmatprep.mubr.f32.mxu1 %v6501_v37  ;;  %v6667_v37 = vadd.f32 %v6517_v45, %v5764_v49  ;;  %v1502_v45 = vrot.slane %v1501_v51, 2 }
 0x271   :  { %v6649_v6 = vpop.f32.mrf.mxu1  ;;  %9218 = vst [vmem:[#allocation130_spill] sm:$0xff] %v6679_v19  ;;  %v1494_v10 = vmax.f32 %v1492_v9, %v1493_v47  ;;  %v6725_v47 = vadd.f32 %v6613_v4, %v5770_v53 }
 0x272   :  { %v1506_v16 = vmax.f32 %v6663_v11, %v6667_v37  ;;  %v1503_v31 = vmax.f32 %v1501_v51, %v1502_v45 }
 0x273   :  { %v6669_v5 = vpop.f32.mrf.mxu1  ;;  %2161 = vmatmul.mubr.f32.gmra.mxu0 %v6611_v46  ;;  %2622 = vmatmul.mubr.f32.gmra.mxu1 %v6511_v29 }
 0x274   :  { %2166 = vmatprep.mubr.f32.mxu0 %v6651_v1  ;;  %2627 = vmatprep.mubr.f32.mxu1 %v6525_v21  ;;  %v1517_v21 = vmax.f32 %v1516_v48, %v6687_v34  ;;  %v1507_v29 = vmax.f32 %v1506_v16, %v6693_v63  ;;  %v1504_v51 = vrot.slane %v1503_v31, 1  ;;  %v1495_v48 = vrot.slane %v1494_v10, 1 }
 0x275   :  { %v6681_v43 = vpop.f32.mrf.mxu1 }
 0x276   :  { %v1508_v36 = vmax.f32 %v1507_v29, %v6704_v20  ;;  %v1518_v45 = vrot.slane %v1517_v21, 4 }
 0x277   :  { %v6695_v52 = vpop.f32.mrf.mxu1  ;;  %2167 = vmatmul.mubr.f32.gmra.mxu0 %v6679_v19  ;;  %2628 = vmatmul.mubr.f32.gmra.mxu1 %v6535_v39 }
 0x278   :  { %2172 = vmatprep.mubr.f32.mxu0 %v6651_v1  ;;  %2633 = vmatprep.mubr.f32.mxu1 %v6541_v30  ;;  %v1509_v9 = vrot.slane %v1508_v36, 4  ;;  %v1519_v39 = vmax.f32 %v1517_v21, %v1518_v45  ;;  %v9219_v21 = vsub.s32 0, %v5752_v14 }
 0x279   :  { %v6706_v17 = vpop.f32.mrf.mxu1 }
 0x27b   :  { %v6710_v46 = vpop.f32.mrf.mxu1  ;;  %2173 = vmatmul.mubr.f32.gmra.mxu0 %v6679_v19  ;;  %2634 = vmatmul.mubr.f32.gmra.mxu1 %v6553_v61  ;;  %v6730_v61 = vmax.f32 %v1503_v31, %v1504_v51 }
 0x27c   :  { %2178 = vmatprep.mubr.f32.mxu0 %v6651_v1  ;;  %2639 = vmatprep.mubr.f32.mxu1 %v6581_v42  ;;  %v1816_v42 = vld [vmem:[%s8946_s6] sm:$0xf] }
 0x27d   :  { %v6717_v30 = vpop.f32.mrf.mxu1  ;;  %v6748_v31 = vrot.slane %v1816_v42, %v9219_v21 }
 0x27f   :  { %2179 = vmatmul.mubr.f32.gmra.mxu0 %v6679_v19  ;;  %v2353_v16 = vpop.f32.mrf.mxu1  ;;  %2640 = vmatmul.mubr.f32.gmra.mxu1 %v6569_v28  ;;  %v6734_v28 = vadd.f32 %v6589_v58, %v5770_v53  ;;  %v1510_v58 = vmax.f32 %v1508_v36, %v1509_v9  ;;  %v6766_v36 = vadd.f32 %v6575_v15, %v5764_v49 }
 0x280   :  { %2184 = vmatprep.mubr.f32.mxu0 %v6651_v1  ;;  %2645 = vmatprep.mubr.f32.mxu1 %v6585_v18  ;;  %v6738_v18 = vadd.f32 %v6631_v41, %v5770_v53  ;;  %v6742_v1 = vmax.f32 %v1494_v10, %v1495_v48  ;;  %v6752_v41 = vadd.f32 %v6595_v2, %v5764_v49  ;;  %v1520_v48 = vrot.slane %v1519_v39, 2 }
 0x281   :  { %v2355_v29 = vpop.f32.mrf.mxu1  ;;  %v1533_v51 = vmax.f32 %v6734_v28, %v6725_v47  ;;  %v6758_v10 = vadd.f32 %v6641_v12, %v5770_v53  ;;  %9221 = vst [vmem:[#allocation131_spill] sm:$0xff] %v6766_v36  ;;  %v6770_v2 = vadd.f32 %v6619_v60, %v5764_v49  ;;  %v1511_v15 = vrot.slane %v1510_v58, 2 }
 0x282   :  { %v1521_v59 = vmax.f32 %v1519_v39, %v1520_v48 }
 0x283   :  { %2185 = vmatmul.mubr.f32.gmra.mxu0 %v6679_v19  ;;  %v2359_v4 = vpop.f32.mrf.mxu1  ;;  %2646 = vmatmul.mubr.f32.gmra.mxu1 %v6573_v24  ;;  %v1534_v9 = vmax.f32 %v1533_v51, %v6738_v18 }
 0x284   :  { %2190 = vmatprep.mubr.f32.mxu0 %v6730_v61  ;;  %2651 = vmatprep.mubr.f32.mxu1 %v6607_v8  ;;  %v9220_v8 = vsub.s32 1, %v5752_v14 }
 0x285   :  { %v2361_v45 = vpop.f32.mrf.mxu1  ;;  %v1535_v60 = vmax.f32 %v1534_v9, %v6758_v10 }
 0x286   :  { %v6762_v24 = vrot.slane %v1816_v42, %v9220_v8  ;;  %v1524_v42 = vmax.f32 %v6766_v36, %v6752_v41  ;;  %v6782_v8 = vadd.f32 %v6634_v44, %v5764_v49 }
 0x287   :  { %v1904_v21 = vpop.f32.mrf.mxu0  ;;  %2191 = vmatmul.mubr.f32.gmra.mxu0 %v6742_v1  ;;  %v2365_v12 = vpop.f32.mrf.mxu1  ;;  %2652 = vmatmul.mubr.f32.gmra.mxu1 %v6603_v32 }
 0x288   :  { %v1905_v14 = vadd.f32 %v1904_v21, %v6748_v31  ;;  %2196 = vmatprep.mubr.f32.mxu0 %v6730_v61  ;;  %2657 = vmatprep.mubr.f32.mxu1 %v6617_v22  ;;  %v1525_v3 = vmax.f32 %v1524_v42, %v6770_v2  ;;  %v1522_v42 = vrot.slane %v1521_v59, 1 }
 0x289   :  { %v1906_v51 = vpop.f32.mrf.mxu0  ;;  %v2367_v19 = vpop.f32.mrf.mxu1 }
 0x28a   :  { %v6785_v32 = vadd.f32 %v2353_v16, %v1905_v14  ;;  %v1907_v21 = vadd.f32 %v1906_v51, %v6762_v24  ;;  %v1512_v14 = vmax.f32 %v1510_v58, %v1511_v15  ;;  %v1526_v39 = vmax.f32 %v1525_v3, %v6782_v8 }
 0x28b   :  { %v1910_v22 = vpop.f32.mrf.mxu0  ;;  %2197 = vmatmul.mubr.f32.gmra.mxu0 %v6742_v1  ;;  %v2371_v27 = vpop.f32.mrf.mxu1  ;;  %2658 = vmatmul.mubr.f32.gmra.mxu1 %v6627_v38  ;;  %v1536_v16 = vrot.slane %v1535_v60, 4 }
 0x28c   :  { %9222 = vst [vmem:[#allocation132_spill] sm:$0xff] %v6785_v32  ;;  %v6791_v25 = vadd.f32 %v2355_v29, %v1907_v21  ;;  %v1911_v44 = vadd.f32 %v1910_v22, %v6748_v31  ;;  %2202 = vmatprep.mubr.f32.mxu0 %v6730_v61  ;;  %2663 = vmatprep.mubr.f32.mxu1 %v6655_v33  ;;  %v1513_v3 = vrot.slane %v1512_v14, 1  ;;  %v1527_v15 = vrot.slane %v1526_v39, 4 }
 0x28d   :  { %v1912_v48 = vpop.f32.mrf.mxu0  ;;  %v2373_v9 = vpop.f32.mrf.mxu1 }
 0x28e   :  { %9223 = vst [vmem:[#allocation133_spill] sm:$0xff] %v6791_v25  ;;  %v6797_v51 = vadd.f32 %v2359_v4, %v1911_v44  ;;  %v1913_v32 = vadd.f32 %v1912_v48, %v6762_v24  ;;  %v1537_v4 = vmax.f32 %v1535_v60, %v1536_v16  ;;  %v6807_v48 = vmax.f32 %v1521_v59, %v1522_v42 }
 0x28f   :  { %v1916_v38 = vpop.f32.mrf.mxu0  ;;  %2203 = vmatmul.mubr.f32.gmra.mxu0 %v6742_v1  ;;  %v2377_v29 = vpop.f32.mrf.mxu1  ;;  %2664 = vmatmul.mubr.f32.gmra.mxu1 %v6663_v11  ;;  %v6824_v59 = vadd.f32 %v6706_v17, %v5770_v53  ;;  %v1528_v16 = vmax.f32 %v1526_v39, %v1527_v15  ;;  %v6841_v17 = vadd.f32 %v6717_v30, %v5770_v53 }
 0x290   :  { %9224 = vst [vmem:[#allocation134_spill] sm:$0xff] %v6797_v51  ;;  %v6802_v22 = vadd.f32 %v2361_v45, %v1913_v32  ;;  %v1917_v58 = vadd.f32 %v1916_v38, %v6748_v31  ;;  %2208 = vmatprep.mubr.f32.mxu0 %v6730_v61  ;;  %2669 = vmatprep.mubr.f32.mxu1 %v6659_v40  ;;  %v1538_v42 = vrot.slane %v1537_v4, 2 }
 0x291   :  { %v1918_v21 = vpop.f32.mrf.mxu0  ;;  %v2379_v44 = vpop.f32.mrf.mxu1  ;;  %v6811_v51 = vadd.f32 %v6681_v43, %v5770_v53  ;;  %v6818_v38 = vadd.f32 %v6649_v6, %v5770_v53  ;;  %v6831_v6 = vmax.f32 %v1512_v14, %v1513_v3  ;;  %v6848_v39 = vadd.f32 %v6643_v35, %v5764_v49 }
 0x292   :  { %9225 = vst [vmem:[#allocation135_spill] sm:$0xff] %v6802_v22  ;;  %v6813_v25 = vadd.f32 %v2365_v12, %v1917_v58  ;;  %v1919_v32 = vadd.f32 %v1918_v21, %v6762_v24  ;;  %v6835_v58 = vadd.f32 %v6669_v5, %v5764_v49  ;;  %v6852_v5 = vadd.f32 %v6695_v52, %v5764_v49 }
 0x293   :  { %v1922_v45 = vpop.f32.mrf.mxu0  ;;  %2209 = vmatmul.mubr.f32.gmra.mxu0 %v6742_v1  ;;  %v2383_v60 = vpop.f32.mrf.mxu1  ;;  %2670 = vmatmul.mubr.f32.gmra.mxu1 %v6667_v37  ;;  %v1529_v35 = vrot.slane %v1528_v16, 2 }
 0x294   :  { %9226 = vst [vmem:[#allocation136_spill] sm:$0xff] %v6813_v25  ;;  %v6826_v43 = vadd.f32 %v2367_v19, %v1919_v32  ;;  %v1923_v12 = vadd.f32 %v1922_v45, %v6748_v31  ;;  %2214 = vmatprep.mubr.f32.mxu0 %v6807_v48  ;;  %2675 = vmatprep.mubr.f32.mxu1 %v6675_v26 }
 0x295   :  { %v1924_v21 = vpop.f32.mrf.mxu0  ;;  %v2385_v25 = vpop.f32.mrf.mxu1  ;;  %v1551_v19 = vmax.f32 %v6818_v38, %v6811_v51  ;;  %v1542_v52 = vmax.f32 %v6848_v39, %v6835_v58  ;;  %v6866_v45 = vadd.f32 %v6710_v46, %v5764_v49  ;;  %v1530_v46 = vmax.f32 %v1528_v16, %v1529_v35 }
 0x296   :  { %9227 = vst [vmem:[#allocation137_spill] sm:$0xff] %v6826_v43  ;;  %v6843_v32 = vadd.f32 %v2371_v27, %v1923_v12  ;;  %v1925_v14 = vadd.f32 %v1924_v21, %v6762_v24 }
 0x297   :  { %v1928_v3 = vpop.f32.mrf.mxu0  ;;  %2215 = vmatmul.mubr.f32.gmra.mxu0 %v6831_v6  ;;  %v2389_v15 = vpop.f32.mrf.mxu1  ;;  %2676 = vmatmul.mubr.f32.gmra.mxu1 %v6693_v63  ;;  %v1552_v53 = vmax.f32 %v1551_v19, %v6824_v59  ;;  %v1531_v35 = vrot.slane %v1530_v46, 1 }
 0x298   :  { %9228 = vst [vmem:[#allocation138_spill] sm:$0xff] %v6843_v32  ;;  %v6857_v27 = vadd.f32 %v2373_v9, %v1925_v14  ;;  %v1929_v30 = vadd.f32 %v1928_v3, %v6748_v31  ;;  %2220 = vmatprep.mubr.f32.mxu0 %v6807_v48  ;;  %2681 = vmatprep.mubr.f32.mxu1 %v6687_v34 }
 0x299   :  { %v1930_v12 = vpop.f32.mrf.mxu0  ;;  %v2391_v21 = vpop.f32.mrf.mxu1  ;;  %v1539_v32 = vmax.f32 %v1537_v4, %v1538_v42  ;;  %v1553_v9 = vmax.f32 %v1552_v53, %v6841_v17  ;;  %v1543_v3 = vmax.f32 %v1542_v52, %v6852_v5 }
 0x29a   :  { %9229 = vst [vmem:[#allocation139_spill] sm:$0xff] %v6857_v27  ;;  %v6869_v19 = vadd.f32 %v2377_v29, %v1929_v30  ;;  %v1931_v14 = vadd.f32 %v1930_v12, %v6762_v24 }
 0x29b   :  { %v1934_v27 = vpop.f32.mrf.mxu0  ;;  %2221 = vmatmul.mubr.f32.gmra.mxu0 %v6831_v6  ;;  %v2395_v43 = vpop.f32.mrf.mxu1  ;;  %2682 = vmatmul.mubr.f32.gmra.mxu1 %v6704_v20  ;;  %v1544_v29 = vmax.f32 %v1543_v3, %v6866_v45  ;;  %v1540_v53 = vrot.slane %v1539_v32, 1  ;;  %v1554_v30 = vrot.slane %v1553_v9, 4 }
 0x29c   :  { %9230 = vst [vmem:[#allocation140_spill] sm:$0xff] %v6869_v19  ;;  %v6875_v22 = vadd.f32 %v2379_v44, %v1931_v14  ;;  %v1935_v49 = vadd.f32 %v1934_v27, %v6748_v31  ;;  %2226 = vmatprep.mubr.f32.mxu0 %v6807_v48  ;;  %2687 = vmatprep.mubr.f32.mxu1 %v6734_v28 }
 0x29d   :  { %v1936_v4 = vpop.f32.mrf.mxu0  ;;  %v2397_v42 = vpop.f32.mrf.mxu1  ;;  %v1545_v14 = vrot.slane %v1544_v29, 4 }
 0x29e   :  { %9231 = vst [vmem:[#allocation141_spill] sm:$0xff] %v6875_v22  ;;  %v6881_v52 = vadd.f32 %v2383_v60, %v1935_v49  ;;  %v1937_v12 = vadd.f32 %v1936_v4, %v6762_v24  ;;  %v6891_v49 = vmax.f32 %v1539_v32, %v1540_v53  ;;  %v1555_v4 = vmax.f32 %v1553_v9, %v1554_v30 }
 0x29f   :  { %v1940_v19 = vpop.f32.mrf.mxu0  ;;  %2227 = vmatmul.mubr.f32.gmra.mxu0 %v6831_v6  ;;  %v2401_v44 = vpop.f32.mrf.mxu1  ;;  %2688 = vmatmul.mubr.f32.gmra.mxu1 %v6766_v36  ;;  %v6903_v32 = vmax.f32 %v1530_v46, %v1531_v35 }
 0x2a0   :  { %9232 = vst [vmem:[#allocation142_spill] sm:$0xff] %v6881_v52  ;;  %v6886_v27 = vadd.f32 %v2385_v25, %v1937_v12  ;;  %v1941_v16 = vadd.f32 %v1940_v19, %v6748_v31  ;;  %2232 = vmatprep.mubr.f32.mxu0 %v6807_v48  ;;  %2693 = vmatprep.mubr.f32.mxu1 %v6725_v47  ;;  %v1556_v30 = vrot.slane %v1555_v4, 2 }
 0x2a1   :  { %v1942_v60 = vpop.f32.mrf.mxu0  ;;  %v2403_v3 = vpop.f32.mrf.mxu1 }
 0x2a2   :  { %v6893_v52 = vadd.f32 %v2389_v15, %v1941_v16  ;;  %v1943_v22 = vadd.f32 %v1942_v60, %v6762_v24  ;;  %v1546_v15 = vmax.f32 %v1544_v29, %v1545_v14  ;;  %v1557_v35 = vmax.f32 %v1555_v4, %v1556_v30 }
 0x2a3   :  { %v1946_v36 = vpop.f32.mrf.mxu0  ;;  %2233 = vmatmul.mubr.f32.gmra.mxu0 %v6831_v6  ;;  %v2407_v25 = vpop.f32.mrf.mxu1  ;;  %2694 = vmatmul.mubr.f32.gmra.mxu1 %v6752_v41 }
 0x2a4   :  { %9233 = vst [vmem:[#allocation143_spill] sm:$0xff] %v6893_v52  ;;  %v6898_v19 = vadd.f32 %v2391_v21, %v1943_v22  ;;  %v1947_v12 = vadd.f32 %v1946_v36, %v6748_v31  ;;  %2238 = vmatprep.mubr.f32.mxu0 %v6891_v49  ;;  %2699 = vmatprep.mubr.f32.mxu1 %v6738_v18  ;;  %v1547_v46 = vrot.slane %v1546_v15, 2  ;;  %v1558_v30 = vrot.slane %v1557_v35, 1 }
 0x2a5   :  { %v1948_v9 = vpop.f32.mrf.mxu0  ;;  %v2409_v53 = vpop.f32.mrf.mxu1 }
 0x2a6   :  { %v6905_v16 = vadd.f32 %v2395_v43, %v1947_v12  ;;  %v1949_v60 = vadd.f32 %v1948_v9, %v6762_v24 }
 0x2a7   :  { %v1952_v52 = vpop.f32.mrf.mxu0  ;;  %2239 = vmatmul.mubr.f32.gmra.mxu0 %v6903_v32  ;;  %v2413_v22 = vpop.f32.mrf.mxu1  ;;  %2700 = vmatmul.mubr.f32.gmra.mxu1 %v6770_v2 }
 0x2a8   :  { %9234 = vst [vmem:[#allocation144_spill] sm:$0xff] %v6905_v16  ;;  %v6910_v36 = vadd.f32 %v2397_v42, %v1949_v60  ;;  %v1953_v21 = vadd.f32 %v1952_v52, %v6748_v31  ;;  %2244 = vmatprep.mubr.f32.mxu0 %v6891_v49  ;;  %2705 = vmatprep.mubr.f32.mxu1 %v6758_v10 }
 0x2a9   :  { %v1954_v29 = vpop.f32.mrf.mxu0  ;;  %v2415_v43 = vpop.f32.mrf.mxu1  ;;  %v1548_v60 = vmax.f32 %v1546_v15, %v1547_v46 }
 0x2aa   :  { %9235 = vst [vmem:[#allocation145_spill] sm:$0xff] %v6910_v36  ;;  %v6915_v14 = vadd.f32 %v2401_v44, %v1953_v21  ;;  %v1955_v12 = vadd.f32 %v1954_v29, %v6762_v24 }
 0x2ab   :  { %v1958_v9 = vpop.f32.mrf.mxu0  ;;  %2245 = vmatmul.mubr.f32.gmra.mxu0 %v6903_v32  ;;  %v2419_v16 = vpop.f32.mrf.mxu1  ;;  %2706 = vmatmul.mubr.f32.gmra.mxu1 %v6782_v8  ;;  %v1549_v15 = vrot.slane %v1548_v60, 1 }
 0x2ac   :  { %9236 = vst [vmem:[#allocation146_spill] sm:$0xff] %v6915_v14  ;;  %v6920_v42 = vadd.f32 %v2403_v3, %v1955_v12  ;;  %v1959_v52 = vadd.f32 %v1958_v9, %v6748_v31  ;;  %2250 = vmatprep.mubr.f32.mxu0 %v6891_v49  ;;  %2711 = vmatprep.mubr.f32.mxu1 %v6818_v38 }
 0x2ad   :  { %v1960_v4 = vpop.f32.mrf.mxu0  ;;  %v2421_v44 = vpop.f32.mrf.mxu1  ;;  %v6935_v9 = vmax.f32 %v1557_v35, %v1558_v30  ;;  %v6947_v35 = vmax.f32 %v1548_v60, %v1549_v15 }
 0x2ae   :  { %9237 = vst [vmem:[#allocation147_spill] sm:$0xff] %v6920_v42  ;;  %v6925_v21 = vadd.f32 %v2407_v25, %v1959_v52  ;;  %v1961_v29 = vadd.f32 %v1960_v4, %v6762_v24 }
 0x2af   :  { %v1964_v14 = vpop.f32.mrf.mxu0  ;;  %2251 = vmatmul.mubr.f32.gmra.mxu0 %v6903_v32  ;;  %v2425_v36 = vpop.f32.mrf.mxu1  ;;  %2712 = vmatmul.mubr.f32.gmra.mxu1 %v6848_v39 }
 0x2b0   :  { %9238 = vst [vmem:[#allocation148_spill] sm:$0xff] %v6925_v21  ;;  %v6930_v3 = vadd.f32 %v2409_v53, %v1961_v29  ;;  %v1965_v12 = vadd.f32 %v1964_v14, %v6748_v31  ;;  %2256 = vmatprep.mubr.f32.mxu0 %v6891_v49  ;;  %2717 = vmatprep.mubr.f32.mxu1 %v6811_v51 }
 0x2b1   :  { %v1966_v46 = vpop.f32.mrf.mxu0  ;;  %v2427_v25 = vpop.f32.mrf.mxu1 }
 0x2b2   :  { %9239 = vst [vmem:[#allocation149_spill] sm:$0xff] %v6930_v3  ;;  %v6937_v52 = vadd.f32 %v2413_v22, %v1965_v12  ;;  %v1967_v4 = vadd.f32 %v1966_v46, %v6762_v24 }
 0x2b3   :  { %v1970_v21 = vpop.f32.mrf.mxu0  ;;  %2257 = vmatmul.mubr.f32.gmra.mxu0 %v6903_v32  ;;  %v2431_v53 = vpop.f32.mrf.mxu1  ;;  %2718 = vmatmul.mubr.f32.gmra.mxu1 %v6835_v58 }
 0x2b4   :  { %9240 = vst [vmem:[#allocation150_spill] sm:$0xff] %v6937_v52  ;;  %v6942_v14 = vadd.f32 %v2415_v43, %v1967_v4  ;;  %v1971_v29 = vadd.f32 %v1970_v21, %v6748_v31  ;;  %2262 = vmatprep.mubr.f32.mxu0 %v6935_v9  ;;  %2723 = vmatprep.mubr.f32.mxu1 %v6824_v59 }
 0x2b5   :  { %v1972_v22 = vpop.f32.mrf.mxu0  ;;  %v2433_v30 = vpop.f32.mrf.mxu1 }
 0x2b6   :  { %9241 = vst [vmem:[#allocation151_spill] sm:$0xff] %v6942_v14  ;;  %v6949_v12 = vadd.f32 %v2419_v16, %v1971_v29  ;;  %v1973_v46 = vadd.f32 %v1972_v22, %v6762_v24  ;;  %v5207_v14 = vld [vmem:[%s8946_s6] sm:$0xf] }
 0x2b7   :  { %v1976_v52 = vpop.f32.mrf.mxu0  ;;  %2263 = vmatmul.mubr.f32.gmra.mxu0 %v6947_v35  ;;  %v2437_v3 = vpop.f32.mrf.mxu1  ;;  %2724 = vmatmul.mubr.f32.gmra.mxu1 %v6852_v5 }
 0x2b8   :  { %9242 = vst [vmem:[#allocation152_spill] sm:$0xff] %v6949_v12  ;;  %v6954_v43 = vadd.f32 %v2421_v44, %v1973_v46  ;;  %v1977_v21 = vadd.f32 %v1976_v52, %v6748_v31  ;;  %2268 = vmatprep.mubr.f32.mxu0 %v6935_v9  ;;  %2729 = vmatprep.mubr.f32.mxu1 %v6841_v17 }
 0x2b9   :  { %v1978_v60 = vpop.f32.mrf.mxu0  ;;  %v2439_v15 = vpop.f32.mrf.mxu1 }
 0x2ba   :  { %9243 = vst [vmem:[#allocation153_spill] sm:$0xff] %v6954_v43  ;;  %v6959_v16 = vadd.f32 %v2425_v36, %v1977_v21  ;;  %v1979_v4 = vadd.f32 %v1978_v60, %v6762_v24  ;;  %v3937_v60 = vld [vmem:[%s8947_s7 + $0x178] sm:$0xff] }
 0x2bb   :  { %v1982_v29 = vpop.f32.mrf.mxu0  ;;  %2269 = vmatmul.mubr.f32.gmra.mxu0 %v6947_v35  ;;  %v2443_v22 = vpop.f32.mrf.mxu1  ;;  %2730 = vmatmul.mubr.f32.gmra.mxu1 %v6866_v45 }
 0x2bc   :  { %9244 = vst [vmem:[#allocation154_spill] sm:$0xff] %v6959_v16  ;;  %v6964_v44 = vadd.f32 %v2427_v25, %v1979_v4  ;;  %v1983_v52 = vadd.f32 %v1982_v29, %v6748_v31  ;;  %2274 = vmatprep.mubr.f32.mxu0 %v6935_v9  ;;  %3249 = vmatprep.mubr.f32.mxu1 %v5787_v62 }
 0x2bd   :  { %v1984_v46 = vpop.f32.mrf.mxu0  ;;  %v2445_v12 = vpop.f32.mrf.mxu1 }
 0x2be   :  { %9245 = vst [vmem:[#allocation155_spill] sm:$0xff] %v6964_v44  ;;  %v6969_v36 = vadd.f32 %v2431_v53, %v1983_v52  ;;  %v1985_v21 = vadd.f32 %v1984_v46, %v6762_v24 }
 0x2bf   :  { %v1988_v16 = vpop.f32.mrf.mxu0  ;;  %2275 = vmatmul.mubr.f32.gmra.mxu0 %v6947_v35  ;;  %v2449_v25 = vpop.f32.mrf.mxu1  ;;  %3250 = vmatmul.mubr.f32.vlgmr.msra.gmra.mxu1 %v5776_v23  ;;  %v3936_v23 = vld [vmem:[%s8947_s7 + $0x170] sm:$0xff] }
 0x2c0   :  { %9246 = vst [vmem:[#allocation156_spill] sm:$0xff] %v6969_v36  ;;  %v6977_v4 = vadd.f32 %v2433_v30, %v1985_v21  ;;  %v1989_v62 = vadd.f32 %v1988_v16, %v6748_v31  ;;  %2280 = vmatprep.mubr.f32.mxu0 %v6935_v9  ;;  %3255 = vmatprep.mubr.f32.mxu1 %v5779_v56 }
 0x2c1   :  { %v1990_v53 = vpop.f32.mrf.mxu0  ;;  %v2451_v29 = vpop.f32.mrf.mxu1  ;;  %4347 = vmatpush1.msra.mxu1 %v3937_v60 }
 0x2c2   :  { %9247 = vst [vmem:[#allocation157_spill] sm:$0xff] %v6977_v4  ;;  %v6982_v52 = vadd.f32 %v2437_v3, %v1989_v62  ;;  %v1991_v46 = vadd.f32 %v1990_v53, %v6762_v24  ;;  %4348 = vmatprep.subr.mxu1 %v9194_v7  ;;  %v3905_v62 = vld [vmem:[%s8947_s7 + $0x78] sm:$0xff] }
 0x2c3   :  { %v1994_v30 = vpop.f32.mrf.mxu0  ;;  %2281 = vmatmul.mubr.f32.gmra.mxu0 %v6947_v35  ;;  %v2455_v16 = vpop.f32.mrf.mxu1  ;;  %3256 = vmatmul.mubr.f32.gmra.mxu1 %v5773_v54 }
 0x2c4   :  { %9248 = vst [vmem:[#allocation158_spill] sm:$0xff] %v6982_v52  ;;  %v6991_v56 = vadd.f32 %v2439_v15, %v1991_v46  ;;  %v1995_v21 = vadd.f32 %v1994_v30, %v6748_v31  ;;  %2800 = vmatprep.mubr.f32.mxu0 %v5835_v50  ;;  %3261 = vmatprep.mubr.f32.mxu1 %v5792_v0  ;;  %v3904_v0 = vld [vmem:[%s8947_s7 + $0x70] sm:$0xff]  ;;  %v3935_v46 = vld [vmem:[%s8947_s7 + $0x168] sm:$0xff] }
 0x2c5   :  { %v1996_v3 = vpop.f32.mrf.mxu0  ;;  %v2457_v60 = vpop.f32.mrf.mxu1  ;;  %4349 = vmatpush1.msra.mxu1 %v3936_v23 }
 0x2c6   :  { %9249 = vst [vmem:[#allocation159_spill] sm:$0xff] %v6991_v56  ;;  %v6999_v53 = vadd.f32 %v2443_v22, %v1995_v21  ;;  %v1997_v52 = vadd.f32 %v1996_v3, %v6762_v24  ;;  %4350 = vmatprep.subr.mxu1 %v9194_v7 }
 0x2c7   :  { %v2000_v54 = vpop.f32.mrf.mxu0  ;;  %v2461_v15 = vpop.f32.mrf.mxu1  ;;  %2801 = vmatmul.mubr.f32.vlgmr.msra.gmra.mxu0 %v5842_v55  ;;  %3262 = vmatmul.mubr.f32.gmra.mxu1 %v5782_v57 }
 0x2c8   :  { %9250 = vst [vmem:[#allocation160_spill] sm:$0xff] %v6999_v53  ;;  %v7011_v22 = vadd.f32 %v2445_v12, %v1997_v52  ;;  %v2001_v23 = vadd.f32 %v2000_v54, %v6748_v31  ;;  %3962 = vmatpush1.msra.mxu0 %v3905_v62  ;;  %2806 = vmatprep.mubr.f32.mxu0 %v5835_v50  ;;  %v9253_v52 = vld [vmem:[#allocation12_spill] sm:$0xff]  ;;  %v3934_v62 = vld [vmem:[%s8947_s7 + $0x160] sm:$0xff] }
 0x2c9   :  { %3267 = vmatprep.mubr.f32.mxu1 %v5805_v13  ;;  %v2002_v30 = vpop.f32.mrf.mxu0  ;;  %v2463_v21 = vpop.f32.mrf.mxu1  ;;  %3963 = vmatprep.subr.mxu0 %v9194_v7  ;;  %v3903_v13 = vld [vmem:[%s8947_s7 + $0x68] sm:$0xff] }
 0x2ca   :  { %9251 = vst [vmem:[#allocation161_spill] sm:$0xff] %v7011_v22  ;;  %v7017_v57 = vadd.f32 %v2449_v25, %v2001_v23  ;;  %v2003_v3 = vadd.f32 %v2002_v30, %v6762_v24  ;;  %3964 = vmatpush1.msra.mxu0 %v3904_v0  ;;  %4351 = vmatpush1.msra.mxu1 %v3935_v46  ;;  %v9255_v0 = vld [vmem:[#allocation17_spill] sm:$0xff] }
 0x2cb   :  { %v2006_v53 = vpop.f32.mrf.mxu0  ;;  %v2467_v12 = vpop.f32.mrf.mxu1  ;;  %2807 = vmatmul.mubr.f32.gmra.mxu0 %v5842_v55  ;;  %3268 = vmatmul.mubr.f32.gmra.mxu1 %v9253_v52 }
 0x2cc   :  { %9252 = vst [vmem:[#allocation162_spill] sm:$0xff] %v7017_v57  ;;  %v7028_v25 = vadd.f32 %v2451_v29, %v2003_v3  ;;  %v2007_v54 = vadd.f32 %v2006_v53, %v6748_v31  ;;  %2812 = vmatprep.mubr.f32.mxu0 %v5835_v50  ;;  %3273 = vmatprep.mubr.f32.mxu1 %v9255_v0  ;;  %v9257_v53 = vld [vmem:[#allocation15_spill] sm:$0xff]  ;;  %v3902_v0 = vld [vmem:[%s8947_s7 + $0x60] sm:$0xff]  ;;  %v3933_v57 = vld [vmem:[%s8947_s7 + $0x158] sm:$0xff] }
 0x2cd   :  { %v2008_v46 = vpop.f32.mrf.mxu0  ;;  %v2469_v23 = vpop.f32.mrf.mxu1  ;;  %3965 = vmatprep.subr.mxu0 %v9194_v7  ;;  %4352 = vmatprep.subr.mxu1 %v9194_v7 }
 0x2ce   :  { %9254 = vst [vmem:[#allocation12_spill] sm:$0xff] %v7028_v25  ;;  %v7035_v30 = vadd.f32 %v2455_v16, %v2007_v54  ;;  %v2009_v52 = vadd.f32 %v2008_v46, %v6762_v24  ;;  %3966 = vmatpush1.msra.mxu0 %v3903_v13  ;;  %4353 = vmatpush1.msra.mxu1 %v3934_v62  ;;  %v9259_v13 = vld [vmem:[#allocation14_spill] sm:$0xff] }
 0x2cf   :  { %v2012_v29 = vpop.f32.mrf.mxu0  ;;  %v2473_v3 = vpop.f32.mrf.mxu1  ;;  %2813 = vmatmul.mubr.f32.gmra.mxu0 %v5842_v55  ;;  %3274 = vmatmul.mubr.f32.gmra.mxu1 %v9257_v53 }
 0x2d0   :  { %9256 = vst [vmem:[#allocation17_spill] sm:$0xff] %v7035_v30  ;;  %v7046_v16 = vadd.f32 %v2457_v60, %v2009_v52  ;;  %v2013_v54 = vadd.f32 %v2012_v29, %v6748_v31  ;;  %2818 = vmatprep.mubr.f32.mxu0 %v5835_v50  ;;  %3279 = vmatprep.mubr.f32.mxu1 %v9259_v13  ;;  %v9261_v29 = vld [vmem:[#allocation13_spill] sm:$0xff]  ;;  %v3901_v50 = vld [vmem:[%s8947_s7 + $0x58] sm:$0xff]  ;;  %v3932_v13 = vld [vmem:[%s8947_s7 + $0x150] sm:$0xff] }
 0x2d1   :  { %v2014_v62 = vpop.f32.mrf.mxu0  ;;  %v2475_v46 = vpop.f32.mrf.mxu1  ;;  %3967 = vmatprep.subr.mxu0 %v9194_v7  ;;  %4354 = vmatprep.subr.mxu1 %v9194_v7 }
 0x2d2   :  { %9258 = vst [vmem:[#allocation15_spill] sm:$0xff] %v7046_v16  ;;  %v7053_v53 = vadd.f32 %v2461_v15, %v2013_v54  ;;  %v2015_v30 = vadd.f32 %v2014_v62, %v6762_v24  ;;  %3968 = vmatpush1.msra.mxu0 %v3902_v0  ;;  %4355 = vmatpush1.msra.mxu1 %v3933_v57  ;;  %v9263_v0 = vld [vmem:[#allocation27_spill] sm:$0xff]  ;;  %v9264_v57 = vld [vmem:[#allocation18_spill] sm:$0xff] }
 0x2d3   :  { %v2018_v60 = vpop.f32.mrf.mxu0  ;;  %v2479_v52 = vpop.f32.mrf.mxu1  ;;  %2819 = vmatmul.mubr.f32.gmra.mxu0 %v5842_v55  ;;  %3280 = vmatmul.mubr.f32.gmra.mxu1 %v9261_v29  ;;  %v3931_v16 = vld [vmem:[%s8947_s7 + $0x148] sm:$0xff] }
 0x2d4   :  { %9260 = vst [vmem:[#allocation14_spill] sm:$0xff] %v7053_v53  ;;  %v7064_v15 = vadd.f32 %v2463_v21, %v2015_v30  ;;  %v2019_v54 = vadd.f32 %v2018_v60, %v6748_v31  ;;  %2824 = vmatprep.mubr.f32.mxu0 %v9263_v0  ;;  %3285 = vmatprep.mubr.f32.mxu1 %v9264_v57  ;;  %v9267_v60 = vld [vmem:[#allocation16_spill] sm:$0xff]  ;;  %v3900_v57 = vld [vmem:[%s8947_s7 + $0x50] sm:$0xff] }
 0x2d5   :  { %v2020_v62 = vpop.f32.mrf.mxu0  ;;  %v2481_v55 = vpop.f32.mrf.mxu1  ;;  %3969 = vmatprep.subr.mxu0 %v9194_v7  ;;  %4356 = vmatprep.subr.mxu1 %v9194_v7 }
 0x2d6   :  { %9262 = vst [vmem:[#allocation13_spill] sm:$0xff] %v7064_v15  ;;  %v7071_v29 = vadd.f32 %v2467_v12, %v2019_v54  ;;  %v2021_v53 = vadd.f32 %v2020_v62, %v6762_v24  ;;  %3970 = vmatpush1.msra.mxu0 %v3901_v50  ;;  %4357 = vmatpush1.msra.mxu1 %v3932_v13  ;;  %v9266_v15 = vld [vmem:[#allocation29_spill] sm:$0xff]  ;;  %v9269_v50 = vld [vmem:[#allocation20_spill] sm:$0xff] }
 0x2d7   :  { %v2024_v21 = vpop.f32.mrf.mxu0  ;;  %v2485_v30 = vpop.f32.mrf.mxu1  ;;  %2825 = vmatmul.mubr.f32.gmra.mxu0 %v9266_v15  ;;  %3286 = vmatmul.mubr.f32.gmra.mxu1 %v9267_v60 }
 0x2d8   :  { %9265 = vst [vmem:[#allocation27_spill] sm:$0xff] %v7071_v29  ;;  %v7082_v12 = vadd.f32 %v2469_v23, %v2021_v53  ;;  %v2025_v54 = vadd.f32 %v2024_v21, %v6748_v31  ;;  %2830 = vmatprep.mubr.f32.mxu0 %v9263_v0  ;;  %3291 = vmatprep.mubr.f32.mxu1 %v9269_v50  ;;  %v9271_v21 = vld [vmem:[#allocation19_spill] sm:$0xff]  ;;  %v3899_v50 = vld [vmem:[%s8947_s7 + $0x48] sm:$0xff] }
 0x2d9   :  { %v2026_v13 = vpop.f32.mrf.mxu0  ;;  %v2487_v62 = vpop.f32.mrf.mxu1  ;;  %3971 = vmatprep.subr.mxu0 %v9194_v7  ;;  %4358 = vmatprep.subr.mxu1 %v9194_v7 }
 0x2da   :  { %9268 = vst [vmem:[#allocation18_spill] sm:$0xff] %v7082_v12  ;;  %v7089_v60 = vadd.f32 %v2473_v3, %v2025_v54  ;;  %v2027_v29 = vadd.f32 %v2026_v13, %v6762_v24  ;;  %3972 = vmatpush1.msra.mxu0 %v3900_v57  ;;  %4359 = vmatpush1.msra.mxu1 %v3931_v16  ;;  %v3930_v12 = vld [vmem:[%s8947_s7 + $0x140] sm:$0xff] }
 0x2db   :  { %v2030_v23 = vpop.f32.mrf.mxu0  ;;  %v2491_v53 = vpop.f32.mrf.mxu1  ;;  %2831 = vmatmul.mubr.f32.gmra.mxu0 %v9266_v15  ;;  %3292 = vmatmul.mubr.f32.gmra.mxu1 %v9271_v21  ;;  %v9273_v16 = vld [vmem:[#allocation25_spill] sm:$0xff] }
 0x2dc   :  { %9270 = vst [vmem:[#allocation29_spill] sm:$0xff] %v7089_v60  ;;  %v7100_v3 = vadd.f32 %v2475_v46, %v2027_v29  ;;  %v2031_v54 = vadd.f32 %v2030_v23, %v6748_v31  ;;  %2836 = vmatprep.mubr.f32.mxu0 %v9263_v0  ;;  %3297 = vmatprep.mubr.f32.mxu1 %v9273_v16  ;;  %v9275_v23 = vld [vmem:[#allocation22_spill] sm:$0xff]  ;;  %v3898_v16 = vld [vmem:[%s8947_s7 + $0x40] sm:$0xff] }
 0x2dd   :  { %v2032_v57 = vpop.f32.mrf.mxu0  ;;  %v2493_v13 = vpop.f32.mrf.mxu1  ;;  %3973 = vmatprep.subr.mxu0 %v9194_v7  ;;  %4360 = vmatprep.subr.mxu1 %v9194_v7 }
 0x2de   :  { %9272 = vst [vmem:[#allocation16_spill] sm:$0xff] %v7100_v3  ;;  %v7107_v21 = vadd.f32 %v2479_v52, %v2031_v54  ;;  %v2033_v60 = vadd.f32 %v2032_v57, %v6762_v24  ;;  %3974 = vmatpush1.msra.mxu0 %v3899_v50  ;;  %4361 = vmatpush1.msra.mxu1 %v3930_v12  ;;  %v3929_v3 = vld [vmem:[%s8947_s7 + $0x138] sm:$0xff]  ;;  %v9277_v12 = vld [vmem:[#allocation23_spill] sm:$0xff] }
 0x2df   :  { %v2036_v46 = vpop.f32.mrf.mxu0  ;;  %v2497_v29 = vpop.f32.mrf.mxu1  ;;  %2837 = vmatmul.mubr.f32.gmra.mxu0 %v9266_v15  ;;  %3298 = vmatmul.mubr.f32.gmra.mxu1 %v9275_v23 }
 0x2e0   :  { %9274 = vst [vmem:[#allocation20_spill] sm:$0xff] %v7107_v21  ;;  %v7118_v52 = vadd.f32 %v2481_v55, %v2033_v60  ;;  %v2037_v54 = vadd.f32 %v2036_v46, %v6748_v31  ;;  %2842 = vmatprep.mubr.f32.mxu0 %v9263_v0  ;;  %3303 = vmatprep.mubr.f32.mxu1 %v9277_v12  ;;  %v9279_v46 = vld [vmem:[#allocation21_spill] sm:$0xff]  ;;  %v3897_v0 = vld [vmem:[%s8947_s7 + $0x38] sm:$0xff]  ;;  %v3928_v12 = vld [vmem:[%s8947_s7 + $0x130] sm:$0xff] }
 0x2e1   :  { %v2038_v50 = vpop.f32.mrf.mxu0  ;;  %v2499_v57 = vpop.f32.mrf.mxu1  ;;  %3975 = vmatprep.subr.mxu0 %v9194_v7  ;;  %4362 = vmatprep.subr.mxu1 %v9194_v7 }
 0x2e2   :  { %9276 = vst [vmem:[#allocation19_spill] sm:$0xff] %v7118_v52  ;;  %v7125_v23 = vadd.f32 %v2485_v30, %v2037_v54  ;;  %v2039_v21 = vadd.f32 %v2038_v50, %v6762_v24  ;;  %3976 = vmatpush1.msra.mxu0 %v3898_v16  ;;  %4363 = vmatpush1.msra.mxu1 %v3929_v3  ;;  %v9281_v16 = vld [vmem:[#allocation37_spill] sm:$0xff]  ;;  %v9282_v3 = vld [vmem:[#allocation26_spill] sm:$0xff] }
 0x2e3   :  { %v2042_v55 = vpop.f32.mrf.mxu0  ;;  %v2503_v60 = vpop.f32.mrf.mxu1  ;;  %2843 = vmatmul.mubr.f32.gmra.mxu0 %v9266_v15  ;;  %3304 = vmatmul.mubr.f32.gmra.mxu1 %v9279_v46  ;;  %v3927_v52 = vld [vmem:[%s8947_s7 + $0x128] sm:$0xff] }
 0x2e4   :  { %9278 = vst [vmem:[#allocation25_spill] sm:$0xff] %v7125_v23  ;;  %v7136_v30 = vadd.f32 %v2487_v62, %v2039_v21  ;;  %v2043_v54 = vadd.f32 %v2042_v55, %v6748_v31  ;;  %2848 = vmatprep.mubr.f32.mxu0 %v9281_v16  ;;  %3309 = vmatprep.mubr.f32.mxu1 %v9282_v3  ;;  %v9285_v55 = vld [vmem:[#allocation24_spill] sm:$0xff]  ;;  %v3896_v3 = vld [vmem:[%s8947_s7 + $0x30] sm:$0xff] }
 0x2e5   :  { %v2044_v50 = vpop.f32.mrf.mxu0  ;;  %v2505_v15 = vpop.f32.mrf.mxu1  ;;  %3977 = vmatprep.subr.mxu0 %v9194_v7  ;;  %4364 = vmatprep.subr.mxu1 %v9194_v7 }
 0x2e6   :  { %9280 = vst [vmem:[#allocation22_spill] sm:$0xff] %v7136_v30  ;;  %v7143_v46 = vadd.f32 %v2491_v53, %v2043_v54  ;;  %v2045_v23 = vadd.f32 %v2044_v50, %v6762_v24  ;;  %3978 = vmatpush1.msra.mxu0 %v3897_v0  ;;  %4365 = vmatpush1.msra.mxu1 %v3928_v12  ;;  %v9284_v30 = vld [vmem:[#allocation39_spill] sm:$0xff]  ;;  %v9287_v0 = vld [vmem:[#allocation30_spill] sm:$0xff] }
 0x2e7   :  { %v2048_v62 = vpop.f32.mrf.mxu0  ;;  %v2509_v21 = vpop.f32.mrf.mxu1  ;;  %2849 = vmatmul.mubr.f32.gmra.mxu0 %v9284_v30  ;;  %3310 = vmatmul.mubr.f32.gmra.mxu1 %v9285_v55 }
 0x2e8   :  { %9283 = vst [vmem:[#allocation23_spill] sm:$0xff] %v7143_v46  ;;  %v7154_v53 = vadd.f32 %v2493_v13, %v2045_v23  ;;  %v2049_v54 = vadd.f32 %v2048_v62, %v6748_v31  ;;  %2854 = vmatprep.mubr.f32.mxu0 %v9281_v16  ;;  %3315 = vmatprep.mubr.f32.mxu1 %v9287_v0  ;;  %v9289_v62 = vld [vmem:[#allocation28_spill] sm:$0xff]  ;;  %v3895_v0 = vld [vmem:[%s8947_s7 + $0x28] sm:$0xff] }
 0x2e9   :  { %v2050_v12 = vpop.f32.mrf.mxu0  ;;  %v2511_v50 = vpop.f32.mrf.mxu1  ;;  %3979 = vmatprep.subr.mxu0 %v9194_v7  ;;  %4366 = vmatprep.subr.mxu1 %v9194_v7 }
 0x2ea   :  { %9286 = vst [vmem:[#allocation21_spill] sm:$0xff] %v7154_v53  ;;  %v7161_v55 = vadd.f32 %v2497_v29, %v2049_v54  ;;  %v2051_v46 = vadd.f32 %v2050_v12, %v6762_v24  ;;  %3980 = vmatpush1.msra.mxu0 %v3896_v3  ;;  %4367 = vmatpush1.msra.mxu1 %v3927_v52  ;;  %v3926_v53 = vld [vmem:[%s8947_s7 + $0x120] sm:$0xff]  ;;  %v9291_v52 = vld [vmem:[#allocation35_spill] sm:$0xff] }
 0x2eb   :  { %v2054_v13 = vpop.f32.mrf.mxu0  ;;  %v2515_v23 = vpop.f32.mrf.mxu1  ;;  %2855 = vmatmul.mubr.f32.gmra.mxu0 %v9284_v30  ;;  %3316 = vmatmul.mubr.f32.gmra.mxu1 %v9289_v62 }
 0x2ec   :  { %9288 = vst [vmem:[#allocation37_spill] sm:$0xff] %v7161_v55  ;;  %v7172_v29 = vadd.f32 %v2499_v57, %v2051_v46  ;;  %v2055_v54 = vadd.f32 %v2054_v13, %v6748_v31  ;;  %2860 = vmatprep.mubr.f32.mxu0 %v9281_v16  ;;  %3321 = vmatprep.mubr.f32.mxu1 %v9291_v52  ;;  %v9293_v13 = vld [vmem:[#allocation32_spill] sm:$0xff]  ;;  %v3894_v52 = vld [vmem:[%s8947_s7 + $0x20] sm:$0xff] }
 0x2ed   :  { %v2056_v3 = vpop.f32.mrf.mxu0  ;;  %v2517_v12 = vpop.f32.mrf.mxu1  ;;  %3981 = vmatprep.subr.mxu0 %v9194_v7  ;;  %4368 = vmatprep.subr.mxu1 %v9194_v7 }
 0x2ee   :  { %9290 = vst [vmem:[#allocation26_spill] sm:$0xff] %v7172_v29  ;;  %v7179_v62 = vadd.f32 %v2503_v60, %v2055_v54  ;;  %v2057_v55 = vadd.f32 %v2056_v3, %v6762_v24  ;;  %3982 = vmatpush1.msra.mxu0 %v3895_v0  ;;  %4369 = vmatpush1.msra.mxu1 %v3926_v53  ;;  %v3925_v29 = vld [vmem:[%s8947_s7 + $0x118] sm:$0xff]  ;;  %v9295_v53 = vld [vmem:[#allocation33_spill] sm:$0xff] }
 0x2ef   :  { %v2060_v57 = vpop.f32.mrf.mxu0  ;;  %v2521_v46 = vpop.f32.mrf.mxu1  ;;  %2861 = vmatmul.mubr.f32.gmra.mxu0 %v9284_v30  ;;  %3322 = vmatmul.mubr.f32.gmra.mxu1 %v9293_v13 }
 0x2f0   :  { %9292 = vst [vmem:[#allocation39_spill] sm:$0xff] %v7179_v62  ;;  %v7190_v60 = vadd.f32 %v2505_v15, %v2057_v55  ;;  %v2061_v54 = vadd.f32 %v2060_v57, %v6748_v31  ;;  %2866 = vmatprep.mubr.f32.mxu0 %v9281_v16  ;;  %3327 = vmatprep.mubr.f32.mxu1 %v9295_v53  ;;  %v9297_v57 = vld [vmem:[#allocation31_spill] sm:$0xff]  ;;  %v3893_v16 = vld [vmem:[%s8947_s7 + $0x18] sm:$0xff] }
 0x2f1   :  { %v2062_v0 = vpop.f32.mrf.mxu0  ;;  %v2523_v3 = vpop.f32.mrf.mxu1  ;;  %3983 = vmatprep.subr.mxu0 %v9194_v7  ;;  %4370 = vmatprep.subr.mxu1 %v9194_v7  ;;  %v3924_v53 = vld [vmem:[%s8947_s7 + $0x110] sm:$0xff] }
 0x2f2   :  { %9294 = vst [vmem:[#allocation24_spill] sm:$0xff] %v7190_v60  ;;  %v7197_v13 = vadd.f32 %v2509_v21, %v2061_v54  ;;  %v2063_v62 = vadd.f32 %v2062_v0, %v6762_v24  ;;  %3984 = vmatpush1.msra.mxu0 %v3894_v52  ;;  %4371 = vmatpush1.msra.mxu1 %v3925_v29  ;;  %v9299_v52 = vld [vmem:[#allocation55_spill] sm:$0xff]  ;;  %v9300_v29 = vld [vmem:[#allocation36_spill] sm:$0xff]  ;;  %v3923_v60 = vld [vmem:[%s8947_s7 + $0x108] sm:$0xff] }
 0x2f3   :  { %v2066_v15 = vpop.f32.mrf.mxu0  ;;  %v2527_v55 = vpop.f32.mrf.mxu1  ;;  %2867 = vmatmul.mubr.f32.gmra.mxu0 %v9284_v30  ;;  %3328 = vmatmul.mubr.f32.gmra.mxu1 %v9297_v57 }
 0x2f4   :  { %9296 = vst [vmem:[#allocation30_spill] sm:$0xff] %v7197_v13  ;;  %v7208_v21 = vadd.f32 %v2511_v50, %v2063_v62  ;;  %v2067_v54 = vadd.f32 %v2066_v15, %v6748_v31  ;;  %2872 = vmatprep.mubr.f32.mxu0 %v9299_v52  ;;  %3333 = vmatprep.mubr.f32.mxu1 %v9300_v29  ;;  %v9303_v15 = vld [vmem:[#allocation34_spill] sm:$0xff]  ;;  %v3892_v29 = vld [vmem:[%s8947_s7 + $0x10] sm:$0xff] }
 0x2f5   :  { %v2068_v0 = vpop.f32.mrf.mxu0  ;;  %v2529_v30 = vpop.f32.mrf.mxu1  ;;  %3985 = vmatprep.subr.mxu0 %v9194_v7  ;;  %4372 = vmatprep.subr.mxu1 %v9194_v7 }
 0x2f6   :  { %9298 = vst [vmem:[#allocation28_spill] sm:$0xff] %v7208_v21  ;;  %v7215_v57 = vadd.f32 %v2515_v23, %v2067_v54  ;;  %v2069_v13 = vadd.f32 %v2068_v0, %v6762_v24  ;;  %3986 = vmatpush1.msra.mxu0 %v3893_v16  ;;  %4373 = vmatpush1.msra.mxu1 %v3924_v53  ;;  %v9302_v21 = vld [vmem:[#allocation56_spill] sm:$0xff] }
 0x2f7   :  { %v2072_v50 = vpop.f32.mrf.mxu0  ;;  %v2533_v62 = vpop.f32.mrf.mxu1  ;;  %2873 = vmatmul.mubr.f32.gmra.mxu0 %v9302_v21  ;;  %3334 = vmatmul.mubr.f32.gmra.mxu1 %v9303_v15  ;;  %v9305_v16 = vld [vmem:[#allocation40_spill] sm:$0xff] }
 0x2f8   :  { %9301 = vst [vmem:[#allocation35_spill] sm:$0xff] %v7215_v57  ;;  %v7226_v23 = vadd.f32 %v2517_v12, %v2069_v13  ;;  %v2073_v54 = vadd.f32 %v2072_v50, %v6748_v31  ;;  %2878 = vmatprep.mubr.f32.mxu0 %v9299_v52  ;;  %3339 = vmatprep.mubr.f32.mxu1 %v9305_v16  ;;  %v9307_v50 = vld [vmem:[#allocation38_spill] sm:$0xff] }
 0x2f9   :  { %v2074_v53 = vpop.f32.mrf.mxu0  ;;  %v2535_v0 = vpop.f32.mrf.mxu1  ;;  %3987 = vmatprep.subr.mxu0 %v9194_v7  ;;  %4374 = vmatprep.subr.mxu1 %v9194_v7  ;;  %v3891_v16 = vld [vmem:[%s8947_s7 + $0x8] sm:$0xff] }
 0x2fa   :  { %9304 = vst [vmem:[#allocation32_spill] sm:$0xff] %v7226_v23  ;;  %v7233_v15 = vadd.f32 %v2521_v46, %v2073_v54  ;;  %v2075_v57 = vadd.f32 %v2074_v53, %v6762_v24  ;;  %3988 = vmatpush1.msra.mxu0 %v3892_v29  ;;  %4375 = vmatpush1.msra.mxu1 %v3923_v60  ;;  %v3922_v23 = vld [vmem:[%s8947_s7 + $0x100] sm:$0xff]  ;;  %v9309_v60 = vld [vmem:[#allocation48_spill] sm:$0xff] }
 0x2fb   :  { %v2078_v12 = vpop.f32.mrf.mxu0  ;;  %v2539_v13 = vpop.f32.mrf.mxu1  ;;  %2879 = vmatmul.mubr.f32.gmra.mxu0 %v9302_v21  ;;  %3340 = vmatmul.mubr.f32.gmra.mxu1 %v9307_v50 }
 0x2fc   :  { %9306 = vst [vmem:[#allocation33_spill] sm:$0xff] %v7233_v15  ;;  %v7244_v46 = vadd.f32 %v2523_v3, %v2075_v57  ;;  %v2079_v54 = vadd.f32 %v2078_v12, %v6748_v31  ;;  %2884 = vmatprep.mubr.f32.mxu0 %v9299_v52  ;;  %3345 = vmatprep.mubr.f32.mxu1 %v9309_v60  ;;  %v9311_v12 = vld [vmem:[#allocation44_spill] sm:$0xff]  ;;  %v3890_v60 = vld [vmem:[%s8947_s7] sm:$0xff] }
 0x2fd   :  { %v2080_v29 = vpop.f32.mrf.mxu0  ;;  %v2541_v53 = vpop.f32.mrf.mxu1  ;;  %3989 = vmatprep.subr.mxu0 %v9194_v7  ;;  %4376 = vmatprep.subr.mxu1 %v9194_v7 }
 0x2fe   :  { %9308 = vst [vmem:[#allocation31_spill] sm:$0xff] %v7244_v46  ;;  %v7251_v50 = vadd.f32 %v2527_v55, %v2079_v54  ;;  %v2081_v15 = vadd.f32 %v2080_v29, %v6762_v24  ;;  %3990 = vmatpush1.msra.mxu0 %v3891_v16  ;;  %4377 = vmatpush1.msra.mxu1 %v3922_v23  ;;  %v3953_v46 = vld [vmem:[%s8947_s7 + $0x1f8] sm:$0xff]  ;;  %v9313_v23 = vld [vmem:[#allocation45_spill] sm:$0xff] }
 0x2ff   :  { %v2084_v3 = vpop.f32.mrf.mxu0  ;;  %v2545_v57 = vpop.f32.mrf.mxu1  ;;  %2885 = vmatmul.mubr.f32.gmra.mxu0 %v9302_v21  ;;  %3346 = vmatmul.mubr.f32.gmra.mxu1 %v9311_v12 }
 0x300   :  { %9310 = vst [vmem:[#allocation55_spill] sm:$0xff] %v7251_v50  ;;  %v7262_v55 = vadd.f32 %v2529_v30, %v2081_v15  ;;  %v2085_v54 = vadd.f32 %v2084_v3, %v6748_v31  ;;  %2890 = vmatprep.mubr.f32.mxu0 %v9299_v52  ;;  %3351 = vmatprep.mubr.f32.mxu1 %v9313_v23  ;;  %v9315_v3 = vld [vmem:[#allocation41_spill] sm:$0xff]  ;;  %v3921_v52 = vld [vmem:[%s8947_s7 + $0xf8] sm:$0xff]  ;;  %v3952_v23 = vld [vmem:[%s8947_s7 + $0x1f0] sm:$0xff] }
 0x301   :  { %v2086_v16 = vpop.f32.mrf.mxu0  ;;  %v2547_v29 = vpop.f32.mrf.mxu1  ;;  %3991 = vmatprep.subr.mxu0 %v9194_v7  ;;  %4378 = vmatprep.subr.mxu1 %v9194_v7 }
 0x302   :  { %9312 = vst [vmem:[#allocation36_spill] sm:$0xff] %v7262_v55  ;;  %v7269_v12 = vadd.f32 %v2533_v62, %v2085_v54  ;;  %v2087_v50 = vadd.f32 %v2086_v16, %v6762_v24  ;;  %3992 = vmatpush1.msra.mxu0 %v3890_v60  ;;  %4379 = vmatpush2.msra.mxu1 %v3953_v46  ;;  %v9317_v60 = vld [vmem:[#allocation63_spill] sm:$0xff]  ;;  %v9318_v46 = vld [vmem:[#allocation52_spill] sm:$0xff]  ;;  %v3951_v55 = vld [vmem:[%s8947_s7 + $0x1e8] sm:$0xff] }
 0x303   :  { %v2090_v30 = vpop.f32.mrf.mxu0  ;;  %v2551_v15 = vpop.f32.mrf.mxu1  ;;  %2891 = vmatmul.mubr.f32.gmra.mxu0 %v9302_v21  ;;  %3352 = vmatmul.mubr.f32.gmra.mxu1 %v9315_v3 }
 0x304   :  { %9314 = vst [vmem:[#allocation56_spill] sm:$0xff] %v7269_v12  ;;  %v7280_v62 = vadd.f32 %v2535_v0, %v2087_v50  ;;  %v2091_v54 = vadd.f32 %v2090_v30, %v6748_v31  ;;  %2896 = vmatprep.mubr.f32.mxu0 %v9317_v60  ;;  %3357 = vmatprep.mubr.f32.mxu1 %v9318_v46  ;;  %v9321_v30 = vld [vmem:[#allocation49_spill] sm:$0xff]  ;;  %v3920_v46 = vld [vmem:[%s8947_s7 + $0xf0] sm:$0xff] }
 0x305   :  { %v2092_v16 = vpop.f32.mrf.mxu0  ;;  %v2553_v21 = vpop.f32.mrf.mxu1  ;;  %3993 = vmatprep.subr.mxu0 %v9194_v7  ;;  %4380 = vmatprep.subr.mxu1 %v9194_v7 }
 0x306   :  { %9316 = vst [vmem:[#allocation34_spill] sm:$0xff] %v7280_v62  ;;  %v7287_v3 = vadd.f32 %v2539_v13, %v2091_v54  ;;  %v2093_v12 = vadd.f32 %v2092_v16, %v6762_v24  ;;  %3994 = vmatpush2.msra.mxu0 %v3921_v52  ;;  %4381 = vmatpush2.msra.mxu1 %v3952_v23  ;;  %v9320_v62 = vld [vmem:[#allocation66_spill] sm:$0xff]  ;;  %v9323_v52 = vld [vmem:[#allocation51_spill] sm:$0xff] }
 0x307   :  { %v2096_v0 = vpop.f32.mrf.mxu0  ;;  %v2557_v50 = vpop.f32.mrf.mxu1  ;;  %2897 = vmatmul.mubr.f32.gmra.mxu0 %v9320_v62  ;;  %3358 = vmatmul.mubr.f32.gmra.mxu1 %v9321_v30 }
 0x308   :  { %9319 = vst [vmem:[#allocation40_spill] sm:$0xff] %v7287_v3  ;;  %v7298_v13 = vadd.f32 %v2541_v53, %v2093_v12  ;;  %v2097_v54 = vadd.f32 %v2096_v0, %v6748_v31  ;;  %2902 = vmatprep.mubr.f32.mxu0 %v9317_v60  ;;  %3363 = vmatprep.mubr.f32.mxu1 %v9323_v52  ;;  %v9325_v0 = vld [vmem:[#allocation50_spill] sm:$0xff] }
 0x309   :  { %v2098_v23 = vpop.f32.mrf.mxu0  ;;  %v2559_v16 = vpop.f32.mrf.mxu1  ;;  %3995 = vmatprep.subr.mxu0 %v9194_v7  ;;  %4382 = vmatprep.subr.mxu1 %v9194_v7  ;;  %v3919_v52 = vld [vmem:[%s8947_s7 + $0xe8] sm:$0xff] }
 0x30a   :  { %9322 = vst [vmem:[#allocation38_spill] sm:$0xff] %v7298_v13  ;;  %v7305_v30 = vadd.f32 %v2545_v57, %v2097_v54  ;;  %v2099_v3 = vadd.f32 %v2098_v23, %v6762_v24  ;;  %3996 = vmatpush2.msra.mxu0 %v3920_v46  ;;  %4383 = vmatpush2.msra.mxu1 %v3951_v55  ;;  %v3950_v13 = vld [vmem:[%s8947_s7 + $0x1e0] sm:$0xff]  ;;  %v9327_v55 = vld [vmem:[#allocation43_spill] sm:$0xff] }
 0x30b   :  { %v2102_v53 = vpop.f32.mrf.mxu0  ;;  %v2563_v12 = vpop.f32.mrf.mxu1  ;;  %2903 = vmatmul.mubr.f32.gmra.mxu0 %v9320_v62  ;;  %3364 = vmatmul.mubr.f32.gmra.mxu1 %v9325_v0 }
 0x30c   :  { %9324 = vst [vmem:[#allocation48_spill] sm:$0xff] %v7305_v30  ;;  %v7316_v57 = vadd.f32 %v2547_v29, %v2099_v3  ;;  %v2103_v54 = vadd.f32 %v2102_v53, %v6748_v31  ;;  %2908 = vmatprep.mubr.f32.mxu0 %v9317_v60  ;;  %3369 = vmatprep.mubr.f32.mxu1 %v9327_v55  ;;  %v9329_v53 = vld [vmem:[#allocation42_spill] sm:$0xff]  ;;  %v3918_v55 = vld [vmem:[%s8947_s7 + $0xe0] sm:$0xff] }
 0x30d   :  { %v2104_v46 = vpop.f32.mrf.mxu0  ;;  %v2565_v23 = vpop.f32.mrf.mxu1  ;;  %3997 = vmatprep.subr.mxu0 %v9194_v7  ;;  %4384 = vmatprep.subr.mxu1 %v9194_v7 }
 0x30e   :  { %9326 = vst [vmem:[#allocation44_spill] sm:$0xff] %v7316_v57  ;;  %v7323_v0 = vadd.f32 %v2551_v15, %v2103_v54  ;;  %v2105_v30 = vadd.f32 %v2104_v46, %v6762_v24  ;;  %3998 = vmatpush2.msra.mxu0 %v3919_v52  ;;  %4385 = vmatpush2.msra.mxu1 %v3950_v13  ;;  %v3949_v57 = vld [vmem:[%s8947_s7 + $0x1d8] sm:$0xff]  ;;  %v9331_v13 = vld [vmem:[#allocation47_spill] sm:$0xff] }
 0x30f   :  { %v2108_v29 = vpop.f32.mrf.mxu0  ;;  %v2569_v3 = vpop.f32.mrf.mxu1  ;;  %2909 = vmatmul.mubr.f32.gmra.mxu0 %v9320_v62  ;;  %3370 = vmatmul.mubr.f32.gmra.mxu1 %v9329_v53 }
 0x310   :  { %9328 = vst [vmem:[#allocation45_spill] sm:$0xff] %v7323_v0  ;;  %v7334_v15 = vadd.f32 %v2553_v21, %v2105_v30  ;;  %v2109_v54 = vadd.f32 %v2108_v29, %v6748_v31  ;;  %2914 = vmatprep.mubr.f32.mxu0 %v9317_v60  ;;  %3375 = vmatprep.mubr.f32.mxu1 %v9331_v13  ;;  %v9333_v29 = vld [vmem:[#allocation46_spill] sm:$0xff]  ;;  %v3917_v60 = vld [vmem:[%s8947_s7 + $0xd8] sm:$0xff]  ;;  %v3948_v13 = vld [vmem:[%s8947_s7 + $0x1d0] sm:$0xff] }
 0x311   :  { %v2110_v52 = vpop.f32.mrf.mxu0  ;;  %v2571_v46 = vpop.f32.mrf.mxu1  ;;  %3999 = vmatprep.subr.mxu0 %v9194_v7  ;;  %4386 = vmatprep.subr.mxu1 %v9194_v7 }
 0x312   :  { %9330 = vst [vmem:[#allocation41_spill] sm:$0xff] %v7334_v15  ;;  %v7341_v53 = vadd.f32 %v2557_v50, %v2109_v54  ;;  %v2111_v0 = vadd.f32 %v2110_v52, %v6762_v24  ;;  %4000 = vmatpush2.msra.mxu0 %v3918_v55  ;;  %4387 = vmatpush2.msra.mxu1 %v3949_v57  ;;  %v9335_v55 = vld [vmem:[#allocation73_spill] sm:$0xff]  ;;  %v9336_v57 = vld [vmem:[#allocation54_spill] sm:$0xff] }
 0x313   :  { %v2114_v21 = vpop.f32.mrf.mxu0  ;;  %v2575_v30 = vpop.f32.mrf.mxu1  ;;  %2915 = vmatmul.mubr.f32.gmra.mxu0 %v9320_v62  ;;  %3376 = vmatmul.mubr.f32.gmra.mxu1 %v9333_v29  ;;  %v3947_v15 = vld [vmem:[%s8947_s7 + $0x1c8] sm:$0xff] }
 0x314   :  { %9332 = vst [vmem:[#allocation63_spill] sm:$0xff] %v7341_v53  ;;  %v7352_v50 = vadd.f32 %v2559_v16, %v2111_v0  ;;  %v2115_v54 = vadd.f32 %v2114_v21, %v6748_v31  ;;  %2920 = vmatprep.mubr.f32.mxu0 %v9335_v55  ;;  %3381 = vmatprep.mubr.f32.mxu1 %v9336_v57  ;;  %v9339_v21 = vld [vmem:[#allocation53_spill] sm:$0xff]  ;;  %v3916_v57 = vld [vmem:[%s8947_s7 + $0xd0] sm:$0xff] }
 0x315   :  { %v2116_v52 = vpop.f32.mrf.mxu0  ;;  %v2577_v62 = vpop.f32.mrf.mxu1  ;;  %4001 = vmatprep.subr.mxu0 %v9194_v7  ;;  %4388 = vmatprep.subr.mxu1 %v9194_v7 }
 0x316   :  { %9334 = vst [vmem:[#allocation52_spill] sm:$0xff] %v7352_v50  ;;  %v7359_v29 = vadd.f32 %v2563_v12, %v2115_v54  ;;  %v2117_v53 = vadd.f32 %v2116_v52, %v6762_v24  ;;  %4002 = vmatpush2.msra.mxu0 %v3917_v60  ;;  %4389 = vmatpush2.msra.mxu1 %v3948_v13  ;;  %v9338_v50 = vld [vmem:[#allocation74_spill] sm:$0xff]  ;;  %v9341_v60 = vld [vmem:[#allocation57_spill] sm:$0xff] }
 0x317   :  { %v2120_v16 = vpop.f32.mrf.mxu0  ;;  %v2581_v0 = vpop.f32.mrf.mxu1  ;;  %2921 = vmatmul.mubr.f32.gmra.mxu0 %v9338_v50  ;;  %3382 = vmatmul.mubr.f32.gmra.mxu1 %v9339_v21 }
 0x318   :  { %9337 = vst [vmem:[#allocation66_spill] sm:$0xff] %v7359_v29  ;;  %v7370_v12 = vadd.f32 %v2565_v23, %v2117_v53  ;;  %v2121_v54 = vadd.f32 %v2120_v16, %v6748_v31  ;;  %2926 = vmatprep.mubr.f32.mxu0 %v9335_v55  ;;  %3387 = vmatprep.mubr.f32.mxu1 %v9341_v60  ;;  %v9343_v16 = vld [vmem:[#allocation58_spill] sm:$0xff] }
 0x319   :  { %v2122_v13 = vpop.f32.mrf.mxu0  ;;  %v2583_v52 = vpop.f32.mrf.mxu1  ;;  %4003 = vmatprep.subr.mxu0 %v9194_v7  ;;  %4390 = vmatprep.subr.mxu1 %v9194_v7  ;;  %v3915_v60 = vld [vmem:[%s8947_s7 + $0xc8] sm:$0xff] }
 0x31a   :  { %9340 = vst [vmem:[#allocation49_spill] sm:$0xff] %v7370_v12  ;;  %v7377_v21 = vadd.f32 %v2569_v3, %v2121_v54  ;;  %v2123_v29 = vadd.f32 %v2122_v13, %v6762_v24  ;;  %4004 = vmatpush2.msra.mxu0 %v3916_v57  ;;  %4391 = vmatpush2.msra.mxu1 %v3947_v15  ;;  %v3946_v12 = vld [vmem:[%s8947_s7 + $0x1c0] sm:$0xff]  ;;  %v9345_v15 = vld [vmem:[#allocation59_spill] sm:$0xff] }
 0x31b   :  { %v2126_v23 = vpop.f32.mrf.mxu0  ;;  %v2587_v53 = vpop.f32.mrf.mxu1  ;;  %2927 = vmatmul.mubr.f32.gmra.mxu0 %v9338_v50  ;;  %3388 = vmatmul.mubr.f32.gmra.mxu1 %v9343_v16 }
 0x31c   :  { %9342 = vst [vmem:[#allocation51_spill] sm:$0xff] %v7377_v21  ;;  %v7388_v3 = vadd.f32 %v2571_v46, %v2123_v29  ;;  %v2127_v54 = vadd.f32 %v2126_v23, %v6748_v31  ;;  %2932 = vmatprep.mubr.f32.mxu0 %v9335_v55  ;;  %3393 = vmatprep.mubr.f32.mxu1 %v9345_v15  ;;  %v9347_v23 = vld [vmem:[#allocation61_spill] sm:$0xff] }
 0x31d   :  { %v2128_v57 = vpop.f32.mrf.mxu0  ;;  %v2589_v13 = vpop.f32.mrf.mxu1  ;;  %4005 = vmatprep.subr.mxu0 %v9194_v7  ;;  %4392 = vmatprep.subr.mxu1 %v9194_v7  ;;  %v3914_v15 = vld [vmem:[%s8947_s7 + $0xc0] sm:$0xff] }
 0x31e   :  { %9344 = vst [vmem:[#allocation50_spill] sm:$0xff] %v7388_v3  ;;  %v7395_v16 = vadd.f32 %v2575_v30, %v2127_v54  ;;  %v2129_v21 = vadd.f32 %v2128_v57, %v6762_v24  ;;  %4006 = vmatpush2.msra.mxu0 %v3915_v60  ;;  %4393 = vmatpush2.msra.mxu1 %v3946_v12  ;;  %v3945_v3 = vld [vmem:[%s8947_s7 + $0x1b8] sm:$0xff] }
 0x31f   :  { %v2132_v46 = vpop.f32.mrf.mxu0  ;;  %v2593_v29 = vpop.f32.mrf.mxu1  ;;  %2933 = vmatmul.mubr.f32.gmra.mxu0 %v9338_v50  ;;  %3394 = vmatmul.mubr.f32.gmra.mxu1 %v9347_v23  ;;  %v9349_v12 = vld [vmem:[#allocation60_spill] sm:$0xff] }
 0x320   :  { %9346 = vst [vmem:[#allocation43_spill] sm:$0xff] %v7395_v16  ;;  %v7406_v30 = vadd.f32 %v2577_v62, %v2129_v21  ;;  %v2133_v54 = vadd.f32 %v2132_v46, %v6748_v31  ;;  %2938 = vmatprep.mubr.f32.mxu0 %v9335_v55  ;;  %3399 = vmatprep.mubr.f32.mxu1 %v9349_v12  ;;  %v9351_v46 = vld [vmem:[#allocation62_spill] sm:$0xff]  ;;  %v3913_v55 = vld [vmem:[%s8947_s7 + $0xb8] sm:$0xff]  ;;  %v3944_v12 = vld [vmem:[%s8947_s7 + $0x1b0] sm:$0xff] }
 0x321   :  { %v2134_v60 = vpop.f32.mrf.mxu0  ;;  %v2595_v57 = vpop.f32.mrf.mxu1  ;;  %4007 = vmatprep.subr.mxu0 %v9194_v7  ;;  %4394 = vmatprep.subr.mxu1 %v9194_v7 }
 0x322   :  { %9348 = vst [vmem:[#allocation42_spill] sm:$0xff] %v7406_v30  ;;  %v7413_v23 = vadd.f32 %v2581_v0, %v2133_v54  ;;  %v2135_v16 = vadd.f32 %v2134_v60, %v6762_v24  ;;  %4008 = vmatpush2.msra.mxu0 %v3914_v15  ;;  %4395 = vmatpush2.msra.mxu1 %v3945_v3  ;;  %v9353_v15 = vld [vmem:[#allocation83_spill] sm:$0xff]  ;;  %v9354_v3 = vld [vmem:[#allocation64_spill] sm:$0xff]  ;;  %v3943_v30 = vld [vmem:[%s8947_s7 + $0x1a8] sm:$0xff] }
 0x323   :  { %v2138_v62 = vpop.f32.mrf.mxu0  ;;  %v2599_v21 = vpop.f32.mrf.mxu1  ;;  %2939 = vmatmul.mubr.f32.gmra.mxu0 %v9338_v50  ;;  %3400 = vmatmul.mubr.f32.gmra.mxu1 %v9351_v46 }
 0x324   :  { %9350 = vst [vmem:[#allocation47_spill] sm:$0xff] %v7413_v23  ;;  %v7424_v0 = vadd.f32 %v2583_v52, %v2135_v16  ;;  %v2139_v54 = vadd.f32 %v2138_v62, %v6748_v31  ;;  %2944 = vmatprep.mubr.f32.mxu0 %v9353_v15  ;;  %3405 = vmatprep.mubr.f32.mxu1 %v9354_v3  ;;  %v9357_v62 = vld [vmem:[#allocation65_spill] sm:$0xff]  ;;  %v3912_v3 = vld [vmem:[%s8947_s7 + $0xb0] sm:$0xff] }
 0x325   :  { %v2140_v60 = vpop.f32.mrf.mxu0  ;;  %v2601_v50 = vpop.f32.mrf.mxu1  ;;  %4009 = vmatprep.subr.mxu0 %v9194_v7  ;;  %4396 = vmatprep.subr.mxu1 %v9194_v7 }
 0x326   :  { %9352 = vst [vmem:[#allocation46_spill] sm:$0xff] %v7424_v0  ;;  %v7431_v46 = vadd.f32 %v2587_v53, %v2139_v54  ;;  %v2141_v23 = vadd.f32 %v2140_v60, %v6762_v24  ;;  %4010 = vmatpush2.msra.mxu0 %v3913_v55  ;;  %4397 = vmatpush2.msra.mxu1 %v3944_v12  ;;  %v9356_v0 = vld [vmem:[#allocation86_spill] sm:$0xff]  ;;  %v9359_v55 = vld [vmem:[#allocation67_spill] sm:$0xff] }
 0x327   :  { %v2144_v52 = vpop.f32.mrf.mxu0  ;;  %v2605_v16 = vpop.f32.mrf.mxu1  ;;  %2945 = vmatmul.mubr.f32.gmra.mxu0 %v9356_v0  ;;  %3406 = vmatmul.mubr.f32.gmra.mxu1 %v9357_v62 }
 0x328   :  { %9355 = vst [vmem:[#allocation73_spill] sm:$0xff] %v7431_v46  ;;  %v7442_v53 = vadd.f32 %v2589_v13, %v2141_v23  ;;  %v2145_v54 = vadd.f32 %v2144_v52, %v6748_v31  ;;  %2950 = vmatprep.mubr.f32.mxu0 %v9353_v15  ;;  %3411 = vmatprep.mubr.f32.mxu1 %v9359_v55  ;;  %v9361_v52 = vld [vmem:[#allocation68_spill] sm:$0xff]  ;;  %v3911_v55 = vld [vmem:[%s8947_s7 + $0xa8] sm:$0xff] }
 0x329   :  { %v2146_v12 = vpop.f32.mrf.mxu0  ;;  %v2607_v60 = vpop.f32.mrf.mxu1  ;;  %4011 = vmatprep.subr.mxu0 %v9194_v7  ;;  %4398 = vmatprep.subr.mxu1 %v9194_v7 }
 0x32a   :  { %9358 = vst [vmem:[#allocation54_spill] sm:$0xff] %v7442_v53  ;;  %v7449_v62 = vadd.f32 %v2593_v29, %v2145_v54  ;;  %v2147_v46 = vadd.f32 %v2146_v12, %v6762_v24  ;;  %4012 = vmatpush2.msra.mxu0 %v3912_v3  ;;  %4399 = vmatpush2.msra.mxu1 %v3943_v30  ;;  %v3942_v53 = vld [vmem:[%s8947_s7 + $0x1a0] sm:$0xff] }
 0x32b   :  { %v2150_v13 = vpop.f32.mrf.mxu0  ;;  %v2611_v23 = vpop.f32.mrf.mxu1  ;;  %2951 = vmatmul.mubr.f32.gmra.mxu0 %v9356_v0  ;;  %3412 = vmatmul.mubr.f32.gmra.mxu1 %v9361_v52  ;;  %v9363_v30 = vld [vmem:[#allocation69_spill] sm:$0xff] }
 0x32c   :  { %9360 = vst [vmem:[#allocation74_spill] sm:$0xff] %v7449_v62  ;;  %v7460_v29 = vadd.f32 %v2595_v57, %v2147_v46  ;;  %v2151_v54 = vadd.f32 %v2150_v13, %v6748_v31  ;;  %2956 = vmatprep.mubr.f32.mxu0 %v9353_v15  ;;  %3417 = vmatprep.mubr.f32.mxu1 %v9363_v30  ;;  %v9365_v13 = vld [vmem:[#allocation71_spill] sm:$0xff]  ;;  %v3910_v30 = vld [vmem:[%s8947_s7 + $0xa0] sm:$0xff] }
 0x32d   :  { %v2152_v3 = vpop.f32.mrf.mxu0  ;;  %v2613_v12 = vpop.f32.mrf.mxu1  ;;  %4013 = vmatprep.subr.mxu0 %v9194_v7  ;;  %4400 = vmatprep.subr.mxu1 %v9194_v7 }
 0x32e   :  { %9362 = vst [vmem:[#allocation53_spill] sm:$0xff] %v7460_v29  ;;  %v7467_v52 = vadd.f32 %v2599_v21, %v2151_v54  ;;  %v2153_v62 = vadd.f32 %v2152_v3, %v6762_v24  ;;  %4014 = vmatpush2.msra.mxu0 %v3911_v55  ;;  %4401 = vmatpush2.msra.mxu1 %v3942_v53  ;;  %v3941_v29 = vld [vmem:[%s8947_s7 + $0x198] sm:$0xff]  ;;  %v9367_v53 = vld [vmem:[#allocation70_spill] sm:$0xff] }
 0x32f   :  { %v2156_v57 = vpop.f32.mrf.mxu0  ;;  %v2617_v46 = vpop.f32.mrf.mxu1  ;;  %2957 = vmatmul.mubr.f32.gmra.mxu0 %v9356_v0  ;;  %3418 = vmatmul.mubr.f32.gmra.mxu1 %v9365_v13 }
 0x330   :  { %9364 = vst [vmem:[#allocation57_spill] sm:$0xff] %v7467_v52  ;;  %v7478_v21 = vadd.f32 %v2601_v50, %v2153_v62  ;;  %v2157_v54 = vadd.f32 %v2156_v57, %v6748_v31  ;;  %2962 = vmatprep.mubr.f32.mxu0 %v9353_v15  ;;  %3423 = vmatprep.mubr.f32.mxu1 %v9367_v53  ;;  %v9369_v57 = vld [vmem:[#allocation72_spill] sm:$0xff] }
 0x331   :  { %v2158_v55 = vpop.f32.mrf.mxu0  ;;  %v2619_v3 = vpop.f32.mrf.mxu1  ;;  %4015 = vmatprep.subr.mxu0 %v9194_v7  ;;  %4402 = vmatprep.subr.mxu1 %v9194_v7  ;;  %v3909_v15 = vld [vmem:[%s8947_s7 + $0x98] sm:$0xff] }
 0x332   :  { %9366 = vst [vmem:[#allocation58_spill] sm:$0xff] %v7478_v21  ;;  %v7485_v13 = vadd.f32 %v2605_v16, %v2157_v54  ;;  %v2159_v52 = vadd.f32 %v2158_v55, %v6762_v24  ;;  %4016 = vmatpush2.msra.mxu0 %v3910_v30  ;;  %4403 = vmatpush2.msra.mxu1 %v3941_v29  ;;  %v9371_v16 = vld [vmem:[#allocation93_spill] sm:$0xff]  ;;  %v9372_v54 = vld [vmem:[#allocation75_spill] sm:$0xff] }
 0x333   :  { %v2162_v50 = vpop.f32.mrf.mxu0  ;;  %v2623_v62 = vpop.f32.mrf.mxu1  ;;  %2963 = vmatmul.mubr.f32.gmra.mxu0 %v9356_v0  ;;  %3424 = vmatmul.mubr.f32.gmra.mxu1 %v9369_v57  ;;  %v3940_v29 = vld [vmem:[%s8947_s7 + $0x190] sm:$0xff] }
 0x334   :  { %9368 = vst [vmem:[#allocation59_spill] sm:$0xff] %v7485_v13  ;;  %v7493_v53 = vadd.f32 %v2607_v60, %v2159_v52  ;;  %v2163_v21 = vadd.f32 %v2162_v50, %v6748_v31  ;;  %2968 = vmatprep.mubr.f32.mxu0 %v9371_v16  ;;  %3429 = vmatprep.mubr.f32.mxu1 %v9372_v54  ;;  %v9374_v57 = vld [vmem:[#allocation95_spill] sm:$0xff]  ;;  %v9375_v54 = vld [vmem:[#allocation76_spill] sm:$0xff] }
 0x335   :  { %v2164_v30 = vpop.f32.mrf.mxu0  ;;  %v2625_v0 = vpop.f32.mrf.mxu1  ;;  %4017 = vmatprep.subr.mxu0 %v9194_v7  ;;  %4404 = vmatprep.subr.mxu1 %v9194_v7  ;;  %v3908_v13 = vld [vmem:[%s8947_s7 + $0x90] sm:$0xff] }
 0x336   :  { %9370 = vst [vmem:[#allocation61_spill] sm:$0xff] %v7493_v53  ;;  %v7503_v55 = vadd.f32 %v2611_v23, %v2163_v21  ;;  %v2165_v60 = vadd.f32 %v2164_v30, %v6762_v24  ;;  %4018 = vmatpush2.msra.mxu0 %v3909_v15  ;;  %4405 = vmatpush2.msra.mxu1 %v3940_v29  ;;  %v9377_v23 = vld [vmem:[#allocation77_spill] sm:$0xff] }
 0x337   :  { %v2168_v52 = vpop.f32.mrf.mxu0  ;;  %v2629_v50 = vpop.f32.mrf.mxu1  ;;  %2969 = vmatmul.mubr.f32.gmra.mxu0 %v9374_v57  ;;  %3430 = vmatmul.mubr.f32.gmra.mxu1 %v9375_v54 }
 0x338   :  { %9373 = vst [vmem:[#allocation60_spill] sm:$0xff] %v7503_v55  ;;  %v7511_v53 = vadd.f32 %v2613_v12, %v2165_v60  ;;  %v2169_v25 = vadd.f32 %v2168_v52, %v6748_v31  ;;  %2974 = vmatprep.mubr.f32.mxu0 %v9371_v16  ;;  %3435 = vmatprep.mubr.f32.mxu1 %v9377_v23  ;;  %v9379_v60 = vld [vmem:[#allocation78_spill] sm:$0xff]  ;;  %v9381_v55 = vld [vmem:[#allocation81_spill] sm:$0xff] }
 0x339   :  { %v2170_v21 = vpop.f32.mrf.mxu0  ;;  %v2631_v15 = vpop.f32.mrf.mxu1  ;;  %4019 = vmatprep.subr.mxu0 %v9194_v7  ;;  %4406 = vmatprep.subr.mxu1 %v9194_v7 }
 0x33a   :  { %9376 = vst [vmem:[#allocation62_spill] sm:$0xff] %v7511_v53  ;;  %v7518_v29 = vadd.f32 %v2617_v46, %v2169_v25  ;;  %v2171_v30 = vadd.f32 %v2170_v21, %v6762_v24  ;;  %4020 = vmatpush2.msra.mxu0 %v3908_v13  ;;  %v3907_v25 = vld [vmem:[%s8947_s7 + $0x88] sm:$0xff] }
 0x33b   :  { %v2174_v54 = vpop.f32.mrf.mxu0  ;;  %v2635_v12 = vpop.f32.mrf.mxu1  ;;  %2975 = vmatmul.mubr.f32.gmra.mxu0 %v9374_v57  ;;  %3436 = vmatmul.mubr.f32.gmra.mxu1 %v9379_v60  ;;  %v3939_v46 = vld [vmem:[%s8947_s7 + $0x188] sm:$0xff] }
 0x33c   :  { %9378 = vst [vmem:[#allocation83_spill] sm:$0xff] %v7518_v29  ;;  %v7523_v52 = vadd.f32 %v2619_v3, %v2171_v30  ;;  %v2175_v23 = vadd.f32 %v2174_v54, %v6748_v31  ;;  %2980 = vmatprep.mubr.f32.mxu0 %v9371_v16  ;;  %3441 = vmatprep.mubr.f32.mxu1 %v9381_v55  ;;  %v3938_v55 = vld [vmem:[%s8947_s7 + $0x180] sm:$0xff]  ;;  %v9383_v29 = vld [vmem:[#allocation79_spill] sm:$0xff] }
 0x33d   :  { %v2176_v13 = vpop.f32.mrf.mxu0  ;;  %v2637_v21 = vpop.f32.mrf.mxu1  ;;  %4021 = vmatprep.subr.mxu0 %v9194_v7  ;;  %4407 = vmatpush2.msra.mxu1 %v3939_v46 }
 0x33e   :  { %9380 = vst [vmem:[#allocation64_spill] sm:$0xff] %v7523_v52  ;;  %v7535_v3 = vadd.f32 %v2623_v62, %v2175_v23  ;;  %v2177_v30 = vadd.f32 %v2176_v13, %v6762_v24  ;;  %4022 = vmatpush2.msra.mxu0 %v3907_v25  ;;  %4408 = vmatprep.subr.mxu1 %v9194_v7  ;;  %v9385_v23 = vld [vmem:[#allocation82_spill] sm:$0xff] }
 0x33f   :  { %v2180_v54 = vpop.f32.mrf.mxu0  ;;  %v2641_v60 = vpop.f32.mrf.mxu1  ;;  %2981 = vmatmul.mubr.f32.gmra.mxu0 %v9374_v57  ;;  %3442 = vmatmul.mubr.f32.gmra.mxu1 %v9383_v29 }
 0x340   :  { %9382 = vst [vmem:[#allocation86_spill] sm:$0xff] %v7535_v3  ;;  %v7544_v52 = vadd.f32 %v2625_v0, %v2177_v30  ;;  %v2181_v62 = vadd.f32 %v2180_v54, %v6748_v31  ;;  %2986 = vmatprep.mubr.f32.mxu0 %v9371_v16  ;;  %3447 = vmatprep.mubr.f32.mxu1 %v9385_v23  ;;  %v9387_v0 = vld [vmem:[#allocation80_spill] sm:$0xff]  ;;  %v9389_v30 = vld [vmem:[#allocation103_spill] sm:$0xff]  ;;  %v9390_v54 = vld [vmem:[#allocation85_spill] sm:$0xff] }
 0x341   :  { %v2182_v25 = vpop.f32.mrf.mxu0  ;;  %v2643_v46 = vpop.f32.mrf.mxu1  ;;  %4023 = vmatprep.subr.mxu0 %v9194_v7  ;;  %4409 = vmatpush2.msra.mxu1 %v3938_v55  ;;  %v3906_v7 = vld [vmem:[%s8947_s7 + $0x80] sm:$0xff] }
 0x342   :  { %9384 = vst [vmem:[#allocation65_spill] sm:$0xff] %v7544_v52  ;;  %v7550_v13 = vadd.f32 %v2629_v50, %v2181_v62  ;;  %v2183_v3 = vadd.f32 %v2182_v25, %v6762_v24  ;;  %4024 = vmatpush2.msra.mxu0 %v3906_v7 }
 0x343   :  { %v2186_v53 = vpop.f32.mrf.mxu0  ;;  %v2647_v22 = vpop.f32.mrf.mxu1  ;;  %2987 = vmatmul.mubr.f32.gmra.mxu0 %v9374_v57  ;;  %3448 = vmatmul.mubr.f32.gmra.mxu1 %v9387_v0 }
 0x344   :  { %9386 = vst [vmem:[#allocation67_spill] sm:$0xff] %v7550_v13  ;;  %v7555_v29 = vadd.f32 %v2631_v15, %v2183_v3  ;;  %v2187_v16 = vadd.f32 %v2186_v53, %v6748_v31  ;;  %2992 = vmatprep.mubr.f32.mxu0 %v9389_v30  ;;  %3453 = vmatprep.mubr.f32.mxu1 %v9390_v54  ;;  %v9392_v3 = vld [vmem:[#allocation104_spill] sm:$0xff]  ;;  %v9395_v54 = vld [vmem:[#allocation87_spill] sm:$0xff] }
 0x345   :  { %v2188_v50 = vpop.f32.mrf.mxu0  ;;  %v2649_v55 = vpop.f32.mrf.mxu1  ;;  %v9393_v53 = vld [vmem:[#allocation84_spill] sm:$0xff] }
 0x346   :  { %9388 = vst [vmem:[#allocation68_spill] sm:$0xff] %v7555_v29  ;;  %v7563_v62 = vadd.f32 %v2635_v12, %v2187_v16  ;;  %v2189_v57 = vadd.f32 %v2188_v50, %v6762_v24  ;;  %v9397_v29 = vld [vmem:[#allocation88_spill] sm:$0xff] }
 0x347   :  { %v2192_v23 = vpop.f32.mrf.mxu0  ;;  %v2653_v15 = vpop.f32.mrf.mxu1  ;;  %2993 = vmatmul.mubr.f32.gmra.mxu0 %v9392_v3  ;;  %3454 = vmatmul.mubr.f32.gmra.mxu1 %v9393_v53 }
 0x348   :  { %9391 = vst [vmem:[#allocation69_spill] sm:$0xff] %v7563_v62  ;;  %v7568_v25 = vadd.f32 %v2637_v21, %v2189_v57  ;;  %v2193_v0 = vadd.f32 %v2192_v23, %v6748_v31  ;;  %2998 = vmatprep.mubr.f32.mxu0 %v9389_v30  ;;  %3459 = vmatprep.mubr.f32.mxu1 %v9395_v54  ;;  %v9399_v23 = vld [vmem:[#allocation89_spill] sm:$0xff] }
 0x349   :  { %v2194_v13 = vpop.f32.mrf.mxu0  ;;  %v2655_v7 = vpop.f32.mrf.mxu1 }
 0x34a   :  { %9394 = vst [vmem:[#allocation71_spill] sm:$0xff] %v7568_v25  ;;  %v7573_v12 = vadd.f32 %v2641_v60, %v2193_v0  ;;  %v2195_v16 = vadd.f32 %v2194_v13, %v6762_v24  ;;  %v9401_v25 = vld [vmem:[#allocation91_spill] sm:$0xff] }
 0x34b   :  { %v2198_v50 = vpop.f32.mrf.mxu0  ;;  %v2659_v62 = vpop.f32.mrf.mxu1  ;;  %2999 = vmatmul.mubr.f32.gmra.mxu0 %v9392_v3  ;;  %3460 = vmatmul.mubr.f32.gmra.mxu1 %v9397_v29 }
 0x34c   :  { %9396 = vst [vmem:[#allocation70_spill] sm:$0xff] %v7573_v12  ;;  %v7578_v21 = vadd.f32 %v2643_v46, %v2195_v16  ;;  %v2199_v57 = vadd.f32 %v2198_v50, %v6748_v31  ;;  %3004 = vmatprep.mubr.f32.mxu0 %v9389_v30  ;;  %3465 = vmatprep.mubr.f32.mxu1 %v9399_v23  ;;  %v9403_v16 = vld [vmem:[#allocation90_spill] sm:$0xff] }
 0x34d   :  { %v2200_v53 = vpop.f32.mrf.mxu0  ;;  %v2661_v54 = vpop.f32.mrf.mxu1 }
 0x34e   :  { %9398 = vst [vmem:[#allocation72_spill] sm:$0xff] %v7578_v21  ;;  %v7583_v60 = vadd.f32 %v2647_v22, %v2199_v57  ;;  %v2201_v13 = vadd.f32 %v2200_v53, %v6762_v24  ;;  %v9405_v21 = vld [vmem:[#allocation92_spill] sm:$0xff] }
 0x34f   :  { %v2204_v0 = vpop.f32.mrf.mxu0  ;;  %v2665_v12 = vpop.f32.mrf.mxu1  ;;  %3005 = vmatmul.mubr.f32.gmra.mxu0 %v9392_v3  ;;  %3466 = vmatmul.mubr.f32.gmra.mxu1 %v9401_v25 }
 0x350   :  { %9400 = vst [vmem:[#allocation93_spill] sm:$0xff] %v7583_v60  ;;  %v7588_v46 = vadd.f32 %v2649_v55, %v2201_v13  ;;  %v2205_v29 = vadd.f32 %v2204_v0, %v6748_v31  ;;  %3010 = vmatprep.mubr.f32.mxu0 %v9389_v30  ;;  %3471 = vmatprep.mubr.f32.mxu1 %v9403_v16  ;;  %v9407_v13 = vld [vmem:[#allocation113_spill] sm:$0xff]  ;;  %v9408_v30 = vld [vmem:[#allocation94_spill] sm:$0xff] }
 0x351   :  { %v2206_v50 = vpop.f32.mrf.mxu0  ;;  %v2667_v23 = vpop.f32.mrf.mxu1 }
 0x352   :  { %9402 = vst [vmem:[#allocation75_spill] sm:$0xff] %v7588_v46  ;;  %v7593_v22 = vadd.f32 %v2653_v15, %v2205_v29  ;;  %v2207_v57 = vadd.f32 %v2206_v50, %v6762_v24  ;;  %v9410_v46 = vld [vmem:[#allocation115_spill] sm:$0xff] }
 0x353   :  { %v2210_v53 = vpop.f32.mrf.mxu0  ;;  %v2671_v60 = vpop.f32.mrf.mxu1  ;;  %3011 = vmatmul.mubr.f32.gmra.mxu0 %v9392_v3  ;;  %3472 = vmatmul.mubr.f32.gmra.mxu1 %v9405_v21  ;;  %v9411_v3 = vld [vmem:[#allocation96_spill] sm:$0xff] }
 0x354   :  { %9404 = vst [vmem:[#allocation95_spill] sm:$0xff] %v7593_v22  ;;  %v7598_v55 = vadd.f32 %v2655_v7, %v2207_v57  ;;  %v2211_v25 = vadd.f32 %v2210_v53, %v6748_v31  ;;  %3016 = vmatprep.mubr.f32.mxu0 %v9407_v13  ;;  %3477 = vmatprep.mubr.f32.mxu1 %v9408_v30  ;;  %v9413_v57 = vld [vmem:[#allocation97_spill] sm:$0xff] }
 0x355   :  { %v2212_v0 = vpop.f32.mrf.mxu0  ;;  %v2673_v16 = vpop.f32.mrf.mxu1 }
 0x356   :  { %9406 = vst [vmem:[#allocation76_spill] sm:$0xff] %v7598_v55  ;;  %v7603_v15 = vadd.f32 %v2659_v62, %v2211_v25  ;;  %v2213_v29 = vadd.f32 %v2212_v0, %v6762_v24  ;;  %v9415_v55 = vld [vmem:[#allocation98_spill] sm:$0xff] }
 0x357   :  { %v2216_v50 = vpop.f32.mrf.mxu0  ;;  %v2677_v22 = vpop.f32.mrf.mxu1  ;;  %3017 = vmatmul.mubr.f32.gmra.mxu0 %v9410_v46  ;;  %3478 = vmatmul.mubr.f32.gmra.mxu1 %v9411_v3 }
 0x358   :  { %9409 = vst [vmem:[#allocation77_spill] sm:$0xff] %v7603_v15  ;;  %v7608_v7 = vadd.f32 %v2661_v54, %v2213_v29  ;;  %v2217_v21 = vadd.f32 %v2216_v50, %v6748_v31  ;;  %3022 = vmatprep.mubr.f32.mxu0 %v9407_v13  ;;  %3483 = vmatprep.mubr.f32.mxu1 %v9413_v57  ;;  %v9417_v50 = vld [vmem:[#allocation99_spill] sm:$0xff] }
 0x359   :  { %v2218_v53 = vpop.f32.mrf.mxu0  ;;  %v2679_v30 = vpop.f32.mrf.mxu1 }
 0x35a   :  { %9412 = vst [vmem:[#allocation78_spill] sm:$0xff] %v7608_v7  ;;  %v7613_v62 = vadd.f32 %v2665_v12, %v2217_v21  ;;  %v2219_v25 = vadd.f32 %v2218_v53, %v6762_v24  ;;  %v9419_v7 = vld [vmem:[#allocation101_spill] sm:$0xff] }
 0x35b   :  { %v2222_v0 = vpop.f32.mrf.mxu0  ;;  %v2683_v15 = vpop.f32.mrf.mxu1  ;;  %3023 = vmatmul.mubr.f32.gmra.mxu0 %v9410_v46  ;;  %3484 = vmatmul.mubr.f32.gmra.mxu1 %v9415_v55 }
 0x35c   :  { %9414 = vst [vmem:[#allocation81_spill] sm:$0xff] %v7613_v62  ;;  %v7618_v54 = vadd.f32 %v2667_v23, %v2219_v25  ;;  %v2223_v29 = vadd.f32 %v2222_v0, %v6748_v31  ;;  %3028 = vmatprep.mubr.f32.mxu0 %v9407_v13  ;;  %3489 = vmatprep.mubr.f32.mxu1 %v9417_v50  ;;  %v9421_v25 = vld [vmem:[#allocation100_spill] sm:$0xff] }
 0x35d   :  { %v2224_v3 = vpop.f32.mrf.mxu0  ;;  %v2685_v57 = vpop.f32.mrf.mxu1 }
 0x35e   :  { %9416 = vst [vmem:[#allocation79_spill] sm:$0xff] %v7618_v54  ;;  %v7623_v12 = vadd.f32 %v2671_v60, %v2223_v29  ;;  %v2225_v21 = vadd.f32 %v2224_v3, %v6762_v24  ;;  %v9423_v54 = vld [vmem:[#allocation102_spill] sm:$0xff] }
 0x35f   :  { %v2228_v53 = vpop.f32.mrf.mxu0  ;;  %v2689_v62 = vpop.f32.mrf.mxu1  ;;  %3029 = vmatmul.mubr.f32.gmra.mxu0 %v9410_v46  ;;  %3490 = vmatmul.mubr.f32.gmra.mxu1 %v9419_v7 }
 0x360   :  { %9418 = vst [vmem:[#allocation82_spill] sm:$0xff] %v7623_v12  ;;  %v7628_v23 = vadd.f32 %v2673_v16, %v2225_v21  ;;  %v2229_v55 = vadd.f32 %v2228_v53, %v6748_v31  ;;  %3034 = vmatprep.mubr.f32.mxu0 %v9407_v13  ;;  %3495 = vmatprep.mubr.f32.mxu1 %v9421_v25  ;;  %v9425_v21 = vld [vmem:[#allocation123_spill] sm:$0xff]  ;;  %v9426_v13 = vld [vmem:[#allocation105_spill] sm:$0xff] }
 0x361   :  { %v2230_v0 = vpop.f32.mrf.mxu0  ;;  %v2691_v50 = vpop.f32.mrf.mxu1 }
 0x362   :  { %9420 = vst [vmem:[#allocation80_spill] sm:$0xff] %v7628_v23  ;;  %v7633_v60 = vadd.f32 %v2677_v22, %v2229_v55  ;;  %v2231_v29 = vadd.f32 %v2230_v0, %v6762_v24  ;;  %v9428_v23 = vld [vmem:[#allocation126_spill] sm:$0xff] }
 0x363   :  { %v2234_v3 = vpop.f32.mrf.mxu0  ;;  %v2695_v12 = vpop.f32.mrf.mxu1  ;;  %3035 = vmatmul.mubr.f32.gmra.mxu0 %v9410_v46  ;;  %3496 = vmatmul.mubr.f32.gmra.mxu1 %v9423_v54  ;;  %v9429_v46 = vld [vmem:[#allocation106_spill] sm:$0xff] }
 0x364   :  { %9422 = vst [vmem:[#allocation103_spill] sm:$0xff] %v7633_v60  ;;  %v7638_v16 = vadd.f32 %v2679_v30, %v2231_v29  ;;  %v2235_v7 = vadd.f32 %v2234_v3, %v6748_v31  ;;  %3040 = vmatprep.mubr.f32.mxu0 %v9425_v21  ;;  %3501 = vmatprep.mubr.f32.mxu1 %v9426_v13  ;;  %v9431_v29 = vld [vmem:[#allocation107_spill] sm:$0xff] }
 0x365   :  { %v2236_v53 = vpop.f32.mrf.mxu0  ;;  %v2697_v25 = vpop.f32.mrf.mxu1 }
 0x366   :  { %9424 = vst [vmem:[#allocation85_spill] sm:$0xff] %v7638_v16  ;;  %v7643_v22 = vadd.f32 %v2683_v15, %v2235_v7  ;;  %v2237_v55 = vadd.f32 %v2236_v53, %v6762_v24  ;;  %v9433_v16 = vld [vmem:[#allocation108_spill] sm:$0xff] }
 0x367   :  { %v2240_v0 = vpop.f32.mrf.mxu0  ;;  %v2701_v60 = vpop.f32.mrf.mxu1  ;;  %3041 = vmatmul.mubr.f32.gmra.mxu0 %v9428_v23  ;;  %3502 = vmatmul.mubr.f32.gmra.mxu1 %v9429_v46 }
 0x368   :  { %9427 = vst [vmem:[#allocation104_spill] sm:$0xff] %v7643_v22  ;;  %v7648_v30 = vadd.f32 %v2685_v57, %v2237_v55  ;;  %v2241_v54 = vadd.f32 %v2240_v0, %v6748_v31  ;;  %3046 = vmatprep.mubr.f32.mxu0 %v9425_v21  ;;  %3507 = vmatprep.mubr.f32.mxu1 %v9431_v29  ;;  %v9435_v0 = vld [vmem:[#allocation109_spill] sm:$0xff] }
 0x369   :  { %v2242_v3 = vpop.f32.mrf.mxu0  ;;  %v2703_v13 = vpop.f32.mrf.mxu1 }
 0x36a   :  { %9430 = vst [vmem:[#allocation84_spill] sm:$0xff] %v7648_v30  ;;  %v7653_v15 = vadd.f32 %v2689_v62, %v2241_v54  ;;  %v2243_v7 = vadd.f32 %v2242_v3, %v6762_v24  ;;  %v9437_v30 = vld [vmem:[#allocation111_spill] sm:$0xff] }
 0x36b   :  { %v2246_v53 = vpop.f32.mrf.mxu0  ;;  %v2707_v22 = vpop.f32.mrf.mxu1  ;;  %3047 = vmatmul.mubr.f32.gmra.mxu0 %v9428_v23  ;;  %3508 = vmatmul.mubr.f32.gmra.mxu1 %v9433_v16 }
 0x36c   :  { %9432 = vst [vmem:[#allocation87_spill] sm:$0xff] %v7653_v15  ;;  %v7658_v57 = vadd.f32 %v2691_v50, %v2243_v7  ;;  %v2247_v55 = vadd.f32 %v2246_v53, %v6748_v31  ;;  %3052 = vmatprep.mubr.f32.mxu0 %v9425_v21  ;;  %3513 = vmatprep.mubr.f32.mxu1 %v9435_v0  ;;  %v9439_v7 = vld [vmem:[#allocation110_spill] sm:$0xff] }
 0x36d   :  { %v2248_v46 = vpop.f32.mrf.mxu0  ;;  %v2709_v29 = vpop.f32.mrf.mxu1 }
 0x36e   :  { %9434 = vst [vmem:[#allocation88_spill] sm:$0xff] %v7658_v57  ;;  %v7663_v62 = vadd.f32 %v2695_v12, %v2247_v55  ;;  %v2249_v54 = vadd.f32 %v2248_v46, %v6762_v24  ;;  %v9441_v57 = vld [vmem:[#allocation112_spill] sm:$0xff] }
 0x36f   :  { %v2252_v3 = vpop.f32.mrf.mxu0  ;;  %v2713_v15 = vpop.f32.mrf.mxu1  ;;  %3053 = vmatmul.mubr.f32.gmra.mxu0 %v9428_v23  ;;  %3514 = vmatmul.mubr.f32.gmra.mxu1 %v9437_v30 }
 0x370   :  { %9436 = vst [vmem:[#allocation89_spill] sm:$0xff] %v7663_v62  ;;  %v7668_v50 = vadd.f32 %v2697_v25, %v2249_v54  ;;  %v2253_v16 = vadd.f32 %v2252_v3, %v6748_v31  ;;  %3058 = vmatprep.mubr.f32.mxu0 %v9425_v21  ;;  %3519 = vmatprep.mubr.f32.mxu1 %v9439_v7  ;;  %v9443_v54 = vld [vmem:[#allocation129_spill] sm:$0xff]  ;;  %v9444_v21 = vld [vmem:[#allocation114_spill] sm:$0xff] }
 0x371   :  { %v2254_v53 = vpop.f32.mrf.mxu0  ;;  %v2715_v0 = vpop.f32.mrf.mxu1 }
 0x372   :  { %9438 = vst [vmem:[#allocation91_spill] sm:$0xff] %v7668_v50  ;;  %v7673_v12 = vadd.f32 %v2701_v60, %v2253_v16  ;;  %v2255_v55 = vadd.f32 %v2254_v53, %v6762_v24  ;;  %v9446_v50 = vld [vmem:[#allocation130_spill] sm:$0xff] }
 0x373   :  { %v2258_v46 = vpop.f32.mrf.mxu0  ;;  %v2719_v62 = vpop.f32.mrf.mxu1  ;;  %3059 = vmatmul.mubr.f32.gmra.mxu0 %v9428_v23  ;;  %3520 = vmatmul.mubr.f32.gmra.mxu1 %v9441_v57  ;;  %v9447_v23 = vld [vmem:[#allocation116_spill] sm:$0xff] }
 0x374   :  { %9440 = vst [vmem:[#allocation90_spill] sm:$0xff] %v7673_v12  ;;  %v7678_v25 = vadd.f32 %v2703_v13, %v2255_v55  ;;  %v2259_v30 = vadd.f32 %v2258_v46, %v6748_v31  ;;  %3064 = vmatprep.mubr.f32.mxu0 %v9443_v54  ;;  %3525 = vmatprep.mubr.f32.mxu1 %v9444_v21  ;;  %v9449_v55 = vld [vmem:[#allocation117_spill] sm:$0xff] }
 0x375   :  { %v2260_v3 = vpop.f32.mrf.mxu0  ;;  %v2721_v7 = vpop.f32.mrf.mxu1 }
 0x376   :  { %9442 = vst [vmem:[#allocation92_spill] sm:$0xff] %v7678_v25  ;;  %v7683_v60 = vadd.f32 %v2707_v22, %v2259_v30  ;;  %v2261_v16 = vadd.f32 %v2260_v3, %v6762_v24  ;;  %v9451_v25 = vld [vmem:[#allocation118_spill] sm:$0xff] }
 0x377   :  { %v2264_v53 = vpop.f32.mrf.mxu0  ;;  %v2725_v12 = vpop.f32.mrf.mxu1  ;;  %3065 = vmatmul.mubr.f32.gmra.mxu0 %v9446_v50  ;;  %3526 = vmatmul.mubr.f32.gmra.mxu1 %v9447_v23 }
 0x378   :  { %9445 = vst [vmem:[#allocation113_spill] sm:$0xff] %v7683_v60  ;;  %v7688_v13 = vadd.f32 %v2709_v29, %v2261_v16  ;;  %v2265_v57 = vadd.f32 %v2264_v53, %v6748_v31  ;;  %3070 = vmatprep.mubr.f32.mxu0 %v9443_v54  ;;  %3531 = vmatprep.mubr.f32.mxu1 %v9449_v55  ;;  %v9453_v53 = vld [vmem:[#allocation121_spill] sm:$0xff] }
 0x379   :  { %v2266_v46 = vpop.f32.mrf.mxu0  ;;  %v2727_v21 = vpop.f32.mrf.mxu1 }
 0x37a   :  { %9448 = vst [vmem:[#allocation94_spill] sm:$0xff] %v7688_v13  ;;  %v7693_v22 = vadd.f32 %v2713_v15, %v2265_v57  ;;  %v2267_v30 = vadd.f32 %v2266_v46, %v6762_v24 }
 0x37b   :  { %v2270_v3 = vpop.f32.mrf.mxu0  ;;  %v2731_v60 = vpop.f32.mrf.mxu1  ;;  %3071 = vmatmul.mubr.f32.gmra.mxu0 %v9446_v50  ;;  %3532 = vmatmul.mubr.f32.gmra.mxu1 %v9451_v25  ;;  %v9455_v25 = vld [vmem:[#allocation119_spill] sm:$0xff] }
 0x37c   :  { %9450 = vst [vmem:[#allocation115_spill] sm:$0xff] %v7693_v22  ;;  %v7698_v29 = vadd.f32 %v2715_v0, %v2267_v30  ;;  %v2271_v16 = vadd.f32 %v2270_v3, %v6748_v31  ;;  %3076 = vmatprep.mubr.f32.mxu0 %v9443_v54  ;;  %3537 = vmatprep.mubr.f32.mxu1 %v9453_v53  ;;  %v9457_v3 = vld [vmem:[#allocation122_spill] sm:$0xff] }
 0x37d   :  { %v2272_v23 = vpop.f32.mrf.mxu0  ;;  %v2733_v55 = vpop.f32.mrf.mxu1 }
 0x37e   :  { %9452 = vst [vmem:[#allocation96_spill] sm:$0xff] %v7698_v29  ;;  %v7703_v15 = vadd.f32 %v2719_v62, %v2271_v16  ;;  %v2273_v57 = vadd.f32 %v2272_v23, %v6762_v24 }
 0x37f   :  { %v2276_v46 = vpop.f32.mrf.mxu0  ;;  %3077 = vmatmul.mubr.f32.gmra.mxu0 %v9446_v50  ;;  %v7707_v22 = vpop.f32.mrf.mxu1  ;;  %3538 = vmatmul.mubr.f32.gmra.mxu1 %v9455_v25 }
 0x380   :  { %9454 = vst [vmem:[#allocation97_spill] sm:$0xff] %v7703_v15  ;;  %v7710_v0 = vadd.f32 %v2721_v7, %v2273_v57  ;;  %v2277_v30 = vadd.f32 %v2276_v46, %v6748_v31  ;;  %3082 = vmatprep.mubr.f32.mxu0 %v9443_v54  ;;  %3543 = vmatprep.mubr.f32.mxu1 %v9457_v3  ;;  %v9459_v7 = vld [vmem:[#allocation120_spill] sm:$0xff]  ;;  %v9461_v46 = vld [vmem:[#allocation125_spill] sm:$0xff] }
 0x381   :  { %v2278_v53 = vpop.f32.mrf.mxu0  ;;  %v7715_v62 = vpop.f32.mrf.mxu1 }
 0x382   :  { %9456 = vst [vmem:[#allocation98_spill] sm:$0xff] %v7710_v0  ;;  %v7717_v16 = vadd.f32 %v2725_v12, %v2277_v30  ;;  %v2279_v23 = vadd.f32 %v2278_v53, %v6762_v24  ;;  %v9467_v0 = vld [vmem:[#allocation131_spill] sm:$0xff] }
 0x383   :  { %v2282_v15 = vpop.f32.mrf.mxu0  ;;  %3083 = vmatmul.mubr.f32.gmra.mxu0 %v9446_v50  ;;  %v7721_v29 = vpop.f32.mrf.mxu1  ;;  %3544 = vmatmul.mubr.f32.gmra.mxu1 %v9459_v7 }
 0x384   :  { %9458 = vst [vmem:[#allocation99_spill] sm:$0xff] %v7717_v16  ;;  %v7724_v57 = vadd.f32 %v2727_v21, %v2279_v23  ;;  %v2283_v54 = vadd.f32 %v2282_v15, %v6748_v31  ;;  %3088 = vmatprep.mubr.f32.mxu0 %v6730_v61  ;;  %3549 = vmatprep.mubr.f32.mxu1 %v9461_v46  ;;  %v9463_v21 = vld [vmem:[#allocation124_spill] sm:$0xff]  ;;  %v9465_v15 = vld [vmem:[#allocation127_spill] sm:$0xff] }
 0x385   :  { %v2284_v25 = vpop.f32.mrf.mxu0  ;;  %v7729_v12 = vpop.f32.mrf.mxu1 }
 0x386   :  { %9460 = vst [vmem:[#allocation101_spill] sm:$0xff] %v7724_v57  ;;  %v7731_v30 = vadd.f32 %v2731_v60, %v2283_v54  ;;  %v2285_v3 = vadd.f32 %v2284_v25, %v6762_v24  ;;  %v9466_v54 = vld [vmem:[#allocation128_spill] sm:$0xff] }
 0x387   :  { %v7734_v50 = vpop.f32.mrf.mxu0  ;;  %3089 = vmatmul.mubr.f32.gmra.mxu0 %v6742_v1  ;;  %v7737_v53 = vpop.f32.mrf.mxu1  ;;  %3550 = vmatmul.mubr.f32.gmra.mxu1 %v9463_v21 }
 0x388   :  { %9462 = vst [vmem:[#allocation100_spill] sm:$0xff] %v7731_v30  ;;  %v7740_v31 = vadd.f32 %v2733_v55, %v2285_v3  ;;  %3094 = vmatprep.mubr.f32.mxu0 %v6730_v61  ;;  %3555 = vmatprep.mubr.f32.mxu1 %v9465_v15 }
 0x389   :  { %v7744_v23 = vpop.f32.mrf.mxu0  ;;  %v7746_v60 = vpop.f32.mrf.mxu1 }
 0x38a   :  { %9464 = vst [vmem:[#allocation102_spill] sm:$0xff] %v7740_v31 }
 0x38b   :  { %v7748_v7 = vpop.f32.mrf.mxu0  ;;  %3095 = vmatmul.mubr.f32.gmra.mxu0 %v6742_v1  ;;  %v7751_v24 = vpop.f32.mrf.mxu1  ;;  %3556 = vmatmul.mubr.f32.gmra.mxu1 %v9466_v54 }
 0x38c   :  { %3100 = vmatprep.mubr.f32.mxu0 %v6730_v61  ;;  %3561 = vmatprep.mubr.f32.mxu1 %v6655_v33 }
 0x38d   :  { %v7756_v55 = vpop.f32.mrf.mxu0  ;;  %v7758_v46 = vpop.f32.mrf.mxu1 }
 0x38f   :  { %v7760_v25 = vpop.f32.mrf.mxu0  ;;  %3101 = vmatmul.mubr.f32.gmra.mxu0 %v6742_v1  ;;  %v7763_v3 = vpop.f32.mrf.mxu1  ;;  %3562 = vmatmul.mubr.f32.gmra.mxu1 %v6663_v11 }
 0x390   :  { %3106 = vmatprep.mubr.f32.mxu0 %v6730_v61  ;;  %3567 = vmatprep.mubr.f32.mxu1 %v6659_v40 }
 0x391   :  { %v7768_v21 = vpop.f32.mrf.mxu0  ;;  %v7770_v15 = vpop.f32.mrf.mxu1 }
 0x393   :  { %v7772_v33 = vpop.f32.mrf.mxu0  ;;  %3107 = vmatmul.mubr.f32.gmra.mxu0 %v6742_v1  ;;  %v7775_v54 = vpop.f32.mrf.mxu1  ;;  %3568 = vmatmul.mubr.f32.gmra.mxu1 %v6667_v37 }
 0x394   :  { %3112 = vmatprep.mubr.f32.mxu0 %v6807_v48  ;;  %3573 = vmatprep.mubr.f32.mxu1 %v6675_v26 }
 0x395   :  { %v7780_v11 = vpop.f32.mrf.mxu0  ;;  %v7782_v61 = vpop.f32.mrf.mxu1 }
 0x397   :  { %v7784_v40 = vpop.f32.mrf.mxu0  ;;  %3113 = vmatmul.mubr.f32.gmra.mxu0 %v6831_v6  ;;  %v7787_v30 = vpop.f32.mrf.mxu1  ;;  %3574 = vmatmul.mubr.f32.gmra.mxu1 %v6693_v63 }
 0x398   :  { %3118 = vmatprep.mubr.f32.mxu0 %v6807_v48  ;;  %3579 = vmatprep.mubr.f32.mxu1 %v6687_v34 }
 0x399   :  { %v7792_v1 = vpop.f32.mrf.mxu0  ;;  %v7794_v37 = vpop.f32.mrf.mxu1 }
 0x39b   :  { %v7796_v26 = vpop.f32.mrf.mxu0  ;;  %3119 = vmatmul.mubr.f32.gmra.mxu0 %v6831_v6  ;;  %v7799_v31 = vpop.f32.mrf.mxu1  ;;  %3580 = vmatmul.mubr.f32.gmra.mxu1 %v6704_v20 }
 0x39c   :  { %3124 = vmatprep.mubr.f32.mxu0 %v6807_v48  ;;  %3585 = vmatprep.mubr.f32.mxu1 %v6734_v28 }
 0x39d   :  { %v7804_v63 = vpop.f32.mrf.mxu0  ;;  %v7806_v16 = vpop.f32.mrf.mxu1 }
 0x39f   :  { %v7808_v34 = vpop.f32.mrf.mxu0  ;;  %3125 = vmatmul.mubr.f32.gmra.mxu0 %v6831_v6  ;;  %v7811_v57 = vpop.f32.mrf.mxu1  ;;  %3586 = vmatmul.mubr.f32.gmra.mxu1 %v9467_v0 }
 0x3a0   :  { %3130 = vmatprep.mubr.f32.mxu0 %v6807_v48  ;;  %3591 = vmatprep.mubr.f32.mxu1 %v6725_v47 }
 0x3a1   :  { %v7816_v20 = vpop.f32.mrf.mxu0  ;;  %v7818_v13 = vpop.f32.mrf.mxu1 }
 0x3a3   :  { %v7820_v28 = vpop.f32.mrf.mxu0  ;;  %3131 = vmatmul.mubr.f32.gmra.mxu0 %v6831_v6  ;;  %v7823_v52 = vpop.f32.mrf.mxu1  ;;  %3592 = vmatmul.mubr.f32.gmra.mxu1 %v6752_v41 }
 0x3a4   :  { %3136 = vmatprep.mubr.f32.mxu0 %v6891_v49  ;;  %3597 = vmatprep.mubr.f32.mxu1 %v6738_v18  ;;  %v9469_v18 = vld [vmem:[#allocation11_spill] sm:$0xff] }
 0x3a5   :  { %v7828_v0 = vpop.f32.mrf.mxu0  ;;  %v7830_v48 = vpop.f32.mrf.mxu1  ;;  %v1832_v36 = vsub.s32 3, %v9469_v18 }
 0x3a7   :  { %v7832_v47 = vpop.f32.mrf.mxu0  ;;  %3137 = vmatmul.mubr.f32.gmra.mxu0 %v6903_v32  ;;  %v7835_v56 = vpop.f32.mrf.mxu1  ;;  %3598 = vmatmul.mubr.f32.gmra.mxu1 %v6770_v2  ;;  %v7861_v42 = vrot.slane %v5207_v14, %v1832_v36 }
 0x3a8   :  { %9468 = vst [vmem:[#allocation123_spill] sm:$0xff] %v7835_v56  ;;  %3142 = vmatprep.mubr.f32.mxu0 %v6891_v49  ;;  %3603 = vmatprep.mubr.f32.mxu1 %v6758_v10  ;;  %v1828_v10 = vsub.s32 2, %v9469_v18 }
 0x3a9   :  { %v7840_v41 = vpop.f32.mrf.mxu0  ;;  %v7842_v6 = vpop.f32.mrf.mxu1  ;;  %v2805_v36 = vadd.f32 %v7744_v23, %v7861_v42 }
 0x3ab   :  { %v7845_v4 = vpop.f32.mrf.mxu0  ;;  %3143 = vmatmul.mubr.f32.gmra.mxu0 %v6903_v32  ;;  %v7848_v44 = vpop.f32.mrf.mxu1  ;;  %3604 = vmatmul.mubr.f32.gmra.mxu1 %v6782_v8 }
 0x3ac   :  { %9470 = vst [vmem:[#allocation105_spill] sm:$0xff] %v7848_v44  ;;  %3148 = vmatprep.mubr.f32.mxu0 %v6891_v49  ;;  %3609 = vmatprep.mubr.f32.mxu1 %v6818_v38  ;;  %v7871_v38 = vrot.slane %v5207_v14, %v1828_v10  ;;  %v3254_v14 = vadd.f32 %v7715_v62, %v2805_v36 }
 0x3ad   :  { %v7854_v2 = vpop.f32.mrf.mxu0  ;;  %v7856_v43 = vpop.f32.mrf.mxu1  ;;  %v2817_v36 = vadd.f32 %v7768_v21, %v7861_v42 }
 0x3ae   :  { %9471 = vst [vmem:[#allocation126_spill] sm:$0xff] %v7856_v43  ;;  %v2809_v62 = vadd.f32 %v7748_v7, %v7871_v38 }
 0x3af   :  { %v7863_v56 = vpop.f32.mrf.mxu0  ;;  %3149 = vmatmul.mubr.f32.gmra.mxu0 %v6903_v32  ;;  %v7866_v8 = vpop.f32.mrf.mxu1  ;;  %3610 = vmatmul.mubr.f32.gmra.mxu1 %v6848_v39 }
 0x3b0   :  { %9472 = vst [vmem:[#allocation106_spill] sm:$0xff] %v7866_v8  ;;  %3154 = vmatprep.mubr.f32.mxu0 %v6891_v49  ;;  %3615 = vmatprep.mubr.f32.mxu1 %v6811_v51  ;;  %v2803_v51 = vadd.f32 %v7734_v50, %v7871_v38  ;;  %v3258_v7 = vadd.f32 %v7721_v29, %v2809_v62 }
 0x3b1   :  { %v7873_v18 = vpop.f32.mrf.mxu0  ;;  %v7875_v44 = vpop.f32.mrf.mxu1 }
 0x3b2   :  { %v3640_v29 = vmax.f32 %v3258_v7, 0.0 }
 0x3b3   :  { %v7879_v43 = vpop.f32.mrf.mxu0  ;;  %3155 = vmatmul.mubr.f32.gmra.mxu0 %v6903_v32  ;;  %v7882_v8 = vpop.f32.mrf.mxu1  ;;  %3616 = vmatmul.mubr.f32.gmra.mxu1 %v6835_v58  ;;  %v2811_v32 = vadd.f32 %v7756_v55, %v7861_v42 }
 0x3b4   :  { %3160 = vmatprep.mubr.f32.mxu0 %v6935_v9  ;;  %3621 = vmatprep.mubr.f32.mxu1 %v6824_v59  ;;  %v3252_v59 = vadd.f32 %v7707_v22, %v2803_v51 }
 0x3b5   :  { %v7889_v39 = vpop.f32.mrf.mxu0  ;;  %v7891_v49 = vpop.f32.mrf.mxu1  ;;  %v3260_v10 = vadd.f32 %v7729_v12, %v2811_v32  ;;  %v2815_v12 = vadd.f32 %v7760_v25, %v7871_v38  ;;  %v2823_v32 = vadd.f32 %v7780_v11, %v7861_v42 }
 0x3b6   :  { %v3636_v22 = vmax.f32 %v3252_v59, 0.0 }
 0x3b7   :  { %v7896_v23 = vpop.f32.mrf.mxu0  ;;  %3161 = vmatmul.mubr.f32.gmra.mxu0 %v6947_v35  ;;  %v7899_v58 = vpop.f32.mrf.mxu1  ;;  %3622 = vmatmul.mubr.f32.gmra.mxu1 %v6852_v5  ;;  %v3264_v25 = vadd.f32 %v7737_v53, %v2815_v12  ;;  %v3272_v62 = vadd.f32 %v7758_v46, %v2823_v32 }
 0x3b8   :  { %9473 = vst [vmem:[#allocation107_spill] sm:$0xff] %v7899_v58  ;;  %3166 = vmatprep.mubr.f32.mxu0 %v6935_v9  ;;  %3627 = vmatprep.mubr.f32.mxu1 %v6841_v17  ;;  %v3637_v58 = vmax.f32 %v3254_v14, 0.0  ;;  %v3266_v14 = vadd.f32 %v7746_v60, %v2817_v36  ;;  %v2821_v60 = vadd.f32 %v7772_v33, %v7871_v38  ;;  %v9476_v36 = vld [vmem:[#allocation133_spill] sm:$0xff]  ;;  %v9477_v33 = vld [vmem:[#allocation132_spill] sm:$0xff] }
 0x3b9   :  { %v7907_v50 = vpop.f32.mrf.mxu0  ;;  %v7909_v55 = vpop.f32.mrf.mxu1  ;;  %v3644_v7 = vmax.f32 %v3264_v25, 0.0 }
 0x3ba   :  { %v3270_v46 = vadd.f32 %v7751_v24, %v2821_v60  ;;  %v9479_v24 = vld [vmem:[#allocation134_spill] sm:$0xff] }
 0x3bb   :  { %v7914_v5 = vpop.f32.mrf.mxu0  ;;  %3167 = vmatmul.mubr.f32.gmra.mxu0 %v6947_v35  ;;  %v7917_v17 = vpop.f32.mrf.mxu1  ;;  %3628 = vmatmul.mubr.f32.gmra.mxu1 %v6866_v45 }
 0x3bc   :  { %9474 = vst [vmem:[#allocation108_spill] sm:$0xff] %v7917_v17  ;;  %3172 = vmatprep.mubr.f32.mxu0 %v6935_v9  ;;  %4410 = vmatprep.mubr.f32.mxu1 %v3637_v58  ;;  %v3641_v17 = vmax.f32 %v3260_v10, 0.0  ;;  %v2829_v10 = vadd.f32 %v7792_v1, %v7861_v42  ;;  %v2827_v1 = vadd.f32 %v7784_v40, %v7871_v38  ;;  %v3638_v40 = vmax.f32 %v9479_v24, 0.0 }
 0x3bd   :  { %v7924_v51 = vpop.f32.mrf.mxu0  ;;  %v7926_v21 = vpop.f32.mrf.mxu1  ;;  %v3648_v60 = vmax.f32 %v3270_v46, 0.0 }
 0x3be   :  { %v3278_v32 = vadd.f32 %v7770_v15, %v2829_v10  ;;  %v2833_v15 = vadd.f32 %v7796_v26, %v7871_v38 }
 0x3bf   :  { %v7931_v45 = vpop.f32.mrf.mxu0  ;;  %3173 = vmatmul.mubr.f32.gmra.mxu0 %v6947_v35  ;;  %v7934_v58 = vpop.f32.mrf.mxu1  ;;  %4411 = vmatmul.mubr.f32.vlgmr.msra.gmra.mxu1 %v3636_v22  ;;  %v3635_v22 = vmax.f32 %v9476_v36, 0.0 }
 0x3c0   :  { %9475 = vst [vmem:[#allocation109_spill] sm:$0xff] %v7934_v58  ;;  %3178 = vmatprep.mubr.f32.mxu0 %v6935_v9  ;;  %4415 = vmatprep.mubr.f32.mxu1 %v3641_v17  ;;  %v3645_v58 = vmax.f32 %v3266_v14, 0.0  ;;  %v3634_v17 = vmax.f32 %v9477_v33, 0.0  ;;  %v3276_v33 = vadd.f32 %v7763_v3, %v2827_v1  ;;  %v9481_v3 = vld [vmem:[#allocation136_spill] sm:$0xff]  ;;  %v3282_v24 = vadd.f32 %v7775_v54, %v2833_v15  ;;  %v9483_v54 = vld [vmem:[#allocation138_spill] sm:$0xff] }
 0x3c1   :  { %v7940_v59 = vpop.f32.mrf.mxu0  ;;  %v7942_v11 = vpop.f32.mrf.mxu1  ;;  %v3642_v26 = vmax.f32 %v9481_v3, 0.0 }
 0x3c2   :  { %v3652_v1 = vmax.f32 %v3276_v33, 0.0  ;;  %v3656_v15 = vmax.f32 %v3282_v24, 0.0 }
 0x3c3   :  { %v7948_v9 = vpop.f32.mrf.mxu0  ;;  %3179 = vmatmul.mubr.f32.gmra.mxu0 %v6947_v35  ;;  %v7951_v53 = vpop.f32.mrf.mxu1  ;;  %4416 = vmatmul.mubr.f32.gmra.mxu1 %v3640_v29  ;;  %v2835_v35 = vadd.f32 %v7804_v63, %v7861_v42  ;;  %v9478_v29 = vld [vmem:[#allocation135_spill] sm:$0xff] }
 0x3c4   :  { %4025 = vmatprep.mubr.f32.mxu0 %v3635_v22  ;;  %4420 = vmatprep.mubr.f32.mxu1 %v3645_v58  ;;  %v3639_v36 = vmax.f32 %v9478_v29, 0.0  ;;  %v3649_v58 = vmax.f32 %v3272_v62, 0.0 }
 0x3c5   :  { %v7957_v12 = vpop.f32.mrf.mxu0  ;;  %v7959_v14 = vpop.f32.mrf.mxu1  ;;  %v3284_v62 = vadd.f32 %v7782_v61, %v2835_v35  ;;  %v2839_v61 = vadd.f32 %v7808_v34, %v7871_v38  ;;  %v3646_v34 = vmax.f32 %v9483_v54, 0.0 }
 0x3c7   :  { %v7965_v22 = vpop.f32.mrf.mxu0  ;;  %v7967_v25 = vpop.f32.mrf.mxu1  ;;  %4026 = vmatmul.mubr.f32.vlgmr.msra.gmra.mxu0 %v3634_v17  ;;  %4421 = vmatmul.mubr.f32.gmra.mxu1 %v3644_v7  ;;  %v2841_v17 = vadd.f32 %v7816_v20, %v7861_v42  ;;  %v9480_v7 = vld [vmem:[#allocation137_spill] sm:$0xff]  ;;  %v3288_v3 = vadd.f32 %v7787_v30, %v2839_v61  ;;  %v9485_v30 = vld [vmem:[#allocation140_spill] sm:$0xff] }
 0x3c8   :  { %4030 = vmatprep.mubr.f32.mxu0 %v3639_v36  ;;  %4425 = vmatprep.mubr.f32.mxu1 %v3649_v58  ;;  %v3643_v29 = vmax.f32 %v9480_v7, 0.0  ;;  %v3653_v36 = vmax.f32 %v3278_v32, 0.0 }
 0x3c9   :  { %v7973_v63 = vpop.f32.mrf.mxu0  ;;  %v7975_v10 = vpop.f32.mrf.mxu1  ;;  %v3290_v32 = vadd.f32 %v7794_v37, %v2841_v17  ;;  %v2845_v37 = vadd.f32 %v7820_v28, %v7871_v38  ;;  %v3650_v28 = vmax.f32 %v9485_v30, 0.0  ;;  %v3660_v61 = vmax.f32 %v3288_v3, 0.0 }
 0x3ca   :  { %v3659_v30 = vmax.f32 %v6898_v19, 0.0 }
 0x3cb   :  { %v7981_v58 = vpop.f32.mrf.mxu0  ;;  %v7983_v46 = vpop.f32.mrf.mxu1  ;;  %4031 = vmatmul.mubr.f32.gmra.mxu0 %v3638_v40  ;;  %4426 = vmatmul.mubr.f32.gmra.mxu1 %v3648_v60  ;;  %v2847_v40 = vadd.f32 %v7828_v0, %v7861_v42  ;;  %v9482_v60 = vld [vmem:[#allocation139_spill] sm:$0xff]  ;;  %v3294_v54 = vadd.f32 %v7799_v31, %v2845_v37  ;;  %v9486_v31 = vld [vmem:[#allocation142_spill] sm:$0xff] }
 0x3cc   :  { %4035 = vmatprep.mubr.f32.mxu0 %v3643_v29  ;;  %4430 = vmatprep.mubr.f32.mxu1 %v3653_v36  ;;  %v3647_v7 = vmax.f32 %v9482_v60, 0.0  ;;  %v3657_v29 = vmax.f32 %v3284_v62, 0.0 }
 0x3cd   :  { %v7989_v20 = vpop.f32.mrf.mxu0  ;;  %v7991_v35 = vpop.f32.mrf.mxu1  ;;  %v3296_v62 = vadd.f32 %v7806_v16, %v2847_v40  ;;  %v2851_v16 = vadd.f32 %v7832_v47, %v7871_v38  ;;  %v3654_v47 = vmax.f32 %v9486_v31, 0.0  ;;  %v3664_v37 = vmax.f32 %v3294_v54, 0.0 }
 0x3cf   :  { %v7997_v36 = vpop.f32.mrf.mxu0  ;;  %v7999_v33 = vpop.f32.mrf.mxu1  ;;  %4036 = vmatmul.mubr.f32.gmra.mxu0 %v3642_v26  ;;  %4431 = vmatmul.mubr.f32.gmra.mxu1 %v3652_v1  ;;  %v2853_v26 = vadd.f32 %v7840_v41, %v7861_v42  ;;  %v9484_v1 = vld [vmem:[#allocation141_spill] sm:$0xff] }
 0x3d0   :  { %4040 = vmatprep.mubr.f32.mxu0 %v3647_v7  ;;  %4435 = vmatprep.mubr.f32.mxu1 %v3657_v29  ;;  %v3651_v60 = vmax.f32 %v9484_v1, 0.0  ;;  %v3661_v7 = vmax.f32 %v3290_v32, 0.0  ;;  %v3665_v1 = vmax.f32 %v3296_v62, 0.0 }
 0x3d1   :  { %v8005_v0 = vpop.f32.mrf.mxu0  ;;  %v8007_v17 = vpop.f32.mrf.mxu1  ;;  %v3302_v32 = vadd.f32 %v7818_v13, %v2853_v26  ;;  %v2857_v13 = vadd.f32 %v7845_v4, %v7871_v38  ;;  %v2865_v26 = vadd.f32 %v7873_v18, %v7861_v42  ;;  %v9487_v4 = vld [vmem:[#allocation143_spill] sm:$0xff] }
 0x3d3   :  { %v8013_v29 = vpop.f32.mrf.mxu0  ;;  %v8015_v24 = vpop.f32.mrf.mxu1  ;;  %4041 = vmatmul.mubr.f32.gmra.mxu0 %v3646_v34  ;;  %4436 = vmatmul.mubr.f32.gmra.mxu1 %v3656_v15  ;;  %v2859_v34 = vadd.f32 %v7854_v2, %v7861_v42  ;;  %v3655_v15 = vmax.f32 %v6886_v27, 0.0 }
 0x3d4   :  { %4045 = vmatprep.mubr.f32.mxu0 %v3651_v60  ;;  %4440 = vmatprep.mubr.f32.mxu1 %v3661_v7  ;;  %v3300_v7 = vadd.f32 %v7811_v57, %v2851_v16  ;;  %v3658_v57 = vmax.f32 %v9487_v4, 0.0 }
 0x3d5   :  { %v8021_v41 = vpop.f32.mrf.mxu0  ;;  %v8023_v40 = vpop.f32.mrf.mxu1  ;;  %v3308_v62 = vadd.f32 %v7830_v48, %v2859_v34  ;;  %v2863_v48 = vadd.f32 %v7863_v56, %v7871_v38  ;;  %v2871_v34 = vadd.f32 %v7889_v39, %v7861_v42  ;;  %v9490_v56 = vld [vmem:[#allocation144_spill] sm:$0xff] }
 0x3d6   :  { %v3668_v16 = vmax.f32 %v3300_v7, 0.0 }
 0x3d7   :  { %v8029_v60 = vpop.f32.mrf.mxu0  ;;  %v8031_v3 = vpop.f32.mrf.mxu1  ;;  %4046 = vmatmul.mubr.f32.gmra.mxu0 %v3650_v28  ;;  %4441 = vmatmul.mubr.f32.gmra.mxu1 %v3660_v61  ;;  %v3669_v28 = vmax.f32 %v3302_v32, 0.0  ;;  %v3314_v32 = vadd.f32 %v7842_v6, %v2865_v26  ;;  %v2869_v6 = vadd.f32 %v7879_v43, %v7871_v38  ;;  %v9495_v43 = vld [vmem:[#allocation146_spill] sm:$0xff] }
 0x3d8   :  { %4050 = vmatprep.mubr.f32.mxu0 %v3655_v15  ;;  %4445 = vmatprep.mubr.f32.mxu1 %v3665_v1  ;;  %v3306_v15 = vadd.f32 %v7823_v52, %v2857_v13  ;;  %v9488_v1 = vld [vmem:[#allocation145_spill] sm:$0xff]  ;;  %v3662_v52 = vmax.f32 %v9490_v56, 0.0 }
 0x3d9   :  { %v8037_v2 = vpop.f32.mrf.mxu0  ;;  %v8039_v27 = vpop.f32.mrf.mxu1  ;;  %v3663_v31 = vmax.f32 %v9488_v1, 0.0 }
 0x3da   :  { %v3672_v13 = vmax.f32 %v3306_v15, 0.0 }
 0x3db   :  { %v8045_v61 = vpop.f32.mrf.mxu0  ;;  %v8047_v54 = vpop.f32.mrf.mxu1  ;;  %4051 = vmatmul.mubr.f32.gmra.mxu0 %v3654_v47  ;;  %4446 = vmatmul.mubr.f32.gmra.mxu1 %v3664_v37  ;;  %v3673_v47 = vmax.f32 %v3308_v62, 0.0  ;;  %v9492_v62 = vld [vmem:[#allocation126_spill] sm:$0xff] }
 0x3dc   :  { %4055 = vmatprep.mubr.f32.mxu0 %v3659_v30  ;;  %4450 = vmatprep.mubr.f32.mxu1 %v3669_v28  ;;  %v9491_v30 = vld [vmem:[#allocation123_spill] sm:$0xff]  ;;  %v3320_v4 = vadd.f32 %v9492_v62, %v2871_v34  ;;  %v2875_v34 = vadd.f32 %v7896_v23, %v7871_v38  ;;  %v9498_v23 = vld [vmem:[#allocation148_spill] sm:$0xff] }
 0x3dd   :  { %v8053_v18 = vpop.f32.mrf.mxu0  ;;  %v8055_v19 = vpop.f32.mrf.mxu1  ;;  %v3312_v28 = vadd.f32 %v9491_v30, %v2863_v48  ;;  %v3666_v48 = vmax.f32 %v9495_v43, 0.0  ;;  %v9496_v30 = vld [vmem:[#allocation105_spill] sm:$0xff] }
 0x3df   :  { %v8061_v37 = vpop.f32.mrf.mxu0  ;;  %v8063_v7 = vpop.f32.mrf.mxu1  ;;  %4056 = vmatmul.mubr.f32.gmra.mxu0 %v3658_v57  ;;  %4451 = vmatmul.mubr.f32.gmra.mxu1 %v3668_v16  ;;  %v2877_v57 = vadd.f32 %v7907_v50, %v7861_v42  ;;  %v9493_v16 = vld [vmem:[#allocation147_spill] sm:$0xff]  ;;  %v3676_v56 = vmax.f32 %v3312_v28, 0.0 }
 0x3e0   :  { %9489 = vst [vmem:[#allocation111_spill] sm:$0xff] %v8063_v7  ;;  %4060 = vmatprep.mubr.f32.mxu0 %v3663_v31  ;;  %4455 = vmatprep.mubr.f32.mxu1 %v3673_v47  ;;  %v3667_v1 = vmax.f32 %v9493_v16, 0.0  ;;  %v3677_v31 = vmax.f32 %v3314_v32, 0.0  ;;  %v3318_v7 = vadd.f32 %v9496_v30, %v2869_v6  ;;  %v3670_v6 = vmax.f32 %v9498_v23, 0.0  ;;  %v9499_v30 = vld [vmem:[#allocation106_spill] sm:$0xff] }
 0x3e1   :  { %v8069_v39 = vpop.f32.mrf.mxu0  ;;  %v8071_v26 = vpop.f32.mrf.mxu1  ;;  %v3326_v32 = vadd.f32 %v7875_v44, %v2877_v57  ;;  %v2881_v44 = vadd.f32 %v7914_v5, %v7871_v38  ;;  %v9502_v5 = vld [vmem:[#allocation150_spill] sm:$0xff] }
 0x3e2   :  { %v3680_v43 = vmax.f32 %v3318_v7, 0.0 }
 0x3e3   :  { %v8077_v47 = vpop.f32.mrf.mxu0  ;;  %v8079_v15 = vpop.f32.mrf.mxu1  ;;  %4061 = vmatmul.mubr.f32.gmra.mxu0 %v3662_v52  ;;  %4456 = vmatmul.mubr.f32.gmra.mxu1 %v3672_v13  ;;  %v2883_v52 = vadd.f32 %v7924_v51, %v7861_v42  ;;  %v9497_v13 = vld [vmem:[#allocation149_spill] sm:$0xff] }
 0x3e4   :  { %9494 = vst [vmem:[#allocation110_spill] sm:$0xff] %v8079_v15  ;;  %4065 = vmatprep.mubr.f32.mxu0 %v3667_v1  ;;  %4460 = vmatprep.mubr.f32.mxu1 %v3677_v31  ;;  %v3671_v16 = vmax.f32 %v9497_v13, 0.0  ;;  %v3681_v1 = vmax.f32 %v3320_v4, 0.0  ;;  %v3324_v15 = vadd.f32 %v9499_v30, %v2875_v34  ;;  %v3674_v34 = vmax.f32 %v9502_v5, 0.0  ;;  %v9506_v5 = vld [vmem:[#allocation107_spill] sm:$0xff] }
 0x3e5   :  { %v8085_v50 = vpop.f32.mrf.mxu0  ;;  %v8087_v62 = vpop.f32.mrf.mxu1  ;;  %v3332_v4 = vadd.f32 %v7891_v49, %v2883_v52  ;;  %v3330_v30 = vadd.f32 %v7882_v8, %v2881_v44  ;;  %v2887_v49 = vadd.f32 %v7931_v45, %v7871_v38  ;;  %v9505_v8 = vld [vmem:[#allocation152_spill] sm:$0xff] }
 0x3e6   :  { %v3684_v23 = vmax.f32 %v3324_v15, 0.0  ;;  %v3678_v45 = vmax.f32 %v9505_v8, 0.0 }
 0x3e7   :  { %v8093_v31 = vpop.f32.mrf.mxu0  ;;  %v8095_v28 = vpop.f32.mrf.mxu1  ;;  %4066 = vmatmul.mubr.f32.gmra.mxu0 %v3666_v48  ;;  %4461 = vmatmul.mubr.f32.gmra.mxu1 %v3676_v56  ;;  %v2889_v48 = vadd.f32 %v7940_v59, %v7861_v42  ;;  %v9500_v56 = vld [vmem:[#allocation151_spill] sm:$0xff]  ;;  %v3688_v44 = vmax.f32 %v3330_v30, 0.0 }
 0x3e8   :  { %4070 = vmatprep.mubr.f32.mxu0 %v3671_v16  ;;  %4465 = vmatprep.mubr.f32.mxu1 %v3681_v1  ;;  %v3675_v13 = vmax.f32 %v9500_v56, 0.0  ;;  %v3685_v16 = vmax.f32 %v3326_v32, 0.0 }
 0x3e9   :  { %v8101_v51 = vpop.f32.mrf.mxu0  ;;  %v8103_v57 = vpop.f32.mrf.mxu1  ;;  %v3338_v32 = vadd.f32 %v7909_v55, %v2889_v48  ;;  %v2893_v55 = vadd.f32 %v7948_v9, %v7871_v38  ;;  %v9509_v9 = vld [vmem:[#allocation154_spill] sm:$0xff] }
 0x3eb   :  { %v8109_v1 = vpop.f32.mrf.mxu0  ;;  %v8111_v7 = vpop.f32.mrf.mxu1  ;;  %4071 = vmatmul.mubr.f32.gmra.mxu0 %v3670_v6  ;;  %4466 = vmatmul.mubr.f32.gmra.mxu1 %v3680_v43  ;;  %v2895_v6 = vadd.f32 %v7957_v12, %v7861_v42  ;;  %v9503_v43 = vld [vmem:[#allocation153_spill] sm:$0xff] }
 0x3ec   :  { %9501 = vst [vmem:[#allocation112_spill] sm:$0xff] %v8111_v7  ;;  %4075 = vmatprep.mubr.f32.mxu0 %v3675_v13  ;;  %4470 = vmatprep.mubr.f32.mxu1 %v3685_v16  ;;  %v3679_v56 = vmax.f32 %v9503_v43, 0.0  ;;  %v3689_v13 = vmax.f32 %v3332_v4, 0.0  ;;  %v3336_v7 = vadd.f32 %v9506_v5, %v2887_v49  ;;  %v3682_v49 = vmax.f32 %v9509_v9, 0.0  ;;  %v9510_v5 = vld [vmem:[#allocation108_spill] sm:$0xff] }
 0x3ed   :  { %v8117_v59 = vpop.f32.mrf.mxu0  ;;  %v8119_v52 = vpop.f32.mrf.mxu1  ;;  %v3344_v4 = vadd.f32 %v7926_v21, %v2895_v6  ;;  %v2899_v21 = vadd.f32 %v7965_v22, %v7871_v38  ;;  %v9512_v22 = vld [vmem:[#allocation156_spill] sm:$0xff] }
 0x3ee   :  { %v3692_v8 = vmax.f32 %v3336_v7, 0.0 }
 0x3ef   :  { %v8125_v16 = vpop.f32.mrf.mxu0  ;;  %v8127_v15 = vpop.f32.mrf.mxu1  ;;  %4076 = vmatmul.mubr.f32.gmra.mxu0 %v3674_v34  ;;  %4471 = vmatmul.mubr.f32.gmra.mxu1 %v3684_v23  ;;  %v2901_v34 = vadd.f32 %v7973_v63, %v7861_v42  ;;  %v9507_v23 = vld [vmem:[#allocation155_spill] sm:$0xff] }
 0x3f0   :  { %9504 = vst [vmem:[#allocation129_spill] sm:$0xff] %v8127_v15  ;;  %4080 = vmatprep.mubr.f32.mxu0 %v3679_v56  ;;  %4475 = vmatprep.mubr.f32.mxu1 %v3689_v13  ;;  %v3683_v43 = vmax.f32 %v9507_v23, 0.0  ;;  %v3693_v56 = vmax.f32 %v3338_v32, 0.0  ;;  %v3342_v15 = vadd.f32 %v9510_v5, %v2893_v55  ;;  %v3686_v55 = vmax.f32 %v9512_v22, 0.0  ;;  %v9513_v5 = vld [vmem:[#allocation109_spill] sm:$0xff] }
 0x3f1   :  { %v8133_v12 = vpop.f32.mrf.mxu0  ;;  %v8135_v48 = vpop.f32.mrf.mxu1  ;;  %v3350_v32 = vadd.f32 %v7942_v11, %v2901_v34  ;;  %v2905_v11 = vadd.f32 %v7981_v58, %v7871_v38  ;;  %v9515_v58 = vld [vmem:[#allocation158_spill] sm:$0xff] }
 0x3f2   :  { %v3696_v9 = vmax.f32 %v3342_v15, 0.0 }
 0x3f3   :  { %v8141_v13 = vpop.f32.mrf.mxu0  ;;  %v8143_v30 = vpop.f32.mrf.mxu1  ;;  %4081 = vmatmul.mubr.f32.gmra.mxu0 %v3678_v45  ;;  %4476 = vmatmul.mubr.f32.gmra.mxu1 %v3688_v44  ;;  %v2907_v45 = vadd.f32 %v7989_v20, %v7861_v42  ;;  %v9511_v44 = vld [vmem:[#allocation157_spill] sm:$0xff] }
 0x3f4   :  { %9508 = vst [vmem:[#allocation114_spill] sm:$0xff] %v8143_v30  ;;  %4085 = vmatprep.mubr.f32.mxu0 %v3683_v43  ;;  %4480 = vmatprep.mubr.f32.mxu1 %v3693_v56  ;;  %v3687_v23 = vmax.f32 %v9511_v44, 0.0  ;;  %v3697_v43 = vmax.f32 %v3344_v4, 0.0  ;;  %v3348_v30 = vadd.f32 %v9513_v5, %v2899_v21  ;;  %v3690_v21 = vmax.f32 %v9515_v58, 0.0 }
 0x3f5   :  { %v8149_v63 = vpop.f32.mrf.mxu0  ;;  %v8151_v6 = vpop.f32.mrf.mxu1  ;;  %v3356_v4 = vadd.f32 %v7959_v14, %v2907_v45  ;;  %v3354_v5 = vadd.f32 %v7951_v53, %v2905_v11  ;;  %v2911_v14 = vadd.f32 %v7997_v36, %v7871_v38  ;;  %v9517_v53 = vld [vmem:[#allocation160_spill] sm:$0xff] }
 0x3f6   :  { %v3700_v22 = vmax.f32 %v3348_v30, 0.0  ;;  %v3694_v36 = vmax.f32 %v9517_v53, 0.0 }
 0x3f7   :  { %v8157_v56 = vpop.f32.mrf.mxu0  ;;  %v8159_v7 = vpop.f32.mrf.mxu1  ;;  %4086 = vmatmul.mubr.f32.gmra.mxu0 %v3682_v49  ;;  %4481 = vmatmul.mubr.f32.gmra.mxu1 %v3692_v8  ;;  %v2913_v49 = vadd.f32 %v8005_v0, %v7861_v42  ;;  %v9514_v8 = vld [vmem:[#allocation159_spill] sm:$0xff]  ;;  %v3704_v11 = vmax.f32 %v3354_v5, 0.0  ;;  %v3360_v58 = vadd.f32 %v7967_v25, %v2911_v14  ;;  %v9519_v25 = vld [vmem:[#allocation162_spill] sm:$0xff] }
 0x3f8   :  { %4090 = vmatprep.mubr.f32.mxu0 %v3687_v23  ;;  %4485 = vmatprep.mubr.f32.mxu1 %v3697_v43  ;;  %v3691_v44 = vmax.f32 %v9514_v8, 0.0  ;;  %v3701_v23 = vmax.f32 %v3350_v32, 0.0 }
 0x3f9   :  { %v8165_v20 = vpop.f32.mrf.mxu0  ;;  %v8167_v34 = vpop.f32.mrf.mxu1  ;;  %v3362_v32 = vadd.f32 %v7975_v10, %v2913_v49  ;;  %v2917_v10 = vadd.f32 %v8013_v29, %v7871_v38  ;;  %v3698_v29 = vmax.f32 %v9519_v25, 0.0  ;;  %v3708_v14 = vmax.f32 %v3360_v58, 0.0 }
 0x3fb   :  { %v8173_v43 = vpop.f32.mrf.mxu0  ;;  %v8175_v15 = vpop.f32.mrf.mxu1  ;;  %4091 = vmatmul.mubr.f32.gmra.mxu0 %v3686_v55  ;;  %4486 = vmatmul.mubr.f32.gmra.mxu1 %v3696_v9  ;;  %v2919_v55 = vadd.f32 %v8021_v41, %v7861_v42  ;;  %v9516_v9 = vld [vmem:[#allocation161_spill] sm:$0xff]  ;;  %v3366_v53 = vadd.f32 %v7983_v46, %v2917_v10 }
 0x3fc   :  { %4095 = vmatprep.mubr.f32.mxu0 %v3691_v44  ;;  %4490 = vmatprep.mubr.f32.mxu1 %v3701_v23  ;;  %v3695_v8 = vmax.f32 %v9516_v9, 0.0  ;;  %v3705_v44 = vmax.f32 %v3356_v4, 0.0  ;;  %v9521_v46 = vld [vmem:[#allocation17_spill] sm:$0xff] }
 0x3fd   :  { %v8181_v0 = vpop.f32.mrf.mxu0  ;;  %v8183_v45 = vpop.f32.mrf.mxu1  ;;  %v3368_v4 = vadd.f32 %v7991_v35, %v2919_v55  ;;  %v2923_v35 = vadd.f32 %v8029_v60, %v7871_v38  ;;  %v3702_v60 = vmax.f32 %v9521_v46, 0.0  ;;  %v3712_v10 = vmax.f32 %v3366_v53, 0.0 }
 0x3ff   :  { %v8189_v23 = vpop.f32.mrf.mxu0  ;;  %v8191_v30 = vpop.f32.mrf.mxu1  ;;  %4096 = vmatmul.mubr.f32.gmra.mxu0 %v3690_v21  ;;  %4491 = vmatmul.mubr.f32.gmra.mxu1 %v3700_v22  ;;  %v2925_v21 = vadd.f32 %v8037_v2, %v7861_v42  ;;  %v9518_v22 = vld [vmem:[#allocation12_spill] sm:$0xff]  ;;  %v3372_v25 = vadd.f32 %v7999_v33, %v2923_v35  ;;  %v9523_v33 = vld [vmem:[#allocation14_spill] sm:$0xff] }
 0x400   :  { %4100 = vmatprep.mubr.f32.mxu0 %v3695_v8  ;;  %4495 = vmatprep.mubr.f32.mxu1 %v3705_v44  ;;  %v3699_v9 = vmax.f32 %v9518_v22, 0.0  ;;  %v3709_v8 = vmax.f32 %v3362_v32, 0.0 }
 0x401   :  { %v8197_v41 = vpop.f32.mrf.mxu0  ;;  %v8199_v49 = vpop.f32.mrf.mxu1  ;;  %v3374_v32 = vadd.f32 %v8007_v17, %v2925_v21  ;;  %v2929_v17 = vadd.f32 %v8045_v61, %v7871_v38  ;;  %v3706_v61 = vmax.f32 %v9523_v33, 0.0  ;;  %v3716_v35 = vmax.f32 %v3372_v25, 0.0 }
 0x403   :  { %v8205_v44 = vpop.f32.mrf.mxu0  ;;  %v8207_v5 = vpop.f32.mrf.mxu1  ;;  %4101 = vmatmul.mubr.f32.gmra.mxu0 %v3694_v36  ;;  %4496 = vmatmul.mubr.f32.gmra.mxu1 %v3704_v11  ;;  %v2931_v36 = vadd.f32 %v8053_v18, %v7861_v42  ;;  %v9520_v11 = vld [vmem:[#allocation15_spill] sm:$0xff]  ;;  %v3378_v46 = vadd.f32 %v8015_v24, %v2929_v17 }
 0x404   :  { %4105 = vmatprep.mubr.f32.mxu0 %v3699_v9  ;;  %4500 = vmatprep.mubr.f32.mxu1 %v3709_v8  ;;  %v3703_v22 = vmax.f32 %v9520_v11, 0.0  ;;  %v3713_v9 = vmax.f32 %v3368_v4, 0.0  ;;  %v9525_v24 = vld [vmem:[#allocation27_spill] sm:$0xff] }
 0x405   :  { %v8213_v2 = vpop.f32.mrf.mxu0  ;;  %v8215_v55 = vpop.f32.mrf.mxu1  ;;  %v3380_v4 = vadd.f32 %v8023_v40, %v2931_v36  ;;  %v2935_v40 = vadd.f32 %v8061_v37, %v7871_v38  ;;  %v3710_v37 = vmax.f32 %v9525_v24, 0.0  ;;  %v3720_v17 = vmax.f32 %v3378_v46, 0.0 }
 0x407   :  { %v8221_v8 = vpop.f32.mrf.mxu0  ;;  %v8223_v58 = vpop.f32.mrf.mxu1  ;;  %4106 = vmatmul.mubr.f32.gmra.mxu0 %v3698_v29  ;;  %4501 = vmatmul.mubr.f32.gmra.mxu1 %v3708_v14  ;;  %v2937_v29 = vadd.f32 %v8069_v39, %v7861_v42  ;;  %v9522_v14 = vld [vmem:[#allocation13_spill] sm:$0xff]  ;;  %v3384_v33 = vadd.f32 %v8031_v3, %v2935_v40 }
 0x408   :  { %4110 = vmatprep.mubr.f32.mxu0 %v3703_v22  ;;  %4505 = vmatprep.mubr.f32.mxu1 %v3713_v9  ;;  %v3707_v11 = vmax.f32 %v9522_v14, 0.0  ;;  %v3717_v22 = vmax.f32 %v3374_v32, 0.0  ;;  %v9528_v3 = vld [vmem:[#allocation29_spill] sm:$0xff] }
 0x409   :  { %v8229_v18 = vpop.f32.mrf.mxu0  ;;  %v8231_v21 = vpop.f32.mrf.mxu1  ;;  %v3386_v32 = vadd.f32 %v8039_v27, %v2937_v29  ;;  %v2941_v27 = vadd.f32 %v8077_v47, %v7871_v38  ;;  %v3714_v47 = vmax.f32 %v9528_v3, 0.0  ;;  %v3724_v40 = vmax.f32 %v3384_v33, 0.0  ;;  %v9532_v3 = vld [vmem:[#allocation111_spill] sm:$0xff] }
 0x40b   :  { %v8237_v9 = vpop.f32.mrf.mxu0  ;;  %v8239_v53 = vpop.f32.mrf.mxu1  ;;  %4111 = vmatmul.mubr.f32.gmra.mxu0 %v3702_v60  ;;  %4506 = vmatmul.mubr.f32.gmra.mxu1 %v3712_v10  ;;  %v2943_v60 = vadd.f32 %v8085_v50, %v7861_v42  ;;  %v9524_v10 = vld [vmem:[#allocation18_spill] sm:$0xff]  ;;  %v3390_v24 = vadd.f32 %v8047_v54, %v2941_v27  ;;  %v9531_v54 = vld [vmem:[#allocation20_spill] sm:$0xff] }
 0x40c   :  { %4115 = vmatprep.mubr.f32.mxu0 %v3707_v11  ;;  %4510 = vmatprep.mubr.f32.mxu1 %v3717_v22  ;;  %v3711_v14 = vmax.f32 %v9524_v10, 0.0  ;;  %v3721_v11 = vmax.f32 %v3380_v4, 0.0 }
 0x40d   :  { %v8245_v39 = vpop.f32.mrf.mxu0  ;;  %v8247_v36 = vpop.f32.mrf.mxu1  ;;  %v3392_v4 = vadd.f32 %v8055_v19, %v2943_v60  ;;  %v2947_v19 = vadd.f32 %v8093_v31, %v7871_v38  ;;  %v3718_v31 = vmax.f32 %v9531_v54, 0.0  ;;  %v3728_v27 = vmax.f32 %v3390_v24, 0.0 }
 0x40f   :  { %v8253_v22 = vpop.f32.mrf.mxu0  ;;  %v8255_v25 = vpop.f32.mrf.mxu1  ;;  %4116 = vmatmul.mubr.f32.gmra.mxu0 %v3706_v61  ;;  %4511 = vmatmul.mubr.f32.gmra.mxu1 %v3716_v35  ;;  %v2949_v61 = vadd.f32 %v8101_v51, %v7861_v42  ;;  %v9526_v35 = vld [vmem:[#allocation16_spill] sm:$0xff] }
 0x410   :  { %4120 = vmatprep.mubr.f32.mxu0 %v3711_v14  ;;  %4515 = vmatprep.mubr.f32.mxu1 %v3721_v11  ;;  %v3715_v10 = vmax.f32 %v9526_v35, 0.0  ;;  %v3725_v14 = vmax.f32 %v3386_v32, 0.0 }
 0x411   :  { %v8261_v50 = vpop.f32.mrf.mxu0  ;;  %v8263_v29 = vpop.f32.mrf.mxu1  ;;  %v3398_v32 = vadd.f32 %v8071_v26, %v2949_v61  ;;  %v2953_v26 = vadd.f32 %v8109_v1, %v7871_v38  ;;  %v9534_v1 = vld [vmem:[#allocation25_spill] sm:$0xff] }
 0x413   :  { %v8269_v11 = vpop.f32.mrf.mxu0  ;;  %v8271_v46 = vpop.f32.mrf.mxu1  ;;  %4121 = vmatmul.mubr.f32.gmra.mxu0 %v3710_v37  ;;  %4516 = vmatmul.mubr.f32.gmra.mxu1 %v3720_v17  ;;  %v2955_v37 = vadd.f32 %v8117_v59, %v7861_v42  ;;  %v9529_v17 = vld [vmem:[#allocation19_spill] sm:$0xff] }
 0x414   :  { %9527 = vst [vmem:[#allocation130_spill] sm:$0xff] %v8271_v46  ;;  %4125 = vmatprep.mubr.f32.mxu0 %v3715_v10  ;;  %4520 = vmatprep.mubr.f32.mxu1 %v3725_v14  ;;  %v3719_v35 = vmax.f32 %v9529_v17, 0.0  ;;  %v3729_v10 = vmax.f32 %v3392_v4, 0.0  ;;  %v3396_v46 = vadd.f32 %v9532_v3, %v2947_v19  ;;  %v3722_v19 = vmax.f32 %v9534_v1, 0.0  ;;  %v9535_v3 = vld [vmem:[#allocation110_spill] sm:$0xff] }
 0x415   :  { %v8277_v51 = vpop.f32.mrf.mxu0  ;;  %v8279_v60 = vpop.f32.mrf.mxu1  ;;  %v3404_v4 = vadd.f32 %v8087_v62, %v2955_v37  ;;  %v2959_v62 = vadd.f32 %v8125_v16, %v7871_v38  ;;  %v9538_v16 = vld [vmem:[#allocation23_spill] sm:$0xff] }
 0x416   :  { %v3732_v54 = vmax.f32 %v3396_v46, 0.0 }
 0x417   :  { %v8285_v14 = vpop.f32.mrf.mxu0  ;;  %v8287_v33 = vpop.f32.mrf.mxu1  ;;  %4126 = vmatmul.mubr.f32.gmra.mxu0 %v3714_v47  ;;  %4521 = vmatmul.mubr.f32.gmra.mxu1 %v3724_v40  ;;  %v2961_v47 = vadd.f32 %v8133_v12, %v7861_v42  ;;  %v9533_v40 = vld [vmem:[#allocation22_spill] sm:$0xff] }
 0x418   :  { %9530 = vst [vmem:[#allocation116_spill] sm:$0xff] %v8287_v33  ;;  %4130 = vmatprep.mubr.f32.mxu0 %v3719_v35  ;;  %4525 = vmatprep.mubr.f32.mxu1 %v3729_v10  ;;  %v3723_v17 = vmax.f32 %v9533_v40, 0.0  ;;  %v3733_v35 = vmax.f32 %v3398_v32, 0.0  ;;  %v3402_v33 = vadd.f32 %v9535_v3, %v2953_v26  ;;  %v3726_v26 = vmax.f32 %v9538_v16, 0.0  ;;  %v9542_v16 = vld [vmem:[#allocation112_spill] sm:$0xff] }
 0x419   :  { %v8293_v59 = vpop.f32.mrf.mxu0  ;;  %v8295_v61 = vpop.f32.mrf.mxu1  ;;  %v3410_v32 = vadd.f32 %v8103_v57, %v2961_v47  ;;  %v3408_v3 = vadd.f32 %v8095_v28, %v2959_v62  ;;  %v2965_v57 = vadd.f32 %v8141_v13, %v7871_v38  ;;  %v9541_v28 = vld [vmem:[#allocation37_spill] sm:$0xff] }
 0x41a   :  { %v3736_v1 = vmax.f32 %v3402_v33, 0.0  ;;  %v3730_v13 = vmax.f32 %v9541_v28, 0.0 }
 0x41b   :  { %v8301_v10 = vpop.f32.mrf.mxu0  ;;  %v8303_v24 = vpop.f32.mrf.mxu1  ;;  %4131 = vmatmul.mubr.f32.gmra.mxu0 %v3718_v31  ;;  %4526 = vmatmul.mubr.f32.gmra.mxu1 %v3728_v27  ;;  %v2967_v31 = vadd.f32 %v8149_v63, %v7861_v42  ;;  %v9536_v27 = vld [vmem:[#allocation21_spill] sm:$0xff]  ;;  %v3740_v62 = vmax.f32 %v3408_v3, 0.0 }
 0x41c   :  { %4135 = vmatprep.mubr.f32.mxu0 %v3723_v17  ;;  %4530 = vmatprep.mubr.f32.mxu1 %v3733_v35  ;;  %v3727_v40 = vmax.f32 %v9536_v27, 0.0  ;;  %v3737_v17 = vmax.f32 %v3404_v4, 0.0 }
 0x41d   :  { %v8309_v12 = vpop.f32.mrf.mxu0  ;;  %v8311_v37 = vpop.f32.mrf.mxu1  ;;  %v3416_v4 = vadd.f32 %v8119_v52, %v2967_v31  ;;  %v2971_v52 = vadd.f32 %v8157_v56, %v7871_v38  ;;  %v9545_v56 = vld [vmem:[#allocation39_spill] sm:$0xff] }
 0x41f   :  { %v8317_v35 = vpop.f32.mrf.mxu0  ;;  %v8319_v46 = vpop.f32.mrf.mxu1  ;;  %4136 = vmatmul.mubr.f32.gmra.mxu0 %v3722_v19  ;;  %4531 = vmatmul.mubr.f32.gmra.mxu1 %v3732_v54  ;;  %v2973_v19 = vadd.f32 %v8165_v20, %v7861_v42  ;;  %v9539_v54 = vld [vmem:[#allocation26_spill] sm:$0xff] }
 0x420   :  { %9537 = vst [vmem:[#allocation117_spill] sm:$0xff] %v8319_v46  ;;  %4140 = vmatprep.mubr.f32.mxu0 %v3727_v40  ;;  %4535 = vmatprep.mubr.f32.mxu1 %v3737_v17  ;;  %v3731_v27 = vmax.f32 %v9539_v54, 0.0  ;;  %v3741_v40 = vmax.f32 %v3410_v32, 0.0  ;;  %v3414_v46 = vadd.f32 %v9542_v16, %v2965_v57  ;;  %v3734_v57 = vmax.f32 %v9545_v56, 0.0  ;;  %v9546_v16 = vld [vmem:[#allocation129_spill] sm:$0xff] }
 0x421   :  { %v8325_v63 = vpop.f32.mrf.mxu0  ;;  %v8327_v47 = vpop.f32.mrf.mxu1  ;;  %v3422_v32 = vadd.f32 %v8135_v48, %v2973_v19  ;;  %v2977_v48 = vadd.f32 %v8173_v43, %v7871_v38  ;;  %v9548_v43 = vld [vmem:[#allocation30_spill] sm:$0xff] }
 0x422   :  { %v3744_v28 = vmax.f32 %v3414_v46, 0.0 }
 0x423   :  { %v8333_v17 = vpop.f32.mrf.mxu0  ;;  %v8335_v33 = vpop.f32.mrf.mxu1  ;;  %4141 = vmatmul.mubr.f32.gmra.mxu0 %v3726_v26  ;;  %4536 = vmatmul.mubr.f32.gmra.mxu1 %v3736_v1  ;;  %v2979_v26 = vadd.f32 %v8181_v0, %v7861_v42  ;;  %v9543_v1 = vld [vmem:[#allocation24_spill] sm:$0xff] }
 0x424   :  { %9540 = vst [vmem:[#allocation118_spill] sm:$0xff] %v8335_v33  ;;  %4145 = vmatprep.mubr.f32.mxu0 %v3731_v27  ;;  %4540 = vmatprep.mubr.f32.mxu1 %v3741_v40  ;;  %v3735_v54 = vmax.f32 %v9543_v1, 0.0  ;;  %v3745_v27 = vmax.f32 %v3416_v4, 0.0  ;;  %v3420_v33 = vadd.f32 %v9546_v16, %v2971_v52  ;;  %v3738_v52 = vmax.f32 %v9548_v43, 0.0  ;;  %v9549_v16 = vld [vmem:[#allocation114_spill] sm:$0xff] }
 0x425   :  { %v8341_v20 = vpop.f32.mrf.mxu0  ;;  %v8343_v31 = vpop.f32.mrf.mxu1  ;;  %v3428_v4 = vadd.f32 %v8151_v6, %v2979_v26  ;;  %v2983_v6 = vadd.f32 %v8189_v23, %v7871_v38  ;;  %v9551_v23 = vld [vmem:[#allocation35_spill] sm:$0xff] }
 0x426   :  { %v3748_v56 = vmax.f32 %v3420_v33, 0.0 }
 0x427   :  { %v8349_v40 = vpop.f32.mrf.mxu0  ;;  %v8351_v3 = vpop.f32.mrf.mxu1  ;;  %4146 = vmatmul.mubr.f32.gmra.mxu0 %v3730_v13  ;;  %4541 = vmatmul.mubr.f32.gmra.mxu1 %v3740_v62  ;;  %v2985_v13 = vadd.f32 %v8197_v41, %v7861_v42  ;;  %v9547_v62 = vld [vmem:[#allocation28_spill] sm:$0xff] }
 0x428   :  { %9544 = vst [vmem:[#allocation121_spill] sm:$0xff] %v8351_v3  ;;  %4150 = vmatprep.mubr.f32.mxu0 %v3735_v54  ;;  %4545 = vmatprep.mubr.f32.mxu1 %v3745_v27  ;;  %v3739_v1 = vmax.f32 %v9547_v62, 0.0  ;;  %v3749_v54 = vmax.f32 %v3422_v32, 0.0  ;;  %v3426_v3 = vadd.f32 %v9549_v16, %v2977_v48  ;;  %v3742_v48 = vmax.f32 %v9551_v23, 0.0 }
 0x429   :  { %v8357_v0 = vpop.f32.mrf.mxu0  ;;  %v8359_v19 = vpop.f32.mrf.mxu1  ;;  %v3434_v32 = vadd.f32 %v8167_v34, %v2985_v13  ;;  %v3432_v16 = vadd.f32 %v8159_v7, %v2983_v6  ;;  %v2989_v34 = vadd.f32 %v8205_v44, %v7871_v38  ;;  %v9553_v7 = vld [vmem:[#allocation33_spill] sm:$0xff] }
 0x42a   :  { %v3752_v43 = vmax.f32 %v3426_v3, 0.0  ;;  %v3746_v44 = vmax.f32 %v9553_v7, 0.0 }
 0x42b   :  { %v8365_v27 = vpop.f32.mrf.mxu0  ;;  %v8367_v46 = vpop.f32.mrf.mxu1  ;;  %4151 = vmatmul.mubr.f32.gmra.mxu0 %v3734_v57  ;;  %4546 = vmatmul.mubr.f32.gmra.mxu1 %v3744_v28  ;;  %v2991_v57 = vadd.f32 %v8213_v2, %v7861_v42  ;;  %v9550_v28 = vld [vmem:[#allocation32_spill] sm:$0xff]  ;;  %v3756_v6 = vmax.f32 %v3432_v16, 0.0  ;;  %v3438_v23 = vadd.f32 %v8175_v15, %v2989_v34  ;;  %v9555_v15 = vld [vmem:[#allocation55_spill] sm:$0xff] }
 0x42c   :  { %4155 = vmatprep.mubr.f32.mxu0 %v3739_v1  ;;  %4550 = vmatprep.mubr.f32.mxu1 %v3749_v54  ;;  %v3743_v62 = vmax.f32 %v9550_v28, 0.0  ;;  %v3753_v1 = vmax.f32 %v3428_v4, 0.0 }
 0x42d   :  { %v8373_v41 = vpop.f32.mrf.mxu0  ;;  %v8375_v26 = vpop.f32.mrf.mxu1  ;;  %v3440_v4 = vadd.f32 %v8183_v45, %v2991_v57  ;;  %v2995_v45 = vadd.f32 %v8221_v8, %v7871_v38  ;;  %v3750_v8 = vmax.f32 %v9555_v15, 0.0  ;;  %v3760_v34 = vmax.f32 %v3438_v23, 0.0 }
 0x42f   :  { %v8381_v54 = vpop.f32.mrf.mxu0  ;;  %v8383_v33 = vpop.f32.mrf.mxu1  ;;  %4156 = vmatmul.mubr.f32.gmra.mxu0 %v3738_v52  ;;  %4551 = vmatmul.mubr.f32.gmra.mxu1 %v3748_v56  ;;  %v2997_v52 = vadd.f32 %v8229_v18, %v7861_v42  ;;  %v9552_v56 = vld [vmem:[#allocation31_spill] sm:$0xff]  ;;  %v3444_v7 = vadd.f32 %v8191_v30, %v2995_v45  ;;  %v9557_v30 = vld [vmem:[#allocation56_spill] sm:$0xff] }
 0x430   :  { %4160 = vmatprep.mubr.f32.mxu0 %v3743_v62  ;;  %4555 = vmatprep.mubr.f32.mxu1 %v3753_v1  ;;  %v3747_v28 = vmax.f32 %v9552_v56, 0.0  ;;  %v3757_v62 = vmax.f32 %v3434_v32, 0.0 }
 0x431   :  { %v8389_v2 = vpop.f32.mrf.mxu0  ;;  %v8391_v13 = vpop.f32.mrf.mxu1  ;;  %v3446_v32 = vadd.f32 %v8199_v49, %v2997_v52  ;;  %v3001_v49 = vadd.f32 %v8237_v9, %v7871_v38  ;;  %v3754_v9 = vmax.f32 %v9557_v30, 0.0  ;;  %v3764_v45 = vmax.f32 %v3444_v7, 0.0 }
 0x433   :  { %v8397_v1 = vpop.f32.mrf.mxu0  ;;  %v8399_v3 = vpop.f32.mrf.mxu1  ;;  %4161 = vmatmul.mubr.f32.gmra.mxu0 %v3742_v48  ;;  %4556 = vmatmul.mubr.f32.gmra.mxu1 %v3752_v43  ;;  %v3003_v48 = vadd.f32 %v8245_v39, %v7861_v42  ;;  %v9554_v43 = vld [vmem:[#allocation36_spill] sm:$0xff]  ;;  %v3450_v15 = vadd.f32 %v8207_v5, %v3001_v49 }
 0x434   :  { %4165 = vmatprep.mubr.f32.mxu0 %v3747_v28  ;;  %4560 = vmatprep.mubr.f32.mxu1 %v3757_v62  ;;  %v3751_v56 = vmax.f32 %v9554_v43, 0.0  ;;  %v3761_v28 = vmax.f32 %v3440_v4, 0.0  ;;  %v9559_v5 = vld [vmem:[#allocation40_spill] sm:$0xff] }
 0x435   :  { %v8405_v18 = vpop.f32.mrf.mxu0  ;;  %v8407_v57 = vpop.f32.mrf.mxu1  ;;  %v3452_v4 = vadd.f32 %v8215_v55, %v3003_v48  ;;  %v3007_v55 = vadd.f32 %v8253_v22, %v7871_v38  ;;  %v3758_v22 = vmax.f32 %v9559_v5, 0.0  ;;  %v3768_v49 = vmax.f32 %v3450_v15, 0.0 }
 0x437   :  { %v8413_v62 = vpop.f32.mrf.mxu0  ;;  %v8415_v16 = vpop.f32.mrf.mxu1  ;;  %4166 = vmatmul.mubr.f32.gmra.mxu0 %v3746_v44  ;;  %4561 = vmatmul.mubr.f32.gmra.mxu1 %v3756_v6  ;;  %v3009_v44 = vadd.f32 %v8261_v50, %v7861_v42  ;;  %v9556_v6 = vld [vmem:[#allocation34_spill] sm:$0xff]  ;;  %v3456_v30 = vadd.f32 %v8223_v58, %v3007_v55  ;;  %v9561_v58 = vld [vmem:[#allocation48_spill] sm:$0xff] }
 0x438   :  { %4170 = vmatprep.mubr.f32.mxu0 %v3751_v56  ;;  %4565 = vmatprep.mubr.f32.mxu1 %v3761_v28  ;;  %v3755_v43 = vmax.f32 %v9556_v6, 0.0  ;;  %v3765_v56 = vmax.f32 %v3446_v32, 0.0 }
 0x439   :  { %v8421_v39 = vpop.f32.mrf.mxu0  ;;  %v8423_v52 = vpop.f32.mrf.mxu1  ;;  %v3458_v32 = vadd.f32 %v8231_v21, %v3009_v44  ;;  %v3013_v21 = vadd.f32 %v8269_v11, %v7871_v38  ;;  %v3762_v11 = vmax.f32 %v9561_v58, 0.0  ;;  %v3772_v55 = vmax.f32 %v3456_v30, 0.0 }
 0x43b   :  { %v8429_v28 = vpop.f32.mrf.mxu0  ;;  %v8431_v23 = vpop.f32.mrf.mxu1  ;;  %4171 = vmatmul.mubr.f32.gmra.mxu0 %v3750_v8  ;;  %4566 = vmatmul.mubr.f32.gmra.mxu1 %v3760_v34  ;;  %v3015_v8 = vadd.f32 %v8277_v51, %v7861_v42  ;;  %v9558_v34 = vld [vmem:[#allocation38_spill] sm:$0xff]  ;;  %v3462_v5 = vadd.f32 %v8239_v53, %v3013_v21  ;;  %v9564_v53 = vld [vmem:[#allocation45_spill] sm:$0xff] }
 0x43c   :  { %4175 = vmatprep.mubr.f32.mxu0 %v3755_v43  ;;  %4570 = vmatprep.mubr.f32.mxu1 %v3765_v56  ;;  %v3759_v6 = vmax.f32 %v9558_v34, 0.0  ;;  %v3769_v43 = vmax.f32 %v3452_v4, 0.0 }
 0x43d   :  { %v8437_v50 = vpop.f32.mrf.mxu0  ;;  %v8439_v48 = vpop.f32.mrf.mxu1  ;;  %v3464_v4 = vadd.f32 %v8247_v36, %v3015_v8  ;;  %v3019_v36 = vadd.f32 %v8285_v14, %v7871_v38  ;;  %v3766_v14 = vmax.f32 %v9564_v53, 0.0  ;;  %v3776_v21 = vmax.f32 %v3462_v5, 0.0  ;;  %v9568_v53 = vld [vmem:[#allocation130_spill] sm:$0xff] }
 0x43f   :  { %v8445_v56 = vpop.f32.mrf.mxu0  ;;  %v8447_v7 = vpop.f32.mrf.mxu1  ;;  %4176 = vmatmul.mubr.f32.gmra.mxu0 %v3754_v9  ;;  %4571 = vmatmul.mubr.f32.gmra.mxu1 %v3764_v45  ;;  %v3021_v9 = vadd.f32 %v8293_v59, %v7861_v42  ;;  %v9560_v45 = vld [vmem:[#allocation44_spill] sm:$0xff]  ;;  %v3468_v58 = vadd.f32 %v8255_v25, %v3019_v36  ;;  %v9567_v25 = vld [vmem:[#allocation63_spill] sm:$0xff] }
 0x440   :  { %4180 = vmatprep.mubr.f32.mxu0 %v3759_v6  ;;  %4575 = vmatprep.mubr.f32.mxu1 %v3769_v43  ;;  %v3763_v34 = vmax.f32 %v9560_v45, 0.0  ;;  %v3773_v6 = vmax.f32 %v3458_v32, 0.0 }
 0x441   :  { %v8453_v51 = vpop.f32.mrf.mxu0  ;;  %v8455_v44 = vpop.f32.mrf.mxu1  ;;  %v3470_v32 = vadd.f32 %v8263_v29, %v3021_v9  ;;  %v3025_v29 = vadd.f32 %v8301_v10, %v7871_v38  ;;  %v3770_v10 = vmax.f32 %v9567_v25, 0.0  ;;  %v3780_v36 = vmax.f32 %v3468_v58, 0.0 }
 0x443   :  { %v8461_v43 = vpop.f32.mrf.mxu0  ;;  %v8463_v15 = vpop.f32.mrf.mxu1  ;;  %4181 = vmatmul.mubr.f32.gmra.mxu0 %v3758_v22  ;;  %4576 = vmatmul.mubr.f32.gmra.mxu1 %v3768_v49  ;;  %v3027_v22 = vadd.f32 %v8309_v12, %v7861_v42  ;;  %v9562_v49 = vld [vmem:[#allocation41_spill] sm:$0xff] }
 0x444   :  { %4185 = vmatprep.mubr.f32.mxu0 %v3763_v34  ;;  %4580 = vmatprep.mubr.f32.mxu1 %v3773_v6  ;;  %v3767_v45 = vmax.f32 %v9562_v49, 0.0  ;;  %v3777_v34 = vmax.f32 %v3464_v4, 0.0 }
 0x445   :  { %v8469_v59 = vpop.f32.mrf.mxu0  ;;  %v8471_v8 = vpop.f32.mrf.mxu1  ;;  %v3476_v4 = vadd.f32 %v8279_v60, %v3027_v22  ;;  %v3031_v60 = vadd.f32 %v8317_v35, %v7871_v38  ;;  %v9570_v35 = vld [vmem:[#allocation66_spill] sm:$0xff] }
 0x447   :  { %v8477_v6 = vpop.f32.mrf.mxu0  ;;  %v8479_v30 = vpop.f32.mrf.mxu1  ;;  %4186 = vmatmul.mubr.f32.gmra.mxu0 %v3762_v11  ;;  %4581 = vmatmul.mubr.f32.gmra.mxu1 %v3772_v55  ;;  %v3033_v11 = vadd.f32 %v8325_v63, %v7861_v42  ;;  %v9565_v55 = vld [vmem:[#allocation52_spill] sm:$0xff] }
 0x448   :  { %9563 = vst [vmem:[#allocation119_spill] sm:$0xff] %v8479_v30  ;;  %4190 = vmatprep.mubr.f32.mxu0 %v3767_v45  ;;  %4585 = vmatprep.mubr.f32.mxu1 %v3777_v34  ;;  %v3771_v49 = vmax.f32 %v9565_v55, 0.0  ;;  %v3781_v45 = vmax.f32 %v3470_v32, 0.0  ;;  %v3474_v30 = vadd.f32 %v9568_v53, %v3025_v29  ;;  %v3774_v29 = vmax.f32 %v9570_v35, 0.0  ;;  %v9571_v53 = vld [vmem:[#allocation116_spill] sm:$0xff] }
 0x449   :  { %v8485_v12 = vpop.f32.mrf.mxu0  ;;  %v8487_v9 = vpop.f32.mrf.mxu1  ;;  %v3482_v32 = vadd.f32 %v8295_v61, %v3033_v11  ;;  %v3037_v61 = vadd.f32 %v8333_v17, %v7871_v38  ;;  %v9574_v17 = vld [vmem:[#allocation51_spill] sm:$0xff] }
 0x44a   :  { %v3784_v25 = vmax.f32 %v3474_v30, 0.0 }
 0x44b   :  { %v8493_v34 = vpop.f32.mrf.mxu0  ;;  %v8495_v5 = vpop.f32.mrf.mxu1  ;;  %4191 = vmatmul.mubr.f32.gmra.mxu0 %v3766_v14  ;;  %4586 = vmatmul.mubr.f32.gmra.mxu1 %v3776_v21  ;;  %v3039_v14 = vadd.f32 %v8341_v20, %v7861_v42  ;;  %v9569_v21 = vld [vmem:[#allocation49_spill] sm:$0xff] }
 0x44c   :  { %9566 = vst [vmem:[#allocation122_spill] sm:$0xff] %v8495_v5  ;;  %4195 = vmatprep.mubr.f32.mxu0 %v3771_v49  ;;  %4590 = vmatprep.mubr.f32.mxu1 %v3781_v45  ;;  %v3775_v55 = vmax.f32 %v9569_v21, 0.0  ;;  %v3785_v49 = vmax.f32 %v3476_v4, 0.0  ;;  %v3480_v5 = vadd.f32 %v9571_v53, %v3031_v60  ;;  %v3778_v60 = vmax.f32 %v9574_v17, 0.0  ;;  %v9578_v17 = vld [vmem:[#allocation117_spill] sm:$0xff] }
 0x44d   :  { %v8501_v63 = vpop.f32.mrf.mxu0  ;;  %v8503_v22 = vpop.f32.mrf.mxu1  ;;  %v3488_v4 = vadd.f32 %v8311_v37, %v3039_v14  ;;  %v3486_v53 = vadd.f32 %v8303_v24, %v3037_v61  ;;  %v3043_v37 = vadd.f32 %v8349_v40, %v7871_v38  ;;  %v9577_v24 = vld [vmem:[#allocation43_spill] sm:$0xff] }
 0x44e   :  { %v3788_v35 = vmax.f32 %v3480_v5, 0.0  ;;  %v3782_v40 = vmax.f32 %v9577_v24, 0.0 }
 0x44f   :  { %v8509_v45 = vpop.f32.mrf.mxu0  ;;  %v8511_v58 = vpop.f32.mrf.mxu1  ;;  %4196 = vmatmul.mubr.f32.gmra.mxu0 %v3770_v10  ;;  %4591 = vmatmul.mubr.f32.gmra.mxu1 %v3780_v36  ;;  %v3045_v10 = vadd.f32 %v8357_v0, %v7861_v42  ;;  %v9572_v36 = vld [vmem:[#allocation50_spill] sm:$0xff]  ;;  %v3792_v61 = vmax.f32 %v3486_v53, 0.0 }
 0x450   :  { %4200 = vmatprep.mubr.f32.mxu0 %v3775_v55  ;;  %4595 = vmatprep.mubr.f32.mxu1 %v3785_v49  ;;  %v3779_v21 = vmax.f32 %v9572_v36, 0.0  ;;  %v3789_v55 = vmax.f32 %v3482_v32, 0.0 }
 0x451   :  { %v8517_v20 = vpop.f32.mrf.mxu0  ;;  %v8519_v11 = vpop.f32.mrf.mxu1  ;;  %v3494_v32 = vadd.f32 %v8327_v47, %v3045_v10  ;;  %v3049_v47 = vadd.f32 %v8365_v27, %v7871_v38  ;;  %v9581_v27 = vld [vmem:[#allocation47_spill] sm:$0xff] }
 0x453   :  { %v8525_v49 = vpop.f32.mrf.mxu0  ;;  %v8527_v30 = vpop.f32.mrf.mxu1  ;;  %4201 = vmatmul.mubr.f32.gmra.mxu0 %v3774_v29  ;;  %4596 = vmatmul.mubr.f32.gmra.mxu1 %v3784_v25  ;;  %v3051_v29 = vadd.f32 %v8373_v41, %v7861_v42  ;;  %v9575_v25 = vld [vmem:[#allocation42_spill] sm:$0xff] }
 0x454   :  { %9573 = vst [vmem:[#allocation120_spill] sm:$0xff] %v8527_v30  ;;  %4205 = vmatprep.mubr.f32.mxu0 %v3779_v21  ;;  %4600 = vmatprep.mubr.f32.mxu1 %v3789_v55  ;;  %v3783_v36 = vmax.f32 %v9575_v25, 0.0  ;;  %v3793_v21 = vmax.f32 %v3488_v4, 0.0  ;;  %v3492_v30 = vadd.f32 %v9578_v17, %v3043_v37  ;;  %v3786_v37 = vmax.f32 %v9581_v27, 0.0  ;;  %v9582_v17 = vld [vmem:[#allocation118_spill] sm:$0xff] }
 0x455   :  { %v8533_v0 = vpop.f32.mrf.mxu0  ;;  %v8535_v14 = vpop.f32.mrf.mxu1  ;;  %v3500_v4 = vadd.f32 %v8343_v31, %v3051_v29  ;;  %v3055_v31 = vadd.f32 %v8381_v54, %v7871_v38  ;;  %v9584_v54 = vld [vmem:[#allocation73_spill] sm:$0xff] }
 0x456   :  { %v3796_v24 = vmax.f32 %v3492_v30, 0.0 }
 0x457   :  { %v8541_v55 = vpop.f32.mrf.mxu0  ;;  %v8543_v5 = vpop.f32.mrf.mxu1  ;;  %4206 = vmatmul.mubr.f32.gmra.mxu0 %v3778_v60  ;;  %4601 = vmatmul.mubr.f32.gmra.mxu1 %v3788_v35  ;;  %v3057_v60 = vadd.f32 %v8389_v2, %v7861_v42  ;;  %v9579_v35 = vld [vmem:[#allocation46_spill] sm:$0xff] }
 0x458   :  { %9576 = vst [vmem:[#allocation125_spill] sm:$0xff] %v8543_v5  ;;  %4210 = vmatprep.mubr.f32.mxu0 %v3783_v36  ;;  %4605 = vmatprep.mubr.f32.mxu1 %v3793_v21  ;;  %v3787_v25 = vmax.f32 %v9579_v35, 0.0  ;;  %v3797_v36 = vmax.f32 %v3494_v32, 0.0  ;;  %v3498_v5 = vadd.f32 %v9582_v17, %v3049_v47  ;;  %v3790_v47 = vmax.f32 %v9584_v54, 0.0  ;;  %v9585_v17 = vld [vmem:[#allocation121_spill] sm:$0xff] }
 0x459   :  { %v8549_v41 = vpop.f32.mrf.mxu0  ;;  %v8551_v10 = vpop.f32.mrf.mxu1  ;;  %v3506_v32 = vadd.f32 %v8359_v19, %v3057_v60  ;;  %v3061_v19 = vadd.f32 %v8397_v1, %v7871_v38  ;;  %v9587_v1 = vld [vmem:[#allocation74_spill] sm:$0xff] }
 0x45a   :  { %v3800_v27 = vmax.f32 %v3498_v5, 0.0 }
 0x45b   :  { %v8557_v21 = vpop.f32.mrf.mxu0  ;;  %v8559_v53 = vpop.f32.mrf.mxu1  ;;  %4211 = vmatmul.mubr.f32.gmra.mxu0 %v3782_v40  ;;  %4606 = vmatmul.mubr.f32.gmra.mxu1 %v3792_v61  ;;  %v3063_v40 = vadd.f32 %v8405_v18, %v7861_v42  ;;  %v9583_v61 = vld [vmem:[#allocation54_spill] sm:$0xff] }
 0x45c   :  { %9580 = vst [vmem:[#allocation124_spill] sm:$0xff] %v8559_v53  ;;  %4215 = vmatprep.mubr.f32.mxu0 %v3787_v25  ;;  %4610 = vmatprep.mubr.f32.mxu1 %v3797_v36  ;;  %v3791_v35 = vmax.f32 %v9583_v61, 0.0  ;;  %v3801_v25 = vmax.f32 %v3500_v4, 0.0  ;;  %v3504_v53 = vadd.f32 %v9585_v17, %v3055_v31  ;;  %v3794_v31 = vmax.f32 %v9587_v1, 0.0 }
 0x45d   :  { %v8565_v2 = vpop.f32.mrf.mxu0  ;;  %v8567_v29 = vpop.f32.mrf.mxu1  ;;  %v3512_v4 = vadd.f32 %v8375_v26, %v3063_v40  ;;  %v3510_v17 = vadd.f32 %v8367_v46, %v3061_v19  ;;  %v3067_v26 = vadd.f32 %v8413_v62, %v7871_v38  ;;  %v9589_v46 = vld [vmem:[#allocation57_spill] sm:$0xff] }
 0x45e   :  { %v3804_v54 = vmax.f32 %v3504_v53, 0.0  ;;  %v3798_v62 = vmax.f32 %v9589_v46, 0.0 }
 0x45f   :  { %v8573_v36 = vpop.f32.mrf.mxu0  ;;  %v8575_v30 = vpop.f32.mrf.mxu1  ;;  %4216 = vmatmul.mubr.f32.gmra.mxu0 %v3786_v37  ;;  %4611 = vmatmul.mubr.f32.gmra.mxu1 %v3796_v24  ;;  %v3069_v37 = vadd.f32 %v8421_v39, %v7861_v42  ;;  %v9586_v24 = vld [vmem:[#allocation53_spill] sm:$0xff]  ;;  %v3808_v19 = vmax.f32 %v3510_v17, 0.0  ;;  %v3516_v1 = vadd.f32 %v8383_v33, %v3067_v26  ;;  %v9591_v33 = vld [vmem:[#allocation59_spill] sm:$0xff] }
 0x460   :  { %4220 = vmatprep.mubr.f32.mxu0 %v3791_v35  ;;  %4615 = vmatprep.mubr.f32.mxu1 %v3801_v25  ;;  %v3795_v61 = vmax.f32 %v9586_v24, 0.0  ;;  %v3805_v35 = vmax.f32 %v3506_v32, 0.0 }
 0x461   :  { %v8581_v18 = vpop.f32.mrf.mxu0  ;;  %v8583_v60 = vpop.f32.mrf.mxu1  ;;  %v3518_v32 = vadd.f32 %v8391_v13, %v3069_v37  ;;  %v3073_v13 = vadd.f32 %v8429_v28, %v7871_v38  ;;  %v3802_v28 = vmax.f32 %v9591_v33, 0.0  ;;  %v3812_v26 = vmax.f32 %v3516_v1, 0.0 }
 0x463   :  { %v8589_v25 = vpop.f32.mrf.mxu0  ;;  %v8591_v5 = vpop.f32.mrf.mxu1  ;;  %4221 = vmatmul.mubr.f32.gmra.mxu0 %v3790_v47  ;;  %4616 = vmatmul.mubr.f32.gmra.mxu1 %v3800_v27  ;;  %v3075_v47 = vadd.f32 %v8437_v50, %v7861_v42  ;;  %v9588_v27 = vld [vmem:[#allocation58_spill] sm:$0xff]  ;;  %v3522_v46 = vadd.f32 %v8399_v3, %v3073_v13  ;;  %v9593_v3 = vld [vmem:[#allocation60_spill] sm:$0xff] }
 0x464   :  { %4225 = vmatprep.mubr.f32.mxu0 %v3795_v61  ;;  %4620 = vmatprep.mubr.f32.mxu1 %v3805_v35  ;;  %v3799_v24 = vmax.f32 %v9588_v27, 0.0  ;;  %v3809_v61 = vmax.f32 %v3512_v4, 0.0 }
 0x465   :  { %v8597_v39 = vpop.f32.mrf.mxu0  ;;  %v8599_v40 = vpop.f32.mrf.mxu1  ;;  %v3524_v4 = vadd.f32 %v8407_v57, %v3075_v47  ;;  %v3079_v57 = vadd.f32 %v8445_v56, %v7871_v38  ;;  %v3806_v56 = vmax.f32 %v9593_v3, 0.0  ;;  %v3816_v13 = vmax.f32 %v3522_v46, 0.0 }
 0x467   :  { %v8605_v35 = vpop.f32.mrf.mxu0  ;;  %v8607_v53 = vpop.f32.mrf.mxu1  ;;  %4226 = vmatmul.mubr.f32.gmra.mxu0 %v3794_v31  ;;  %4621 = vmatmul.mubr.f32.gmra.mxu1 %v3804_v54  ;;  %v3081_v31 = vadd.f32 %v8453_v51, %v7861_v42  ;;  %v9590_v54 = vld [vmem:[#allocation61_spill] sm:$0xff]  ;;  %v3528_v33 = vadd.f32 %v8415_v16, %v3079_v57  ;;  %v9595_v16 = vld [vmem:[#allocation83_spill] sm:$0xff] }
 0x468   :  { %4230 = vmatprep.mubr.f32.mxu0 %v3799_v24  ;;  %4625 = vmatprep.mubr.f32.mxu1 %v3809_v61  ;;  %v3803_v27 = vmax.f32 %v9590_v54, 0.0  ;;  %v3813_v24 = vmax.f32 %v3518_v32, 0.0 }
 0x469   :  { %v8613_v50 = vpop.f32.mrf.mxu0  ;;  %v8615_v37 = vpop.f32.mrf.mxu1  ;;  %v3530_v32 = vadd.f32 %v8423_v52, %v3081_v31  ;;  %v3085_v52 = vadd.f32 %v8461_v43, %v7871_v38  ;;  %v3810_v43 = vmax.f32 %v9595_v16, 0.0  ;;  %v3820_v57 = vmax.f32 %v3528_v33, 0.0 }
 0x46b   :  { %v8621_v61 = vpop.f32.mrf.mxu0  ;;  %v8623_v17 = vpop.f32.mrf.mxu1  ;;  %4231 = vmatmul.mubr.f32.gmra.mxu0 %v3798_v62  ;;  %4626 = vmatmul.mubr.f32.gmra.mxu1 %v3808_v19  ;;  %v3087_v62 = vadd.f32 %v8469_v59, %v7861_v42  ;;  %v9592_v19 = vld [vmem:[#allocation62_spill] sm:$0xff]  ;;  %v3534_v3 = vadd.f32 %v8431_v23, %v3085_v52 }
 0x46c   :  { %4235 = vmatprep.mubr.f32.mxu0 %v3803_v27  ;;  %4630 = vmatprep.mubr.f32.mxu1 %v3813_v24  ;;  %v3807_v54 = vmax.f32 %v9592_v19, 0.0  ;;  %v3817_v27 = vmax.f32 %v3524_v4, 0.0  ;;  %v9597_v23 = vld [vmem:[#allocation86_spill] sm:$0xff] }
 0x46d   :  { %v8629_v51 = vpop.f32.mrf.mxu0  ;;  %v8631_v47 = vpop.f32.mrf.mxu1  ;;  %v3536_v4 = vadd.f32 %v8439_v48, %v3087_v62  ;;  %v3091_v48 = vadd.f32 %v8477_v6, %v7871_v38  ;;  %v3814_v6 = vmax.f32 %v9597_v23, 0.0  ;;  %v3824_v52 = vmax.f32 %v3534_v3, 0.0 }
 0x46f   :  { %v8637_v24 = vpop.f32.mrf.mxu0  ;;  %v8639_v1 = vpop.f32.mrf.mxu1  ;;  %4236 = vmatmul.mubr.f32.gmra.mxu0 %v3802_v28  ;;  %4631 = vmatmul.mubr.f32.gmra.mxu1 %v3812_v26  ;;  %v3093_v28 = vadd.f32 %v8485_v12, %v7861_v42  ;;  %v9594_v26 = vld [vmem:[#allocation64_spill] sm:$0xff]  ;;  %v3540_v16 = vadd.f32 %v8447_v7, %v3091_v48  ;;  %v9600_v7 = vld [vmem:[#allocation67_spill] sm:$0xff] }
 0x470   :  { %4240 = vmatprep.mubr.f32.mxu0 %v3807_v54  ;;  %4635 = vmatprep.mubr.f32.mxu1 %v3817_v27  ;;  %v3811_v19 = vmax.f32 %v9594_v26, 0.0  ;;  %v3821_v54 = vmax.f32 %v3530_v32, 0.0 }
 0x471   :  { %v8645_v59 = vpop.f32.mrf.mxu0  ;;  %v8647_v31 = vpop.f32.mrf.mxu1  ;;  %v3542_v32 = vadd.f32 %v8455_v44, %v3093_v28  ;;  %v3097_v44 = vadd.f32 %v8493_v34, %v7871_v38  ;;  %v3818_v34 = vmax.f32 %v9600_v7, 0.0  ;;  %v3828_v48 = vmax.f32 %v3540_v16, 0.0  ;;  %v9604_v7 = vld [vmem:[#allocation119_spill] sm:$0xff] }
 0x473   :  { %v8653_v27 = vpop.f32.mrf.mxu0  ;;  %v8655_v46 = vpop.f32.mrf.mxu1  ;;  %4241 = vmatmul.mubr.f32.gmra.mxu0 %v3806_v56  ;;  %4636 = vmatmul.mubr.f32.gmra.mxu1 %v3816_v13  ;;  %v3099_v56 = vadd.f32 %v8501_v63, %v7861_v42  ;;  %v9596_v13 = vld [vmem:[#allocation65_spill] sm:$0xff]  ;;  %v3546_v23 = vadd.f32 %v8463_v15, %v3097_v44 }
 0x474   :  { %4245 = vmatprep.mubr.f32.mxu0 %v3811_v19  ;;  %4640 = vmatprep.mubr.f32.mxu1 %v3821_v54  ;;  %v3815_v26 = vmax.f32 %v9596_v13, 0.0  ;;  %v3825_v19 = vmax.f32 %v3536_v4, 0.0  ;;  %v9603_v15 = vld [vmem:[#allocation69_spill] sm:$0xff] }
 0x475   :  { %v8661_v12 = vpop.f32.mrf.mxu0  ;;  %v8663_v62 = vpop.f32.mrf.mxu1  ;;  %v3548_v4 = vadd.f32 %v8471_v8, %v3099_v56  ;;  %v3103_v8 = vadd.f32 %v8509_v45, %v7871_v38  ;;  %v3822_v45 = vmax.f32 %v9603_v15, 0.0  ;;  %v3832_v44 = vmax.f32 %v3546_v23, 0.0 }
 0x477   :  { %v8669_v54 = vpop.f32.mrf.mxu0  ;;  %v8671_v33 = vpop.f32.mrf.mxu1  ;;  %4246 = vmatmul.mubr.f32.gmra.mxu0 %v3810_v43  ;;  %4641 = vmatmul.mubr.f32.gmra.mxu1 %v3820_v57  ;;  %v3105_v43 = vadd.f32 %v8517_v20, %v7861_v42  ;;  %v9598_v57 = vld [vmem:[#allocation68_spill] sm:$0xff] }
 0x478   :  { %4250 = vmatprep.mubr.f32.mxu0 %v3815_v26  ;;  %4645 = vmatprep.mubr.f32.mxu1 %v3825_v19  ;;  %v3819_v13 = vmax.f32 %v9598_v57, 0.0  ;;  %v3829_v26 = vmax.f32 %v3542_v32, 0.0 }
 0x479   :  { %v8677_v63 = vpop.f32.mrf.mxu0  ;;  %v8679_v28 = vpop.f32.mrf.mxu1  ;;  %v3554_v32 = vadd.f32 %v8487_v9, %v3105_v43  ;;  %v3109_v9 = vadd.f32 %v8525_v49, %v7871_v38 }
 0x47b   :  { %v8685_v19 = vpop.f32.mrf.mxu0  ;;  %v8687_v3 = vpop.f32.mrf.mxu1  ;;  %4251 = vmatmul.mubr.f32.gmra.mxu0 %v3814_v6  ;;  %4646 = vmatmul.mubr.f32.gmra.mxu1 %v3824_v52  ;;  %v3111_v6 = vadd.f32 %v8533_v0, %v7861_v42  ;;  %v9602_v52 = vld [vmem:[#allocation71_spill] sm:$0xff] }
 0x47c   :  { %9599 = vst [vmem:[#allocation127_spill] sm:$0xff] %v8687_v3  ;;  %4255 = vmatprep.mubr.f32.mxu0 %v3819_v13  ;;  %4650 = vmatprep.mubr.f32.mxu1 %v3829_v26  ;;  %v3823_v57 = vmax.f32 %v9602_v52, 0.0  ;;  %v3833_v13 = vmax.f32 %v3548_v4, 0.0  ;;  %v3552_v3 = vadd.f32 %v9604_v7, %v3103_v8  ;;  %v9605_v52 = vld [vmem:[#allocation72_spill] sm:$0xff]  ;;  %v9607_v8 = vld [vmem:[#allocation70_spill] sm:$0xff] }
 0x47d   :  { %v8693_v20 = vpop.f32.mrf.mxu0  ;;  %v8695_v56 = vpop.f32.mrf.mxu1  ;;  %v3560_v4 = vadd.f32 %v8503_v22, %v3111_v6  ;;  %v3826_v49 = vmax.f32 %v9607_v8, 0.0  ;;  %v9608_v7 = vld [vmem:[#allocation122_spill] sm:$0xff]  ;;  %v3115_v22 = vadd.f32 %v8541_v55, %v7871_v38  ;;  %v9610_v55 = vld [vmem:[#allocation93_spill] sm:$0xff] }
 0x47e   :  { %9601 = vst [vmem:[#allocation128_spill] sm:$0xff] %v8695_v56  ;;  %v3836_v15 = vmax.f32 %v3552_v3, 0.0  ;;  %v3830_v8 = vmax.f32 %v9610_v55, 0.0 }
 0x47f   :  { %v8701_v26 = vpop.f32.mrf.mxu0  ;;  %4256 = vmatmul.mubr.f32.gmra.mxu0 %v3818_v34  ;;  %v4412_v16 = vpop.f32.mrf.mxu1  ;;  %4651 = vmatmul.mubr.f32.gmra.mxu1 %v3828_v48  ;;  %v3117_v34 = vadd.f32 %v8549_v41, %v7861_v42  ;;  %v3827_v48 = vmax.f32 %v9605_v52, 0.0  ;;  %v9609_v52 = vld [vmem:[#allocation75_spill] sm:$0xff]  ;;  %v3564_v56 = vadd.f32 %v8511_v58, %v3115_v22 }
 0x480   :  { %4260 = vmatprep.mubr.f32.mxu0 %v3823_v57  ;;  %4655 = vmatprep.mubr.f32.mxu1 %v3833_v13  ;;  %v3837_v57 = vmax.f32 %v3554_v32, 0.0  ;;  %v8724_v32 = vld [vmem:[%s8948_s8] ss:$0 sm:$0xff]  ;;  %v3831_v3 = vmax.f32 %v9609_v52, 0.0  ;;  %v9611_v52 = vld [vmem:[#allocation76_spill] sm:$0xff] }
 0x481   :  { %v8707_v43 = vpop.f32.mrf.mxu0  ;;  %v4414_v0 = vpop.f32.mrf.mxu1 }
 0x482   :  { %v3558_v0 = vadd.f32 %v9608_v7, %v3109_v9 }
 0x483   :  { %v8713_v13 = vpop.f32.mrf.mxu0  ;;  %4261 = vmatmul.mubr.f32.gmra.mxu0 %v3822_v45  ;;  %v4417_v23 = vpop.f32.mrf.mxu1  ;;  %4656 = vmatmul.mubr.f32.gmra.mxu1 %v3832_v44  ;;  %v3566_v45 = vadd.f32 %v8519_v11, %v3117_v34  ;;  %v3123_v44 = vadd.f32 %v8565_v2, %v7861_v42  ;;  %v3121_v11 = vadd.f32 %v8557_v21, %v7871_v38  ;;  %v3844_v21 = vmax.f32 %v3564_v56, 0.0  ;;  %v9615_v56 = vld [vmem:[#allocation77_spill] sm:$0xff] }
 0x484   :  { %9606 = vst [vmem:[#allocation131_spill] sm:$0xff] %v8713_v13  ;;  %4265 = vmatprep.mubr.f32.mxu0 %v3827_v48  ;;  %4660 = vmatprep.mubr.f32.mxu1 %v3837_v57  ;;  %v3841_v48 = vmax.f32 %v3560_v4, 0.0  ;;  %v3835_v4 = vmax.f32 %v9611_v52, 0.0 }
 0x485   :  { %v8719_v6 = vpop.f32.mrf.mxu0  ;;  %v4419_v41 = vpop.f32.mrf.mxu1  ;;  %v3845_v13 = vmax.f32 %v3566_v45, 0.0 }
 0x486   :  { %v3840_v41 = vmax.f32 %v3558_v0, 0.0  ;;  %v9612_v0 = vld [vmem:[#allocation95_spill] sm:$0xff] }
 0x487   :  { %v4027_v9 = vpop.f32.mrf.mxu0  ;;  %4266 = vmatmul.mubr.f32.gmra.mxu0 %v3826_v49  ;;  %v4422_v57 = vpop.f32.mrf.mxu1  ;;  %4661 = vmatmul.mubr.f32.gmra.mxu1 %v3836_v15  ;;  %v3572_v49 = vadd.f32 %v8535_v14, %v3123_v44  ;;  %v3129_v15 = vadd.f32 %v8581_v18, %v7861_v42  ;;  %v3834_v58 = vmax.f32 %v9612_v0, 0.0  ;;  %v3127_v14 = vadd.f32 %v8573_v36, %v7871_v38  ;;  %v9616_v0 = vld [vmem:[#allocation125_spill] sm:$0xff] }
 0x488   :  { %v4028_v7 = vadd.f32 %v8724_v32, %v4027_v9  ;;  %4270 = vmatprep.mubr.f32.mxu0 %v3831_v3  ;;  %4665 = vmatprep.mubr.f32.mxu1 %v3841_v48  ;;  %v9613_v48 = vld [vmem:[#allocation120_spill] sm:$0xff] }
 0x489   :  { %v4029_v2 = vpop.f32.mrf.mxu0  ;;  %v4424_v34 = vpop.f32.mrf.mxu1 }
 0x48a   :  { %v4413_v55 = vadd.f32 %v4412_v16, %v4028_v7  ;;  %v3570_v2 = vadd.f32 %v9613_v48, %v3121_v11  ;;  %v9614_v16 = vld [vmem:[#allocation78_spill] sm:$0xff]  ;;  %v3135_v7 = vadd.f32 %v8597_v39, %v7861_v42  ;;  %v3849_v34 = vmax.f32 %v3572_v49, 0.0  ;;  %v9617_v49 = vld [vmem:[#allocation79_spill] sm:$0xff] }
 0x48b   :  { %v4032_v9 = vpop.f32.mrf.mxu0  ;;  %4271 = vmatmul.mubr.f32.gmra.mxu0 %v3830_v8  ;;  %v4427_v3 = vpop.f32.mrf.mxu1  ;;  %4666 = vmatmul.mubr.f32.gmra.mxu1 %v3840_v41  ;;  %v3839_v45 = vmax.f32 %v9614_v16, 0.0  ;;  %v3578_v8 = vadd.f32 %v8551_v10, %v3129_v15  ;;  %v3838_v11 = vmax.f32 %v9615_v56, 0.0  ;;  %v3576_v48 = vadd.f32 %v9616_v0, %v3127_v14  ;;  %v9621_v0 = vld [vmem:[#allocation82_spill] sm:$0xff] }
 0x48c   :  { %v4033_v22 = vadd.f32 %v8724_v32, %v4032_v9  ;;  %4275 = vmatprep.mubr.f32.mxu0 %v3835_v4  ;;  %4670 = vmatprep.mubr.f32.mxu1 %v3845_v13  ;;  %v3848_v9 = vmax.f32 %v3570_v2, 0.0  ;;  %v3133_v10 = vadd.f32 %v8589_v25, %v7871_v38  ;;  %v3843_v15 = vmax.f32 %v9617_v49, 0.0  ;;  %v9618_v2 = vld [vmem:[#allocation81_spill] sm:$0xff] }
 0x48d   :  { %v4034_v44 = vpop.f32.mrf.mxu0  ;;  %v4429_v18 = vpop.f32.mrf.mxu1  ;;  %v3842_v14 = vmax.f32 %v9618_v2, 0.0  ;;  %v3147_v56 = vadd.f32 %v8629_v51, %v7861_v42  ;;  %v9622_v49 = vld [vmem:[#allocation85_spill] sm:$0xff] }
 0x48e   :  { %v4418_v41 = vadd.f32 %v4417_v23, %v4033_v22  ;;  %v3141_v22 = vadd.f32 %v8613_v50, %v7861_v42 }
 0x48f   :  { %v4037_v52 = vpop.f32.mrf.mxu0  ;;  %4276 = vmatmul.mubr.f32.gmra.mxu0 %v3834_v58  ;;  %v4432_v13 = vpop.f32.mrf.mxu1  ;;  %4671 = vmatmul.mubr.f32.gmra.mxu1 %v3844_v21  ;;  %v3584_v58 = vadd.f32 %v8567_v29, %v3135_v7  ;;  %v3853_v21 = vmax.f32 %v3578_v8, 0.0  ;;  %v3139_v29 = vadd.f32 %v8605_v35, %v7871_v38  ;;  %v9620_v8 = vld [vmem:[#allocation80_spill] sm:$0xff] }
 0x490   :  { %v4731_v4 = vmax.f32 %v4413_v55, %v4418_v41  ;;  %v4038_v36 = vadd.f32 %v8724_v32, %v4037_v52  ;;  %4280 = vmatprep.mubr.f32.mxu0 %v3839_v45  ;;  %4675 = vmatprep.mubr.f32.mxu1 %v3849_v34  ;;  %v3852_v45 = vmax.f32 %v3576_v48, 0.0  ;;  %v9619_v41 = vld [vmem:[#allocation124_spill] sm:$0xff]  ;;  %v3847_v7 = vmax.f32 %v9620_v8, 0.0 }
 0x491   :  { %v4039_v39 = vpop.f32.mrf.mxu0  ;;  %v4434_v23 = vpop.f32.mrf.mxu1  ;;  %v3582_v34 = vadd.f32 %v9619_v41, %v3133_v10  ;;  %v3590_v52 = vadd.f32 %v8583_v60, %v3141_v22  ;;  %v3846_v48 = vmax.f32 %v9621_v0, 0.0  ;;  %v3145_v60 = vadd.f32 %v8621_v61, %v7871_v38  ;;  %v9626_v0 = vld [vmem:[#allocation88_spill] sm:$0xff] }
 0x492   :  { %v4423_v55 = vadd.f32 %v4422_v57, %v4038_v36  ;;  %v3588_v23 = vadd.f32 %v8575_v30, %v3139_v29  ;;  %v3153_v22 = vadd.f32 %v8645_v59, %v7861_v42  ;;  %v3159_v29 = vadd.f32 %v8661_v12, %v7861_v42 }
 0x493   :  { %v4042_v44 = vpop.f32.mrf.mxu0  ;;  %4281 = vmatmul.mubr.f32.gmra.mxu0 %v3838_v11  ;;  %v4437_v18 = vpop.f32.mrf.mxu1  ;;  %4676 = vmatmul.mubr.f32.gmra.mxu1 %v3848_v9  ;;  %v3856_v39 = vmax.f32 %v3582_v34, 0.0  ;;  %v3157_v12 = vadd.f32 %v8653_v27, %v7871_v38 }
 0x494   :  { %v4732_v16 = vmax.f32 %v4731_v4, %v4423_v55  ;;  %v4043_v25 = vadd.f32 %v8724_v32, %v4042_v44  ;;  %4285 = vmatprep.mubr.f32.mxu0 %v3843_v15  ;;  %4680 = vmatprep.mubr.f32.mxu1 %v3853_v21  ;;  %v3857_v4 = vmax.f32 %v3584_v58, 0.0  ;;  %v3851_v15 = vmax.f32 %v9622_v49, 0.0 }
 0x495   :  { %v4044_v50 = vpop.f32.mrf.mxu0  ;;  %v4439_v57 = vpop.f32.mrf.mxu1  ;;  %v3596_v58 = vadd.f32 %v8599_v40, %v3147_v56  ;;  %v3861_v21 = vmax.f32 %v3590_v52, 0.0  ;;  %v3860_v61 = vmax.f32 %v3588_v23, 0.0  ;;  %v3151_v40 = vadd.f32 %v8637_v24, %v7871_v38 }
 0x496   :  { %v4428_v11 = vadd.f32 %v4427_v3, %v4043_v25  ;;  %v3594_v25 = vadd.f32 %v8591_v5, %v3145_v60  ;;  %v3602_v34 = vadd.f32 %v8615_v37, %v3153_v22  ;;  %v9625_v5 = vld [vmem:[#allocation104_spill] sm:$0xff] }
 0x497   :  { %v4047_v36 = vpop.f32.mrf.mxu0  ;;  %4286 = vmatmul.mubr.f32.gmra.mxu0 %v3842_v14  ;;  %v4442_v9 = vpop.f32.mrf.mxu1  ;;  %4681 = vmatmul.mubr.f32.gmra.mxu1 %v3852_v45  ;;  %v9623_v14 = vld [vmem:[#allocation103_spill] sm:$0xff]  ;;  %v3865_v57 = vmax.f32 %v3596_v58, 0.0  ;;  %v3854_v56 = vmax.f32 %v9625_v5, 0.0  ;;  %v3600_v37 = vadd.f32 %v8607_v53, %v3151_v40 }
 0x498   :  { %v4733_v10 = vmax.f32 %v4732_v16, %v4428_v11  ;;  %v4048_v35 = vadd.f32 %v8724_v32, %v4047_v36  ;;  %4290 = vmatprep.mubr.f32.mxu0 %v3847_v7  ;;  %4685 = vmatprep.mubr.f32.mxu1 %v3857_v4  ;;  %v3850_v30 = vmax.f32 %v9623_v14, 0.0  ;;  %v3864_v4 = vmax.f32 %v3594_v25, 0.0  ;;  %v9627_v53 = vld [vmem:[#allocation87_spill] sm:$0xff] }
 0x499   :  { %v4049_v51 = vpop.f32.mrf.mxu0  ;;  %v4444_v3 = vpop.f32.mrf.mxu1  ;;  %v3869_v60 = vmax.f32 %v3602_v34, 0.0  ;;  %v3868_v22 = vmax.f32 %v3600_v37, 0.0  ;;  %v9628_v14 = vld [vmem:[#allocation91_spill] sm:$0xff] }
 0x49a   :  { %v4433_v55 = vadd.f32 %v4432_v13, %v4048_v35  ;;  %v9624_v13 = vld [vmem:[#allocation84_spill] sm:$0xff]  ;;  %v4734_v8 = vrot.slane %v4733_v10, 4  ;;  %v3608_v35 = vadd.f32 %v8631_v47, %v3159_v29  ;;  %v3606_v47 = vadd.f32 %v8623_v17, %v3157_v12  ;;  %v9629_v17 = vld [vmem:[#allocation89_spill] sm:$0xff] }
 0x49b   :  { %v4052_v44 = vpop.f32.mrf.mxu0  ;;  %4291 = vmatmul.mubr.f32.gmra.mxu0 %v3846_v48  ;;  %v4447_v2 = vpop.f32.mrf.mxu1  ;;  %4686 = vmatmul.mubr.f32.gmra.mxu1 %v3856_v39  ;;  %v3855_v41 = vmax.f32 %v9624_v13, 0.0  ;;  %v3859_v48 = vmax.f32 %v9626_v0, 0.0  ;;  %v3165_v39 = vadd.f32 %v8677_v63, %v7861_v42  ;;  %v3163_v63 = vadd.f32 %v8669_v54, %v7871_v38 }
 0x49c   :  { %v4053_v16 = vadd.f32 %v8724_v32, %v4052_v44  ;;  %4295 = vmatprep.mubr.f32.mxu0 %v3851_v15  ;;  %4690 = vmatprep.mubr.f32.mxu1 %v3861_v21  ;;  %v4735_v51 = vmax.f32 %v4733_v10, %v4734_v8  ;;  %v3858_v15 = vmax.f32 %v9627_v53, 0.0 }
 0x49d   :  { %v4054_v45 = vpop.f32.mrf.mxu0  ;;  %v4449_v59 = vpop.f32.mrf.mxu1  ;;  %v3614_v21 = vadd.f32 %v8647_v31, %v3165_v39  ;;  %v3612_v31 = vadd.f32 %v8639_v1, %v3163_v63  ;;  %v3183_v39 = vadd.f32 %v8719_v6, %v7861_v42  ;;  %v9635_v63 = vld [vmem:[#allocation96_spill] sm:$0xff] }
 0x49e   :  { %v4438_v50 = vadd.f32 %v4437_v18, %v4053_v16  ;;  %v3873_v16 = vmax.f32 %v3608_v35, 0.0  ;;  %v3862_v45 = vmax.f32 %v9629_v17, 0.0 }
 0x49f   :  { %v4057_v7 = vpop.f32.mrf.mxu0  ;;  %4296 = vmatmul.mubr.f32.gmra.mxu0 %v3850_v30  ;;  %v4452_v52 = vpop.f32.mrf.mxu1  ;;  %4691 = vmatmul.mubr.f32.gmra.mxu1 %v3860_v61  ;;  %v3863_v30 = vmax.f32 %v9628_v14, 0.0  ;;  %v4736_v61 = vrot.slane %v4735_v51, 2  ;;  %v3877_v5 = vmax.f32 %v3614_v21, 0.0 }
 0x4a0   :  { %v4740_v11 = vmax.f32 %v4433_v55, %v4438_v50  ;;  %v4058_v24 = vadd.f32 %v8724_v32, %v4057_v7  ;;  %4300 = vmatprep.mubr.f32.mxu0 %v3855_v41  ;;  %4695 = vmatprep.mubr.f32.mxu1 %v3865_v57  ;;  %v3872_v41 = vmax.f32 %v3606_v47, 0.0  ;;  %v3177_v57 = vadd.f32 %v8707_v43, %v7861_v42 }
 0x4a1   :  { %v4059_v18 = vpop.f32.mrf.mxu0  ;;  %v4454_v36 = vpop.f32.mrf.mxu1 }
 0x4a2   :  { %v4443_v23 = vadd.f32 %v4442_v9, %v4058_v24  ;;  %v3171_v9 = vadd.f32 %v8693_v20, %v7861_v42  ;;  %v9630_v20 = vld [vmem:[#allocation92_spill] sm:$0xff]  ;;  %v3876_v18 = vmax.f32 %v3612_v31, 0.0  ;;  %v3626_v35 = vadd.f32 %v8679_v28, %v3177_v57  ;;  %v9634_v42 = vld [vmem:[#allocation131_spill] sm:$0xff] }
 0x4a3   :  { %v4062_v3 = vpop.f32.mrf.mxu0  ;;  %4301 = vmatmul.mubr.f32.gmra.mxu0 %v3854_v56  ;;  %v4457_v49 = vpop.f32.mrf.mxu1  ;;  %4696 = vmatmul.mubr.f32.gmra.mxu1 %v3864_v4  ;;  %v3867_v13 = vmax.f32 %v9630_v20, 0.0  ;;  %v4737_v56 = vmax.f32 %v4735_v51, %v4736_v61  ;;  %v9631_v4 = vld [vmem:[#allocation90_spill] sm:$0xff]  ;;  %v3181_v6 = vadd.f32 %v9634_v42, %v7871_v38 }
 0x4a4   :  { %v4741_v58 = vmax.f32 %v4740_v11, %v4443_v23  ;;  %v4063_v27 = vadd.f32 %v8724_v32, %v4062_v3  ;;  %4305 = vmatprep.mubr.f32.mxu0 %v3859_v48  ;;  %4700 = vmatprep.mubr.f32.mxu1 %v3869_v60  ;;  %v3620_v34 = vadd.f32 %v8663_v62, %v3171_v9  ;;  %v3866_v1 = vmax.f32 %v9631_v4, 0.0  ;;  %v9632_v62 = vld [vmem:[#allocation94_spill] sm:$0xff] }
 0x4a5   :  { %v4064_v10 = vpop.f32.mrf.mxu0  ;;  %v4459_v55 = vpop.f32.mrf.mxu1  ;;  %v3871_v12 = vmax.f32 %v9632_v62, 0.0  ;;  %v4738_v51 = vrot.slane %v4737_v56, 1  ;;  %v3875_v9 = vmax.f32 %v9635_v63, 0.0  ;;  %v3885_v14 = vmax.f32 %v3626_v35, 0.0 }
 0x4a6   :  { %v4448_v44 = vadd.f32 %v4447_v2, %v4063_v27  ;;  %v3169_v2 = vadd.f32 %v8685_v19, %v7871_v38  ;;  %v3881_v48 = vmax.f32 %v3620_v34, 0.0  ;;  %v9636_v10 = vld [vmem:[#allocation128_spill] sm:$0xff] }
 0x4a7   :  { %v4067_v25 = vpop.f32.mrf.mxu0  ;;  %4306 = vmatmul.mubr.f32.gmra.mxu0 %v3858_v15  ;;  %v4462_v40 = vpop.f32.mrf.mxu1  ;;  %4701 = vmatmul.mubr.f32.gmra.mxu1 %v3868_v22  ;;  %v9633_v15 = vld [vmem:[#allocation113_spill] sm:$0xff]  ;;  %v3632_v55 = vadd.f32 %v9636_v10, %v3183_v39 }
 0x4a8   :  { %v4742_v59 = vmax.f32 %v4741_v58, %v4448_v44  ;;  %v4068_v54 = vadd.f32 %v8724_v32, %v4067_v25  ;;  %4310 = vmatprep.mubr.f32.mxu0 %v3863_v30  ;;  %4705 = vmatprep.mubr.f32.mxu1 %v3873_v16  ;;  %v3618_v43 = vadd.f32 %v8655_v46, %v3169_v2  ;;  %v3870_v46 = vmax.f32 %v9633_v15, 0.0  ;;  %v9639_v2 = vld [vmem:[#allocation98_spill] sm:$0xff] }
 0x4a9   :  { %v4069_v29 = vpop.f32.mrf.mxu0  ;;  %v4464_v50 = vpop.f32.mrf.mxu1  ;;  %v4739_v30 = vmax.f32 %v4737_v56, %v4738_v51  ;;  %v3879_v34 = vmax.f32 %v9639_v2, 0.0 }
 0x4aa   :  { %v4743_v8 = vrot.slane %v4742_v59, 4  ;;  %v4453_v7 = vadd.f32 %v4452_v52, %v4068_v54  ;;  %v3175_v52 = vadd.f32 %v8701_v26, %v7871_v38  ;;  %v3880_v22 = vmax.f32 %v3618_v43, 0.0  ;;  %v9637_v38 = vld [vmem:[#allocation115_spill] sm:$0xff] }
 0x4ab   :  { %v4072_v11 = vpop.f32.mrf.mxu0  ;;  %4311 = vmatmul.mubr.f32.gmra.mxu0 %v3862_v45  ;;  %v4467_v24 = vpop.f32.mrf.mxu1  ;;  %4706 = vmatmul.mubr.f32.gmra.mxu1 %v3872_v41  ;;  %v3874_v45 = vmax.f32 %v9637_v38, 0.0  ;;  %v9638_v54 = vld [vmem:[#allocation127_spill] sm:$0xff]  ;;  %v3889_v29 = vmax.f32 %v3632_v55, 0.0 }
 0x4ac   :  { %v4744_v37 = vmax.f32 %v4742_v59, %v4743_v8  ;;  %v4073_v19 = vadd.f32 %v8724_v32, %v4072_v11  ;;  %4315 = vmatprep.mubr.f32.mxu0 %v3867_v13  ;;  %4710 = vmatprep.mubr.f32.mxu1 %v3877_v5  ;;  %v3624_v28 = vadd.f32 %v8671_v33, %v3175_v52  ;;  %v9640_v5 = vld [vmem:[#allocation97_spill] sm:$0xff] }
 0x4ad   :  { %v4074_v36 = vpop.f32.mrf.mxu0  ;;  %v4469_v0 = vpop.f32.mrf.mxu1  ;;  %v3630_v20 = vadd.f32 %v9638_v54, %v3181_v6  ;;  %v3878_v56 = vmax.f32 %v9640_v5, 0.0 }
 0x4ae   :  { %v4745_v23 = vrot.slane %v4744_v37, 2  ;;  %v4458_v60 = vadd.f32 %v4457_v49, %v4073_v19  ;;  %v3884_v59 = vmax.f32 %v3624_v28, 0.0  ;;  %v9642_v36 = vld [vmem:[#allocation99_spill] sm:$0xff] }
 0x4af   :  { %v4077_v3 = vpop.f32.mrf.mxu0  ;;  %4316 = vmatmul.mubr.f32.gmra.mxu0 %v3866_v1  ;;  %v4472_v53 = vpop.f32.mrf.mxu1  ;;  %4711 = vmatmul.mubr.f32.gmra.mxu1 %v3876_v18  ;;  %v3888_v11 = vmax.f32 %v3630_v20, 0.0  ;;  %v3882_v0 = vmax.f32 %v9642_v36, 0.0 }
 0x4b0   :  { %v4746_v58 = vmax.f32 %v4744_v37, %v4745_v23  ;;  %v4749_v27 = vmax.f32 %v4453_v7, %v4458_v60  ;;  %v4078_v26 = vadd.f32 %v8724_v32, %v4077_v3  ;;  %4320 = vmatprep.mubr.f32.mxu0 %v3871_v12  ;;  %4715 = vmatprep.mubr.f32.mxu1 %v3881_v48  ;;  %v9643_v60 = vld [vmem:[#allocation102_spill] sm:$0xff] }
 0x4b1   :  { %v4079_v49 = vpop.f32.mrf.mxu0  ;;  %v4474_v47 = vpop.f32.mrf.mxu1  ;;  %v3887_v51 = vmax.f32 %v9643_v60, 0.0 }
 0x4b2   :  { %v4747_v21 = vrot.slane %v4746_v58, 1  ;;  %v4463_v44 = vadd.f32 %v4462_v40, %v4078_v26 }
 0x4b3   :  { %v4082_v16 = vpop.f32.mrf.mxu0  ;;  %4321 = vmatmul.mubr.f32.gmra.mxu0 %v3870_v46  ;;  %v4477_v61 = vpop.f32.mrf.mxu1  ;;  %4716 = vmatmul.mubr.f32.gmra.mxu1 %v3880_v22 }
 0x4b4   :  { %v4748_v25 = vmax.f32 %v4746_v58, %v4747_v21  ;;  %v4750_v33 = vmax.f32 %v4749_v27, %v4463_v44  ;;  %v4083_v17 = vadd.f32 %v8724_v32, %v4082_v16  ;;  %4325 = vmatprep.mubr.f32.mxu0 %v3875_v9  ;;  %4720 = vmatprep.mubr.f32.mxu1 %v3885_v14  ;;  %v9644_v27 = vld [vmem:[#allocation100_spill] sm:$0xff] }
 0x4b5   :  { %v4084_v13 = vpop.f32.mrf.mxu0  ;;  %v4479_v40 = vpop.f32.mrf.mxu1  ;;  %v3886_v26 = vmax.f32 %v9644_v27, 0.0 }
 0x4b6   :  { %v4892_v41 = vsel %vm4891_vm2, %v4748_v25, %v4739_v30  ;;  %v4468_v31 = vadd.f32 %v4467_v24, %v4083_v17  ;;  %v9641_v24 = vld [vmem:[#allocation101_spill] sm:$0xff] }
 0x4b7   :  { %v4087_v50 = vpop.f32.mrf.mxu0  ;;  %4326 = vmatmul.mubr.f32.gmra.mxu0 %v3874_v45  ;;  %v4482_v57 = vpop.f32.mrf.mxu1  ;;  %4721 = vmatmul.mubr.f32.gmra.mxu1 %v3884_v59  ;;  %v3883_v62 = vmax.f32 %v9641_v24, 0.0 }
 0x4b8   :  { %v4751_v8 = vmax.f32 %v4750_v33, %v4468_v31  ;;  %v4088_v7 = vadd.f32 %v8724_v32, %v4087_v50  ;;  %4330 = vmatprep.mubr.f32.mxu0 %v3879_v34  ;;  %4725 = vmatprep.mubr.f32.mxu1 %v3889_v29 }
 0x4b9   :  { %v4089_v4 = vpop.f32.mrf.mxu0  ;;  %v4484_v1 = vpop.f32.mrf.mxu1 }
 0x4ba   :  { %v4752_v37 = vrot.slane %v4751_v8, 4  ;;  %v4473_v19 = vadd.f32 %v4472_v53, %v4088_v7 }
 0x4bb   :  { %v4092_v12 = vpop.f32.mrf.mxu0  ;;  %4331 = vmatmul.mubr.f32.gmra.mxu0 %v3878_v56  ;;  %v4487_v18 = vpop.f32.mrf.mxu1  ;;  %4726 = vmatmul.mubr.f32.gmra.mxu1 %v3888_v11 }
 0x4bc   :  { %v4753_v43 = vmax.f32 %v4751_v8, %v4752_v37  ;;  %v4093_v52 = vadd.f32 %v8724_v32, %v4092_v12  ;;  %4335 = vmatprep.mubr.f32.mxu0 %v3883_v62 }
 0x4bd   :  { %v4094_v48 = vpop.f32.mrf.mxu0  ;;  %v4489_v35 = vpop.f32.mrf.mxu1 }
 0x4be   :  { %v4754_v39 = vrot.slane %v4753_v43, 2  ;;  %v4478_v23 = vadd.f32 %v4477_v61, %v4093_v52 }
 0x4bf   :  { %v4097_v3 = vpop.f32.mrf.mxu0  ;;  %4336 = vmatmul.mubr.f32.gmra.mxu0 %v3882_v0  ;;  %v8838_v53 = vpop.f32.mrf.mxu1 }
 0x4c0   :  { %v4755_v15 = vmax.f32 %v4753_v43, %v4754_v39  ;;  %v4758_v46 = vmax.f32 %v4473_v19, %v4478_v23  ;;  %v4098_v58 = vadd.f32 %v8724_v32, %v4097_v3  ;;  %4340 = vmatprep.mubr.f32.mxu0 %v3887_v51 }
 0x4c1   :  { %v4099_v22 = vpop.f32.mrf.mxu0  ;;  %v4494_v28 = vpop.f32.mrf.mxu1 }
 0x4c2   :  { %v4756_v42 = vrot.slane %v4755_v15, 1  ;;  %v4483_v6 = vadd.f32 %v4482_v57, %v4098_v58 }
 0x4c3   :  { %v4102_v49 = vpop.f32.mrf.mxu0  ;;  %4341 = vmatmul.mubr.f32.gmra.mxu0 %v3886_v26  ;;  %v8842_v47 = vpop.f32.mrf.mxu1 }
 0x4c4   :  { %v4757_v63 = vmax.f32 %v4755_v15, %v4756_v42  ;;  %v4759_v9 = vmax.f32 %v4758_v46, %v4483_v6  ;;  %v4103_v10 = vadd.f32 %v8724_v32, %v4102_v49 }
 0x4c5   :  { %v4104_v55 = vpop.f32.mrf.mxu0  ;;  %v4499_v21 = vpop.f32.mrf.mxu1 }
 0x4c6   :  { %v4894_v44 = vsel %vm4893_vm3, %v4757_v63, %v4892_v41  ;;  %v4488_v14 = vadd.f32 %v4487_v18, %v4103_v10 }
 0x4c7   :  { %v4107_v30 = vpop.f32.mrf.mxu0  ;;  %v8846_v16 = vpop.f32.mrf.mxu1 }
 0x4c8   :  { %v4760_v61 = vmax.f32 %v4759_v9, %v4488_v14  ;;  %v4108_v26 = vadd.f32 %v8724_v32, %v4107_v30 }
 0x4c9   :  { %v4109_v25 = vpop.f32.mrf.mxu0  ;;  %v4504_v33 = vpop.f32.mrf.mxu1 }
 0x4ca   :  { %v4761_v17 = vrot.slane %v4760_v61, 4  ;;  %v4493_v25 = vadd.f32 %v8838_v53, %v4108_v26 }
 0x4cb   :  { %v4112_v38 = vpop.f32.mrf.mxu0  ;;  %v8848_v45 = vpop.f32.mrf.mxu1 }
 0x4cc   :  { %v4762_v59 = vmax.f32 %v4760_v61, %v4761_v17  ;;  %v4113_v15 = vadd.f32 %v8724_v32, %v4112_v38 }
 0x4cd   :  { %v4114_v54 = vpop.f32.mrf.mxu0  ;;  %v4509_v20 = vpop.f32.mrf.mxu1 }
 0x4ce   :  { %v4763_v13 = vrot.slane %v4762_v59, 2  ;;  %v4498_v9 = vadd.f32 %v8842_v47, %v4113_v15 }
 0x4cf   :  { %v4117_v40 = vpop.f32.mrf.mxu0  ;;  %v4512_v31 = vpop.f32.mrf.mxu1 }
 0x4d0   :  { %v4764_v2 = vmax.f32 %v4762_v59, %v4763_v13  ;;  %v4118_v22 = vadd.f32 %v8724_v32, %v4117_v40  ;;  %v4767_v20 = vmax.f32 %v4493_v25, %v4498_v9 }
 0x4d1   :  { %v4119_v34 = vpop.f32.mrf.mxu0  ;;  %v4514_v41 = vpop.f32.mrf.mxu1 }
 0x4d2   :  { %v4765_v29 = vrot.slane %v4764_v2, 1  ;;  %v4503_v33 = vadd.f32 %v8846_v16, %v4118_v22 }
 0x4d3   :  { %v4122_v50 = vpop.f32.mrf.mxu0  ;;  %v4517_v57 = vpop.f32.mrf.mxu1 }
 0x4d4   :  { %v4766_v8 = vmax.f32 %v4764_v2, %v4765_v29  ;;  %v4123_v10 = vadd.f32 %v8724_v32, %v4122_v50 }
 0x4d5   :  { %v4124_v7 = vpop.f32.mrf.mxu0  ;;  %v4519_v5 = vpop.f32.mrf.mxu1 }
 0x4d6   :  { %v8851_v56 = vsel %vm4895_vm4, %v4766_v8, %v4894_v44  ;;  %v4508_v13 = vadd.f32 %v8848_v45, %v4123_v10  ;;  %v4768_v8 = vmax.f32 %v4767_v20, %v4503_v33 }
 0x4d7   :  { %v4127_v11 = vpop.f32.mrf.mxu0  ;;  %v4522_v4 = vpop.f32.mrf.mxu1 }
 0x4d8   :  { %v4128_v49 = vadd.f32 %v8724_v32, %v4127_v11 }
 0x4d9   :  { %v4129_v1 = vpop.f32.mrf.mxu0  ;;  %v4524_v37 = vpop.f32.mrf.mxu1 }
 0x4da   :  { %v4513_v54 = vadd.f32 %v4512_v31, %v4128_v49  ;;  %v4769_v1 = vmax.f32 %v4768_v8, %v4508_v13 }
 0x4db   :  { %v4132_v19 = vpop.f32.mrf.mxu0  ;;  %v4527_v24 = vpop.f32.mrf.mxu1 }
 0x4dc   :  { %v4133_v27 = vadd.f32 %v8724_v32, %v4132_v19 }
 0x4dd   :  { %v4134_v62 = vpop.f32.mrf.mxu0  ;;  %v4529_v12 = vpop.f32.mrf.mxu1 }
 0x4de   :  { %v4518_v14 = vadd.f32 %v4517_v57, %v4133_v27 }
 0x4df   :  { %v4137_v18 = vpop.f32.mrf.mxu0  ;;  %v4532_v43 = vpop.f32.mrf.mxu1 }
 0x4e0   :  { %v4138_v63 = vadd.f32 %v8724_v32, %v4137_v18  ;;  %v4776_v29 = vmax.f32 %v4513_v54, %v4518_v14  ;;  %v4770_v18 = vrot.slane %v4769_v1, 4 }
 0x4e1   :  { %v4139_v52 = vpop.f32.mrf.mxu0  ;;  %v4534_v36 = vpop.f32.mrf.mxu1 }
 0x4e2   :  { %v4523_v47 = vadd.f32 %v4522_v4, %v4138_v63 }
 0x4e3   :  { %v4142_v0 = vpop.f32.mrf.mxu0  ;;  %v4537_v48 = vpop.f32.mrf.mxu1 }
 0x4e4   :  { %v4143_v30 = vadd.f32 %v8724_v32, %v4142_v0  ;;  %v4777_v5 = vmax.f32 %v4776_v29, %v4523_v47 }
 0x4e5   :  { %v4144_v35 = vpop.f32.mrf.mxu0  ;;  %v4539_v39 = vpop.f32.mrf.mxu1 }
 0x4e6   :  { %v4528_v50 = vadd.f32 %v4527_v24, %v4143_v30 }
 0x4e7   :  { %v4147_v23 = vpop.f32.mrf.mxu0  ;;  %v4542_v60 = vpop.f32.mrf.mxu1 }
 0x4e8   :  { %v4148_v55 = vadd.f32 %v8724_v32, %v4147_v23  ;;  %v4778_v19 = vmax.f32 %v4777_v5, %v4528_v50  ;;  %v4771_v23 = vmax.f32 %v4769_v1, %v4770_v18 }
 0x4e9   :  { %v4149_v51 = vpop.f32.mrf.mxu0  ;;  %v4544_v3 = vpop.f32.mrf.mxu1 }
 0x4ea   :  { %v4533_v40 = vadd.f32 %v4532_v43, %v4148_v55  ;;  %v4779_v24 = vrot.slane %v4778_v19, 4 }
 0x4eb   :  { %v4152_v46 = vpop.f32.mrf.mxu0  ;;  %v4547_v58 = vpop.f32.mrf.mxu1 }
 0x4ec   :  { %v4153_v28 = vadd.f32 %v8724_v32, %v4152_v46  ;;  %v4780_v3 = vmax.f32 %v4778_v19, %v4779_v24 }
 0x4ed   :  { %v4154_v42 = vpop.f32.mrf.mxu0  ;;  %v4549_v6 = vpop.f32.mrf.mxu1 }
 0x4ee   :  { %v4538_v17 = vadd.f32 %v4537_v48, %v4153_v28  ;;  %v4772_v42 = vrot.slane %v4771_v23, 2  ;;  %v4781_v63 = vrot.slane %v4780_v3, 2 }
 0x4ef   :  { %v4157_v21 = vpop.f32.mrf.mxu0  ;;  %v4552_v44 = vpop.f32.mrf.mxu1 }
 0x4f0   :  { %v4158_v61 = vadd.f32 %v8724_v32, %v4157_v21  ;;  %v4785_v53 = vmax.f32 %v4533_v40, %v4538_v17  ;;  %v4773_v25 = vmax.f32 %v4771_v23, %v4772_v42 }
 0x4f1   :  { %v4159_v38 = vpop.f32.mrf.mxu0  ;;  %v4554_v59 = vpop.f32.mrf.mxu1 }
 0x4f2   :  { %v4543_v2 = vadd.f32 %v4542_v60, %v4158_v61  ;;  %v4782_v38 = vmax.f32 %v4780_v3, %v4781_v63 }
 0x4f3   :  { %v4162_v34 = vpop.f32.mrf.mxu0  ;;  %v4557_v41 = vpop.f32.mrf.mxu1 }
 0x4f4   :  { %v4163_v57 = vadd.f32 %v8724_v32, %v4162_v34  ;;  %v4786_v31 = vmax.f32 %v4785_v53, %v4543_v2  ;;  %v4774_v2 = vrot.slane %v4773_v25, 1  ;;  %v4783_v29 = vrot.slane %v4782_v38, 1 }
 0x4f5   :  { %v4164_v7 = vpop.f32.mrf.mxu0  ;;  %v4559_v16 = vpop.f32.mrf.mxu1 }
 0x4f6   :  { %v4548_v11 = vadd.f32 %v4547_v58, %v4163_v57 }
 0x4f7   :  { %v4167_v4 = vpop.f32.mrf.mxu0  ;;  %v4562_v37 = vpop.f32.mrf.mxu1 }
 0x4f8   :  { %v4787_v45 = vmax.f32 %v4786_v31, %v4548_v11  ;;  %v4168_v39 = vadd.f32 %v8724_v32, %v4167_v4  ;;  %v4775_v11 = vmax.f32 %v4773_v25, %v4774_v2  ;;  %v4784_v4 = vmax.f32 %v4782_v38, %v4783_v29 }
 0x4f9   :  { %v4169_v62 = vpop.f32.mrf.mxu0  ;;  %v4564_v12 = vpop.f32.mrf.mxu1 }
 0x4fa   :  { %v4788_v0 = vrot.slane %v4787_v45, 4  ;;  %v4553_v22 = vadd.f32 %v4552_v44, %v4168_v39  ;;  %v4898_v24 = vsel %vm4897_vm5, %v4775_v11, %v8851_v56 }
 0x4fb   :  { %v4172_v43 = vpop.f32.mrf.mxu0  ;;  %v4567_v52 = vpop.f32.mrf.mxu1  ;;  %v4900_v23 = vsel %vm4899_vm6, %v4784_v4, %v4898_v24 }
 0x4fc   :  { %v4173_v36 = vadd.f32 %v8724_v32, %v4172_v43  ;;  %v4789_v58 = vmax.f32 %v4787_v45, %v4788_v0 }
 0x4fd   :  { %v4174_v48 = vpop.f32.mrf.mxu0  ;;  %v4569_v35 = vpop.f32.mrf.mxu1 }
 0x4fe   :  { %v4558_v15 = vadd.f32 %v4557_v41, %v4173_v36  ;;  %v4790_v55 = vrot.slane %v4789_v58, 2 }
 0x4ff   :  { %v4177_v60 = vpop.f32.mrf.mxu0  ;;  %v4572_v51 = vpop.f32.mrf.mxu1 }
 0x500   :  { %v4178_v46 = vadd.f32 %v8724_v32, %v4177_v60  ;;  %v4794_v9 = vmax.f32 %v4553_v22, %v4558_v15  ;;  %v4791_v54 = vmax.f32 %v4789_v58, %v4790_v55 }
 0x501   :  { %v4179_v27 = vpop.f32.mrf.mxu0  ;;  %v4574_v26 = vpop.f32.mrf.mxu1 }
 0x502   :  { %v4563_v28 = vadd.f32 %v4562_v37, %v4178_v46  ;;  %v4792_v8 = vrot.slane %v4791_v54, 1 }
 0x503   :  { %v4182_v6 = vpop.f32.mrf.mxu0  ;;  %v4577_v49 = vpop.f32.mrf.mxu1 }
 0x504   :  { %v4183_v10 = vadd.f32 %v8724_v32, %v4182_v6  ;;  %v4795_v30 = vmax.f32 %v4794_v9, %v4563_v28  ;;  %v4793_v62 = vmax.f32 %v4791_v54, %v4792_v8 }
 0x505   :  { %v4184_v21 = vpop.f32.mrf.mxu0  ;;  %v4579_v14 = vpop.f32.mrf.mxu1 }
 0x506   :  { %v4568_v61 = vadd.f32 %v4567_v52, %v4183_v10  ;;  %v4902_v3 = vsel %vm4901_vm7, %v4793_v62, %v4900_v23 }
 0x507   :  { %v4187_v33 = vpop.f32.mrf.mxu0  ;;  %v4582_v17 = vpop.f32.mrf.mxu1 }
 0x508   :  { %v4796_v59 = vmax.f32 %v4795_v30, %v4568_v61  ;;  %v4188_v44 = vadd.f32 %v8724_v32, %v4187_v33 }
 0x509   :  { %v4189_v47 = vpop.f32.mrf.mxu0  ;;  %v4584_v20 = vpop.f32.mrf.mxu1 }
 0x50a   :  { %v4797_v13 = vrot.slane %v4796_v59, 4  ;;  %v4573_v40 = vadd.f32 %v4572_v51, %v4188_v44 }
 0x50b   :  { %v4192_v34 = vpop.f32.mrf.mxu0  ;;  %v4587_v41 = vpop.f32.mrf.mxu1 }
 0x50c   :  { %v4798_v50 = vmax.f32 %v4796_v59, %v4797_v13  ;;  %v4193_v57 = vadd.f32 %v8724_v32, %v4192_v34 }
 0x50d   :  { %v4194_v53 = vpop.f32.mrf.mxu0  ;;  %v4589_v7 = vpop.f32.mrf.mxu1 }
 0x50e   :  { %v4799_v16 = vrot.slane %v4798_v50, 2  ;;  %v4578_v5 = vadd.f32 %v4577_v49, %v4193_v57 }
 0x50f   :  { %v4197_v1 = vpop.f32.mrf.mxu0  ;;  %v4592_v31 = vpop.f32.mrf.mxu1 }
 0x510   :  { %v4800_v37 = vmax.f32 %v4798_v50, %v4799_v16  ;;  %v4803_v19 = vmax.f32 %v4573_v40, %v4578_v5  ;;  %v4198_v45 = vadd.f32 %v8724_v32, %v4197_v1 }
 0x511   :  { %v4199_v12 = vpop.f32.mrf.mxu0  ;;  %v4594_v18 = vpop.f32.mrf.mxu1 }
 0x512   :  { %v4801_v43 = vrot.slane %v4800_v37, 1  ;;  %v4583_v52 = vadd.f32 %v4582_v17, %v4198_v45 }
 0x513   :  { %v4202_v36 = vpop.f32.mrf.mxu0  ;;  %v4597_v0 = vpop.f32.mrf.mxu1 }
 0x514   :  { %v4802_v48 = vmax.f32 %v4800_v37, %v4801_v43  ;;  %v4804_v35 = vmax.f32 %v4803_v19, %v4583_v52  ;;  %v4203_v39 = vadd.f32 %v8724_v32, %v4202_v36  ;;  %v8891_v36 = vld [vmem:[%s8948_s8] ss:$0 sm:$0xff]  ;;  %s5282_s8 = smov [#allocation7]  }
 0x515   :  { %v4204_v60 = vpop.f32.mrf.mxu0  ;;  %v4599_v51 = vpop.f32.mrf.mxu1  ;;  %s4921_s12 = sshll.u32 %s5282_s8, 4  ;;  %s4922_s12 = int_to_ptr.vmem [resolvable:$true] %s4921_s12 }
 0x516   :  { %v4588_v15 = vadd.f32 %v4587_v41, %v4203_v39  ;;  %v4904_v46 = vsel %vm4903_vm8, %v4802_v48, %v4902_v3  ;;  %s5249_s4 = scalar_lea.vmem %s4922_s12, 256  ;;  %p5254_p11 = scmp.lt.s32.totalorder %s4922_s12, %s4922_s12 }
 0x517   :  { %v4207_v58 = vpop.f32.mrf.mxu0  ;;  %v4602_v27 = vpop.f32.mrf.mxu1  ;;  %4914 = vst [vmem:[#allocation7] sm:$0xff] %v4904_v46  ;;  %p5250_p10 = scmp.ne.s32.totalorder %s4922_s12, %s5249_s4  ;;  %p5255_p12 = scmp.lt.s32.totalorder %s5249_s4, %s5249_s4 }
 0x518   :  { %v4805_v56 = vmax.f32 %v4804_v35, %v4588_v15  ;;  %v4208_v26 = vadd.f32 %v8724_v32, %v4207_v58 }
 0x519   :  { %v4209_v22 = vpop.f32.mrf.mxu0  ;;  %v4604_v28 = vpop.f32.mrf.mxu1  ;;  %p5256_p13 = por %p5255_p12, %p5254_p11 }
 0x51a   :  { %v4593_v42 = vadd.f32 %v4592_v31, %v4208_v26  ;;  %v4806_v30 = vrot.slane %v4805_v56, 4 }
 0x51b   :  { %v4212_v6 = vpop.f32.mrf.mxu0  ;;  %v4607_v49 = vpop.f32.mrf.mxu1  ;;  %p5257_p0 = pnand %p5256_p13, %p5250_p10 }
 0x51c   :  { %v4213_v63 = vadd.f32 %v8724_v32, %v4212_v6  ;;  %v4807_v54 = vmax.f32 %v4805_v56, %v4806_v30 }
 0x51d   :  { %v4214_v9 = vpop.f32.mrf.mxu0  ;;  %v4609_v10 = vpop.f32.mrf.mxu1 }
 0x51e   :  { %v4598_v55 = vadd.f32 %v4597_v0, %v4213_v63  ;;  %v4808_v29 = vrot.slane %v4807_v54, 2 }
 0x51f   :  { %v4217_v21 = vpop.f32.mrf.mxu0  ;;  %v4612_v14 = vpop.f32.mrf.mxu1 }
 0x520   :  { %v4812_v61 = vmax.f32 %v4593_v42, %v4598_v55  ;;  %v4218_v25 = vadd.f32 %v8724_v32, %v4217_v21  ;;  %v4809_v1 = vmax.f32 %v4807_v54, %v4808_v29 }
 0x521   :  { %v4219_v33 = vpop.f32.mrf.mxu0  ;;  %v4614_v17 = vpop.f32.mrf.mxu1 }
 0x522   :  { %v4603_v38 = vadd.f32 %v4602_v27, %v4218_v25  ;;  %v4810_v43 = vrot.slane %v4809_v1, 1 }
 0x523   :  { %v4222_v59 = vpop.f32.mrf.mxu0  ;;  %v4617_v44 = vpop.f32.mrf.mxu1 }
 0x524   :  { %v4813_v47 = vmax.f32 %v4812_v61, %v4603_v38  ;;  %v4223_v20 = vadd.f32 %v8724_v32, %v4222_v59  ;;  %v4811_v51 = vmax.f32 %v4809_v1, %v4810_v43 }
 0x525   :  { %v4224_v13 = vpop.f32.mrf.mxu0  ;;  %v4619_v40 = vpop.f32.mrf.mxu1 }
 0x526   :  { %v4608_v2 = vadd.f32 %v4607_v49, %v4223_v20 }
 0x527   :  { %v4227_v34 = vpop.f32.mrf.mxu0  ;;  %v4622_v41 = vpop.f32.mrf.mxu1 }
 0x528   :  { %v4814_v50 = vmax.f32 %v4813_v47, %v4608_v2  ;;  %v4228_v57 = vadd.f32 %v8724_v32, %v4227_v34 }
 0x529   :  { %v4229_v8 = vpop.f32.mrf.mxu0  ;;  %v4624_v53 = vpop.f32.mrf.mxu1 }
 0x52a   :  { %v4815_v7 = vrot.slane %v4814_v50, 4  ;;  %v4613_v16 = vadd.f32 %v4612_v14, %v4228_v57 }
 0x52b   :  { %v4232_v5 = vpop.f32.mrf.mxu0  ;;  %v4627_v11 = vpop.f32.mrf.mxu1 }
 0x52c   :  { %v4816_v31 = vmax.f32 %v4814_v50, %v4815_v7  ;;  %v4233_v4 = vadd.f32 %v8724_v32, %v4232_v5 }
 0x52d   :  { %v4234_v37 = vpop.f32.mrf.mxu0  ;;  %v4629_v19 = vpop.f32.mrf.mxu1 }
 0x52e   :  { %v4817_v45 = vrot.slane %v4816_v31, 2  ;;  %v4618_v62 = vadd.f32 %v4617_v44, %v4233_v4 }
 0x52f   :  { %v4237_v12 = vpop.f32.mrf.mxu0  ;;  %v4632_v18 = vpop.f32.mrf.mxu1 }
 0x530   :  { %v4818_v52 = vmax.f32 %v4816_v31, %v4817_v45  ;;  %v4821_v24 = vmax.f32 %v4613_v16, %v4618_v62  ;;  %v4238_v0 = vadd.f32 %v8891_v36, %v4237_v12 }
 0x531   :  { %v4239_v48 = vpop.f32.mrf.mxu0  ;;  %v4634_v35 = vpop.f32.mrf.mxu1 }
 0x532   :  { %v4819_v39 = vrot.slane %v4818_v52, 1  ;;  %v4623_v32 = vadd.f32 %v4622_v41, %v4238_v0 }
 0x533   :  { %v4242_v23 = vpop.f32.mrf.mxu0  ;;  %v4637_v60 = vpop.f32.mrf.mxu1 }
 0x534   :  { %v4820_v3 = vmax.f32 %v4818_v52, %v4819_v39  ;;  %v4822_v15 = vmax.f32 %v4821_v24, %v4623_v32  ;;  %v4243_v46 = vadd.f32 %v8891_v36, %v4242_v23 }
 0x535   :  { %v4244_v58 = vpop.f32.mrf.mxu0  ;;  %v4639_v27 = vpop.f32.mrf.mxu1 }
 0x536   :  { %v4905_v56 = vsel %vm4891_vm2, %v4820_v3, %v4811_v51  ;;  %v4628_v26 = vadd.f32 %v4627_v11, %v4243_v46 }
 0x537   :  { %v4247_v22 = vpop.f32.mrf.mxu0  ;;  %v4642_v28 = vpop.f32.mrf.mxu1 }
 0x538   :  { %v4823_v42 = vmax.f32 %v4822_v15, %v4628_v26  ;;  %v4248_v6 = vadd.f32 %v8891_v36, %v4247_v22 }
 0x539   :  { %v4249_v49 = vpop.f32.mrf.mxu0  ;;  %v4644_v63 = vpop.f32.mrf.mxu1 }
 0x53a   :  { %v4824_v9 = vrot.slane %v4823_v42, 4  ;;  %v4633_v10 = vadd.f32 %v4632_v18, %v4248_v6 }
 0x53b   :  { %v4252_v55 = vpop.f32.mrf.mxu0  ;;  %v4647_v21 = vpop.f32.mrf.mxu1 }
 0x53c   :  { %v4825_v14 = vmax.f32 %v4823_v42, %v4824_v9  ;;  %v4253_v30 = vadd.f32 %v8891_v36, %v4252_v55 }
 0x53d   :  { %v4254_v61 = vpop.f32.mrf.mxu0  ;;  %v4649_v25 = vpop.f32.mrf.mxu1 }
 0x53e   :  { %v4826_v33 = vrot.slane %v4825_v14, 2  ;;  %v4638_v17 = vadd.f32 %v4637_v60, %v4253_v30 }
 0x53f   :  { %v4257_v38 = vpop.f32.mrf.mxu0  ;;  %v8898_v59 = vpop.f32.mrf.mxu1 }
 0x540   :  { %v4827_v44 = vmax.f32 %v4825_v14, %v4826_v33  ;;  %v4830_v54 = vmax.f32 %v4633_v10, %v4638_v17  ;;  %v4258_v47 = vadd.f32 %v8891_v36, %v4257_v38 }
 0x541   :  { %v4259_v20 = vpop.f32.mrf.mxu0  ;;  %v4654_v13 = vpop.f32.mrf.mxu1 }
 0x542   :  { %v4828_v40 = vrot.slane %v4827_v44, 1  ;;  %v4643_v2 = vadd.f32 %v4642_v28, %v4258_v47 }
 0x543   :  { %v4262_v34 = vpop.f32.mrf.mxu0  ;;  %v8901_v41 = vpop.f32.mrf.mxu1 }
 0x544   :  { %v4829_v29 = vmax.f32 %v4827_v44, %v4828_v40  ;;  %v4831_v50 = vmax.f32 %v4830_v54, %v4643_v2  ;;  %v4263_v57 = vadd.f32 %v8891_v36, %v4262_v34 }
 0x545   :  { %v4264_v8 = vpop.f32.mrf.mxu0  ;;  %v4659_v53 = vpop.f32.mrf.mxu1 }
 0x546   :  { %v4906_v7 = vsel %vm4893_vm3, %v4829_v29, %v4905_v56  ;;  %v4648_v16 = vadd.f32 %v4647_v21, %v4263_v57 }
 0x547   :  { %v4267_v5 = vpop.f32.mrf.mxu0  ;;  %v8905_v11 = vpop.f32.mrf.mxu1 }
 0x548   :  { %v4832_v1 = vmax.f32 %v4831_v50, %v4648_v16  ;;  %v4268_v47 = vadd.f32 %v8891_v36, %v4267_v5 }
 0x549   :  { %v4269_v31 = vpop.f32.mrf.mxu0  ;;  %v4664_v4 = vpop.f32.mrf.mxu1 }
 0x54a   :  { %v4833_v37 = vrot.slane %v4832_v1, 4  ;;  %v4653_v31 = vadd.f32 %v8898_v59, %v4268_v47 }
 0x54b   :  { %v4272_v19 = vpop.f32.mrf.mxu0  ;;  %v8907_v45 = vpop.f32.mrf.mxu1 }
 0x54c   :  { %v4834_v62 = vmax.f32 %v4832_v1, %v4833_v37  ;;  %v4273_v17 = vadd.f32 %v8891_v36, %v4272_v19 }
 0x54d   :  { %v4274_v12 = vpop.f32.mrf.mxu0  ;;  %v4669_v18 = vpop.f32.mrf.mxu1 }
 0x54e   :  { %v4835_v43 = vrot.slane %v4834_v62, 2  ;;  %v4658_v50 = vadd.f32 %v8901_v41, %v4273_v17 }
 0x54f   :  { %v4277_v52 = vpop.f32.mrf.mxu0  ;;  %v4672_v24 = vpop.f32.mrf.mxu1 }
 0x550   :  { %v4836_v0 = vmax.f32 %v4834_v62, %v4835_v43  ;;  %v4278_v20 = vadd.f32 %v8891_v36, %v4277_v52  ;;  %v4839_v18 = vmax.f32 %v4653_v31, %v4658_v50 }
 0x551   :  { %v4279_v48 = vpop.f32.mrf.mxu0  ;;  %v4674_v35 = vpop.f32.mrf.mxu1 }
 0x552   :  { %v4837_v39 = vrot.slane %v4836_v0, 1  ;;  %v4663_v4 = vadd.f32 %v8905_v11, %v4278_v20 }
 0x553   :  { %v4282_v32 = vpop.f32.mrf.mxu0  ;;  %v4677_v23 = vpop.f32.mrf.mxu1 }
 0x554   :  { %v4838_v60 = vmax.f32 %v4836_v0, %v4837_v39  ;;  %v4283_v57 = vadd.f32 %v8891_v36, %v4282_v32 }
 0x555   :  { %v4284_v51 = vpop.f32.mrf.mxu0  ;;  %v4679_v3 = vpop.f32.mrf.mxu1 }
 0x556   :  { %v8910_v15 = vsel %vm4895_vm4, %v4838_v60, %v4906_v7  ;;  %v4668_v43 = vadd.f32 %v8907_v45, %v4283_v57  ;;  %v4840_v60 = vmax.f32 %v4839_v18, %v4663_v4 }
 0x557   :  { %v4287_v46 = vpop.f32.mrf.mxu0  ;;  %v4682_v58 = vpop.f32.mrf.mxu1 }
 0x558   :  { %v4288_v34 = vadd.f32 %v8891_v36, %v4287_v46 }
 0x559   :  { %v4289_v27 = vpop.f32.mrf.mxu0  ;;  %v4684_v56 = vpop.f32.mrf.mxu1 }
 0x55a   :  { %v4673_v12 = vadd.f32 %v4672_v24, %v4288_v34  ;;  %v4841_v27 = vmax.f32 %v4840_v60, %v4668_v43 }
 0x55b   :  { %v4292_v26 = vpop.f32.mrf.mxu0  ;;  %v4687_v22 = vpop.f32.mrf.mxu1 }
 0x55c   :  { %v4293_v54 = vadd.f32 %v8891_v36, %v4292_v26 }
 0x55d   :  { %v4294_v28 = vpop.f32.mrf.mxu0  ;;  %v4689_v42 = vpop.f32.mrf.mxu1 }
 0x55e   :  { %v4678_v16 = vadd.f32 %v4677_v23, %v4293_v54 }
 0x55f   :  { %v4297_v6 = vpop.f32.mrf.mxu0  ;;  %v4692_v49 = vpop.f32.mrf.mxu1 }
 0x560   :  { %v4298_v29 = vadd.f32 %v8891_v36, %v4297_v6  ;;  %v4848_v39 = vmax.f32 %v4673_v12, %v4678_v16  ;;  %v4842_v6 = vrot.slane %v4841_v27, 4 }
 0x561   :  { %v4299_v63 = vpop.f32.mrf.mxu0  ;;  %v4694_v9 = vpop.f32.mrf.mxu1 }
 0x562   :  { %v4683_v41 = vadd.f32 %v4682_v58, %v4298_v29 }
 0x563   :  { %v4302_v10 = vpop.f32.mrf.mxu0  ;;  %v4697_v55 = vpop.f32.mrf.mxu1 }
 0x564   :  { %v4303_v5 = vadd.f32 %v8891_v36, %v4302_v10  ;;  %v4849_v3 = vmax.f32 %v4848_v39, %v4683_v41 }
 0x565   :  { %v4304_v21 = vpop.f32.mrf.mxu0  ;;  %v4699_v14 = vpop.f32.mrf.mxu1 }
 0x566   :  { %v4688_v32 = vadd.f32 %v4687_v22, %v4303_v5 }
 0x567   :  { %v4307_v30 = vpop.f32.mrf.mxu0  ;;  %v4702_v61 = vpop.f32.mrf.mxu1 }
 0x568   :  { %v4308_v8 = vadd.f32 %v8891_v36, %v4307_v30  ;;  %v4850_v26 = vmax.f32 %v4849_v3, %v4688_v32  ;;  %v4843_v30 = vmax.f32 %v4841_v27, %v4842_v6 }
 0x569   :  { %v4309_v25 = vpop.f32.mrf.mxu0  ;;  %v4704_v33 = vpop.f32.mrf.mxu1 }
 0x56a   :  { %v4693_v52 = vadd.f32 %v4692_v49, %v4308_v8  ;;  %v4851_v22 = vrot.slane %v4850_v26, 4  ;;  %v4844_v20 = vrot.slane %v4843_v30, 2 }
 0x56b   :  { %v4312_v38 = vpop.f32.mrf.mxu0  ;;  %v4707_v44 = vpop.f32.mrf.mxu1 }
 0x56c   :  { %v4313_v13 = vadd.f32 %v8891_v36, %v4312_v38  ;;  %v4852_v25 = vmax.f32 %v4850_v26, %v4851_v22 }
 0x56d   :  { %v4314_v40 = vpop.f32.mrf.mxu0  ;;  %v4709_v2 = vpop.f32.mrf.mxu1 }
 0x56e   :  { %v4698_v37 = vadd.f32 %v4697_v55, %v4313_v13  ;;  %v4853_v40 = vrot.slane %v4852_v25, 2 }
 0x56f   :  { %v4317_v53 = vpop.f32.mrf.mxu0  ;;  %v4712_v7 = vpop.f32.mrf.mxu1 }
 0x570   :  { %v4318_v1 = vadd.f32 %v8891_v36, %v4317_v53  ;;  %v4857_v59 = vmax.f32 %v4693_v52, %v4698_v37  ;;  %v4845_v53 = vmax.f32 %v4843_v30, %v4844_v20  ;;  %v4854_v16 = vmax.f32 %v4852_v25, %v4853_v40 }
 0x571   :  { %v4319_v19 = vpop.f32.mrf.mxu0  ;;  %v4714_v62 = vpop.f32.mrf.mxu1 }
 0x572   :  { %v4703_v0 = vadd.f32 %v4702_v61, %v4318_v1  ;;  %v4846_v4 = vrot.slane %v4845_v53, 1  ;;  %v4855_v37 = vrot.slane %v4854_v16, 1 }
 0x573   :  { %v4322_v48 = vpop.f32.mrf.mxu0  ;;  %v4717_v35 = vpop.f32.mrf.mxu1 }
 0x574   :  { %v4323_v23 = vadd.f32 %v8891_v36, %v4322_v48  ;;  %v4858_v24 = vmax.f32 %v4857_v59, %v4703_v0  ;;  %v4847_v12 = vmax.f32 %v4845_v53, %v4846_v4  ;;  %v4856_v41 = vmax.f32 %v4854_v16, %v4855_v37 }
 0x575   :  { %v4324_v51 = vpop.f32.mrf.mxu0  ;;  %v4719_v11 = vpop.f32.mrf.mxu1 }
 0x576   :  { %v4708_v46 = vadd.f32 %v4707_v44, %v4323_v23 }
 0x577   :  { %v4327_v58 = vpop.f32.mrf.mxu0  ;;  %v4722_v56 = vpop.f32.mrf.mxu1 }
 0x578   :  { %v4859_v45 = vmax.f32 %v4858_v24, %v4708_v46  ;;  %v4328_v14 = vadd.f32 %v8891_v36, %v4327_v58 }
 0x579   :  { %v4329_v28 = vpop.f32.mrf.mxu0  ;;  %v4724_v42 = vpop.f32.mrf.mxu1 }
 0x57a   :  { %v4860_v10 = vrot.slane %v4859_v45, 4  ;;  %v4713_v54 = vadd.f32 %v4712_v7, %v4328_v14 }
 0x57b   :  { %v4332_v49 = vpop.f32.mrf.mxu0  ;;  %v4727_v63 = vpop.f32.mrf.mxu1 }
 0x57c   :  { %v4333_v9 = vadd.f32 %v8891_v36, %v4332_v49  ;;  %v4861_v38 = vmax.f32 %v4859_v45, %v4860_v10 }
 0x57d   :  { %v4334_v55 = vpop.f32.mrf.mxu0  ;;  %v4729_v21 = vpop.f32.mrf.mxu1 }
 0x57e   :  { %v4718_v33 = vadd.f32 %v4717_v35, %v4333_v9  ;;  %v4862_v29 = vrot.slane %v4861_v38, 2 }
 0x57f   :  { %v4337_v61 = vpop.f32.mrf.mxu0 }
 0x580   :  { %v4338_v17 = vadd.f32 %v8891_v36, %v4337_v61  ;;  %v4866_v2 = vmax.f32 %v4713_v54, %v4718_v33  ;;  %v4863_v1 = vmax.f32 %v4861_v38, %v4862_v29 }
 0x581   :  { %v4339_v44 = vpop.f32.mrf.mxu0 }
 0x582   :  { %v4723_v47 = vadd.f32 %v4722_v56, %v4338_v17  ;;  %v4864_v7 = vrot.slane %v4863_v1, 1 }
 0x583   :  { %v4342_v13 = vpop.f32.mrf.mxu0 }
 0x584   :  { %v4343_v34 = vadd.f32 %v8891_v36, %v4342_v13  ;;  %v4867_v57 = vmax.f32 %v4866_v2, %v4723_v47  ;;  %v4865_v43 = vmax.f32 %v4863_v1, %v4864_v7  ;;  %v4908_v36 = vsel %vm4897_vm5, %v4847_v12, %v8910_v15 }
 0x585   :  { %v4344_v50 = vpop.f32.mrf.mxu0  ;;  %v4909_v48 = vsel %vm4899_vm6, %v4856_v41, %v4908_v36 }
 0x586   :  { %v4728_v8 = vadd.f32 %v4727_v63, %v4343_v34  ;;  %v4910_v35 = vsel %vm4901_vm7, %v4865_v43, %v4909_v48 }
 0x588   :  { %v4868_v5 = vmax.f32 %v4867_v57, %v4728_v8 }
 0x58a   :  { %v4869_v31 = vrot.slane %v4868_v5, 4 }
 0x58c   :  { %v4870_v19 = vmax.f32 %v4868_v5, %v4869_v31 }
 0x58e   :  { %v4871_v62 = vrot.slane %v4870_v19, 2 }
 0x590   :  { %v4872_v18 = vmax.f32 %v4870_v19, %v4871_v62 }
 0x592   :  { %v4873_v52 = vrot.slane %v4872_v18, 1 }
 0x594   :  { %v4874_v0 = vmax.f32 %v4872_v18, %v4873_v52 }
 0x596   :  { %v4911_v39 = vsel %vm4903_vm8, %v4874_v0, %v4910_v35 }
 0x597   :  { %4915 = vst [vmem:[#allocation7 + $0x8] sm:$0xff] %v4911_v39 }
 0x598   :  { %5260 = shalt.err (!%p5257_p0)
}
 0x599   :  { %s5283_s13 = smov 128   ;;  %s5284_s14 = smov 8  }
 0x59a   :  { %4927 = dma.vmem_to_hbm [thread:$0]  %s4922_s12, 256, %s8949_s9, [#allocation4], %s5283_s13, %s5283_s13, %s5284_s14  }
 0x59b   :  { %5273 = dma.done.wait [#allocation4], 256  }
 0x59c   :  { %5274 = vsyncadd [#allocation4], 4294967040 }
 0x59d   :  { %4931 = vsyncpa [#allocation3], 1 }
 0x59e   :  { %4932 = vsyncpa [#allocation6], 1 }
 0x59f   :  { %4933 = vsyncpa [#allocation4], 1 }

</bundles_post_ra>
